<compile_context>
chip_gen: v7x
topology: tpu7x:2x2x1
jax: 0.10.0
libtpu: 0.0.40
codegen_flags: <defaults>
</compile_context>

<pallas_src>
import jax
import jax.numpy as jnp
from jax.experimental import pallas as pl
from jax.experimental.pallas import tpu as pltpu

LEAKY_SLOPE = 0.1
COMPRESS_C = 16
_VMEM_LIMIT_BYTES = 48 * 1024 * 1024   # fits v5e/v6e (128 MiB) and v7x (64 MiB)


def _nn_upsample_flat(x, r):
    """Nearest-neighbour upsample a (rows, width, C) tile by `r` in both spatial
    dims and flatten to row-major output pixels -> (rows*r * width*r, C).

    The width repeat is a sublane-dim repeat, the height repeat a leading-dim
    repeat; everything stays in VMEM/vregs (no HBM traffic).
    """
    s, w, c = x.shape
    x = jnp.repeat(x, r, axis=1)        # (s, w*r, c)   width
    x = jnp.repeat(x, r, axis=0)        # (s*r, w*r, c) height (leading dim)
    return x.reshape(s * r * w * r, c)  # row-major output pixels


def _asff_kernel(l0_ref, l1_ref, l2_ref, wc_ref, bc_ref, wl_ref, bl_ref, out_ref):
    # l0_ref: (TH/4, W2/4, C)  level-0 source rows for this output strip
    # l1_ref: (TH/2, W2/2, C)  level-1 source rows
    # l2_ref: (TH*W2, C)       level-2 pixels (already at output resolution)
    # wc_ref: (3, C, 16)       1x1 compress conv weights (BN scale folded in)
    # bc_ref: (3, 1, 16)       folded BN biases
    # wl_ref: (3, 16, 3)       weight_levels conv, split per concat chunk
    # bl_ref: (1, 3)           weight_levels bias
    # out_ref: (TH*W2, C)
    x2 = l2_ref[...]
    x0 = _nn_upsample_flat(l0_ref[...], 4)   # (TH*W2, C) upsampled in VMEM
    x1 = _nn_upsample_flat(l1_ref[...], 2)   # (TH*W2, C)

    def compress(x, i):
        # 1x1 conv (BN scale pre-folded into the weight) + bias + LeakyReLU(0.1)
        y = jnp.dot(x, wc_ref[i], preferred_element_type=jnp.float32)
        y = y + bc_ref[i]
        return jnp.where(y > 0, y, LEAKY_SLOPE * y)

    f0 = compress(x0, 0)
    f1 = compress(x1, 1)
    f2 = compress(x2, 2)

    # weight_levels: 1x1 conv over the channel-concat [f0|f1|f2] -> 3 logits per
    # pixel, expressed as the sum of three small matmuls (identical math).
    z = (jnp.dot(f0, wl_ref[0], preferred_element_type=jnp.float32)
         + jnp.dot(f1, wl_ref[1], preferred_element_type=jnp.float32)
         + jnp.dot(f2, wl_ref[2], preferred_element_type=jnp.float32)
         + bl_ref[...])                       # (TH*W2, 3)

    # softmax over the 3 fusion weights, kept as per-column VPU/EUP ops
    z0, z1, z2 = z[:, 0:1], z[:, 1:2], z[:, 2:3]
    m = jnp.maximum(jnp.maximum(z0, z1), z2)
    e0 = jnp.exp(z0 - m)
    e1 = jnp.exp(z1 - m)
    e2 = jnp.exp(z2 - m)
    inv = pl.reciprocal(e0 + e1 + e2, approx=True)

    out = x0 * (e0 * inv) + x1 * (e1 * inv) + x2 * (e2 * inv)
    out_ref[...] = out.astype(out_ref.dtype)


def _pick_row_tile(n, h2, w2, target_pixels=2048):
    """Number of output rows handled per grid step.

    Must divide H2 and be a multiple of 4 (so the level-0/1 source strips are
    whole rows).  Prefer the largest tile under ~target_pixels output pixels
    (amortises the ~0.35us per-step pipeline overhead while staying well inside
    the raised scoped-VMEM limit) while keeping >= 2 grid steps so
    dimension_semantics=("parallel",) can shard across v7x's two TensorCores.
    """
    cands = [t for t in range(4, h2 + 1, 4) if h2 % t == 0]
    if not cands:
        cands = [h2]
    good = [t for t in cands if t * w2 <= target_pixels and (n * h2) // t >= 2]
    if not good:
        good = [t for t in cands if t * w2 <= target_pixels]
    return max(good) if good else cands[0]


def asff_level2_nhwc(x_level_0, x_level_1, x_level_2, params):
    """ASFF level-2 forward on channels-last (NHWC) feature maps.

    x_level_0: (N, H, W, 256)    coarsest map (upsampled x4 in-kernel)
    x_level_1: (N, 2H, 2W, 256)  (upsampled x2 in-kernel)
    x_level_2: (N, 4H, 4W, 256)  finest map / output resolution
    params:    (wc, bc, wl, bl) packed, BN-folded parameters.
    Returns:   (N, 4H, 4W, 256)
    """
    wc, bc, wl, bl = params
    n, h0, w0, c = x_level_0.shape
    n1, h1, w1, c1 = x_level_1.shape
    n2, h2, w2, c2 = x_level_2.shape
    assert (n1, n2) == (n, n) and (c1, c2) == (c, c)
    assert (h1, w1) == (2 * h0, 2 * w0) and (h2, w2) == (4 * h0, 4 * w0)
    assert wc.shape[1] == c
    cc = wc.shape[2]

    th = _pick_row_tile(n, h2, w2)        # output rows per grid step
    s0, s1 = th // 4, th // 2
    nb = (n * h2) // th                   # grid length (exact by construction)

    # Free, layout-preserving reshapes (no transposes, no data movement).
    a0 = x_level_0.reshape(n * h0, w0, c)
    a1 = x_level_1.reshape(n * h1, w1, c)
    a2 = x_level_2.reshape(n * h2 * w2, c)

    p_total = n * h2 * w2
    itemsize = x_level_2.dtype.itemsize
    cost = pl.CostEstimate(
        flops=int(2 * p_total * c * 3 * cc + 2 * p_total * (3 * cc * 3 + 3 * c)),
        transcendentals=int(3 * p_total),
        bytes_accessed=int(itemsize * c * (2 * p_total + p_total // 4 + p_total // 16)),
    )

    out_flat = pl.pallas_call(
        _asff_kernel,
        out_shape=jax.ShapeDtypeStruct((p_total, c), x_level_2.dtype),
        grid_spec=pltpu.PrefetchScalarGridSpec(
            num_scalar_prefetch=0,
            grid=(nb,),
            in_specs=[
                pl.BlockSpec((s0, w0, c), lambda k: (k, 0, 0)),   # level-0 row strip
                pl.BlockSpec((s1, w1, c), lambda k: (k, 0, 0)),   # level-1 row strip
                pl.BlockSpec((th * w2, c), lambda k: (k, 0)),     # level-2 pixels
                pl.BlockSpec(wc.shape, lambda k: (0, 0, 0)),
                pl.BlockSpec(bc.shape, lambda k: (0, 0, 0)),
                pl.BlockSpec(wl.shape, lambda k: (0, 0, 0)),
                pl.BlockSpec(bl.shape, lambda k: (0, 0)),
            ],
            out_specs=pl.BlockSpec((th * w2, c), lambda k: (k, 0)),
        ),
        compiler_params=pltpu.CompilerParams(
            dimension_semantics=("parallel",),
            vmem_limit_bytes=_VMEM_LIMIT_BYTES),
        cost_estimate=cost,
    )(a0, a1, a2, wc, bc, wl, bl)

    return out_flat.reshape(n, h2, w2, c)


def asff_level2(x_level_0, x_level_1, x_level_2, params):
    """NCHW-compatibility wrapper matching the PyTorch module's convention.

    The two layout transposes here each cost a full HBM read+write; callers
    that keep activations channels-last should call `asff_level2_nhwc`.
    """
    to_nhwc = lambda x: jnp.transpose(x, (0, 2, 3, 1))
    out = asff_level2_nhwc(to_nhwc(x_level_0), to_nhwc(x_level_1),
                           to_nhwc(x_level_2), params)
    return jnp.transpose(out, (0, 3, 1, 2))


def asff_level2_ref(x_level_0, x_level_1, x_level_2, params):
    """Pure-JAX NCHW reference (same math, no Pallas) for correctness checking."""
    wc, bc, wl, bl = params
    up = lambda x, r: jnp.repeat(jnp.repeat(x, r, axis=2), r, axis=3)
    l0, l1, l2 = up(x_level_0, 4), up(x_level_1, 2), x_level_2

    def compress(x, i):
        y = jnp.einsum('nchw,cd->ndhw', x, wc[i]) + bc[i, 0][None, :, None, None]
        return jnp.where(y > 0, y, LEAKY_SLOPE * y)

    f0, f1, f2 = compress(l0, 0), compress(l1, 1), compress(l2, 2)
    z = (jnp.einsum('ndhw,de->nehw', f0, wl[0])
         + jnp.einsum('ndhw,de->nehw', f1, wl[1])
         + jnp.einsum('ndhw,de->nehw', f2, wl[2])
         + bl[0][None, :, None, None])
    w = jax.nn.softmax(z, axis=1)
    return l0 * w[:, 0:1] + l1 * w[:, 1:2] + l2 * w[:, 2:3]


if __name__ == "__main__":
    key = jax.random.PRNGKey(0)
    keys = jax.random.split(key, 16)

    C, CC, N = 256, COMPRESS_C, 2      # channels / compress_c fixed by ASFF.__init__
    EPS = 1e-5

    def conv_bn_folded(kw, kbn, in_ch, out_ch):
        # Conv2d(in_ch, out_ch, 1, bias=False) as a (Cin, Cout) matmul matrix
        # with eval-mode BatchNorm folded in: W' = W * scale, b' = beta - mean*scale.
        W = 0.05 * jax.random.normal(kw, (in_ch, out_ch), jnp.float32)
        kg, kb, km, kv = jax.random.split(kbn, 4)
        gamma = 1.0 + 0.1 * jax.random.normal(kg, (out_ch,), jnp.float32)
        beta = 0.1 * jax.random.normal(kb, (out_ch,), jnp.float32)
        mean = 0.1 * jax.random.normal(km, (out_ch,), jnp.float32)
        var = 1.0 + 0.1 * jnp.abs(jax.random.normal(kv, (out_ch,), jnp.float32))
        scale = gamma / jnp.sqrt(var + EPS)
        return W * scale[None, :], beta - mean * scale

    w0f, b0 = conv_bn_folded(keys[0], keys[1], C, CC)   # weight_level_0
    w1f, b1 = conv_bn_folded(keys[2], keys[3], C, CC)   # weight_level_1
    w2f, b2 = conv_bn_folded(keys[4], keys[5], C, CC)   # weight_level_2
    wc = jnp.stack([w0f, w1f, w2f])                     # (3, 256, 16)
    bc = jnp.stack([b0, b1, b2]).reshape(3, 1, CC)      # (3, 1, 16)

    # weight_levels: Conv2d(3*compress_c, 3, 1) with bias, split per concat chunk.
    Wl = 0.05 * jax.random.normal(keys[6], (3 * CC, 3), jnp.float32)
    bl = (0.1 * jax.random.normal(keys[7], (3,), jnp.float32)).reshape(1, 3)
    wl = jnp.stack([Wl[0:CC], Wl[CC:2 * CC], Wl[2 * CC:]])   # (3, 16, 3)

    params = (wc, bc, wl, bl)

    # Inputs in the PyTorch NCHW convention (level 2 is the finest map).
    x_level_0 = jax.random.normal(keys[8], (N, C, 4, 4), jnp.float32)
    x_level_1 = jax.random.normal(keys[9], (N, C, 8, 8), jnp.float32)
    x_level_2 = jax.random.normal(keys[10], (N, C, 16, 16), jnp.float32)

    fwd = jax.jit(asff_level2)
    out = jax.block_until_ready(fwd(x_level_0, x_level_1, x_level_2, params))
    ref = asff_level2_ref(x_level_0, x_level_1, x_level_2, params)

    assert out.shape == (N, C, 16, 16), out.shape
    max_err = float(jnp.max(jnp.abs(out - ref)))
    if max_err > 1e-2:
        raise AssertionError(f"Pallas output mismatch vs reference, max abs err = {max_err}")

    print("KERNEL_OK")
</pallas_src>

<mosaic_0001>
module attributes {stable_mosaic.version = 11 : i64} {
  func.func @_asff_kernel(%arg0: i32, %arg1: memref<4x4x256xf32, #tpu.memory_space<vmem>>, %arg2: memref<8x8x256xf32, #tpu.memory_space<vmem>>, %arg3: memref<256x256xf32, #tpu.memory_space<vmem>>, %arg4: memref<3x256x16xf32, #tpu.memory_space<vmem>>, %arg5: memref<3x1x16xf32, #tpu.memory_space<vmem>>, %arg6: memref<3x16x3xf32, #tpu.memory_space<vmem>>, %arg7: memref<1x3xf32, #tpu.memory_space<vmem>>, %arg8: memref<256x256xf32, #tpu.memory_space<vmem>>) attributes {dimension_semantics = [#tpu.dimension_semantics<parallel>], iteration_bounds = array<i64: 2>, scalar_prefetch = 0 : i64, scratch_operands = 0 : i64, tpu.core_type = #tpu.core_type<tc>, window_params = [{transform_indices = @transform_0, window_bounds = array<i64: 4, 4, 256>}, {transform_indices = @transform_1, window_bounds = array<i64: 8, 8, 256>}, {transform_indices = @transform_2, window_bounds = array<i64: 256, 256>}, {pipeline_mode = #tpu.pipeline_mode<synchronous>, transform_indices = @transform_3, window_bounds = array<i64: 3, 256, 16>}, {pipeline_mode = #tpu.pipeline_mode<synchronous>, transform_indices = @transform_4, window_bounds = array<i64: 3, 1, 16>}, {pipeline_mode = #tpu.pipeline_mode<synchronous>, transform_indices = @transform_5, window_bounds = array<i64: 3, 16, 3>}, {pipeline_mode = #tpu.pipeline_mode<synchronous>, transform_indices = @transform_6, window_bounds = array<i64: 1, 3>}, {transform_indices = @transform_7, window_bounds = array<i64: 256, 256>}]} {
    %c0 = arith.constant 0 : index
    %c0_0 = arith.constant 0 : index
    %0 = vector.load %arg3[%c0, %c0_0] : memref<256x256xf32, #tpu.memory_space<vmem>>, vector<256x256xf32>
    %c0_1 = arith.constant 0 : index
    %c0_2 = arith.constant 0 : index
    %c0_3 = arith.constant 0 : index
    %1 = vector.load %arg1[%c0_1, %c0_2, %c0_3] : memref<4x4x256xf32, #tpu.memory_space<vmem>>, vector<4x4x256xf32>
    %2 = vector.shape_cast %1 : vector<4x4x256xf32> to vector<4x4x1x256xf32>
    %3 = vector.broadcast %2 : vector<4x4x1x256xf32> to vector<4x4x4x256xf32>
    %4 = vector.shape_cast %3 : vector<4x4x4x256xf32> to vector<4x16x256xf32>
    %5 = vector.shape_cast %4 : vector<4x16x256xf32> to vector<4x1x16x256xf32>
    %6 = vector.broadcast %5 : vector<4x1x16x256xf32> to vector<4x4x16x256xf32>
    %7 = vector.shape_cast %6 : vector<4x4x16x256xf32> to vector<16x16x256xf32>
    %8 = vector.shape_cast %7 : vector<16x16x256xf32> to vector<256x256xf32>
    %c0_4 = arith.constant 0 : index
    %c0_5 = arith.constant 0 : index
    %c0_6 = arith.constant 0 : index
    %9 = vector.load %arg2[%c0_4, %c0_5, %c0_6] : memref<8x8x256xf32, #tpu.memory_space<vmem>>, vector<8x8x256xf32>
    %10 = vector.shape_cast %9 : vector<8x8x256xf32> to vector<8x8x1x256xf32>
    %11 = vector.broadcast %10 : vector<8x8x1x256xf32> to vector<8x8x2x256xf32>
    %12 = vector.shape_cast %11 : vector<8x8x2x256xf32> to vector<8x16x256xf32>
    %13 = vector.shape_cast %12 : vector<8x16x256xf32> to vector<8x1x16x256xf32>
    %14 = vector.broadcast %13 : vector<8x1x16x256xf32> to vector<8x2x16x256xf32>
    %15 = vector.shape_cast %14 : vector<8x2x16x256xf32> to vector<16x16x256xf32>
    %16 = vector.shape_cast %15 : vector<16x16x256xf32> to vector<256x256xf32>
    %c0_7 = arith.constant 0 : index
    %c0_8 = arith.constant 0 : index
    %c0_9 = arith.constant 0 : index
    %17 = vector.load %arg4[%c0_7, %c0_8, %c0_9] : memref<3x256x16xf32, #tpu.memory_space<vmem>>, vector<1x256x16xf32>
    %18 = vector.shape_cast %17 : vector<1x256x16xf32> to vector<256x16xf32>
    %cst = arith.constant dense<0.000000e+00> : vector<256x16xf32>
    %19 = tpu.matmul %8, %18, %cst {dimension_numbers = #tpu.dot_dimension_numbers<[1], [0], [0], [1], [0, 0, 1, 1], [], []>} : vector<256x256xf32>, vector<256x16xf32>, vector<256x16xf32> -> vector<256x16xf32>
    %c0_10 = arith.constant 0 : index
    %c0_11 = arith.constant 0 : index
    %c0_12 = arith.constant 0 : index
    %20 = vector.load %arg5[%c0_10, %c0_11, %c0_12] : memref<3x1x16xf32, #tpu.memory_space<vmem>>, vector<1x1x16xf32>
    %21 = vector.shape_cast %20 : vector<1x1x16xf32> to vector<1x16xf32>
    %22 = vector.broadcast %21 : vector<1x16xf32> to vector<256x16xf32>
    %23 = arith.addf %19, %22 : vector<256x16xf32>
    %cst_13 = arith.constant 0.000000e+00 : f32
    %24 = vector.broadcast %cst_13 : f32 to vector<256x16xf32>
    %25 = arith.cmpf ogt, %23, %24 : vector<256x16xf32>
    %cst_14 = arith.constant 1.000000e-01 : f32
    %26 = vector.broadcast %cst_14 : f32 to vector<256x16xf32>
    %27 = arith.mulf %26, %23 : vector<256x16xf32>
    %28 = arith.select %25, %23, %27 : vector<256x16xi1>, vector<256x16xf32>
    %c1 = arith.constant 1 : index
    %c0_15 = arith.constant 0 : index
    %c0_16 = arith.constant 0 : index
    %29 = vector.load %arg4[%c1, %c0_15, %c0_16] : memref<3x256x16xf32, #tpu.memory_space<vmem>>, vector<1x256x16xf32>
    %30 = vector.shape_cast %29 : vector<1x256x16xf32> to vector<256x16xf32>
    %cst_17 = arith.constant dense<0.000000e+00> : vector<256x16xf32>
    %31 = tpu.matmul %16, %30, %cst_17 {dimension_numbers = #tpu.dot_dimension_numbers<[1], [0], [0], [1], [0, 0, 1, 1], [], []>} : vector<256x256xf32>, vector<256x16xf32>, vector<256x16xf32> -> vector<256x16xf32>
    %c1_18 = arith.constant 1 : index
    %c0_19 = arith.constant 0 : index
    %c0_20 = arith.constant 0 : index
    %32 = vector.load %arg5[%c1_18, %c0_19, %c0_20] : memref<3x1x16xf32, #tpu.memory_space<vmem>>, vector<1x1x16xf32>
    %33 = vector.shape_cast %32 : vector<1x1x16xf32> to vector<1x16xf32>
    %34 = vector.broadcast %33 : vector<1x16xf32> to vector<256x16xf32>
    %35 = arith.addf %31, %34 : vector<256x16xf32>
    %cst_21 = arith.constant 0.000000e+00 : f32
    %36 = vector.broadcast %cst_21 : f32 to vector<256x16xf32>
    %37 = arith.cmpf ogt, %35, %36 : vector<256x16xf32>
    %cst_22 = arith.constant 1.000000e-01 : f32
    %38 = vector.broadcast %cst_22 : f32 to vector<256x16xf32>
    %39 = arith.mulf %38, %35 : vector<256x16xf32>
    %40 = arith.select %37, %35, %39 : vector<256x16xi1>, vector<256x16xf32>
    %c2 = arith.constant 2 : index
    %c0_23 = arith.constant 0 : index
    %c0_24 = arith.constant 0 : index
    %41 = vector.load %arg4[%c2, %c0_23, %c0_24] : memref<3x256x16xf32, #tpu.memory_space<vmem>>, vector<1x256x16xf32>
    %42 = vector.shape_cast %41 : vector<1x256x16xf32> to vector<256x16xf32>
    %cst_25 = arith.constant dense<0.000000e+00> : vector<256x16xf32>
    %43 = tpu.matmul %0, %42, %cst_25 {dimension_numbers = #tpu.dot_dimension_numbers<[1], [0], [0], [1], [0, 0, 1, 1], [], []>} : vector<256x256xf32>, vector<256x16xf32>, vector<256x16xf32> -> vector<256x16xf32>
    %c2_26 = arith.constant 2 : index
    %c0_27 = arith.constant 0 : index
    %c0_28 = arith.constant 0 : index
    %44 = vector.load %arg5[%c2_26, %c0_27, %c0_28] : memref<3x1x16xf32, #tpu.memory_space<vmem>>, vector<1x1x16xf32>
    %45 = vector.shape_cast %44 : vector<1x1x16xf32> to vector<1x16xf32>
    %46 = vector.broadcast %45 : vector<1x16xf32> to vector<256x16xf32>
    %47 = arith.addf %43, %46 : vector<256x16xf32>
    %cst_29 = arith.constant 0.000000e+00 : f32
    %48 = vector.broadcast %cst_29 : f32 to vector<256x16xf32>
    %49 = arith.cmpf ogt, %47, %48 : vector<256x16xf32>
    %cst_30 = arith.constant 1.000000e-01 : f32
    %50 = vector.broadcast %cst_30 : f32 to vector<256x16xf32>
    %51 = arith.mulf %50, %47 : vector<256x16xf32>
    %52 = arith.select %49, %47, %51 : vector<256x16xi1>, vector<256x16xf32>
    %c0_31 = arith.constant 0 : index
    %c0_32 = arith.constant 0 : index
    %c0_33 = arith.constant 0 : index
    %53 = vector.load %arg6[%c0_31, %c0_32, %c0_33] : memref<3x16x3xf32, #tpu.memory_space<vmem>>, vector<1x16x3xf32>
    %54 = vector.shape_cast %53 : vector<1x16x3xf32> to vector<16x3xf32>
    %cst_34 = arith.constant dense<0.000000e+00> : vector<256x3xf32>
    %55 = tpu.matmul %28, %54, %cst_34 {dimension_numbers = #tpu.dot_dimension_numbers<[1], [0], [0], [1], [0, 0, 1, 1], [], []>} : vector<256x16xf32>, vector<16x3xf32>, vector<256x3xf32> -> vector<256x3xf32>
    %c1_35 = arith.constant 1 : index
    %c0_36 = arith.constant 0 : index
    %c0_37 = arith.constant 0 : index
    %56 = vector.load %arg6[%c1_35, %c0_36, %c0_37] : memref<3x16x3xf32, #tpu.memory_space<vmem>>, vector<1x16x3xf32>
    %57 = vector.shape_cast %56 : vector<1x16x3xf32> to vector<16x3xf32>
    %cst_38 = arith.constant dense<0.000000e+00> : vector<256x3xf32>
    %58 = tpu.matmul %40, %57, %cst_38 {dimension_numbers = #tpu.dot_dimension_numbers<[1], [0], [0], [1], [0, 0, 1, 1], [], []>} : vector<256x16xf32>, vector<16x3xf32>, vector<256x3xf32> -> vector<256x3xf32>
    %59 = arith.addf %55, %58 : vector<256x3xf32>
    %c2_39 = arith.constant 2 : index
    %c0_40 = arith.constant 0 : index
    %c0_41 = arith.constant 0 : index
    %60 = vector.load %arg6[%c2_39, %c0_40, %c0_41] : memref<3x16x3xf32, #tpu.memory_space<vmem>>, vector<1x16x3xf32>
    %61 = vector.shape_cast %60 : vector<1x16x3xf32> to vector<16x3xf32>
    %cst_42 = arith.constant dense<0.000000e+00> : vector<256x3xf32>
    %62 = tpu.matmul %52, %61, %cst_42 {dimension_numbers = #tpu.dot_dimension_numbers<[1], [0], [0], [1], [0, 0, 1, 1], [], []>} : vector<256x16xf32>, vector<16x3xf32>, vector<256x3xf32> -> vector<256x3xf32>
    %63 = arith.addf %59, %62 : vector<256x3xf32>
    %c0_43 = arith.constant 0 : index
    %c0_44 = arith.constant 0 : index
    %64 = vector.load %arg7[%c0_43, %c0_44] : memref<1x3xf32, #tpu.memory_space<vmem>>, vector<1x3xf32>
    %65 = vector.broadcast %64 : vector<1x3xf32> to vector<256x3xf32>
    %66 = arith.addf %63, %65 : vector<256x3xf32>
    %67 = vector.extract_strided_slice %66 {offsets = [0, 0], sizes = [256, 1], strides = [1, 1]} : vector<256x3xf32> to vector<256x1xf32>
    %68 = vector.extract_strided_slice %66 {offsets = [0, 1], sizes = [256, 1], strides = [1, 1]} : vector<256x3xf32> to vector<256x1xf32>
    %69 = vector.extract_strided_slice %66 {offsets = [0, 2], sizes = [256, 1], strides = [1, 1]} : vector<256x3xf32> to vector<256x1xf32>
    %70 = arith.maximumf %67, %68 : vector<256x1xf32>
    %71 = arith.maximumf %70, %69 : vector<256x1xf32>
    %72 = arith.subf %67, %71 : vector<256x1xf32>
    %73 = math.exp %72 : vector<256x1xf32>
    %74 = arith.subf %68, %71 : vector<256x1xf32>
    %75 = math.exp %74 : vector<256x1xf32>
    %76 = arith.subf %69, %71 : vector<256x1xf32>
    %77 = math.exp %76 : vector<256x1xf32>
    %78 = arith.addf %73, %75 : vector<256x1xf32>
    %79 = arith.addf %78, %77 : vector<256x1xf32>
    %80 = tpu.reciprocal %79 {approx = true} : vector<256x1xf32> -> vector<256x1xf32>
    %81 = arith.mulf %73, %80 : vector<256x1xf32>
    %82 = vector.broadcast %81 : vector<256x1xf32> to vector<256x256xf32>
    %83 = arith.mulf %8, %82 : vector<256x256xf32>
    %84 = arith.mulf %75, %80 : vector<256x1xf32>
    %85 = vector.broadcast %84 : vector<256x1xf32> to vector<256x256xf32>
    %86 = arith.mulf %16, %85 : vector<256x256xf32>
    %87 = arith.addf %83, %86 : vector<256x256xf32>
    %88 = arith.mulf %77, %80 : vector<256x1xf32>
    %89 = vector.broadcast %88 : vector<256x1xf32> to vector<256x256xf32>
    %90 = arith.mulf %0, %89 : vector<256x256xf32>
    %91 = arith.addf %87, %90 : vector<256x256xf32>
    %c0_45 = arith.constant 0 : index
    %c0_46 = arith.constant 0 : index
    %92 = vector.load %arg8[%c0_45, %c0_46] : memref<256x256xf32, #tpu.memory_space<vmem>>, vector<256x256xf32>
    tpu.vector_store %arg8[%c0_45, %c0_46], %91 {strides = array<i32>} : memref<256x256xf32, #tpu.memory_space<vmem>>, vector<256x256xf32>,
    return
  }
  func.func @transform_0(%arg0: i32) -> (i32, i32, i32) {
    %c0_i32 = arith.constant 0 : i32
    %c0_i32_0 = arith.constant 0 : i32
    %c0_i32_1 = arith.constant 0 : i32
    return %arg0, %c0_i32, %c0_i32_0 : i32, i32, i32
  }
  func.func @transform_1(%arg0: i32) -> (i32, i32, i32) {
    %c0_i32 = arith.constant 0 : i32
    %c0_i32_0 = arith.constant 0 : i32
    %c0_i32_1 = arith.constant 0 : i32
    return %arg0, %c0_i32, %c0_i32_0 : i32, i32, i32
  }
  func.func @transform_2(%arg0: i32) -> (i32, i32) {
    %c0_i32 = arith.constant 0 : i32
    %c0_i32_0 = arith.constant 0 : i32
    return %arg0, %c0_i32 : i32, i32
  }
  func.func @transform_3(%arg0: i32) -> (i32, i32, i32) {
    %c0_i32 = arith.constant 0 : i32
    %c0_i32_0 = arith.constant 0 : i32
    %c0_i32_1 = arith.constant 0 : i32
    %c0_i32_2 = arith.constant 0 : i32
    return %c0_i32, %c0_i32_0, %c0_i32_1 : i32, i32, i32
  }
  func.func @transform_4(%arg0: i32) -> (i32, i32, i32) {
    %c0_i32 = arith.constant 0 : i32
    %c0_i32_0 = arith.constant 0 : i32
    %c0_i32_1 = arith.constant 0 : i32
    %c0_i32_2 = arith.constant 0 : i32
    return %c0_i32, %c0_i32_0, %c0_i32_1 : i32, i32, i32
  }
  func.func @transform_5(%arg0: i32) -> (i32, i32, i32) {
    %c0_i32 = arith.constant 0 : i32
    %c0_i32_0 = arith.constant 0 : i32
    %c0_i32_1 = arith.constant 0 : i32
    %c0_i32_2 = arith.constant 0 : i32
    return %c0_i32, %c0_i32_0, %c0_i32_1 : i32, i32, i32
  }
  func.func @transform_6(%arg0: i32) -> (i32, i32) {
    %c0_i32 = arith.constant 0 : i32
    %c0_i32_0 = arith.constant 0 : i32
    %c0_i32_1 = arith.constant 0 : i32
    return %c0_i32, %c0_i32_0 : i32, i32
  }
  func.func @transform_7(%arg0: i32) -> (i32, i32) {
    %c0_i32 = arith.constant 0 : i32
    %c0_i32_0 = arith.constant 0 : i32
    return %arg0, %c0_i32 : i32, i32
  }
}

</mosaic_0001>

<bundles_post_ra>
// kernel: asff_level2.1
= control target key start
LH: loop header
LB: loop body
LE: loop exit
PB: predicated region body
PF: predicated region fallthrough
CT: control target
= control target key end

     0   :  { %12 = vsyncpa [#allocation3], 0  ;;  %s15544_s0 = inlined_call_operand.vmem [shape: f32[8,4,256], index: 0, kind: input, shape index: {}]   ;;  %s15545_s1 = inlined_call_operand.vmem [shape: f32[16,8,256], index: 1, kind: input, shape index: {}]   ;;  %s15546_s2 = inlined_call_operand.hbm [shape: f32[512,256], index: 2, kind: input, shape index: {}]   ;;  %s15547_s3 = inlined_call_operand.vmem [shape: f32[3,256,16], index: 3, kind: input, shape index: {}]   ;;  %s15548_s4 = inlined_call_operand.vmem [shape: f32[3,1,16], index: 4, kind: input, shape index: {}]   ;;  %s15549_s5 = inlined_call_operand.vmem [shape: f32[3,16,3], index: 5, kind: input, shape index: {}]   ;;  %s15550_s6 = inlined_call_operand.vmem [shape: f32[1,3], index: 6, kind: input, shape index: {}]   ;;  %s15551_s7 = inlined_call_operand.hbm [shape: f32[512,256], index: 7, kind: output, shape index: {}]  }
   0x1   :  { %14 = vsyncpa [#allocation3 + $0x1], 0 }
   0x2   :  { %15 = vsyncpa [#allocation4], 0 }
   0x3   :  { %17 = vsyncpa [#allocation4 + $0x1], 0  ;;  %s11051_s24 = smov 0   ;;  %s11053_s25 = smov 0  }
   0x4   :  { %s11055_s26 = smov 0   ;;  %s11057_s27 = smov 0  }
   0x5 LB: > { %s11072_s28 = sadd.s32 4294967295, %s10987_s27   ;;  %s9749_s29 = sadd.s32 4294967294, %s10987_s27   ;;  %s10987_s27 = sphi %s11057_s27, %s16311_s27   ;;  %s10983_s26 = sphi %s11055_s26, %s16310_s26   ;;  %s10979_s25 = sphi %s11053_s25, %s16309_s25   ;;  %s10975_s24 = sphi %s11051_s24, %s16308_s24  }
   0x6   : > { %s11076_s30 = sadd.s32 1, %s10987_s27   ;;  %s82_s8 = sadd.s32 1, %s10983_s26 }
   0x7   : > { %s79_s9 = ssub.s32 %s10987_s27, %s11076_s30  ;;  %p89_p0 = scmp.ne.s32.totalorder %s10983_s26, %s10979_s25 }
   0x8   : > { %p80_p1 = scmp.eq.s32.totalorder %s79_s9, 0  ;;  %p90_p2 = scmp.eq.s32.totalorder %s10987_s27, 0 }
   0x9   : > { %p95_p3 = scmp.ne.s32.totalorder %s10979_s25, %s10975_s24  ;;  %p96_p4 = scmp.eq.s32.totalorder %s11072_s28, 0 }
   0xa   : > { %s11088_s10 = scalar_select %p80_p1, %s10983_s26, %s82_s8  }
   0xb   : > { %p11090_p5 = por %p90_p2, %p89_p0  ;;  %p11094_p6 = por %p96_p4, %p95_p3 }
   0xc   : > { %p203_p7 = scmp.eq.s32.totalorder %s11072_s28, 1  ;;  %p209_p8 = scmp.eq.s32.totalorder %s9749_s29, 1 }
   0xd   : > { %p10459_p10 = scmp.lt.s32.totalorder %s10987_s27, 2  ;;  %s261_s15 = sand.u32 1, %s10983_s26  }
   0xe   : > { %p11101_p11 = por %p203_p7, %p89_p0  ;;  %p11105_p12 = por %p209_p8, %p95_p3 }
   0xf   : > { %s9962_s16 = sshll.u32 %s10987_s27, 13  ;;  %s9752_s17 = sshll.u32 %s261_s15, 9 }
  0x10   : > { %s15818_s13 = scalar_select %p11101_p11, 1, 0 }
  0x11   : > { %s15819_s14 = scalar_select %p11105_p12, 1, 0 }
  0x12   : > { %s11114_s20 = scalar_lea.hbm %s15546_s2, %s9962_s16  ;;  %s265_s21 = scalar_lea.vmem [#allocation2], %s9752_s17 }
  0x13   : > { %s273_s22 = sshll.u32 %s265_s21, 4  ;;  %p11118_p13 = pnand %p10459_p10, %p11090_p5  ;;  %s11122_s22 = int_to_ptr.vmem [resolvable:$true] %s273_s22 }
  0x14   : > { %s11124_s29 = scalar_lea.sflag [#allocation3], %s261_s15  ;;  %s10891_s8 = scalar_lea.hbm %s11114_s20, 8192 }
  0x15   : > { %p10892_p0 = scmp.ne.s32.totalorder %s11114_s20, %s10891_s8  ;;  %p10893_p1 = pneg %p11118_p13 }
  0x16   : > { %s10896_s16 = scalar_lea.hbm %s15546_s2, 16384  ;;  %p10897_p4 = scmp.lt.u32.totalorder %s11114_s20, %s15546_s2 }
  0x17   : > { %p10894_p2 = pnand %p10893_p1, %p10892_p0  ;;  %p10898_p5 = scmp.lt.u32.totalorder %s10896_s16, %s10891_s8 }
  0x18   : > { %p10900_p8 = scmp.lt.u32.totalorder %s10891_s8, %s11114_s20 }
  0x19   : > { %p10895_p3 = pneg %p10894_p2  ;;  %p10899_p7 = por %p10898_p5, %p10897_p4 }
  0x1b   : > { %p10901_p10 = por %p10900_p8, %p10899_p7 }
  0x1d   : > { %p10902_p9 = pnand %p10901_p10, %p10895_p3 }
  0x1f   : > { %10905 = shalt.err (!%p10902_p9)
}
  0x20   : > { %s10906_s15 = scalar_lea.vmem %s11122_s22, 8192  ;;  %s10989_s19 = smov [#allocation2]  }
  0x21   : > { %p10907_p0 = scmp.ne.s32.totalorder %s11122_s22, %s10906_s15  ;;  %s10911_s21 = sshll.u32 %s10989_s19, 4  ;;  %s10912_s21 = int_to_ptr.vmem [resolvable:$false] %s10911_s21 }
  0x22   : > { %s10913_s9 = scalar_lea.vmem %s10912_s21, 16384  ;;  %p10914_p11 = scmp.lt.s32.totalorder %s11122_s22, %s10912_s21 }
  0x23   : > { %p10909_p2 = pnand %p10907_p0, %p10893_p1  ;;  %p10915_p4 = scmp.lt.s32.totalorder %s10913_s9, %s10906_s15 }
  0x25   : > { %p10910_p12 = pneg %p10909_p2  ;;  %p10916_p5 = por %p10915_p4, %p10914_p11 }
  0x27   : > { %p10917_p7 = pnand %p10916_p5, %p10910_p12 }
  0x29   : > { %10920 = shalt.err (!%p10917_p7)
}
  0x2a   : > { %s10990_s8 = smov 256   ;;  %s10991_s11 = smov 16  }
  0x2b   : > { %10454 = dma.hbm_to_vmem [thread:$0]  (!%p11118_p13), %s11114_s20, 8192, %s11122_s22, %s11124_s29, %s10990_s8, %s10990_s8, %s10991_s11  }
  0x2c   : > { %p9756_p9 = scmp.ge.s32.totalorder %s10987_s27, 1  ;;  %p281_p1 = scmp.lt.s32.totalorder %s10987_s27, 3 }
  0x2e   : > { %p282_p3 = pnand %p9756_p9, %p281_p1 }
  0x30   : > { %285 = sbr.rel (%p282_p3) target bundleno = 1714 (0x6b2), region = 48 }
  0x37   : > { %s11155_s16 = sand.u32 1, %s10979_s25  }
  0x38   : > { %s15553_s17 = sshll.u32 %s11155_s16, 9  ;;  %s288_s18 = scalar_lea.sflag [#allocation3], %s11155_s16 }
  0x39   : > { %s11161_s15 = scalar_lea.vmem [#allocation2], %s15553_s17 }
  0x3a   : > { %10966 = dma.done.wait (%p11094_p6), %s288_s18, 8192  }
  0x3b   : > { %10968 = vsyncadd (%p11094_p6), %s288_s18, 4294959104  ;;  %v15554_v0 = vmov 0.0|0.0   ;;  %v2198_v1 = vld [vmem:[%s15547_s3] sm:$0xff]  ;;  %v2199_v2 = vld [vmem:[%s15547_s3 + $0x8] sm:$0xff]  ;;  %s9759_s11 = sshll.u32 %s11072_s28, 2  ;;  %s9762_s29 = sshll.u32 %s11072_s28, 3  ;;  %v433_v25 = vlaneseq }
  0x3c   : > { %10225 = vmatprep.subr.bf16.mxu0 %v15554_v0  ;;  %10273 = vmatprep.subr.bf16.mxu1 %v15554_v0  ;;  %v9786_v3 = vld [vmem:[%s15547_s3 + $0x100] sm:$0xff]  ;;  %v10226_v4 = vpack.c.bf16 %v2199_v2, %v2198_v1  ;;  %v9787_v5 = vld [vmem:[%s15547_s3 + $0x108] sm:$0xff]  ;;  %v2200_v6 = vld [vmem:[%s15547_s3 + $0x10] sm:$0xff]  ;;  %p11209_p6 = scmp.lt.s32.totalorder %s9759_s11, 7  ;;  %p11222_p11 = scmp.lt.s32.totalorder %s9762_s29, 15  ;;  %vm3639_vm1 = vcmask 130048  }
  0x3d   : > { %v2201_v7 = vld [vmem:[%s15547_s3 + $0x18] sm:$0xff]  ;;  %v10274_v8 = vpack.c.bf16 %v9787_v5, %v9786_v3  ;;  %v9788_v9 = vld [vmem:[%s15547_s3 + $0x110] sm:$0xff]  ;;  %v2202_v13 = vld [vmem:[%s15547_s3 + $0x20] sm:$0xff]  ;;  %v10993_v23 = vmov 1966171168   ;;  %v11318_v45 = vshrl.u32 %v433_v25, 7 }
  0x3e   : > { %v9789_v10 = vld [vmem:[%s15547_s3 + $0x118] sm:$0xff]  ;;  %10227 = vmatpush1.bf16.msra.mxu0 %v10226_v4  ;;  %v10229_v11 = vpack.c.bf16 %v2201_v7, %v2200_v6  ;;  %v2203_v14 = vld [vmem:[%s15547_s3 + $0x28] sm:$0xff]  ;;  %v9790_v15 = vld [vmem:[%s15547_s3 + $0x120] sm:$0xff]  ;;  %v11233_v24 = vunpack.c.l.s4 %v10993_v23  ;;  %v10994_v26 = vmov 1983009808   ;;  %s16313_s11 = smov (!%p11209_p6, %s9759_s11), 7 }
  0x3f   : > { %10275 = vmatpush1.bf16.msra.mxu1 %v10274_v8  ;;  %10228 = vmatprep.subr.bf16.mxu0 %v15554_v0  ;;  %v10277_v12 = vpack.c.bf16 %v9789_v10, %v9788_v9  ;;  %v9791_v16 = vld [vmem:[%s15547_s3 + $0x128] sm:$0xff]  ;;  %v10232_v17 = vpack.c.bf16 %v2203_v14, %v2202_v13  ;;  %v2204_v19 = vld [vmem:[%s15547_s3 + $0x30] sm:$0xff]  ;;  %v2205_v20 = vld [vmem:[%s15547_s3 + $0x38] sm:$0xff]  ;;  %v1624_v27 = vunpack.c.l.s4 %v10994_v26  ;;  %s16315_s29 = smov (!%p11222_p11, %s9762_s29), 15  ;;  %15823 = vst [vmem:[#allocation8_spill] sm:$0xff] %v11318_v45  ;;  %s9963_s23 = sshll.u32 %s16313_s11, 3 }
  0x40   : > { %10276 = vmatprep.subr.bf16.mxu1 %v15554_v0  ;;  %v10280_v18 = vpack.c.bf16 %v9791_v16, %v9790_v15  ;;  %v9792_v21 = vld [vmem:[%s15547_s3 + $0x130] sm:$0xff]  ;;  %v9793_v22 = vld [vmem:[%s15547_s3 + $0x138] sm:$0xff]  ;;  %v10235_v28 = vpack.c.bf16 %v2205_v20, %v2204_v19  ;;  %v11238_v29 = vld [vmem:[%s15547_s3 + $0x40] sm:$0xff]  ;;  %v432_v44 = vunpack.c.0.s8 %v11233_v24  ;;  %s9964_s8 = sshll.u32 %s16315_s29, 4  ;;  %s11485_s22 = scalar_lea.vmem %s15544_s0, %s9963_s23 }
  0x41   : > { %v11243_v30 = vld [vmem:[%s15547_s3 + $0x48] sm:$0xff]  ;;  %v11248_v31 = vld [vmem:[%s15547_s3 + $0x140] sm:$0xff]  ;;  %v10283_v32 = vpack.c.bf16 %v9793_v22, %v9792_v21  ;;  %v11263_v34 = vld [vmem:[%s15547_s3 + $0x50] sm:$0xff]  ;;  %v1625_v46 = vunpack.c.0.s8 %v1624_v27  ;;  %s11513_s17 = scalar_lea.vmem %s15545_s1, %s9964_s8  ;;  %s10995_s29 = smov 126  }
  0x42   : > { %10230 = vmatpush1.bf16.msra.mxu0 %v10229_v11  ;;  %v11258_v33 = vld [vmem:[%s15547_s3 + $0x148] sm:$0xff]  ;;  %v11268_v35 = vld [vmem:[%s15547_s3 + $0x58] sm:$0xff]  ;;  %v11280_v36 = vld [vmem:[%s15547_s3 + $0x150] sm:$0xff]  ;;  %v10238_v55 = vpack.c.bf16 %v11243_v30, %v11238_v29  ;;  %v11451_v11 = vsub.s32 %v432_v44, %v11318_v45  ;;  %s10996_s23 = smov 127   ;;  %s10997_s18 = smov 1  }
  0x43   : > { %10278 = vmatpush1.bf16.msra.mxu1 %v10277_v12  ;;  %10231 = vmatprep.subr.bf16.mxu0 %v15554_v0  ;;  %v11285_v37 = vld [vmem:[%s15547_s3 + $0x158] sm:$0xff]  ;;  %v11290_v38 = vld [vmem:[%s15547_s3 + $0x60] sm:$0xff]  ;;  %v11295_v39 = vld [vmem:[%s15547_s3 + $0x68] sm:$0xff]  ;;  %v10286_v62 = vpack.c.bf16 %v11258_v33, %v11248_v31  ;;  %v10241_v7 = vpack.c.bf16 %v11268_v35, %v11263_v34  ;;  %v11454_v12 = vsub.s32 0, %v11318_v45  ;;  %v11457_v13 = vsub.s32 %v1625_v46, %v11318_v45  ;;  %s10998_s12 = smov 2   ;;  %s16132_s9 = sshll.u32 %s11155_s16, 9 }
  0x44   : > { %10279 = vmatprep.subr.bf16.mxu1 %v15554_v0  ;;  %v11300_v40 = vld [vmem:[%s15547_s3 + $0x160] sm:$0xff]  ;;  %v11305_v41 = vld [vmem:[%s15547_s3 + $0x168] sm:$0xff]  ;;  %v11310_v42 = vld [vmem:[%s15547_s3 + $0x70] sm:$0xff]  ;;  %v10289_v14 = vpack.c.bf16 %v11285_v37, %v11280_v36  ;;  %v10244_v15 = vpack.c.bf16 %v11295_v39, %v11290_v38  ;;  %v11538_v34 = vsub.s32 1, %v11318_v45  ;;  %s14499_s19 = scalar_lea.vmem [#allocation5], %s16132_s9  ;;  %p16305_p13 = scmp.ne.s32.totalorder %s15818_s13, 0 }
  0x45   : > { %v11315_v43 = vld [vmem:[%s15547_s3 + $0x78] sm:$0xff]  ;;  %v11323_v47 = vld [vmem:[%s15547_s3 + $0x170] sm:$0xff]  ;;  %v11333_v49 = vld [vmem:[%s15547_s3 + $0x80] sm:$0xff]  ;;  %15824 = vst [vmem:[#allocation9_spill] sm:$0xff] %v11457_v13  ;;  %v10292_v16 = vpack.c.bf16 %v11305_v41, %v11300_v40  ;;  %s9652_s11 = sshll.u32 %s14499_s19, 4  ;;  %s11008_s8 = smov [#allocation5]   ;;  %s15496_s11 = int_to_ptr.vmem [resolvable:$true] %s9652_s11 }
  0x46   : > { %10233 = vmatpush1.bf16.msra.mxu0 %v10232_v17  ;;  %v11328_v48 = vld [vmem:[%s15547_s3 + $0x178] sm:$0xff]  ;;  %v11338_v50 = vld [vmem:[%s15547_s3 + $0x88] sm:$0xff]  ;;  %v11343_v51 = vld [vmem:[%s15547_s3 + $0x180] sm:$0xff] }
  0x47   : > { %10281 = vmatpush1.bf16.msra.mxu1 %v10280_v18  ;;  %10234 = vmatprep.subr.bf16.mxu0 %v15554_v0  ;;  %v11348_v52 = vld [vmem:[%s15547_s3 + $0x188] sm:$0xff]  ;;  %v11353_v53 = vld [vmem:[%s15547_s3 + $0x90] sm:$0xff]  ;;  %v11358_v54 = vld [vmem:[%s15547_s3 + $0x98] sm:$0xff] }
  0x48   : > { %10282 = vmatprep.subr.bf16.mxu1 %v15554_v0  ;;  %v11365_v56 = vld [vmem:[%s15547_s3 + $0x190] sm:$0xff]  ;;  %v11370_v57 = vld [vmem:[%s15547_s3 + $0x198] sm:$0xff]  ;;  %v11375_v58 = vld [vmem:[%s15547_s3 + $0xa0] sm:$0xff] }
  0x49   : > { %v11380_v59 = vld [vmem:[%s15547_s3 + $0xa8] sm:$0xff]  ;;  %v11385_v60 = vld [vmem:[%s15547_s3 + $0x1a0] sm:$0xff]  ;;  %v11399_v63 = vld [vmem:[%s15547_s3 + $0xb0] sm:$0xff] }
  0x4a   : > { %10236 = vmatpush1.bf16.msra.mxu0 %v10235_v28  ;;  %v11390_v61 = vld [vmem:[%s15547_s3 + $0x1a8] sm:$0xff]  ;;  %v11404_v1 = vld [vmem:[%s15547_s3 + $0xb8] sm:$0xff]  ;;  %v11409_v2 = vld [vmem:[%s15547_s3 + $0x1b0] sm:$0xff] }
  0x4b   : > { %10284 = vmatpush1.bf16.msra.mxu1 %v10283_v32  ;;  %10237 = vmatprep.subr.bf16.mxu0 %v15554_v0  ;;  %v11414_v3 = vld [vmem:[%s15547_s3 + $0x1b8] sm:$0xff]  ;;  %v11419_v4 = vld [vmem:[%s15547_s3 + $0xc0] sm:$0xff]  ;;  %v11424_v5 = vld [vmem:[%s15547_s3 + $0xc8] sm:$0xff] }
  0x4c   : > { %v11429_v6 = vld [vmem:[%s15547_s3 + $0x1c0] sm:$0xff]  ;;  %10285 = vmatprep.subr.bf16.mxu1 %v15554_v0  ;;  %v11438_v8 = vld [vmem:[%s15547_s3 + $0x1c8] sm:$0xff]  ;;  %v11443_v9 = vld [vmem:[%s15547_s3 + $0xd0] sm:$0xff] }
  0x4d   : > { %v11448_v10 = vld [vmem:[%s15547_s3 + $0xd8] sm:$0xff]  ;;  %v11470_v18 = vld [vmem:[%s15547_s3 + $0x1d0] sm:$0xff]  ;;  %v11480_v20 = vld [vmem:[%s15547_s3 + $0xe0] sm:$0xff] }
  0x4e   : > { %v11475_v19 = vld [vmem:[%s15547_s3 + $0x1d8] sm:$0xff]  ;;  %10239 = vmatpush1.bf16.msra.mxu0 %v10238_v55  ;;  %v11498_v25 = vld [vmem:[%s15547_s3 + $0xe8] sm:$0xff]  ;;  %v11503_v26 = vld [vmem:[%s15547_s3 + $0x1e0] sm:$0xff] }
  0x4f   : > { %v11508_v27 = vld [vmem:[%s15547_s3 + $0x1e8] sm:$0xff]  ;;  %10287 = vmatpush1.bf16.msra.mxu1 %v10286_v62  ;;  %10240 = vmatprep.subr.bf16.mxu0 %v15554_v0  ;;  %v11525_v31 = vld [vmem:[%s15547_s3 + $0xf0] sm:$0xff]  ;;  %v11530_v32 = vld [vmem:[%s15547_s3 + $0xf8] sm:$0xff] }
  0x50   : > { %v11535_v33 = vld [vmem:[%s15547_s3 + $0x1f0] sm:$0xff]  ;;  %10288 = vmatprep.subr.bf16.mxu1 %v15554_v0  ;;  %v11552_v39 = vld [vmem:[%s15547_s3 + $0x1f8] sm:$0xff]  ;;  %v9765_v40 = vld.sshfl [vmem:[%s11485_s22] sm:$0xff pattern:$0x75316420] }
  0x51   : > { %v429_v46 = vcombine.high %v9765_v40, %v9765_v40  ;;  %v436_v55 = vrot.slane %v9765_v40, %v11451_v11  ;;  %v10547_v62 = vld [vmem:[%s11513_s17] ss:$8 sps:$4 sm:$0xff]   ;;  %v10549_v37 = vld [vmem:[%s11513_s17 + $0x4] ss:$8 sps:$4 sm:$0xff]   ;;  %v10550_v30 = vld [vmem:[%s11513_s17 + $0x10] ss:$8 sps:$4 sm:$0xff]  }
  0x52   : > { %10242 = vmatpush1.bf16.msra.mxu0 %v10241_v7  ;;  %v718_v44 = vrot.slane %v10547_v62, %v11451_v11  ;;  %v725_v35 = vrot.slane %v10549_v37, %v11451_v11  ;;  %v11581_v41 = vrot.slane %v10550_v30, %v11451_v11 }
  0x53   : > { %10290 = vmatpush1.bf16.msra.mxu1 %v10289_v14  ;;  %10243 = vmatprep.subr.bf16.mxu0 %v15554_v0  ;;  %v443_v40 = vrot.slane %v429_v46, %v11451_v11  ;;  %v525_v7 = vrot.slane %v436_v55, %v11538_v34  ;;  %v521_v36 = vrot.slane %v436_v55, %v11454_v12 }
  0x54   : > { %10291 = vmatprep.subr.bf16.mxu1 %v15554_v0  ;;  %v11577_v38 = vcombine.high %v436_v55, %v436_v55  ;;  %v726_v29 = vcombine.high %v718_v44, %v718_v44  ;;  %v734_v46 = vrot.slane %v718_v44, %v11451_v11  ;;  %v727_v23 = vcombine.high %v725_v35, %v725_v35 }
  0x55   : > { %v533_v14 = vrot.slane %v443_v40, %v11538_v34  ;;  %v529_v28 = vrot.slane %v443_v40, %v11454_v12  ;;  %v11586_v62 = vcombine.low %v521_v36, %v525_v7  ;;  %v445_v24 = vcombine.high %v443_v40, %v443_v40 }
  0x56   : > { %10245 = vmatpush1.bf16.msra.mxu0 %v10244_v15  ;;  %v11590_v55 = vrot.slane %v11577_v38, %v11538_v34  ;;  %v748_v37 = vrot.slane %v726_v29, %v11451_v11  ;;  %v756_v22 = vcombine.high %v734_v46, %v734_v46  ;;  %v1113_v15 = vrot.slane %v734_v46, %v11454_v12 }
  0x57   : > { %15825 = vst [vmem:[#allocation10_spill] sm:$0xff] %v11586_v62  ;;  %10293 = vmatpush1.bf16.msra.mxu1 %v10292_v16  ;;  %10246 = vmatprep.subr.bf16.mxu0 %v15554_v0  ;;  %v11593_v30 = vcombine.low %v525_v7, %v533_v14  ;;  %v1117_v44 = vrot.slane %v734_v46, %v11538_v34 }
  0x58   : > { %10294 = vmatprep.subr.bf16.mxu1 %v15554_v0  ;;  %v11599_v40 = vcombine.low %v529_v28, %v533_v14  ;;  %v11601_v21 = vcombine.low %v521_v36, %v529_v28  ;;  %v758_v16 = vcombine.high %v748_v37, %v748_v37  ;;  %v1121_v17 = vrot.slane %v748_v37, %v11454_v12 }
  0x59   : > { %15826 = vst [vmem:[#allocation11_spill] sm:$0xff] %v11593_v30  ;;  %2333 = vmatprep.mubr.f32.mxu0 %v11593_v30  ;;  %v1125_v7 = vrot.slane %v748_v37, %v11538_v34  ;;  %v1129_v29 = vrot.slane %v756_v22, %v11454_v12  ;;  %v15828_v0 = vpack.c.bf16 %v11315_v43, %v11310_v42 }
  0x5a   : > { %15827 = vst [vmem:[#allocation12_spill] sm:$0xff] %v11599_v40  ;;  %v1133_v62 = vrot.slane %v756_v22, %v11538_v34  ;;  %v1622_v46 = vcombine.low %v1113_v15, %v1117_v44  ;;  %v549_v14 = vrot.slane %v445_v24, %v11538_v34  ;;  %v741_v28 = vrot.slane %v725_v35, %v11451_v11 }
  0x5b   : > { %10248 = vmatpush1.bf16.msra.mxu0 %v15828_v0  ;;  %v15829_v36 = vpack.c.bf16 %v11328_v48, %v11323_v47  ;;  %v15830_v40 = vmov 0.0|0.0   ;;  %v1137_v37 = vrot.slane %v758_v16, %v11454_v12  ;;  %v1141_v45 = vrot.slane %v758_v16, %v11538_v34 }
  0x5c   : > { %10249 = vmatprep.subr.bf16.mxu0 %v15830_v40  ;;  %v1630_v30 = vcombine.low %v1121_v17, %v1125_v7  ;;  %v11621_v0 = vrot.slane %v1622_v46, %v11457_v13  ;;  %v1638_v42 = vcombine.low %v1129_v29, %v1133_v62  ;;  %v11624_v43 = vcombine.low %v11590_v55, %v549_v14 }
  0x5d   : > { %10296 = vmatpush1.bf16.msra.mxu1 %v15829_v36  ;;  %v755_v22 = vrot.slane %v727_v23, %v11451_v11  ;;  %v1646_v48 = vcombine.low %v1137_v37, %v1141_v45  ;;  %v757_v35 = vcombine.high %v741_v28, %v741_v28  ;;  %v1145_v15 = vrot.slane %v741_v28, %v11454_v12 }
  0x5e   : > { %10297 = vmatprep.subr.bf16.mxu1 %v15830_v40  ;;  %15831 = vst [vmem:[#allocation13_spill] sm:$0xff] %v11621_v0  ;;  %v11628_v47 = vrot.slane %v1630_v30, %v11457_v13  ;;  %v15833_v17 = vpack.c.bf16 %v11338_v50, %v11333_v49  ;;  %v11635_v44 = vrot.slane %v1638_v42, %v11457_v13 }
  0x5f   : > { %v759_v62 = vcombine.high %v755_v22, %v755_v22  ;;  %v1149_v16 = vrot.slane %v741_v28, %v11538_v34  ;;  %v1153_v7 = vrot.slane %v755_v22, %v11454_v12  ;;  %v15835_v23 = vpack.c.bf16 %v11348_v52, %v11343_v51 }
  0x60   : > { %15832 = vst [vmem:[#allocation14_spill] sm:$0xff] %v11628_v47  ;;  %10251 = vmatpush1.bf16.msra.mxu0 %v15833_v17  ;;  %15834 = vst [vmem:[#allocation15_spill] sm:$0xff] %v11635_v44  ;;  %v11644_v45 = vrot.slane %v1646_v48, %v11457_v13  ;;  %v2631_v49 = vcombine.low %v11621_v0, %v11628_v47  ;;  %v1157_v50 = vrot.slane %v755_v22, %v11538_v34 }
  0x61   : > { %10299 = vmatpush1.bf16.msra.mxu1 %v15835_v23  ;;  %10252 = vmatprep.subr.bf16.mxu0 %v15830_v40  ;;  %v1161_v30 = vrot.slane %v757_v35, %v11454_v12  ;;  %v1165_v29 = vrot.slane %v757_v35, %v11538_v34  ;;  %v1169_v51 = vrot.slane %v759_v62, %v11454_v12 }
  0x62   : > { %15836 = vst [vmem:[#allocation16_spill] sm:$0xff] %v11644_v45  ;;  %10300 = vmatprep.subr.bf16.mxu1 %v15830_v40  ;;  %v1173_v52 = vrot.slane %v759_v62, %v11538_v34  ;;  %v2632_v46 = vcombine.low %v11635_v44, %v11644_v45  ;;  %v2639_v28 = vrot.slane %v2631_v49, %v11457_v13  ;;  %v10552_v62 = vld [vmem:[%s11513_s17 + $0x14] ss:$8 sps:$4 sm:$0xff]  }
  0x63   : > { %v1654_v36 = vcombine.low %v1145_v15, %v1149_v16  ;;  %v1662_v37 = vcombine.low %v1153_v7, %v1157_v50  ;;  %v15837_v42 = vpack.c.bf16 %v11358_v54, %v11353_v53  ;;  %v1670_v22 = vcombine.low %v1161_v30, %v1165_v29  ;;  %v11688_v16 = vld.sshfl [vmem:[%s11485_s22 + $0x8] sm:$0xff pattern:$0x75316420] }
  0x64   : > { %v1678_v48 = vcombine.low %v1169_v51, %v1173_v52  ;;  %v537_v35 = vrot.slane %v11577_v38, %v11454_v12  ;;  %v545_v17 = vrot.slane %v445_v24, %v11454_v12  ;;  %v15838_v23 = vpack.c.bf16 %v11370_v57, %v11365_v56 }
  0x65   : > { %10254 = vmatpush1.bf16.msra.mxu0 %v15837_v42  ;;  %v2646_v15 = vrot.slane %v2632_v46, %v11457_v13  ;;  %v11670_v53 = vrot.slane %v1654_v36, %v11457_v13  ;;  %v11673_v54 = vrot.slane %v1662_v37, %v11457_v13  ;;  %v11677_v38 = vrot.slane %v1670_v22, %v11457_v13 }
  0x66   : > { %10302 = vmatpush1.bf16.msra.mxu1 %v15838_v23  ;;  %10255 = vmatprep.subr.bf16.mxu0 %v15830_v40  ;;  %v11680_v24 = vrot.slane %v1678_v48, %v11457_v13  ;;  %v11683_v56 = vcombine.low %v537_v35, %v11590_v55  ;;  %v11685_v57 = vcombine.low %v545_v17, %v549_v14 }
  0x67   : > { %15839 = vst [vmem:[#allocation17_spill] sm:$0xff] %v11670_v53  ;;  %15840 = vst [vmem:[#allocation18_spill] sm:$0xff] %v11673_v54  ;;  %10303 = vmatprep.subr.bf16.mxu1 %v15830_v40  ;;  %v11690_v7 = vcombine.high %v2639_v28, %v2646_v15  ;;  %v11692_v49 = vcombine.low %v2639_v28, %v2646_v15  ;;  %v2649_v50 = vcombine.low %v11670_v53, %v11673_v54 }
  0x68   : > { %15841 = vst [vmem:[#allocation19_spill] sm:$0xff] %v11677_v38  ;;  %15842 = vst [vmem:[#allocation20_spill] sm:$0xff] %v11680_v24  ;;  %v11696_v30 = vcombine.low %v537_v35, %v545_v17  ;;  %v15845_v29 = vpack.c.bf16 %v11380_v59, %v11375_v58  ;;  %v2650_v55 = vcombine.low %v11677_v38, %v11680_v24 }
  0x69   : > { %15843 = vst [vmem:[#allocation21_spill] sm:$0xff] %v11683_v56  ;;  %15844 = vst [vmem:[#allocation22_spill] sm:$0xff] %v11685_v57  ;;  %v776_v14 = vcombine.high %v11581_v41, %v11581_v41  ;;  %v784_v51 = vrot.slane %v11581_v41, %v11451_v11  ;;  %v775_v52 = vrot.slane %v10552_v62, %v11451_v11  ;;  %3015 = vmatprep.mubr.f32.mxu1 %v11690_v7 }
  0x6a   : > { %10257 = vmatpush1.bf16.msra.mxu0 %v15845_v29  ;;  %v15846_v46 = vpack.c.bf16 %v11390_v61, %v11385_v60  ;;  %v2657_v58 = vrot.slane %v2649_v50, %v11457_v13  ;;  %v453_v59 = vcombine.high %v11688_v16, %v11688_v16  ;;  %v11717_v28 = vrot.slane %v11688_v16, %v11451_v11 }
  0x6b   : > { %10258 = vmatprep.subr.bf16.mxu0 %v15830_v40  ;;  %v2664_v41 = vrot.slane %v2650_v55, %v11457_v13  ;;  %v798_v60 = vrot.slane %v776_v14, %v11451_v11  ;;  %v806_v61 = vcombine.high %v784_v51, %v784_v51  ;;  %v1177_v36 = vrot.slane %v784_v51, %v11454_v12 }
  0x6c   : > { %10305 = vmatpush1.bf16.msra.mxu1 %v15846_v46  ;;  %v1181_v37 = vrot.slane %v784_v51, %v11538_v34  ;;  %v777_v42 = vcombine.high %v775_v52, %v775_v52  ;;  %v791_v22 = vrot.slane %v775_v52, %v11451_v11  ;;  %v15847_v48 = vpack.c.bf16 %v11404_v1, %v11399_v63 }
  0x6d   : > { %10306 = vmatprep.subr.bf16.mxu1 %v15830_v40  ;;  %v11729_v35 = vcombine.high %v2657_v58, %v2664_v41  ;;  %v11731_v17 = vcombine.low %v2657_v58, %v2664_v41  ;;  %v808_v62 = vcombine.high %v798_v60, %v798_v60  ;;  %v1185_v23 = vrot.slane %v798_v60, %v11454_v12 }
  0x6e   : > { %10260 = vmatpush1.bf16.msra.mxu0 %v15847_v48  ;;  %v15848_v15 = vpack.c.bf16 %v11414_v3, %v11409_v2  ;;  %v1189_v16 = vrot.slane %v798_v60, %v11538_v34  ;;  %v1193_v50 = vrot.slane %v806_v61, %v11454_v12  ;;  %v1197_v63 = vrot.slane %v806_v61, %v11538_v34 }
  0x6f   : > { %10261 = vmatprep.subr.bf16.mxu0 %v15830_v40  ;;  %v1201_v1 = vrot.slane %v808_v62, %v11454_v12  ;;  %v1205_v29 = vrot.slane %v808_v62, %v11538_v34  ;;  %v1686_v55 = vcombine.low %v1177_v36, %v1181_v37  ;;  %v805_v14 = vrot.slane %v777_v42, %v11451_v11 }
  0x70   : > { %10308 = vmatpush1.bf16.msra.mxu1 %v15848_v15  ;;  %v1694_v51 = vcombine.low %v1185_v23, %v1189_v16  ;;  %v1702_v2 = vcombine.low %v1193_v50, %v1197_v63  ;;  %v807_v3 = vcombine.high %v791_v22, %v791_v22  ;;  %v1209_v52 = vrot.slane %v791_v22, %v11454_v12  ;;  %v10553_v16 = vld [vmem:[%s11513_s17 + $0x20] ss:$8 sps:$4 sm:$0xff]  }
  0x71   : > { %10309 = vmatprep.subr.bf16.mxu1 %v15830_v40  ;;  %v15849_v46 = vpack.c.bf16 %v11424_v5, %v11419_v4  ;;  %v11750_v58 = vrot.slane %v1686_v55, %v11457_v13  ;;  %v1710_v41 = vcombine.low %v1201_v1, %v1205_v29  ;;  %v809_v60 = vcombine.high %v805_v14, %v805_v14 }
  0x72   : > { %v1213_v61 = vrot.slane %v791_v22, %v11538_v34  ;;  %v15851_v36 = vpack.c.bf16 %v11438_v8, %v11429_v6  ;;  %v11758_v37 = vrot.slane %v1694_v51, %v11457_v13  ;;  %v11761_v4 = vrot.slane %v1702_v2, %v11457_v13 }
  0x73   : > { %10263 = vmatpush1.bf16.msra.mxu0 %v15849_v46  ;;  %15850 = vst [vmem:[#allocation23_spill] sm:$0xff] %v11750_v58  ;;  %v1217_v5 = vrot.slane %v805_v14, %v11454_v12  ;;  %v11766_v42 = vrot.slane %v1710_v41, %v11457_v13  ;;  %v1221_v22 = vrot.slane %v805_v14, %v11538_v34 }
  0x74   : > { %10311 = vmatpush1.bf16.msra.mxu1 %v15851_v36  ;;  %10264 = vmatprep.subr.bf16.mxu0 %v15830_v40  ;;  %15852 = vst [vmem:[#allocation24_spill] sm:$0xff] %v11758_v37  ;;  %15853 = vst [vmem:[#allocation25_spill] sm:$0xff] %v11761_v4  ;;  %v1225_v6 = vrot.slane %v807_v3, %v11454_v12  ;;  %v1229_v8 = vrot.slane %v807_v3, %v11538_v34 }
  0x75   : > { %10312 = vmatprep.subr.bf16.mxu1 %v15830_v40  ;;  %15854 = vst [vmem:[#allocation26_spill] sm:$0xff] %v11766_v42  ;;  %v2667_v48 = vcombine.low %v11750_v58, %v11758_v37  ;;  %v1233_v62 = vrot.slane %v809_v60, %v11454_v12  ;;  %v1237_v23 = vrot.slane %v809_v60, %v11538_v34 }
  0x76   : > { %v1718_v15 = vcombine.low %v1209_v52, %v1213_v61  ;;  %v15855_v50 = vpack.c.bf16 %v11448_v10, %v11443_v9  ;;  %v2668_v63 = vcombine.low %v11761_v4, %v11766_v42  ;;  %v1726_v1 = vcombine.low %v1217_v5, %v1221_v22 }
  0x77   : > { %v1734_v29 = vcombine.low %v1225_v6, %v1229_v8  ;;  %v467_v55 = vrot.slane %v453_v59, %v11451_v11  ;;  %v15856_v14 = vpack.c.bf16 %v11475_v19, %v11470_v18  ;;  %v2675_v51 = vrot.slane %v2667_v48, %v11457_v13 }
  0x78   : > { %10266 = vmatpush1.bf16.msra.mxu0 %v15855_v50  ;;  %v11788_v2 = vrot.slane %v1718_v15, %v11457_v13  ;;  %v1742_v9 = vcombine.low %v1233_v62, %v1237_v23  ;;  %v2682_v10 = vrot.slane %v2668_v63, %v11457_v13  ;;  %v11793_v3 = vrot.slane %v1726_v1, %v11457_v13 }
  0x79   : > { %10314 = vmatpush1.bf16.msra.mxu1 %v15856_v14  ;;  %10267 = vmatprep.subr.bf16.mxu0 %v15830_v40  ;;  %v11796_v59 = vrot.slane %v1734_v29, %v11457_v13  ;;  %v557_v18 = vrot.slane %v11717_v28, %v11538_v34  ;;  %v565_v52 = vrot.slane %v467_v55, %v11538_v34 }
  0x7a   : > { %15857 = vst [vmem:[#allocation27_spill] sm:$0xff] %v11788_v2  ;;  %10315 = vmatprep.subr.bf16.mxu1 %v15830_v40  ;;  %15858 = vst [vmem:[#allocation28_spill] sm:$0xff] %v11793_v3  ;;  %v11801_v19 = vrot.slane %v1742_v9, %v11457_v13  ;;  %v818_v46 = vrot.slane %v10553_v16, %v11451_v11  ;;  %v553_v41 = vrot.slane %v11717_v28, %v11454_v12 }
  0x7b   : > { %15859 = vst [vmem:[#allocation29_spill] sm:$0xff] %v11796_v59  ;;  %v15861_v60 = vpack.c.bf16 %v11498_v25, %v11480_v20  ;;  %v11810_v61 = vcombine.high %v2675_v51, %v2682_v10  ;;  %v11812_v36 = vcombine.low %v2675_v51, %v2682_v10  ;;  %v2685_v5 = vcombine.low %v11788_v2, %v11793_v3 }
  0x7c   : > { %15860 = vst [vmem:[#allocation30_spill] sm:$0xff] %v11801_v19  ;;  %v561_v22 = vrot.slane %v467_v55, %v11454_v12  ;;  %v15862_v6 = vpack.c.bf16 %v11508_v27, %v11503_v26  ;;  %v2686_v8 = vcombine.low %v11796_v59, %v11801_v19  ;;  %v11823_v20 = vcombine.low %v557_v18, %v565_v52 }
  0x7d   : > { %10269 = vmatpush1.bf16.msra.mxu0 %v15861_v60  ;;  %v826_v25 = vcombine.high %v818_v46, %v818_v46  ;;  %v2693_v48 = vrot.slane %v2685_v5, %v11457_v13  ;;  %v834_v62 = vrot.slane %v818_v46, %v11451_v11  ;;  %v11828_v23 = vcombine.low %v553_v41, %v557_v18 }
  0x7e   : > { %10317 = vmatpush1.bf16.msra.mxu1 %v15862_v6  ;;  %10270 = vmatprep.subr.bf16.mxu0 %v15830_v40  ;;  %v11830_v15 = vcombine.low %v561_v22, %v565_v52  ;;  %v2700_v26 = vrot.slane %v2686_v8, %v11457_v13  ;;  %v11834_v16 = vcombine.low %v553_v41, %v561_v22 }
  0x7f   : > { %10318 = vmatprep.subr.bf16.mxu1 %v15830_v40  ;;  %15863 = vst [vmem:[#allocation31_spill] sm:$0xff] %v11828_v23  ;;  %v848_v27 = vrot.slane %v826_v25, %v11451_v11  ;;  %v468_v50 = vcombine.high %v11717_v28, %v11717_v28  ;;  %v15865_v63 = vpack.c.bf16 %v11530_v32, %v11525_v31  ;;  %v10555_v31 = vld [vmem:[%s11513_s17 + $0x24] ss:$8 sps:$4 sm:$0xff]  }
  0x80   : > { %15864 = vst [vmem:[#allocation32_spill] sm:$0xff] %v11830_v15  ;;  %v856_v1 = vcombine.high %v834_v62, %v834_v62  ;;  %v1241_v29 = vrot.slane %v834_v62, %v11454_v12  ;;  %v1245_v14 = vrot.slane %v834_v62, %v11538_v34  ;;  %v469_v51 = vcombine.high %v467_v55, %v467_v55  ;;  %v10556_v55 = vld [vmem:[%s11513_s17 + $0x30] ss:$8 sps:$4 sm:$0xff]  }
  0x81   : > { %10272 = vmatpush1.bf16.msra.mxu0 %v15865_v63  ;;  %v15866_v9 = vpack.c.bf16 %v11552_v39, %v11535_v33  ;;  %v11846_v10 = vcombine.high %v2693_v48, %v2700_v26  ;;  %v11848_v18 = vcombine.low %v2693_v48, %v2700_v26  ;;  %v858_v28 = vcombine.high %v848_v27, %v848_v27 }
  0x82   : > { %v1249_v52 = vrot.slane %v848_v27, %v11454_v12  ;;  %v1253_v32 = vrot.slane %v848_v27, %v11538_v34  ;;  %v1257_v46 = vrot.slane %v856_v1, %v11454_v12  ;;  %v1261_v41 = vrot.slane %v856_v1, %v11538_v34  ;;  %10321 = vmatprep.subr.bf16.mxu0 %v15830_v40 }
  0x83   : > { %10320 = vmatpush1.bf16.msra.mxu1 %v15866_v9  ;;  %v1750_v60 = vcombine.low %v1241_v29, %v1245_v14  ;;  %v1265_v33 = vrot.slane %v858_v28, %v11454_v12  ;;  %v1269_v39 = vrot.slane %v858_v28, %v11538_v34  ;;  %v573_v5 = vrot.slane %v468_v50, %v11538_v34 }
  0x84   : > { %2334 = vmatmul.mubr.f32.vlgmr.msra.gmra.mrb[0].mxu0 %v11601_v21  ;;  %v581_v22 = vrot.slane %v469_v51, %v11538_v34  ;;  %v1758_v8 = vcombine.low %v1249_v52, %v1253_v32  ;;  %v1766_v25 = vcombine.low %v1257_v46, %v1261_v41  ;;  %v825_v26 = vrot.slane %v10555_v31, %v11451_v11 }
  0x85   : > { %2338 = vmatprep.mubr.f32.mxu0 %v11624_v43  ;;  %v11865_v6 = vrot.slane %v1750_v60, %v11457_v13  ;;  %v1774_v48 = vcombine.low %v1265_v33, %v1269_v39  ;;  %v569_v27 = vrot.slane %v468_v50, %v11454_v12  ;;  %v577_v29 = vrot.slane %v469_v51, %v11454_v12  ;;  %v15872_v50 = vld [vmem:[#allocation11_spill] sm:$0xff] }
  0x86   : > { %3016 = vmatmul.mubr.f32.vlgmr.msra.gmra.mrb[0].mxu1 %v11692_v49  ;;  %v11868_v62 = vcombine.low %v573_v5, %v581_v22  ;;  %v11873_v63 = vrot.slane %v1758_v8, %v11457_v13  ;;  %v11876_v1 = vrot.slane %v1766_v25, %v11457_v13  ;;  %v868_v14 = vrot.slane %v10556_v55, %v11451_v11 }
  0x87   : > { %15867 = vst [vmem:[#allocation33_spill] sm:$0xff] %v11865_v6  ;;  %3020 = vmatprep.mubr.f32.mxu1 %v11729_v35  ;;  %v11882_v9 = vrot.slane %v1774_v48, %v11457_v13  ;;  %v827_v28 = vcombine.high %v825_v26, %v825_v26  ;;  %v841_v52 = vrot.slane %v825_v26, %v11451_v11 }
  0x88   : > { %15868 = vst [vmem:[#allocation34_spill] sm:$0xff] %v11873_v63  ;;  %15869 = vst [vmem:[#allocation35_spill] sm:$0xff] %v11876_v1  ;;  %2339 = vmatmul.mubr.f32.gmra.mrb[2].mxu0 %v11696_v30  ;;  %v11885_v31 = vcombine.low %v569_v27, %v573_v5  ;;  %v2703_v32 = vcombine.low %v11865_v6, %v11873_v63  ;;  %v11891_v51 = vcombine.low %v577_v29, %v581_v22 }
  0x89   : > { %15870 = vst [vmem:[#allocation36_spill] sm:$0xff] %v11882_v9  ;;  %2343 = vmatprep.mubr.f32.mxu0 %v15872_v50  ;;  %v11893_v46 = vcombine.low %v569_v27, %v577_v29  ;;  %v2704_v41 = vcombine.low %v11876_v1, %v11882_v9  ;;  %v855_v60 = vrot.slane %v827_v28, %v11451_v11 }
  0x8a   : > { %15871 = vst [vmem:[#allocation37_spill] sm:$0xff] %v11885_v31  ;;  %3021 = vmatmul.mubr.f32.gmra.mrb[2].mxu1 %v11731_v17  ;;  %15873 = vst [vmem:[#allocation11_spill] sm:$0xff] %v11891_v51  ;;  %v857_v55 = vcombine.high %v841_v52, %v841_v52  ;;  %v1273_v33 = vrot.slane %v841_v52, %v11454_v12  ;;  %v2711_v39 = vrot.slane %v2703_v32, %v11457_v13 }
  0x8b   : > { %3025 = vmatprep.mubr.f32.mxu1 %v11690_v7  ;;  %v1277_v5 = vrot.slane %v841_v52, %v11538_v34  ;;  %v876_v8 = vcombine.high %v868_v14, %v868_v14  ;;  %v884_v22 = vrot.slane %v868_v14, %v11451_v11  ;;  %v2718_v25 = vrot.slane %v2704_v41, %v11457_v13 }
  0x8c   : > { %2344 = vmatmul.mubr.f32.gmra.mrb[4].mxu0 %v11601_v21  ;;  %v859_v7 = vcombine.high %v855_v60, %v855_v60  ;;  %v1281_v48 = vrot.slane %v855_v60, %v11454_v12  ;;  %v1285_v26 = vrot.slane %v855_v60, %v11538_v34  ;;  %v1289_v27 = vrot.slane %v857_v55, %v11454_v12 }
  0x8d   : > { %2348 = vmatprep.mubr.f32.mxu0 %v11624_v43  ;;  %v1293_v29 = vrot.slane %v857_v55, %v11538_v34  ;;  %v1782_v28 = vcombine.low %v1273_v33, %v1277_v5  ;;  %v11912_v14 = vcombine.high %v2711_v39, %v2718_v25  ;;  %v11914_v52 = vcombine.low %v2711_v39, %v2718_v25  ;;  %v10558_v5 = vld [vmem:[%s11513_s17 + $0x34] ss:$8 sps:$4 sm:$0xff]  }
  0x8e   : > { %3026 = vmatmul.mubr.f32.gmra.mrb[4].mxu1 %v11692_v49  ;;  %v1297_v32 = vrot.slane %v859_v7, %v11454_v12  ;;  %v1301_v41 = vrot.slane %v859_v7, %v11538_v34  ;;  %v1790_v60 = vcombine.low %v1281_v48, %v1285_v26  ;;  %v898_v1 = vrot.slane %v876_v8, %v11451_v11 }
  0x8f   : > { %3030 = vmatprep.mubr.f32.mxu1 %v11729_v35  ;;  %v11919_v49 = vrot.slane %v1782_v28, %v11457_v13  ;;  %v1798_v9 = vcombine.low %v1289_v27, %v1293_v29  ;;  %v906_v33 = vcombine.high %v884_v22, %v884_v22  ;;  %v1305_v35 = vrot.slane %v884_v22, %v11454_v12 }
  0x90   : > { %2349 = vmatmul.mubr.f32.gmra.mrb[6].mxu0 %v11696_v30  ;;  %v1806_v55 = vcombine.low %v1297_v32, %v1301_v41  ;;  %v1309_v39 = vrot.slane %v884_v22, %v11538_v34  ;;  %v11929_v25 = vrot.slane %v1790_v60, %v11457_v13  ;;  %v908_v8 = vcombine.high %v898_v1, %v898_v1 }
  0x91   : > { %15874 = vst [vmem:[#allocation38_spill] sm:$0xff] %v11919_v49  ;;  %2353 = vmatprep.mubr.f32.mxu0 %v15872_v50  ;;  %v11932_v7 = vrot.slane %v1798_v9, %v11457_v13  ;;  %v1313_v26 = vrot.slane %v898_v1, %v11454_v12  ;;  %v1317_v22 = vrot.slane %v898_v1, %v11538_v34 }
  0x92   : > { %3031 = vmatmul.mubr.f32.gmra.mrb[6].mxu1 %v11731_v17  ;;  %15875 = vst [vmem:[#allocation39_spill] sm:$0xff] %v11929_v25  ;;  %v11936_v48 = vrot.slane %v1806_v55, %v11457_v13  ;;  %v1321_v17 = vrot.slane %v906_v33, %v11454_v12  ;;  %v2721_v27 = vcombine.low %v11919_v49, %v11929_v25  ;;  %v9820_v55 = vld [vmem:[%s15547_s3 + $0x200] sm:$0xff] }
  0x93   : > { %15876 = vst [vmem:[#allocation40_spill] sm:$0xff] %v11932_v7  ;;  %3035 = vmatprep.mubr.f32.mxu1 %v11810_v61  ;;  %v1325_v29 = vrot.slane %v906_v33, %v11538_v34  ;;  %v1329_v9 = vrot.slane %v908_v8, %v11454_v12  ;;  %v1333_v28 = vrot.slane %v908_v8, %v11538_v34  ;;  %v9821_v33 = vld [vmem:[%s15547_s3 + $0x208] sm:$0xff] }
  0x94   : > { %15877 = vst [vmem:[#allocation41_spill] sm:$0xff] %v11936_v48  ;;  %2354 = vmatmul.mubr.f32.gmra.mrb[8].mxu0 %v11601_v21  ;;  %v2722_v32 = vcombine.low %v11932_v7, %v11936_v48  ;;  %v1814_v41 = vcombine.low %v1305_v35, %v1309_v39  ;;  %v1822_v60 = vcombine.low %v1313_v26, %v1317_v22 }
  0x95   : > { %v875_v1 = vrot.slane %v10558_v5, %v11451_v11  ;;  %2358 = vmatprep.mubr.f32.mxu0 %v11624_v43  ;;  %v2729_v8 = vrot.slane %v2721_v27, %v11457_v13  ;;  %v1830_v63 = vcombine.low %v1321_v17, %v1325_v29  ;;  %v1838_v6 = vcombine.low %v1329_v9, %v1333_v28 }
  0x96   : > { %3036 = vmatmul.mubr.f32.gmra.mrb[8].mxu1 %v11812_v36  ;;  %v2736_v35 = vrot.slane %v2722_v32, %v11457_v13  ;;  %v11962_v39 = vrot.slane %v1814_v41, %v11457_v13  ;;  %v11965_v5 = vrot.slane %v1822_v60, %v11457_v13  ;;  %v10322_v27 = vpack.c.bf16 %v9821_v33, %v9820_v55  ;;  %v9767_v60 = vld.sshfl [vmem:[%s11485_s22 + $0x10] sm:$0xff pattern:$0x75316420] }
  0x97   : > { %3040 = vmatprep.mubr.f32.mxu1 %v11846_v10  ;;  %v877_v26 = vcombine.high %v875_v1, %v875_v1  ;;  %v11968_v22 = vrot.slane %v1830_v63, %v11457_v13  ;;  %v11971_v42 = vrot.slane %v1838_v6, %v11457_v13  ;;  %v891_v17 = vrot.slane %v875_v1, %v11451_v11 }
  0x98   : > { %15878 = vst [vmem:[#allocation42_spill] sm:$0xff] %v11962_v39  ;;  %15879 = vst [vmem:[#allocation43_spill] sm:$0xff] %v11965_v5  ;;  %2359 = vmatmul.mubr.f32.gmra.mrb[10].mxu0 %v11696_v30  ;;  %v11975_v29 = vcombine.high %v2729_v8, %v2736_v35  ;;  %v11977_v9 = vcombine.low %v2729_v8, %v2736_v35  ;;  %v2739_v28 = vcombine.low %v11962_v39, %v11965_v5 }
  0x99   : > { %15880 = vst [vmem:[#allocation44_spill] sm:$0xff] %v11968_v22  ;;  %15881 = vst [vmem:[#allocation45_spill] sm:$0xff] %v11971_v42  ;;  %v905_v32 = vrot.slane %v877_v26, %v11451_v11  ;;  %2363 = vmatprep.mubr.f32.mxu0 %v15872_v50  ;;  %v2740_v6 = vcombine.low %v11968_v22, %v11971_v42  ;;  %v907_v63 = vcombine.high %v891_v17, %v891_v17  ;;  %v10559_v22 = vld [vmem:[%s11513_s17 + $0x40] ss:$8 sps:$4 sm:$0xff]  }
  0x9a   : > { %3041 = vmatmul.mubr.f32.gmra.mrb[10].mxu1 %v11848_v18  ;;  %v1337_v41 = vrot.slane %v891_v17, %v11454_v12  ;;  %v2747_v1 = vrot.slane %v2739_v28, %v11457_v13  ;;  %v1341_v33 = vrot.slane %v891_v17, %v11538_v34  ;;  %10323 = vmatpush1.bf16.msra.mxu0 %v10322_v27 }
  0x9b   : > { %3045 = vmatprep.mubr.f32.mxu1 %v11810_v61  ;;  %v909_v55 = vcombine.high %v905_v32, %v905_v32  ;;  %v1345_v8 = vrot.slane %v905_v32, %v11454_v12  ;;  %v2754_v35 = vrot.slane %v2740_v6, %v11457_v13  ;;  %v1349_v50 = vrot.slane %v905_v32, %v11538_v34  ;;  %v9822_v6 = vld [vmem:[%s15547_s3 + $0x210] sm:$0xff]  ;;  %v9823_v32 = vld [vmem:[%s15547_s3 + $0x218] sm:$0xff] }
  0x9c   : > { %v1353_v26 = vrot.slane %v907_v63, %v11454_v12  ;;  %v1357_v42 = vrot.slane %v907_v63, %v11538_v34  ;;  %2364 = vmatmul.mubr.f32.gmra.mrb[12].mxu0 %v11601_v21  ;;  %v1846_v5 = vcombine.low %v1337_v41, %v1341_v33  ;;  %v477_v17 = vcombine.high %v9767_v60, %v9767_v60 }
  0x9d   : > { %v1361_v61 = vrot.slane %v909_v55, %v11454_v12  ;;  %v1365_v28 = vrot.slane %v909_v55, %v11538_v34  ;;  %2368 = vmatprep.mubr.f32.mxu0 %v11624_v43  ;;  %v12008_v27 = vcombine.high %v2747_v1, %v2754_v35  ;;  %v12010_v21 = vcombine.low %v2747_v1, %v2754_v35 }
  0x9e   : > { %3046 = vmatmul.mubr.f32.gmra.mrb[12].mxu1 %v11812_v36  ;;  %v1854_v63 = vcombine.low %v1345_v8, %v1349_v50  ;;  %v12014_v41 = vrot.slane %v1846_v5, %v11457_v13  ;;  %v1862_v55 = vcombine.low %v1353_v26, %v1357_v42  ;;  %v484_v39 = vrot.slane %v9767_v60, %v11451_v11 }
  0x9f   : > { %3050 = vmatprep.mubr.f32.mxu1 %v11846_v10  ;;  %v1870_v33 = vcombine.low %v1361_v61, %v1365_v28  ;;  %v491_v36 = vrot.slane %v477_v17, %v11451_v11  ;;  %v918_v43 = vrot.slane %v10559_v22, %v11451_v11  ;;  %10324 = vmatprep.subr.bf16.mxu0 %v15830_v40 }
  0xa0   : > { %15882 = vst [vmem:[#allocation46_spill] sm:$0xff] %v12014_v41  ;;  %v12018_v4 = vrot.slane %v1854_v63, %v11457_v13  ;;  %v10325_v1 = vpack.c.bf16 %v9823_v32, %v9822_v6  ;;  %2369 = vmatmul.mubr.f32.gmra.mrb[14].mxu0 %v11696_v30  ;;  %v12025_v10 = vrot.slane %v1862_v55, %v11457_v13 }
  0xa1   : > { %v12028_v42 = vrot.slane %v1870_v33, %v11457_v13  ;;  %v589_v5 = vrot.slane %v484_v39, %v11538_v34  ;;  %v585_v60 = vrot.slane %v484_v39, %v11454_v12  ;;  %2373 = vmatprep.mubr.f32.mxu0 %v11823_v20  ;;  %v597_v8 = vrot.slane %v491_v36, %v11538_v34 }
  0xa2   : > { %15883 = vst [vmem:[#allocation47_spill] sm:$0xff] %v12018_v4  ;;  %15884 = vst [vmem:[#allocation48_spill] sm:$0xff] %v12025_v10  ;;  %3051 = vmatmul.mubr.f32.gmra.mrb[14].mxu1 %v11848_v18  ;;  %v2757_v22 = vcombine.low %v12014_v41, %v12018_v4  ;;  %v926_v30 = vcombine.high %v918_v43, %v918_v43  ;;  %v934_v50 = vrot.slane %v918_v43, %v11451_v11 }
  0xa3   : > { %15885 = vst [vmem:[#allocation49_spill] sm:$0xff] %v12028_v42  ;;  %3055 = vmatprep.mubr.f32.mxu1 %v11912_v14  ;;  %v2758_v35 = vcombine.low %v12025_v10, %v12028_v42  ;;  %v593_v26 = vrot.slane %v491_v36, %v11454_v12  ;;  %v12042_v61 = vcombine.low %v585_v60, %v589_v5 }
  0xa4   : > { %v2765_v18 = vrot.slane %v2757_v22, %v11457_v13  ;;  %v12045_v28 = vcombine.low %v589_v5, %v597_v8  ;;  %v948_v17 = vrot.slane %v926_v30, %v11451_v11  ;;  %10326 = vmatpush1.bf16.msra.mxu0 %v10325_v1  ;;  %v492_v6 = vcombine.high %v484_v39, %v484_v39 }
  0xa5   : > { %15886 = vst [vmem:[#allocation50_spill] sm:$0xff] %v12042_v61  ;;  %2374 = vmatmul.mubr.f32.gmra.mrb[16].mxu0 %v11834_v16  ;;  %v2772_v32 = vrot.slane %v2758_v35, %v11457_v13  ;;  %v956_v63 = vcombine.high %v934_v50, %v934_v50  ;;  %v1369_v55 = vrot.slane %v934_v50, %v11454_v12 }
  0xa6   : > { %v1373_v33 = vrot.slane %v934_v50, %v11538_v34  ;;  %3056 = vmatmul.mubr.f32.gmra.mrb[16].mxu1 %v11914_v52  ;;  %2378 = vmatprep.mubr.f32.mxu0 %v11868_v62  ;;  %v958_v43 = vcombine.high %v948_v17, %v948_v17  ;;  %v1377_v5 = vrot.slane %v948_v17, %v11454_v12  ;;  %v10561_v50 = vld [vmem:[%s11513_s17 + $0x44] ss:$8 sps:$4 sm:$0xff]  }
  0xa7   : > { %v1381_v1 = vrot.slane %v948_v17, %v11538_v34  ;;  %3060 = vmatprep.mubr.f32.mxu1 %v11975_v29  ;;  %v12057_v39 = vcombine.high %v2765_v18, %v2772_v32  ;;  %v12059_v22 = vcombine.low %v2765_v18, %v2772_v32  ;;  %v1385_v30 = vrot.slane %v956_v63, %v11454_v12 }
  0xa8   : > { %v1389_v35 = vrot.slane %v956_v63, %v11538_v34  ;;  %v1393_v37 = vrot.slane %v958_v43, %v11454_v12  ;;  %v1397_v58 = vrot.slane %v958_v43, %v11538_v34  ;;  %v1878_v42 = vcombine.low %v1369_v55, %v1373_v33  ;;  %10327 = vmatprep.subr.bf16.mxu0 %v15830_v40  ;;  %v9824_v43 = vld [vmem:[%s15547_s3 + $0x220] sm:$0xff] }
  0xa9   : > { %v1886_v10 = vcombine.low %v1377_v5, %v1381_v1  ;;  %2379 = vmatmul.mubr.f32.gmra.mrb[18].mxu0 %v11893_v46  ;;  %v12068_v4 = vcombine.low %v593_v26, %v597_v8  ;;  %v12070_v18 = vcombine.low %v585_v60, %v593_v26  ;;  %v493_v32 = vcombine.high %v491_v36, %v491_v36  ;;  %v9825_v60 = vld [vmem:[%s15547_s3 + $0x228] sm:$0xff] }
  0xaa   : > { %v1894_v17 = vcombine.low %v1385_v30, %v1389_v35  ;;  %3061 = vmatmul.mubr.f32.gmra.mrb[18].mxu1 %v11977_v9  ;;  %2383 = vmatprep.mubr.f32.mxu0 %v11823_v20  ;;  %v12075_v63 = vrot.slane %v1878_v42, %v11457_v13  ;;  %v1902_v33 = vcombine.low %v1393_v37, %v1397_v58 }
  0xab   : > { %15887 = vst [vmem:[#allocation51_spill] sm:$0xff] %v12068_v4  ;;  %v12078_v55 = vrot.slane %v1886_v10, %v11457_v13  ;;  %3065 = vmatprep.mubr.f32.mxu1 %v11912_v14  ;;  %v605_v42 = vrot.slane %v492_v6, %v11538_v34  ;;  %v613_v8 = vrot.slane %v493_v32, %v11538_v34 }
  0xac   : > { %15888 = vst [vmem:[#allocation52_spill] sm:$0xff] %v12075_v63  ;;  %v12088_v36 = vrot.slane %v1894_v17, %v11457_v13  ;;  %v925_v10 = vrot.slane %v10561_v50, %v11451_v11  ;;  %v12094_v58 = vrot.slane %v1902_v33, %v11457_v13  ;;  %v601_v26 = vrot.slane %v492_v6, %v11454_v12  ;;  %v9826_v50 = vld [vmem:[%s15547_s3 + $0x230] sm:$0xff]  ;;  %v9827_v17 = vld [vmem:[%s15547_s3 + $0x238] sm:$0xff] }
  0xad   : > { %15889 = vst [vmem:[#allocation53_spill] sm:$0xff] %v12078_v55  ;;  %v2775_v37 = vcombine.low %v12075_v63, %v12078_v55  ;;  %v609_v5 = vrot.slane %v493_v32, %v11454_v12  ;;  %2384 = vmatmul.mubr.f32.gmra.mrb[20].mxu0 %v11834_v16  ;;  %v12101_v14 = vcombine.low %v605_v42, %v613_v8 }
  0xae   : > { %15890 = vst [vmem:[#allocation54_spill] sm:$0xff] %v12088_v36  ;;  %15891 = vst [vmem:[#allocation55_spill] sm:$0xff] %v12094_v58  ;;  %v927_v1 = vcombine.high %v925_v10, %v925_v10  ;;  %v941_v30 = vrot.slane %v925_v10, %v11451_v11  ;;  %v10328_v35 = vpack.c.bf16 %v9825_v60, %v9824_v43  ;;  %3066 = vmatmul.mubr.f32.gmra.mrb[20].mxu1 %v11914_v52 }
  0xaf   : > { %2388 = vmatprep.mubr.f32.mxu0 %v11868_v62  ;;  %v2776_v6 = vcombine.low %v12088_v36, %v12094_v58  ;;  %v2783_v32 = vrot.slane %v2775_v37, %v11457_v13  ;;  %v12115_v33 = vcombine.low %v601_v26, %v605_v42  ;;  %3070 = vmatprep.mubr.f32.mxu1 %v11975_v29  ;;  %v10562_v37 = vld [vmem:[%s11513_s17 + $0x50] ss:$8 sps:$4 sm:$0xff]   ;;  %v10564_v42 = vld [vmem:[%s11513_s17 + $0x54] ss:$8 sps:$4 sm:$0xff]  }
  0xb0   : > { %v955_v43 = vrot.slane %v927_v1, %v11451_v11  ;;  %v957_v60 = vcombine.high %v941_v30, %v941_v30  ;;  %v1401_v10 = vrot.slane %v941_v30, %v11454_v12  ;;  %v1405_v55 = vrot.slane %v941_v30, %v11538_v34  ;;  %10329 = vmatpush1.bf16.msra.mxu0 %v10328_v35 }
  0xb1   : > { %15892 = vst [vmem:[#allocation56_spill] sm:$0xff] %v12115_v33  ;;  %v2790_v52 = vrot.slane %v2776_v6, %v11457_v13  ;;  %v12122_v63 = vcombine.low %v609_v5, %v613_v8  ;;  %v12124_v41 = vcombine.low %v601_v26, %v609_v5  ;;  %v10331_v58 = vpack.c.bf16 %v9827_v17, %v9826_v50  ;;  %v9828_v8 = vld [vmem:[%s15547_s3 + $0x240] sm:$0xff]  ;;  %v9829_v26 = vld [vmem:[%s15547_s3 + $0x248] sm:$0xff]  ;;  %v12148_v50 = vld [vmem:[%s15547_s3 + $0x250] sm:$0xff] }
  0xb2   : > { %2389 = vmatmul.mubr.f32.gmra.mrb[22].mxu0 %v11893_v46  ;;  %v959_v29 = vcombine.high %v955_v43, %v955_v43  ;;  %v1409_v1 = vrot.slane %v955_v43, %v11454_v12  ;;  %v1413_v36 = vrot.slane %v955_v43, %v11538_v34  ;;  %v1417_v15 = vrot.slane %v957_v60, %v11454_v12  ;;  %v12153_v17 = vld [vmem:[%s15547_s3 + $0x258] sm:$0xff] }
  0xb3   : > { %15893 = vst [vmem:[#allocation57_spill] sm:$0xff] %v12122_v63  ;;  %3071 = vmatmul.mubr.f32.gmra.mrb[22].mxu1 %v11977_v9  ;;  %2393 = vmatprep.mubr.f32.mxu0 %v11823_v20  ;;  %v12140_v5 = vcombine.high %v2783_v32, %v2790_v52  ;;  %v12142_v30 = vcombine.low %v2783_v32, %v2790_v52 }
  0xb4   : > { %v1421_v35 = vrot.slane %v957_v60, %v11538_v34  ;;  %3075 = vmatprep.mubr.f32.mxu1 %v12008_v27  ;;  %v1425_v9 = vrot.slane %v959_v29, %v11454_v12  ;;  %v1429_v6 = vrot.slane %v959_v29, %v11538_v34  ;;  %v1910_v32 = vcombine.low %v1401_v10, %v1405_v55 }
  0xb5   : > { %v1918_v43 = vcombine.low %v1409_v1, %v1413_v36  ;;  %10330 = vmatprep.subr.bf16.mxu0 %v15830_v40  ;;  %v968_v60 = vrot.slane %v10562_v37, %v11451_v11  ;;  %v10334_v23 = vpack.c.bf16 %v9829_v26, %v9828_v8  ;;  %v975_v51 = vrot.slane %v10564_v42, %v11451_v11 }
  0xb6   : > { %v1926_v52 = vcombine.low %v1417_v15, %v1421_v35  ;;  %2394 = vmatmul.mubr.f32.gmra.mrb[24].mxu0 %v11834_v16  ;;  %v12163_v31 = vrot.slane %v1910_v32, %v11457_v13  ;;  %v1934_v7 = vcombine.low %v1425_v9, %v1429_v6 }
  0xb7   : > { %v12166_v48 = vrot.slane %v1918_v43, %v11457_v13  ;;  %3076 = vmatmul.mubr.f32.gmra.mrb[24].mxu1 %v12010_v21  ;;  %2398 = vmatprep.mubr.f32.mxu0 %v11868_v62  ;;  %v976_v36 = vcombine.high %v968_v60, %v968_v60  ;;  %v984_v10 = vrot.slane %v968_v60, %v11451_v11 }
  0xb8   : > { %15894 = vst [vmem:[#allocation58_spill] sm:$0xff] %v12163_v31  ;;  %v12173_v15 = vrot.slane %v1926_v52, %v11457_v13  ;;  %3080 = vmatprep.mubr.f32.mxu1 %v12057_v39  ;;  %v12178_v37 = vrot.slane %v1934_v7, %v11457_v13  ;;  %10332 = vmatpush1.bf16.msra.mxu0 %v10331_v58 }
  0xb9   : > { %15895 = vst [vmem:[#allocation59_spill] sm:$0xff] %v12166_v48  ;;  %v2793_v42 = vcombine.low %v12163_v31, %v12166_v48  ;;  %v977_v29 = vcombine.high %v975_v51, %v975_v51  ;;  %v998_v1 = vrot.slane %v976_v36, %v11451_v11  ;;  %v1006_v8 = vcombine.high %v984_v10, %v984_v10 }
  0xba   : > { %15896 = vst [vmem:[#allocation60_spill] sm:$0xff] %v12173_v15  ;;  %15897 = vst [vmem:[#allocation61_spill] sm:$0xff] %v12178_v37  ;;  %v1433_v26 = vrot.slane %v984_v10, %v11454_v12  ;;  %v1437_v35 = vrot.slane %v984_v10, %v11538_v34  ;;  %10333 = vmatprep.subr.bf16.mxu0 %v15830_v40  ;;  %2399 = vmatmul.mubr.f32.gmra.mrb[26].mxu0 %v11893_v46 }
  0xbb   : > { %v2794_v7 = vcombine.low %v12173_v15, %v12178_v37  ;;  %v2801_v9 = vrot.slane %v2793_v42, %v11457_v13  ;;  %v991_v6 = vrot.slane %v975_v51, %v11451_v11  ;;  %v1005_v58 = vrot.slane %v977_v29, %v11451_v11  ;;  %3081 = vmatmul.mubr.f32.gmra.mrb[26].mxu1 %v12059_v22  ;;  %v12430_v15 = vld [vmem:[%s15547_s3 + $0x2d8] sm:$0xff] }
  0xbc   : > { %2403 = vmatprep.mubr.f32.mxu0 %v11823_v20  ;;  %v1008_v32 = vcombine.high %v998_v1, %v998_v1  ;;  %v1441_v43 = vrot.slane %v998_v1, %v11454_v12  ;;  %v1445_v52 = vrot.slane %v998_v1, %v11538_v34  ;;  %3085 = vmatprep.mubr.f32.mxu1 %v12008_v27 }
  0xbd   : > { %v2808_v60 = vrot.slane %v2794_v7, %v11457_v13  ;;  %v1449_v36 = vrot.slane %v1006_v8, %v11454_v12  ;;  %v1453_v10 = vrot.slane %v1006_v8, %v11538_v34  ;;  %v1942_v51 = vcombine.low %v1433_v26, %v1437_v35  ;;  %10335 = vmatpush1.bf16.msra.mxu0 %v10334_v23 }
  0xbe   : > { %v1457_v42 = vrot.slane %v1008_v32, %v11454_v12  ;;  %v1461_v29 = vrot.slane %v1008_v32, %v11538_v34  ;;  %v1950_v55 = vcombine.low %v1441_v43, %v1445_v52  ;;  %v1007_v20 = vcombine.high %v991_v6, %v991_v6  ;;  %2404 = vmatmul.mubr.f32.gmra.mrb[28].mxu0 %v11834_v16 }
  0xbf   : > { %v12203_v37 = vcombine.high %v2801_v9, %v2808_v60  ;;  %v12205_v1 = vcombine.low %v2801_v9, %v2808_v60  ;;  %v12208_v27 = vrot.slane %v1942_v51, %v11457_v13  ;;  %v1958_v7 = vcombine.low %v1449_v36, %v1453_v10  ;;  %3086 = vmatmul.mubr.f32.gmra.mrb[28].mxu1 %v12010_v21  ;;  %v9834_v10 = vld [vmem:[%s15547_s3 + $0x270] sm:$0xff]  ;;  %v9835_v51 = vld [vmem:[%s15547_s3 + $0x278] sm:$0xff] }
  0xc0   : > { %2408 = vmatprep.mubr.f32.mxu0 %v11868_v62  ;;  %v12213_v8 = vrot.slane %v1950_v55, %v11457_v13  ;;  %v1966_v26 = vcombine.low %v1457_v42, %v1461_v29  ;;  %v1009_v23 = vcombine.high %v1005_v58, %v1005_v58  ;;  %3090 = vmatprep.mubr.f32.mxu1 %v12057_v39  ;;  %v9832_v39 = vld [vmem:[%s15547_s3 + $0x260] sm:$0xff] }
  0xc1   : > { %15898 = vst [vmem:[#allocation62_spill] sm:$0xff] %v12208_v27  ;;  %v12217_v16 = vrot.slane %v1958_v7, %v11457_v13  ;;  %v1465_v35 = vrot.slane %v991_v6, %v11454_v12  ;;  %v1469_v9 = vrot.slane %v991_v6, %v11538_v34  ;;  %v1473_v32 = vrot.slane %v1005_v58, %v11454_v12 }
  0xc2   : > { %15899 = vst [vmem:[#allocation63_spill] sm:$0xff] %v12213_v8  ;;  %v12223_v21 = vrot.slane %v1966_v26, %v11457_v13  ;;  %v2811_v62 = vcombine.low %v12208_v27, %v12213_v8  ;;  %v1477_v55 = vrot.slane %v1005_v58, %v11538_v34  ;;  %v1481_v43 = vrot.slane %v1007_v20, %v11454_v12  ;;  %v9833_v58 = vld [vmem:[%s15547_s3 + $0x268] sm:$0xff] }
  0xc3   : > { %15900 = vst [vmem:[#allocation64_spill] sm:$0xff] %v12217_v16  ;;  %10336 = vmatprep.subr.bf16.mxu0 %v15830_v40  ;;  %2409 = vmatmul.mubr.f32.gmra.mrb[30].mxu0 %v11893_v46  ;;  %v1485_v6 = vrot.slane %v1007_v20, %v11538_v34  ;;  %v1489_v52 = vrot.slane %v1009_v23, %v11454_v12  ;;  %v9768_v20 = vld.sshfl [vmem:[%s11485_s22 + $0x18] sm:$0xff pattern:$0x75316420] }
  0xc4   : > { %15901 = vst [vmem:[#allocation65_spill] sm:$0xff] %v12223_v21  ;;  %v1493_v60 = vrot.slane %v1009_v23, %v11538_v34  ;;  %v1974_v36 = vcombine.low %v1465_v35, %v1469_v9  ;;  %3091 = vmatmul.mubr.f32.gmra.mrb[30].mxu1 %v12059_v22  ;;  %2413 = vmatprep.mubr.f32.mxu0 %v12045_v28 }
  0xc5   : > { %v2812_v46 = vcombine.low %v12217_v16, %v12223_v21  ;;  %v2819_v42 = vrot.slane %v2811_v62, %v11457_v13  ;;  %v1982_v29 = vcombine.low %v1473_v32, %v1477_v55  ;;  %3095 = vmatprep.mubr.f32.mxu1 %v12140_v5  ;;  %v1990_v26 = vcombine.low %v1481_v43, %v1485_v6  ;;  %v10565_v55 = vld [vmem:[%s11513_s17 + $0x60] ss:$8 sps:$4 sm:$0xff]  }
  0xc6   : > { %v12254_v7 = vrot.slane %v1974_v36, %v11457_v13  ;;  %v1998_v23 = vcombine.low %v1489_v52, %v1493_v60  ;;  %v15903_v22 = vpack.c.bf16 %v12153_v17, %v12148_v50  ;;  %v10340_v32 = vpack.c.bf16 %v9833_v58, %v9832_v39  ;;  %v9836_v6 = vld [vmem:[%s15547_s3 + $0x280] sm:$0xff]  ;;  %v9837_v39 = vld [vmem:[%s15547_s3 + $0x288] sm:$0xff] }
  0xc7   : > { %v2826_v35 = vrot.slane %v2812_v46, %v11457_v13  ;;  %v12261_v9 = vrot.slane %v1982_v29, %v11457_v13  ;;  %v10343_v62 = vpack.c.bf16 %v9835_v51, %v9834_v10  ;;  %2414 = vmatmul.mubr.f32.gmra.mrb[32].mxu0 %v12070_v18  ;;  %v12267_v36 = vrot.slane %v1990_v26, %v11457_v13 }
  0xc8   : > { %15902 = vst [vmem:[#allocation66_spill] sm:$0xff] %v12254_v7  ;;  %10338 = vmatpush1.bf16.msra.mxu0 %v15903_v22  ;;  %v12270_v43 = vrot.slane %v1998_v23, %v11457_v13  ;;  %v501_v50 = vcombine.high %v9768_v20, %v9768_v20  ;;  %v508_v17 = vrot.slane %v9768_v20, %v11451_v11 }
  0xc9   : > { %15904 = vst [vmem:[#allocation67_spill] sm:$0xff] %v12261_v9  ;;  %10339 = vmatprep.subr.bf16.mxu0 %v15830_v40  ;;  %15905 = vst [vmem:[#allocation68_spill] sm:$0xff] %v12267_v36  ;;  %3096 = vmatmul.mubr.f32.gmra.mrb[32].mxu1 %v12142_v30  ;;  %v12281_v52 = vcombine.high %v2819_v42, %v2826_v35  ;;  %v12283_v60 = vcombine.low %v2819_v42, %v2826_v35 }
  0xca   : > { %15906 = vst [vmem:[#allocation69_spill] sm:$0xff] %v12270_v43  ;;  %2418 = vmatprep.mubr.f32.mxu0 %v12101_v14  ;;  %v2829_v58 = vcombine.low %v12254_v7, %v12261_v9  ;;  %3100 = vmatprep.mubr.f32.mxu1 %v12203_v37  ;;  %v2830_v10 = vcombine.low %v12267_v36, %v12270_v43 }
  0xcb   : > { %v515_v51 = vrot.slane %v501_v50, %v11451_v11  ;;  %v621_v46 = vrot.slane %v508_v17, %v11538_v34  ;;  %v1018_v42 = vrot.slane %v10565_v55, %v11451_v11  ;;  %v617_v20 = vrot.slane %v508_v17, %v11454_v12  ;;  %2419 = vmatmul.mubr.f32.gmra.mrb[34].mxu0 %v12124_v41 }
  0xcc   : > { %10341 = vmatpush1.bf16.msra.mxu0 %v10340_v32  ;;  %v2837_v29 = vrot.slane %v2829_v58, %v11457_v13  ;;  %v10346_v26 = vpack.c.bf16 %v9837_v39, %v9836_v6  ;;  %v2844_v23 = vrot.slane %v2830_v10, %v11457_v13  ;;  %v516_v32 = vcombine.high %v508_v17, %v508_v17 }
  0xcd   : > { %10342 = vmatprep.subr.bf16.mxu0 %v15830_v40  ;;  %v629_v22 = vrot.slane %v515_v51, %v11538_v34  ;;  %v625_v35 = vrot.slane %v515_v51, %v11454_v12  ;;  %3101 = vmatmul.mubr.f32.gmra.mrb[34].mxu1 %v12205_v1  ;;  %v1026_v50 = vcombine.high %v1018_v42, %v1018_v42 }
  0xce   : > { %2423 = vmatprep.mubr.f32.mxu0 %v12045_v28  ;;  %v1034_v58 = vrot.slane %v1018_v42, %v11451_v11  ;;  %v12303_v55 = vcombine.low %v617_v20, %v621_v46  ;;  %3105 = vmatprep.mubr.f32.mxu1 %v12140_v5  ;;  %v12306_v6 = vcombine.high %v2837_v29, %v2844_v23 }
  0xcf   : > { %v12308_v39 = vcombine.low %v2837_v29, %v2844_v23  ;;  %v12310_v10 = vcombine.low %v621_v46, %v629_v22  ;;  %v1048_v17 = vrot.slane %v1026_v50, %v11451_v11  ;;  %2424 = vmatmul.mubr.f32.gmra.mrb[36].mxu0 %v12070_v18  ;;  %v12317_v42 = vcombine.low %v625_v35, %v629_v22  ;;  %v10567_v46 = vld [vmem:[%s11513_s17 + $0x64] ss:$8 sps:$4 sm:$0xff]  }
  0xd0   : > { %15907 = vst [vmem:[#allocation70_spill] sm:$0xff] %v12303_v55  ;;  %10344 = vmatpush1.bf16.msra.mxu0 %v10343_v62  ;;  %v1056_v21 = vcombine.high %v1034_v58, %v1034_v58  ;;  %v1497_v16 = vrot.slane %v1034_v58, %v11454_v12  ;;  %v1501_v8 = vrot.slane %v1034_v58, %v11538_v34 }
  0xd1   : > { %10345 = vmatprep.subr.bf16.mxu0 %v15830_v40  ;;  %15908 = vst [vmem:[#allocation71_spill] sm:$0xff] %v12317_v42  ;;  %v12319_v5 = vcombine.low %v617_v20, %v625_v35  ;;  %v517_v29 = vcombine.high %v515_v51, %v515_v51  ;;  %v637_v62 = vrot.slane %v516_v32, %v11538_v34 }
  0xd2   : > { %3106 = vmatmul.mubr.f32.gmra.mrb[36].mxu1 %v12142_v30  ;;  %2428 = vmatprep.mubr.f32.mxu0 %v12101_v14  ;;  %v1058_v23 = vcombine.high %v1048_v17, %v1048_v17  ;;  %v1505_v50 = vrot.slane %v1048_v17, %v11454_v12  ;;  %v1509_v58 = vrot.slane %v1048_v17, %v11538_v34 }
  0xd3   : > { %3110 = vmatprep.mubr.f32.mxu1 %v12203_v37  ;;  %v1513_v22 = vrot.slane %v1056_v21, %v11454_v12  ;;  %v1517_v20 = vrot.slane %v1056_v21, %v11538_v34  ;;  %v2006_v35 = vcombine.low %v1497_v16, %v1501_v8  ;;  %v645_v43 = vrot.slane %v517_v29, %v11538_v34  ;;  %v9838_v16 = vld [vmem:[%s15547_s3 + $0x290] sm:$0xff]  ;;  %v9839_v21 = vld [vmem:[%s15547_s3 + $0x298] sm:$0xff] }
  0xd4   : > { %10347 = vmatpush1.bf16.msra.mxu0 %v10346_v26  ;;  %v1521_v51 = vrot.slane %v1058_v23, %v11454_v12  ;;  %v1525_v27 = vrot.slane %v1058_v23, %v11538_v34  ;;  %v2014_v30 = vcombine.low %v1505_v50, %v1509_v58  ;;  %v1025_v36 = vrot.slane %v10567_v46, %v11451_v11 }
  0xd5   : > { %10348 = vmatprep.subr.bf16.mxu0 %v15830_v40  ;;  %2429 = vmatmul.mubr.f32.gmra.mrb[38].mxu0 %v12124_v41  ;;  %v12336_v17 = vrot.slane %v2006_v35, %v11457_v13  ;;  %v2022_v37 = vcombine.low %v1513_v22, %v1517_v20  ;;  %v633_v8 = vrot.slane %v516_v32, %v11454_v12 }
  0xd6   : > { %3111 = vmatmul.mubr.f32.gmra.mrb[38].mxu1 %v12205_v1  ;;  %2433 = vmatprep.mubr.f32.mxu0 %v12045_v28  ;;  %v12349_v26 = vrot.slane %v2014_v30, %v11457_v13  ;;  %v2030_v23 = vcombine.low %v1521_v51, %v1525_v27  ;;  %v12351_v50 = vcombine.low %v637_v62, %v645_v43 }
  0xd7   : > { %15909 = vst [vmem:[#allocation72_spill] sm:$0xff] %v12336_v17  ;;  %3115 = vmatprep.mubr.f32.mxu1 %v12281_v52  ;;  %v12355_v32 = vrot.slane %v2022_v37, %v11457_v13  ;;  %v1027_v46 = vcombine.high %v1025_v36, %v1025_v36  ;;  %v1041_v58 = vrot.slane %v1025_v36, %v11451_v11 }
  0xd8   : > { %15910 = vst [vmem:[#allocation73_spill] sm:$0xff] %v12349_v26  ;;  %v641_v22 = vrot.slane %v517_v29, %v11454_v12  ;;  %v12360_v1 = vrot.slane %v2030_v23, %v11457_v13  ;;  %v2847_v20 = vcombine.low %v12336_v17, %v12349_v26  ;;  %v12364_v35 = vcombine.low %v633_v8, %v637_v62  ;;  %v10568_v26 = vld [vmem:[%s11513_s17 + $0x70] ss:$8 sps:$4 sm:$0xff]   ;;  %v10570_v17 = vld [vmem:[%s11513_s17 + $0x74] ss:$8 sps:$4 sm:$0xff]   ;;  %s10921_s17 = scalar_lea.vmem %s15496_s11, 8192 }
  0xd9   : > { %15911 = vst [vmem:[#allocation74_spill] sm:$0xff] %v12355_v32  ;;  %v10349_v27 = vpack.c.bf16 %v9839_v21, %v9838_v16  ;;  %2434 = vmatmul.mubr.f32.gmra.mrb[40].mxu0 %v12070_v18  ;;  %v1055_v51 = vrot.slane %v1027_v46, %v11451_v11  ;;  %v1057_v30 = vcombine.high %v1041_v58, %v1041_v58  ;;  %p10922_p12 = scmp.ne.s32.totalorder %s15496_s11, %s10921_s17 }
  0xda   : > { %15912 = vst [vmem:[#allocation75_spill] sm:$0xff] %v12360_v1  ;;  %15913 = vst [vmem:[#allocation76_spill] sm:$0xff] %v12364_v35  ;;  %v1529_v36 = vrot.slane %v1041_v58, %v11454_v12  ;;  %v1533_v29 = vrot.slane %v1041_v58, %v11538_v34  ;;  %3116 = vmatmul.mubr.f32.gmra.mrb[40].mxu1 %v12283_v60  ;;  %2438 = vmatprep.mubr.f32.mxu0 %v12101_v14 }
  0xdb   : > { %v2848_v62 = vcombine.low %v12355_v32, %v12360_v1  ;;  %v2855_v37 = vrot.slane %v2847_v20, %v11457_v13  ;;  %v12375_v16 = vcombine.low %v641_v22, %v645_v43  ;;  %3120 = vmatprep.mubr.f32.mxu1 %v12306_v6  ;;  %v1059_v21 = vcombine.high %v1055_v51, %v1055_v51  ;;  %v9840_v43 = vld [vmem:[%s15547_s3 + $0x2a0] sm:$0xff]  ;;  %v9841_v20 = vld [vmem:[%s15547_s3 + $0x2a8] sm:$0xff]  ;;  %p10923_p8 = pnand %p10922_p12, %p16305_p13 }
  0xdc   : > { %v1537_v23 = vrot.slane %v1055_v51, %v11454_v12  ;;  %v1541_v46 = vrot.slane %v1055_v51, %v11538_v34  ;;  %v1545_v58 = vrot.slane %v1057_v30, %v11454_v12  ;;  %v1549_v7 = vrot.slane %v1057_v30, %v11538_v34  ;;  %10350 = vmatpush1.bf16.msra.mxu0 %v10349_v27  ;;  %v9842_v51 = vld [vmem:[%s15547_s3 + $0x2b0] sm:$0xff]  ;;  %v9843_v27 = vld [vmem:[%s15547_s3 + $0x2b8] sm:$0xff] }
  0xdd   : > { %15914 = vst [vmem:[#allocation77_spill] sm:$0xff] %v12375_v16  ;;  %v2862_v9 = vrot.slane %v2848_v62, %v11457_v13  ;;  %v2038_v1 = vcombine.low %v1529_v36, %v1533_v29  ;;  %v12385_v32 = vcombine.low %v633_v8, %v641_v22  ;;  %2439 = vmatmul.mubr.f32.gmra.mrb[42].mxu0 %v12124_v41  ;;  %v12406_v36 = vld [vmem:[%s15547_s3 + $0x2c0] sm:$0xff]  ;;  %v12411_v29 = vld [vmem:[%s15547_s3 + $0x2c8] sm:$0xff]  ;;  %p10924_p10 = pneg %p10923_p8 }
  0xde   : > { %v1553_v30 = vrot.slane %v1059_v21, %v11454_v12  ;;  %v1557_v8 = vrot.slane %v1059_v21, %v11538_v34  ;;  %v2046_v22 = vcombine.low %v1537_v23, %v1541_v46  ;;  %10351 = vmatprep.subr.bf16.mxu0 %v15830_v40  ;;  %3121 = vmatmul.mubr.f32.gmra.mrb[42].mxu1 %v12308_v39  ;;  %v12425_v46 = vld [vmem:[%s15547_s3 + $0x2d0] sm:$0xff] }
  0xdf   : > { %2443 = vmatprep.mubr.f32.mxu0 %v12045_v28  ;;  %v12415_v62 = vcombine.high %v2855_v37, %v2862_v9  ;;  %v12417_v21 = vcombine.low %v2855_v37, %v2862_v9  ;;  %v12420_v23 = vrot.slane %v2038_v1, %v11457_v13  ;;  %3125 = vmatprep.mubr.f32.mxu1 %v12281_v52 }
  0xe0   : > { %v12434_v28 = vrot.slane %v2046_v22, %v11457_v13  ;;  %v2054_v9 = vcombine.low %v1545_v58, %v1549_v7  ;;  %v2062_v37 = vcombine.low %v1553_v30, %v1557_v8  ;;  %v10352_v48 = vpack.c.bf16 %v9841_v20, %v9840_v43 }
  0xe1   : > { %15915 = vst [vmem:[#allocation78_spill] sm:$0xff] %v12420_v23  ;;  %v10355_v1 = vpack.c.bf16 %v9843_v27, %v9842_v51  ;;  %v1068_v31 = vrot.slane %v10568_v26, %v11451_v11  ;;  %v10358_v25 = vpack.c.bf16 %v12411_v29, %v12406_v36  ;;  %v1075_v49 = vrot.slane %v10570_v17, %v11451_v11 }
  0xe2   : > { %15916 = vst [vmem:[#allocation79_spill] sm:$0xff] %v12434_v28  ;;  %2444 = vmatmul.mubr.f32.gmra.mrb[44].mxu0 %v12070_v18  ;;  %v12442_v19 = vrot.slane %v2054_v9, %v11457_v13  ;;  %v12445_v52 = vrot.slane %v2062_v37, %v11457_v13  ;;  %v2865_v7 = vcombine.low %v12420_v23, %v12434_v28 }
  0xe3   : > { %v10361_v58 = vpack.c.bf16 %v12430_v15, %v12425_v46  ;;  %3126 = vmatmul.mubr.f32.gmra.mrb[44].mxu1 %v12283_v60  ;;  %2448 = vmatprep.mubr.f32.mxu0 %v12101_v14  ;;  %v1076_v26 = vcombine.high %v1068_v31, %v1068_v31  ;;  %v1084_v17 = vrot.slane %v1068_v31, %v11451_v11  ;;  %v9851_v15 = vld [vmem:[%s15547_s3 + $0x2f8] sm:$0xff] }
  0xe4   : > { %15917 = vst [vmem:[#allocation80_spill] sm:$0xff] %v12442_v19  ;;  %15918 = vst [vmem:[#allocation81_spill] sm:$0xff] %v12445_v52  ;;  %v1077_v18 = vcombine.high %v1075_v49, %v1075_v49  ;;  %3130 = vmatprep.mubr.f32.mxu1 %v12306_v6  ;;  %v2866_v43 = vcombine.low %v12442_v19, %v12445_v52  ;;  %v2873_v20 = vrot.slane %v2865_v7, %v11457_v13 }
  0xe5   : > { %10353 = vmatpush1.bf16.msra.mxu0 %v10352_v48  ;;  %v1091_v51 = vrot.slane %v1075_v49, %v11451_v11  ;;  %v1098_v60 = vrot.slane %v1076_v26, %v11451_v11  ;;  %v1106_v30 = vcombine.high %v1084_v17, %v1084_v17  ;;  %v1561_v14 = vrot.slane %v1084_v17, %v11454_v12 }
  0xe6   : > { %10354 = vmatprep.subr.bf16.mxu0 %v15830_v40  ;;  %v1565_v31 = vrot.slane %v1084_v17, %v11538_v34  ;;  %2449 = vmatmul.mubr.f32.gmra.mrb[46].mxu0 %v12124_v41  ;;  %v2880_v6 = vrot.slane %v2866_v43, %v11457_v13  ;;  %v1105_v8 = vrot.slane %v1077_v18, %v11451_v11 }
  0xe7   : > { %v1107_v22 = vcombine.high %v1091_v51, %v1091_v51  ;;  %v1593_v48 = vrot.slane %v1091_v51, %v11454_v12  ;;  %3131 = vmatmul.mubr.f32.gmra.mrb[46].mxu1 %v12308_v39  ;;  %2453 = vmatprep.mubr.f32.mxu0 %v12310_v10  ;;  %v1108_v49 = vcombine.high %v1098_v60, %v1098_v60 }
  0xe8   : > { %v1569_v27 = vrot.slane %v1098_v60, %v11454_v12  ;;  %v1573_v36 = vrot.slane %v1098_v60, %v11538_v34  ;;  %3135 = vmatprep.mubr.f32.mxu1 %v12415_v62  ;;  %v2882_v29 = vcombine.high %v2873_v20, %v2880_v6  ;;  %v12472_v41 = vcombine.low %v2873_v20, %v2880_v6 }
  0xe9   : > { %10356 = vmatpush1.bf16.msra.mxu0 %v10355_v1  ;;  %v1577_v11 = vrot.slane %v1106_v30, %v11454_v12  ;;  %v1581_v9 = vrot.slane %v1106_v30, %v11538_v34  ;;  %v1585_v37 = vrot.slane %v1108_v49, %v11454_v12  ;;  %v1589_v39 = vrot.slane %v1108_v49, %v11538_v34 }
  0xea   : > { %v2070_v7 = vcombine.low %v1561_v14, %v1565_v31  ;;  %10357 = vmatprep.subr.bf16.mxu0 %v15830_v40  ;;  %2454 = vmatmul.mubr.f32.gmra.mrb[48].mxu0 %v12319_v5  ;;  %v2078_v26 = vcombine.low %v1569_v27, %v1573_v36  ;;  %v1109_v17 = vcombine.high %v1105_v8, %v1105_v8 }
  0xeb   : > { %v1597_v18 = vrot.slane %v1091_v51, %v11538_v34  ;;  %v1601_v43 = vrot.slane %v1105_v8, %v11454_v12  ;;  %3136 = vmatmul.mubr.f32.gmra.mrb[48].mxu1 %v12417_v21  ;;  %2458 = vmatprep.mubr.f32.mxu0 %v12351_v50  ;;  %v2086_v20 = vcombine.low %v1577_v11, %v1581_v9  ;;  %v9848_v9 = vld [vmem:[%s15547_s3 + $0x2e0] sm:$0xff] }
  0xec   : > { %v12485_v1 = vrot.slane %v2070_v7, %v11457_v13  ;;  %v2094_v60 = vcombine.low %v1585_v37, %v1589_v39  ;;  %3140 = vmatprep.mubr.f32.mxu1 %v2882_v29  ;;  %v12488_v30 = vrot.slane %v2078_v26, %v11457_v13  ;;  %v1605_v14 = vrot.slane %v1105_v8, %v11538_v34 }
  0xed   : > { %10359 = vmatpush1.bf16.msra.mxu0 %v10358_v25  ;;  %v1609_v51 = vrot.slane %v1107_v22, %v11454_v12  ;;  %v12493_v31 = vrot.slane %v2086_v20, %v11457_v13  ;;  %v1613_v49 = vrot.slane %v1107_v22, %v11538_v34  ;;  %v1617_v27 = vrot.slane %v1109_v17, %v11454_v12  ;;  %v9849_v22 = vld [vmem:[%s15547_s3 + $0x2e8] sm:$0xff] }
  0xee   : > { %15919 = vst [vmem:[#allocation82_spill] sm:$0xff] %v12485_v1  ;;  %15920 = vst [vmem:[#allocation83_spill] sm:$0xff] %v12488_v30  ;;  %v12496_v6 = vrot.slane %v2094_v60, %v11457_v13  ;;  %10360 = vmatprep.subr.bf16.mxu0 %v15830_v40  ;;  %2459 = vmatmul.mubr.f32.gmra.mrb[50].mxu0 %v12385_v32  ;;  %v2883_v25 = vcombine.low %v12485_v1, %v12488_v30 }
  0xef   : > { %15921 = vst [vmem:[#allocation84_spill] sm:$0xff] %v12493_v31  ;;  %v1621_v8 = vrot.slane %v1109_v17, %v11538_v34  ;;  %v2102_v36 = vcombine.low %v1593_v48, %v1597_v18  ;;  %v2110_v11 = vcombine.low %v1601_v43, %v1605_v14  ;;  %3141 = vmatmul.mubr.f32.gmra.mrb[50].mxu1 %v12472_v41  ;;  %v9854_v34 = vld [vmem:[%s15549_s5 + $0x10] sm:$0xff]  ;;  %v9855_v48 = vld [vmem:[%s15549_s5 + $0x18] sm:$0xff] }
  0xf0   : > { %15922 = vst [vmem:[#allocation85_spill] sm:$0xff] %v12496_v6  ;;  %2463 = vmatprep.mubr.f32.mxu0 %v12310_v10  ;;  %v2884_v12 = vcombine.low %v12493_v31, %v12496_v6  ;;  %v2118_v37 = vcombine.low %v1609_v51, %v1613_v49  ;;  %3145 = vmatprep.mubr.f32.mxu1 %v12415_v62  ;;  %v9850_v14 = vld [vmem:[%s15547_s3 + $0x2f0] sm:$0xff] }
  0xf1   : > { %v2891_v39 = vrot.slane %v2883_v25, %v11457_v13  ;;  %v12524_v7 = vrot.slane %v2102_v36, %v11457_v13  ;;  %v12527_v26 = vrot.slane %v2110_v11, %v11457_v13  ;;  %v2126_v17 = vcombine.low %v1617_v27, %v1621_v8  ;;  %10362 = vmatpush1.bf16.msra.mxu0 %v10361_v58  ;;  %v353_v36 = vld [vmem:[%s11161_s15 + $0x18] sm:$0xff]  ;;  %v356_v11 = vld [vmem:[%s11161_s15 + $0x30] sm:$0xff] }
  0xf2   : > { %v2898_v18 = vrot.slane %v2884_v12, %v11457_v13  ;;  %v12531_v43 = vrot.slane %v2118_v37, %v11457_v13  ;;  %v10364_v20 = vpack.c.bf16 %v9849_v22, %v9848_v9  ;;  %2464 = vmatmul.mubr.f32.gmra.mrb[52].mxu0 %v12319_v5  ;;  %10363 = vmatprep.subr.bf16.mxu0 %v15830_v40  ;;  %v359_v9 = vld [vmem:[%s11161_s15 + $0x48] sm:$0xff]  ;;  %v358_v22 = vld [vmem:[%s11161_s15 + $0x40] sm:$0xff]  ;;  %v361_v12 = vld [vmem:[%s11161_s15 + $0x58] sm:$0xff] }
  0xf3   : > { %15923 = vst [vmem:[#allocation86_spill] sm:$0xff] %v12524_v7  ;;  %15924 = vst [vmem:[#allocation87_spill] sm:$0xff] %v12527_v26  ;;  %v12538_v62 = vrot.slane %v2126_v17, %v11457_v13  ;;  %v2901_v60 = vcombine.low %v12524_v7, %v12527_v26  ;;  %v10369_v46 = vpack.c.bf16 %v9855_v48, %v9854_v34  ;;  %3146 = vmatmul.mubr.f32.gmra.mrb[52].mxu1 %v12417_v21  ;;  %v360_v37 = vld [vmem:[%s11161_s15 + $0x50] sm:$0xff]  ;;  %v363_v34 = vld [vmem:[%s11161_s15 + $0x68] sm:$0xff] }
  0xf4   : > { %15925 = vst [vmem:[#allocation88_spill] sm:$0xff] %v12531_v43  ;;  %2468 = vmatprep.mubr.f32.mxu0 %v12351_v50  ;;  %3150 = vmatprep.mubr.f32.mxu1 %v2882_v29  ;;  %v2900_v58 = vcombine.high %v2891_v39, %v2898_v18  ;;  %v10367_v27 = vpack.c.bf16 %v9851_v15, %v9850_v14  ;;  %v362_v48 = vld [vmem:[%s11161_s15 + $0x60] sm:$0xff]  ;;  %v364_v17 = vld [vmem:[%s11161_s15 + $0x70] sm:$0xff]  ;;  %v371_v15 = vld [vmem:[%s11161_s15 + $0xa8] sm:$0xff] }
  0xf5   : > { %15926 = vst [vmem:[#allocation89_spill] sm:$0xff] %v12538_v62  ;;  %v2902_v51 = vcombine.low %v12531_v43, %v12538_v62  ;;  %v2909_v49 = vrot.slane %v2901_v60, %v11457_v13  ;;  %10381 = vmatprep.subr.bf16.mxu1 %v10369_v46  ;;  %10365 = vmatpush1.bf16.msra.mxu0 %v10364_v20  ;;  %v366_v20 = vld [vmem:[%s11161_s15 + $0x80] sm:$0xff]  ;;  %v369_v60 = vld [vmem:[%s11161_s15 + $0x98] sm:$0xff]  ;;  %v368_v14 = vld [vmem:[%s11161_s15 + $0x90] sm:$0xff] }
  0xf6   : > { %10382 = vmatpush3.bf16.msra.mxu1 %v10369_v46  ;;  %2469 = vmatmul.mubr.f32.gmra.mrb[54].mxu0 %v12385_v32  ;;  %v2899_v21 = vcombine.low %v2891_v39, %v2898_v18  ;;  %v365_v39 = vld [vmem:[%s11161_s15 + $0x78] sm:$0xff]  ;;  %v367_v18 = vld [vmem:[%s11161_s15 + $0x88] sm:$0xff] }
  0xf7   : > { %v2916_v25 = vrot.slane %v2902_v51, %v11457_v13  ;;  %10366 = vmatprep.subr.bf16.mxu0 %v15830_v40  ;;  %3151 = vmatmul.mubr.f32.gmra.mrb[54].mxu1 %v12472_v41  ;;  %v351_v40 = vld [vmem:[%s11161_s15 + $0x8] sm:$0xff]  ;;  %v350_v41 = vld [vmem:[%s11161_s15] sm:$0xff]  ;;  %v372_v51 = vld [vmem:[%s11161_s15 + $0xb0] sm:$0xff] }
  0xf8   : > { %2473 = vmatprep.mubr.f32.mxu0 %v12310_v10  ;;  %3155 = vmatprep.mubr.f32.mxu1 %v2900_v58 }
  0xf9   : > { %v2918_v29 = vcombine.high %v2909_v49, %v2916_v25  ;;  %10368 = vmatpush1.bf16.msra.mxu0 %v10367_v27  ;;  %v2917_v8 = vcombine.low %v2909_v49, %v2916_v25  ;;  %v375_v49 = vld [vmem:[%s11161_s15 + $0xc8] sm:$0xff]  ;;  %v374_v27 = vld [vmem:[%s11161_s15 + $0xc0] sm:$0xff]  ;;  %v377_v25 = vld [vmem:[%s11161_s15 + $0xd8] sm:$0xff] }
  0xfa   : > { %2474 = vmatmul.mubr.f32.gmra.mrb[56].mxu0 %v12319_v5  ;;  %10370 = vmatprep.subr.bf16.mxu0 %v10369_v46 }
  0xfb   : > { %3156 = vmatmul.mubr.f32.gmra.mrb[56].mxu1 %v2899_v21  ;;  %2478 = vmatprep.mubr.f32.mxu0 %v12351_v50 }
  0xfc   : > { %3160 = vmatprep.mubr.f32.mxu1 %v2918_v29 }
  0xfe   : > { %2479 = vmatmul.mubr.f32.gmra.mrb[58].mxu0 %v12385_v32 }
  0xff   : > { %3161 = vmatmul.mubr.f32.gmra.mrb[58].mxu1 %v2917_v8  ;;  %2483 = vmatprep.mubr.f32.mxu0 %v12310_v10  ;;  %v352_v10 = vld [vmem:[%s11161_s15 + $0x10] sm:$0xff] }
 0x100   : > { %3165 = vmatprep.mubr.f32.mxu1 %v2900_v58  ;;  %v373_v58 = vld [vmem:[%s11161_s15 + $0xb8] sm:$0xff] }
 0x102   : > { %2484 = vmatmul.mubr.f32.gmra.mrb[60].mxu0 %v12319_v5  ;;  %v355_v5 = vld [vmem:[%s11161_s15 + $0x28] sm:$0xff] }
 0x103   : > { %3166 = vmatmul.mubr.f32.gmra.mrb[60].mxu1 %v2899_v21  ;;  %2488 = vmatprep.mubr.f32.mxu0 %v12351_v50  ;;  %v354_v50 = vld [vmem:[%s11161_s15 + $0x20] sm:$0xff]  ;;  %v376_v21 = vld [vmem:[%s11161_s15 + $0xd0] sm:$0xff] }
 0x104   : > { %3170 = vmatprep.mubr.f32.mxu1 %v2918_v29  ;;  %v379_v29 = vld [vmem:[%s11161_s15 + $0xe8] sm:$0xff] }
 0x106   : > { %2489 = vmatmul.mubr.f32.gmra.mrb[62].mxu0 %v12385_v32  ;;  %v357_v32 = vld [vmem:[%s11161_s15 + $0x38] sm:$0xff] }
 0x107   : > { %3171 = vmatmul.mubr.f32.gmra.mrb[62].mxu1 %v2917_v8  ;;  %3377 = vmatprep.mubr.f32.mxu0 %v351_v40  ;;  %v378_v8 = vld [vmem:[%s11161_s15 + $0xe0] sm:$0xff]  ;;  %v381_v40 = vld [vmem:[%s11161_s15 + $0xf8] sm:$0xff] }
 0x10a   : > { %3378 = vmatmul.mubr.f32.vlgmr.msra.gmra.mrb[64].mxu0 %v350_v41  ;;  %v380_v41 = vld [vmem:[%s11161_s15 + $0xf0] sm:$0xff] }
 0x10b   : > { %3382 = vmatprep.mubr.f32.mxu0 %v353_v36  ;;  %10372 = vmatpush3.bf16.msra.mxu0 %v10369_v46  ;;  %v370_v46 = vld [vmem:[%s11161_s15 + $0xa0] sm:$0xff]  ;;  %v383_v36 = vld [vmem:[%s11161_s15 + $0x108] sm:$0xff] }
 0x10e   : > { %3383 = vmatmul.mubr.f32.gmra.mrb[66].mxu0 %v352_v10  ;;  %v3634_v10 = vld [vmem:[%s15549_s5] sm:$0xff] }
 0x10f   : > { %3387 = vmatprep.mubr.f32.mxu0 %v355_v5  ;;  %v3635_v5 = vld [vmem:[%s15549_s5 + $0x8] sm:$0xff] }
 0x112   : > { %3388 = vmatmul.mubr.f32.gmra.mrb[68].mxu0 %v354_v50  ;;  %v12605_v50 = vpack.c.bf16 %v3635_v5, %v3634_v10  ;;  %v398_v5 = vld [vmem:[%s11161_s15 + $0x180] sm:$0xff] }
 0x113   : > { %3392 = vmatprep.mubr.f32.mxu0 %v357_v32  ;;  %v382_v32 = vld [vmem:[%s11161_s15 + $0x100] sm:$0xff] }
 0x114   : > { %10374 = vmatprep.subr.bf16.mxu1 %v12605_v50 }
 0x116   : > { %3393 = vmatmul.mubr.f32.gmra.mrb[70].mxu0 %v356_v11  ;;  %v385_v11 = vld [vmem:[%s11161_s15 + $0x118] sm:$0xff] }
 0x117   : > { %3397 = vmatprep.mubr.f32.mxu0 %v359_v9  ;;  %v384_v9 = vld [vmem:[%s11161_s15 + $0x110] sm:$0xff] }
 0x11a   : > { %3398 = vmatmul.mubr.f32.gmra.mrb[72].mxu0 %v358_v22  ;;  %v387_v22 = vld [vmem:[%s11161_s15 + $0x128] sm:$0xff] }
 0x11b   : > { %3402 = vmatprep.mubr.f32.mxu0 %v361_v12  ;;  %v386_v12 = vld [vmem:[%s11161_s15 + $0x120] sm:$0xff] }
 0x11e   : > { %3403 = vmatmul.mubr.f32.gmra.mrb[74].mxu0 %v360_v37  ;;  %v389_v37 = vld [vmem:[%s11161_s15 + $0x138] sm:$0xff] }
 0x11f   : > { %3407 = vmatprep.mubr.f32.mxu0 %v363_v34  ;;  %v388_v34 = vld [vmem:[%s11161_s15 + $0x130] sm:$0xff] }
 0x122   : > { %3408 = vmatmul.mubr.f32.gmra.mrb[76].mxu0 %v362_v48  ;;  %v391_v48 = vld [vmem:[%s11161_s15 + $0x148] sm:$0xff] }
 0x123   : > { %3412 = vmatprep.mubr.f32.mxu0 %v365_v39  ;;  %v390_v39 = vld [vmem:[%s11161_s15 + $0x140] sm:$0xff] }
 0x126   : > { %3413 = vmatmul.mubr.f32.gmra.mrb[78].mxu0 %v364_v17  ;;  %v393_v17 = vld [vmem:[%s11161_s15 + $0x158] sm:$0xff] }
 0x127   : > { %3417 = vmatprep.mubr.f32.mxu0 %v367_v18  ;;  %v392_v18 = vld [vmem:[%s11161_s15 + $0x150] sm:$0xff] }
 0x12a   : > { %3418 = vmatmul.mubr.f32.gmra.mrb[80].mxu0 %v366_v20  ;;  %v395_v20 = vld [vmem:[%s11161_s15 + $0x168] sm:$0xff] }
 0x12b   : > { %3422 = vmatprep.mubr.f32.mxu0 %v369_v60 }
 0x12e   : > { %3423 = vmatmul.mubr.f32.gmra.mrb[82].mxu0 %v368_v14 }
 0x12f   : > { %3427 = vmatprep.mubr.f32.mxu0 %v371_v15 }
 0x132   : > { %3428 = vmatmul.mubr.f32.gmra.mrb[84].mxu0 %v370_v46 }
 0x133   : > { %3432 = vmatprep.mubr.f32.mxu0 %v373_v58  ;;  %v394_v58 = vld [vmem:[%s11161_s15 + $0x160] sm:$0xff] }
 0x136   : > { %3433 = vmatmul.mubr.f32.gmra.mrb[86].mxu0 %v372_v51  ;;  %v397_v51 = vld [vmem:[%s11161_s15 + $0x178] sm:$0xff] }
 0x137   : > { %3437 = vmatprep.mubr.f32.mxu0 %v375_v49 }
 0x13a   : > { %3438 = vmatmul.mubr.f32.gmra.mrb[88].mxu0 %v374_v27 }
 0x13b   : > { %3442 = vmatprep.mubr.f32.mxu0 %v377_v25 }
 0x13e   : > { %3443 = vmatmul.mubr.f32.gmra.mrb[90].mxu0 %v376_v21 }
 0x13f   : > { %3447 = vmatprep.mubr.f32.mxu0 %v379_v29  ;;  %v396_v29 = vld [vmem:[%s11161_s15 + $0x170] sm:$0xff] }
 0x142   : > { %3448 = vmatmul.mubr.f32.gmra.mrb[92].mxu0 %v378_v8  ;;  %v399_v8 = vld [vmem:[%s11161_s15 + $0x188] sm:$0xff] }
 0x143   : > { %3452 = vmatprep.mubr.f32.mxu0 %v381_v40 }
 0x146   : > { %3453 = vmatmul.mubr.f32.gmra.mrb[94].mxu0 %v380_v41 }
 0x147   : > { %3457 = vmatprep.mubr.f32.mxu0 %v383_v36 }
 0x14a   : > { %3458 = vmatmul.mubr.f32.gmra.mrb[96].mxu0 %v382_v32  ;;  %v401_v32 = vld [vmem:[%s11161_s15 + $0x198] sm:$0xff] }
 0x14b   : > { %3462 = vmatprep.mubr.f32.mxu0 %v385_v11 }
 0x14e   : > { %3463 = vmatmul.mubr.f32.gmra.mrb[98].mxu0 %v384_v9 }
 0x14f   : > { %3467 = vmatprep.mubr.f32.mxu0 %v387_v22 }
 0x152   : > { %3468 = vmatmul.mubr.f32.gmra.mrb[100].mxu0 %v386_v12 }
 0x153   : > { %3472 = vmatprep.mubr.f32.mxu0 %v389_v37  ;;  %v400_v37 = vld [vmem:[%s11161_s15 + $0x190] sm:$0xff] }
 0x156   : > { %3473 = vmatmul.mubr.f32.gmra.mrb[102].mxu0 %v388_v34  ;;  %v403_v34 = vld [vmem:[%s11161_s15 + $0x1a8] sm:$0xff] }
 0x157   : > { %3477 = vmatprep.mubr.f32.mxu0 %v391_v48  ;;  %v12620_v60 = vpop.f32.mrb[0].mxu0 }
 0x158   : > { %v2337_v15 = vpop.f32.mrb[1].mxu0 }
 0x159   : > { %v12622_v14 = vpop.f32.mrb[0].mxu1  ;;  %v405_v15 = vld [vmem:[%s11161_s15 + $0x1b8] sm:$0xff] }
 0x15a   : > { %3478 = vmatmul.mubr.f32.gmra.mrb[104].mxu0 %v390_v39  ;;  %v3019_v46 = vpop.f32.mrb[1].mxu1 }
 0x15b   : > { %3482 = vmatprep.mubr.f32.mxu0 %v393_v17  ;;  %v12626_v49 = vpop.f32.mrb[2].mxu0 }
 0x15c   : > { %v2342_v25 = vpop.f32.mrb[3].mxu0 }
 0x15d   : > { %v12628_v27 = vpop.f32.mrb[2].mxu1 }
 0x15e   : > { %3483 = vmatmul.mubr.f32.gmra.mrb[106].mxu0 %v392_v18  ;;  %v3024_v21 = vpop.f32.mrb[3].mxu1 }
 0x15f   : > { %3487 = vmatprep.mubr.f32.mxu0 %v395_v20  ;;  %v12632_v40 = vpop.f32.mrb[4].mxu0  ;;  %v402_v20 = vld [vmem:[%s11161_s15 + $0x1a0] sm:$0xff]  ;;  %v404_v21 = vld [vmem:[%s11161_s15 + $0x1b0] sm:$0xff] }
 0x160   : > { %v2347_v36 = vpop.f32.mrb[5].mxu0 }
 0x161   : > { %v3027_v41 = vpop.f32.mrb[4].mxu1 }
 0x162   : > { %3488 = vmatmul.mubr.f32.gmra.mrb[108].mxu0 %v394_v58  ;;  %v3029_v10 = vpop.f32.mrb[5].mxu1 }
 0x163   : > { %3492 = vmatprep.mubr.f32.mxu0 %v397_v51  ;;  %v12636_v11 = vpop.f32.mrb[6].mxu0 }
 0x164   : > { %v2352_v22 = vpop.f32.mrb[7].mxu0 }
 0x165   : > { %v3032_v9 = vpop.f32.mrb[6].mxu1  ;;  %v409_v22 = vld [vmem:[%s11161_s15 + $0x1d8] sm:$0xff] }
 0x166   : > { %3493 = vmatmul.mubr.f32.gmra.mrb[110].mxu0 %v396_v29  ;;  %v3034_v12 = vpop.f32.mrb[7].mxu1  ;;  %v407_v29 = vld [vmem:[%s11161_s15 + $0x1c8] sm:$0xff] }
 0x167   : > { %3497 = vmatprep.mubr.f32.mxu0 %v399_v8  ;;  %v12640_v48 = vpop.f32.mrb[8].mxu0 }
 0x168   : > { %v2357_v17 = vpop.f32.mrb[9].mxu0 }
 0x169   : > { %v3037_v39 = vpop.f32.mrb[8].mxu1  ;;  %v12657_v17 = vld [vmem:[%s15548_s4 + $0x1] ss:$0 sm:$0xff] }
 0x16a   : > { %3498 = vmatmul.mubr.f32.gmra.mrb[112].mxu0 %v398_v5  ;;  %v3039_v18 = vpop.f32.mrb[9].mxu1  ;;  %v3028_v6 = vadd.f32 %v12657_v17, %v3027_v41  ;;  %v3038_v1 = vadd.f32 %v12657_v17, %v3037_v39 }
 0x16b   : > { %3502 = vmatprep.mubr.f32.mxu0 %v401_v32  ;;  %v12644_v46 = vpop.f32.mrb[10].mxu0  ;;  %v406_v32 = vld [vmem:[%s11161_s15 + $0x1c0] sm:$0xff] }
 0x16c   : > { %v2362_v51 = vpop.f32.mrb[11].mxu0  ;;  %vm3178_vm3 = vcmp.gt.f32.partialorder %v3028_v6, 0.0  ;;  %vm3180_vm5 = vcmp.gt.f32.partialorder %v3038_v1, 0.0 }
 0x16d   : > { %v3042_v58 = vpop.f32.mrb[10].mxu1 }
 0x16e   : > { %3503 = vmatmul.mubr.f32.gmra.mrb[114].mxu0 %v400_v37  ;;  %v3044_v25 = vpop.f32.mrb[11].mxu1 }
 0x16f   : > { %3507 = vmatprep.mubr.f32.mxu0 %v403_v34  ;;  %v12648_v8 = vpop.f32.mrb[12].mxu0  ;;  %v3018_v25 = vadd.f32 %v12657_v17, %v12622_v14 }
 0x170   : > { %v2367_v10 = vpop.f32.mrb[13].mxu0 }
 0x171   : > { %v3047_v36 = vpop.f32.mrb[12].mxu1  ;;  %vm3176_vm0 = vcmp.gt.f32.partialorder %v3018_v25, 0.0 }
 0x172   : > { %3508 = vmatmul.mubr.f32.gmra.mrb[116].mxu0 %v402_v20  ;;  %v3049_v5 = vpop.f32.mrb[13].mxu1  ;;  %v408_v20 = vld [vmem:[%s11161_s15 + $0x1d0] sm:$0xff]  ;;  %v3048_v7 = vadd.f32 %v12657_v17, %v3047_v36 }
 0x173   : > { %3512 = vmatprep.mubr.f32.mxu0 %v405_v15  ;;  %v12652_v12 = vpop.f32.mrb[14].mxu0  ;;  %v411_v15 = vld [vmem:[%s11161_s15 + $0x1e8] sm:$0xff]  ;;  %v410_v5 = vld [vmem:[%s11161_s15 + $0x1e0] sm:$0xff] }
 0x174   : > { %v2372_v34 = vpop.f32.mrb[15].mxu0  ;;  %vm3182_vm7 = vcmp.gt.f32.partialorder %v3048_v7, 0.0 }
 0x175   : > { %v3052_v37 = vpop.f32.mrb[14].mxu1  ;;  %v3023_v34 = vadd.f32 %v12657_v17, %v12628_v27  ;;  %v3210_v27 = vmul.f32 0.1, %v3028_v6 }
 0x176   : > { %3513 = vmatmul.mubr.f32.gmra.mrb[118].mxu0 %v404_v21  ;;  %v3054_v18 = vpop.f32.mrb[15].mxu1 }
 0x177   : > { %3517 = vmatprep.mubr.f32.mxu0 %v407_v29  ;;  %vm3177_vm2 = vcmp.gt.f32.partialorder %v3023_v34, 0.0  ;;  %v3242_v39 = vsel %vm3178_vm3, %v3028_v6, %v3210_v27 }
 0x178   : > { %v12661_v51 = vpop.f32.mrb[16].mxu0 }
 0x179   : > { %v3057_v21 = vpop.f32.mrb[16].mxu1  ;;  %v2377_v29 = vpop.f32.mrb[17].mxu0 }
 0x17a   : > { %3518 = vmatmul.mubr.f32.gmra.mrb[120].mxu0 %v406_v32  ;;  %v3059_v10 = vpop.f32.mrb[17].mxu1  ;;  %v413_v32 = vld [vmem:[%s11161_s15 + $0x1f8] sm:$0xff]  ;;  %v3209_v29 = vmul.f32 0.1, %v3023_v34 }
 0x17b   : > { %3522 = vmatprep.mubr.f32.mxu0 %v409_v22  ;;  %v3208_v22 = vmul.f32 0.1, %v3018_v25 }
 0x17c   : > { %v12669_v18 = vpop.f32.mrb[18].mxu0 }
 0x17d   : > { %v3062_v31 = vpop.f32.mrb[18].mxu1  ;;  %v2382_v30 = vpop.f32.mrb[19].mxu0  ;;  %v3240_v41 = vsel %vm3176_vm0, %v3018_v25, %v3208_v22 }
 0x17e   : > { %3523 = vmatmul.mubr.f32.gmra.mrb[122].mxu0 %v408_v20  ;;  %v3064_v14 = vpop.f32.mrb[19].mxu1  ;;  %v412_v20 = vld [vmem:[%s11161_s15 + $0x1f0] sm:$0xff] }
 0x17f   : > { %3527 = vmatprep.mubr.f32.mxu0 %v411_v15  ;;  %v3033_v15 = vadd.f32 %v12657_v17, %v3032_v9  ;;  %v3043_v14 = vadd.f32 %v12657_v17, %v3042_v58  ;;  %v3212_v9 = vmul.f32 0.1, %v3038_v1 }
 0x180   : > { %v12674_v10 = vpop.f32.mrb[20].mxu0 }
 0x181   : > { %v3067_v62 = vpop.f32.mrb[20].mxu1  ;;  %v2387_v43 = vpop.f32.mrb[21].mxu0  ;;  %vm3179_vm4 = vcmp.gt.f32.partialorder %v3033_v15, 0.0  ;;  %v3213_v22 = vmul.f32 0.1, %v3043_v14  ;;  %vm3181_vm6 = vcmp.gt.f32.partialorder %v3043_v14, 0.0 }
 0x182   : > { %3528 = vmatmul.mubr.f32.gmra.mrb[124].mxu0 %v410_v5  ;;  %v3069_v30 = vpop.f32.mrb[21].mxu1  ;;  %v3241_v5 = vsel %vm3177_vm2, %v3023_v34, %v3209_v29  ;;  %v3053_v34 = vadd.f32 %v12657_v17, %v3052_v37  ;;  %v3214_v29 = vmul.f32 0.1, %v3048_v7 }
 0x183   : > { %3532 = vmatprep.mubr.f32.mxu0 %v413_v32  ;;  %v3211_v32 = vmul.f32 0.1, %v3033_v15  ;;  %v3244_v30 = vsel %vm3180_vm5, %v3038_v1, %v3212_v9  ;;  %v3245_v37 = vsel %vm3181_vm6, %v3043_v14, %v3213_v22 }
 0x184   : > { %vm3183_vm8 = vcmp.gt.f32.partialorder %v3053_v34, 0.0 }
 0x185   : > { %v12679_v26 = vpop.f32.mrb[22].mxu0 }
 0x186   : > { %3533 = vmatmul.mubr.f32.gmra.mrb[126].mxu0 %v412_v20  ;;  %v3072_v52 = vpop.f32.mrb[22].mxu1  ;;  %v2392_v25 = vpop.f32.mrb[23].mxu0  ;;  %v3243_v20 = vsel %vm3179_vm4, %v3033_v15, %v3211_v32 }
 0x187   : > { %10073 = vmatprep.mubr.msk.f32.mxu0 %vm3639_vm1, %v3240_v41  ;;  %v3074_v43 = vpop.f32.mrb[23].mxu1  ;;  %v3058_v41 = vadd.f32 %v12657_v17, %v3057_v21  ;;  %v3068_v25 = vadd.f32 %v12657_v17, %v3067_v62 }
 0x188   : > { %v3246_v43 = vsel %vm3182_vm7, %v3048_v7, %v3214_v29 }
 0x189   : > { %v12685_v58 = vpop.f32.mrb[24].mxu0  ;;  %v3216_v32 = vmul.f32 0.1, %v3058_v41  ;;  %vm3184_vm9 = vcmp.gt.f32.partialorder %v3058_v41, 0.0  ;;  %v3218_v22 = vmul.f32 0.1, %v3068_v25 }
 0x18a   : > { %10074 = vmatmul.mubr.msk.f32.vlgmr.msra.gmra.mrb[128].mxu0 %vm3639_vm1, %v3241_v5  ;;  %v3077_v36 = vpop.f32.mrb[24].mxu1  ;;  %v2397_v6 = vpop.f32.mrb[25].mxu0  ;;  %v3215_v5 = vmul.f32 0.1, %v3053_v34  ;;  %vm3186_vm11 = vcmp.gt.f32.partialorder %v3068_v25, 0.0 }
 0x18b   : > { %10076 = vmatprep.mubr.msk.f32.mxu0 %vm3639_vm1, %v3242_v39  ;;  %v3079_v27 = vpop.f32.mrb[25].mxu1  ;;  %v3063_v39 = vadd.f32 %v12657_v17, %v3062_v31  ;;  %v3078_v6 = vadd.f32 %v12657_v17, %v3077_v36 }
 0x18c   : > { %v3247_v31 = vsel %vm3183_vm8, %v3053_v34, %v3215_v5  ;;  %v3248_v27 = vsel %vm3184_vm9, %v3058_v41, %v3216_v32 }
 0x18d   : > { %v12691_v15 = vpop.f32.mrb[26].mxu0  ;;  %vm3185_vm10 = vcmp.gt.f32.partialorder %v3063_v39, 0.0  ;;  %v3220_v5 = vmul.f32 0.1, %v3078_v6  ;;  %vm3188_vm13 = vcmp.gt.f32.partialorder %v3078_v6, 0.0 }
 0x18e   : > { %10077 = vmatmul.mubr.msk.f32.gmra.mrb[130].mxu0 %vm3639_vm1, %v3243_v20  ;;  %v3082_v21 = vpop.f32.mrb[26].mxu1  ;;  %v2402_v1 = vpop.f32.mrb[27].mxu0  ;;  %v3217_v20 = vmul.f32 0.1, %v3063_v39 }
 0x18f   : > { %10079 = vmatprep.mubr.msk.f32.mxu0 %vm3639_vm1, %v3244_v30  ;;  %v3084_v9 = vpop.f32.mrb[27].mxu1  ;;  %v3073_v30 = vadd.f32 %v12657_v17, %v3072_v52 }
 0x190   : > { %v3249_v52 = vsel %vm3185_vm10, %v3063_v39, %v3217_v20  ;;  %v3250_v9 = vsel %vm3186_vm11, %v3068_v25, %v3218_v22 }
 0x191   : > { %v12697_v14 = vpop.f32.mrb[28].mxu0  ;;  %vm3187_vm12 = vcmp.gt.f32.partialorder %v3073_v30, 0.0 }
 0x192   : > { %10080 = vmatmul.mubr.msk.f32.gmra.mrb[132].mxu0 %vm3639_vm1, %v3245_v37  ;;  %v3087_v62 = vpop.f32.mrb[28].mxu1  ;;  %v2407_v7 = vpop.f32.mrb[29].mxu0  ;;  %v3219_v37 = vmul.f32 0.1, %v3073_v30 }
 0x193   : > { %10082 = vmatprep.mubr.msk.f32.mxu0 %vm3639_vm1, %v3246_v43  ;;  %v3089_v29 = vpop.f32.mrb[29].mxu1  ;;  %v3083_v43 = vadd.f32 %v12657_v17, %v3082_v21  ;;  %v3088_v1 = vadd.f32 %v12657_v17, %v3087_v62  ;;  %v3252_v62 = vsel %vm3188_vm13, %v3078_v6, %v3220_v5 }
 0x194   : > { %v3251_v21 = vsel %vm3187_vm12, %v3073_v30, %v3219_v37 }
 0x195   : > { %vm3189_vm14 = vcmp.gt.f32.partialorder %v3083_v43, 0.0  ;;  %v3222_v20 = vmul.f32 0.1, %v3088_v1  ;;  %vm3190_vm15 = vcmp.gt.f32.partialorder %v3088_v1, 0.0 }
 0x196   : > { %10083 = vmatmul.mubr.msk.f32.gmra.mrb[134].mxu0 %vm3639_vm1, %v3247_v31  ;;  %v12703_v34 = vpop.f32.mrb[30].mxu0  ;;  %v3221_v31 = vmul.f32 0.1, %v3083_v43 }
 0x197   : > { %10085 = vmatprep.mubr.msk.f32.mxu0 %vm3639_vm1, %v3248_v27  ;;  %v3092_v36 = vpop.f32.mrb[30].mxu1  ;;  %v2412_v41 = vpop.f32.mrb[31].mxu0 }
 0x198   : > { %v3094_v32 = vpop.f32.mrb[31].mxu1  ;;  %v3093_v27 = vadd.f32 %v12657_v17, %v3092_v36  ;;  %v3253_v36 = vsel %vm3189_vm14, %v3083_v43, %v3221_v31  ;;  %v3254_v41 = vsel %vm3190_vm15, %v3088_v1, %v3222_v20  ;;  %v9921_v43 = vld [vmem:[%s15549_s5 + $0x28] sm:$0xff] }
 0x19a   : > { %10086 = vmatmul.mubr.msk.f32.gmra.mrb[136].mxu0 %vm3639_vm1, %v3249_v52  ;;  %v12709_v39 = vpop.f32.mrb[32].mxu0  ;;  %v3223_v52 = vmul.f32 0.1, %v3093_v27  ;;  %vm3191_vm2 = vcmp.gt.f32.partialorder %v3093_v27, 0.0 }
 0x19b   : > { %10088 = vmatprep.mubr.msk.f32.mxu0 %vm3639_vm1, %v3250_v9  ;;  %v2417_v29 = vpop.f32.mrb[33].mxu0 }
 0x19c   : > { %v3097_v7 = vpop.f32.mrb[32].mxu1  ;;  %v3255_v1 = vsel %vm3191_vm2, %v3093_v27, %v3223_v52 }
 0x19d   : > { %v3098_v25 = vadd.f32 %v12657_v17, %v3097_v7  ;;  %v3099_v22 = vpop.f32.mrb[33].mxu1  ;;  %v9920_v7 = vld [vmem:[%s15549_s5 + $0x20] sm:$0xff] }
 0x19e   : > { %10089 = vmatmul.mubr.msk.f32.gmra.mrb[138].mxu0 %vm3639_vm1, %v3251_v21  ;;  %v12714_v30 = vpop.f32.mrb[34].mxu0 }
 0x19f   : > { %10091 = vmatprep.mubr.msk.f32.mxu0 %vm3639_vm1, %v3252_v62  ;;  %vm3192_vm0 = vcmp.gt.f32.partialorder %v3098_v25, 0.0  ;;  %v3224_v9 = vmul.f32 0.1, %v3098_v25  ;;  %v2422_v32 = vpop.f32.mrb[35].mxu0 }
 0x1a0   : > { %v3102_v37 = vpop.f32.mrb[34].mxu1 }
 0x1a1   : > { %v3103_v6 = vadd.f32 %v12657_v17, %v3102_v37  ;;  %v3104_v5 = vpop.f32.mrb[35].mxu1  ;;  %v3256_v21 = vsel %vm3192_vm0, %v3098_v25, %v3224_v9  ;;  %v12729_v25 = vpack.c.bf16 %v9921_v43, %v9920_v7 }
 0x1a2   : > { %10092 = vmatmul.mubr.msk.f32.gmra.mrb[140].mxu0 %vm3639_vm1, %v3253_v36  ;;  %10097 = vmatprep.mubr.msk.f32.mxu1 %vm3639_vm1, %v3256_v21  ;;  %v12726_v20 = vpop.f32.mrb[36].mxu0 }
 0x1a3   : > { %10094 = vmatprep.mubr.msk.f32.mxu0 %vm3639_vm1, %v3254_v41  ;;  %vm3193_vm3 = vcmp.gt.f32.partialorder %v3103_v6, 0.0  ;;  %v3225_v31 = vmul.f32 0.1, %v3103_v6  ;;  %v2427_v29 = vpop.f32.mrb[37].mxu0 }
 0x1a5   : > { %v3107_v62 = vpop.f32.mrb[36].mxu1  ;;  %v3257_v22 = vsel %vm3193_vm3, %v3103_v6, %v3225_v31 }
 0x1a6   : > { %10095 = vmatmul.mubr.msk.f32.gmra.mrb[142].mxu0 %vm3639_vm1, %v3255_v1  ;;  %v3108_v9 = vadd.f32 %v12657_v17, %v3107_v62  ;;  %v3109_v36 = vpop.f32.mrb[37].mxu1  ;;  %10098 = vmatmul.mubr.msk.f32.vlgmr.msra.gmra.mrb[64].mxu1 %vm3639_vm1, %v3257_v22 }
 0x1a7   : > { %10376 = vmatpush3.bf16.msra.mxu1 %v12605_v50 }
 0x1a8   : > { %vm3194_vm4 = vcmp.gt.f32.partialorder %v3108_v9, 0.0  ;;  %v3226_v37 = vmul.f32 0.1, %v3108_v9  ;;  %v12734_v41 = vpop.f32.mrb[38].mxu0  ;;  %10378 = vmatprep.subr.bf16.mxu1 %v12729_v25 }
 0x1a9   : > { %v3112_v27 = vpop.f32.mrb[38].mxu1  ;;  %v2432_v52 = vpop.f32.mrb[39].mxu0 }
 0x1aa   : > { %v3113_v32 = vadd.f32 %v12657_v17, %v3112_v27  ;;  %v3114_v5 = vpop.f32.mrb[39].mxu1  ;;  %v3258_v21 = vsel %vm3194_vm4, %v3108_v9, %v3226_v37 }
 0x1ab   : > { %10100 = vmatprep.mubr.msk.f32.mxu1 %vm3639_vm1, %v3258_v21 }
 0x1ac   : > { %vm3195_vm5 = vcmp.gt.f32.partialorder %v3113_v32, 0.0  ;;  %v3227_v6 = vmul.f32 0.1, %v3113_v32  ;;  %v12739_v7 = vpop.f32.mrb[40].mxu0 }
 0x1ad   : > { %v3117_v43 = vpop.f32.mrb[40].mxu1  ;;  %v2437_v31 = vpop.f32.mrb[41].mxu0 }
 0x1ae   : > { %v3118_v50 = vadd.f32 %v12657_v17, %v3117_v43  ;;  %v3119_v1 = vpop.f32.mrb[41].mxu1  ;;  %v3259_v62 = vsel %vm3195_vm5, %v3113_v32, %v3227_v6 }
 0x1af   : > { %10101 = vmatmul.mubr.msk.f32.gmra.mrb[66].mxu1 %vm3639_vm1, %v3259_v62 }
 0x1b0   : > { %vm3196_vm6 = vcmp.gt.f32.partialorder %v3118_v50, 0.0  ;;  %v3228_v29 = vmul.f32 0.1, %v3118_v50  ;;  %v12743_v22 = vpop.f32.mrb[42].mxu0 }
 0x1b1   : > { %v3122_v36 = vpop.f32.mrb[42].mxu1  ;;  %v2442_v9 = vpop.f32.mrb[43].mxu0 }
 0x1b2   : > { %v3123_v37 = vadd.f32 %v12657_v17, %v3122_v36  ;;  %v3124_v27 = vpop.f32.mrb[43].mxu1  ;;  %v3260_v52 = vsel %vm3196_vm6, %v3118_v50, %v3228_v29 }
 0x1b3   : > { %10103 = vmatprep.mubr.msk.f32.mxu1 %vm3639_vm1, %v3260_v52 }
 0x1b4   : > { %vm3197_vm7 = vcmp.gt.f32.partialorder %v3123_v37, 0.0  ;;  %v3229_v5 = vmul.f32 0.1, %v3123_v37 }
 0x1b5   : > { %v12747_v21 = vpop.f32.mrb[44].mxu0 }
 0x1b6   : > { %v3127_v43 = vpop.f32.mrb[44].mxu1  ;;  %v2447_v32 = vpop.f32.mrb[45].mxu0  ;;  %v3261_v1 = vsel %vm3197_vm7, %v3123_v37, %v3229_v5 }
 0x1b7   : > { %v3128_v6 = vadd.f32 %v12657_v17, %v3127_v43  ;;  %v3129_v31 = vpop.f32.mrb[45].mxu1  ;;  %10104 = vmatmul.mubr.msk.f32.gmra.mrb[68].mxu1 %vm3639_vm1, %v3261_v1 }
 0x1b9   : > { %vm3198_vm8 = vcmp.gt.f32.partialorder %v3128_v6, 0.0  ;;  %v3230_v62 = vmul.f32 0.1, %v3128_v6  ;;  %v12751_v9 = vpop.f32.mrb[46].mxu0 }
 0x1ba   : > { %v3132_v36 = vpop.f32.mrb[46].mxu1  ;;  %v2452_v50 = vpop.f32.mrb[47].mxu0 }
 0x1bb   : > { %v3133_v29 = vadd.f32 %v12657_v17, %v3132_v36  ;;  %v3134_v27 = vpop.f32.mrb[47].mxu1  ;;  %v3262_v52 = vsel %vm3198_vm8, %v3128_v6, %v3230_v62 }
 0x1bc   : > { %10106 = vmatprep.mubr.msk.f32.mxu1 %vm3639_vm1, %v3262_v52 }
 0x1bd   : > { %vm3199_vm9 = vcmp.gt.f32.partialorder %v3133_v29, 0.0  ;;  %v3231_v32 = vmul.f32 0.1, %v3133_v29  ;;  %v12755_v19 = vpop.f32.mrb[48].mxu0 }
 0x1be   : > { %v3137_v43 = vpop.f32.mrb[48].mxu1  ;;  %v2457_v37 = vpop.f32.mrb[49].mxu0 }
 0x1bf   : > { %v3138_v5 = vadd.f32 %v12657_v17, %v3137_v43  ;;  %v3139_v31 = vpop.f32.mrb[49].mxu1  ;;  %v3263_v1 = vsel %vm3199_vm9, %v3133_v29, %v3231_v32 }
 0x1c0   : > { %10107 = vmatmul.mubr.msk.f32.gmra.mrb[70].mxu1 %vm3639_vm1, %v3263_v1 }
 0x1c1   : > { %vm3200_vm10 = vcmp.gt.f32.partialorder %v3138_v5, 0.0  ;;  %v3232_v50 = vmul.f32 0.1, %v3138_v5  ;;  %v12759_v28 = vpop.f32.mrb[50].mxu0 }
 0x1c2   : > { %v3142_v36 = vpop.f32.mrb[50].mxu1  ;;  %v2462_v6 = vpop.f32.mrb[51].mxu0 }
 0x1c3   : > { %v3143_v62 = vadd.f32 %v12657_v17, %v3142_v36  ;;  %v3144_v27 = vpop.f32.mrb[51].mxu1  ;;  %v3264_v52 = vsel %vm3200_vm10, %v3138_v5, %v3232_v50 }
 0x1c4   : > { %10109 = vmatprep.mubr.msk.f32.mxu1 %vm3639_vm1, %v3264_v52 }
 0x1c5   : > { %vm3201_vm11 = vcmp.gt.f32.partialorder %v3143_v62, 0.0  ;;  %v3233_v37 = vmul.f32 0.1, %v3143_v62  ;;  %v12763_v23 = vpop.f32.mrb[52].mxu0 }
 0x1c6   : > { %v3147_v43 = vpop.f32.mrb[52].mxu1  ;;  %v2467_v29 = vpop.f32.mrb[53].mxu0 }
 0x1c7   : > { %v3148_v32 = vadd.f32 %v12657_v17, %v3147_v43  ;;  %v3149_v31 = vpop.f32.mrb[53].mxu1  ;;  %v3265_v1 = vsel %vm3201_vm11, %v3143_v62, %v3233_v37 }
 0x1c8   : > { %10110 = vmatmul.mubr.msk.f32.gmra.mrb[72].mxu1 %vm3639_vm1, %v3265_v1 }
 0x1c9   : > { %vm3202_vm12 = vcmp.gt.f32.partialorder %v3148_v32, 0.0  ;;  %v3234_v6 = vmul.f32 0.1, %v3148_v32  ;;  %v12767_v59 = vpop.f32.mrb[54].mxu0 }
 0x1ca   : > { %v3152_v36 = vpop.f32.mrb[54].mxu1  ;;  %v2472_v5 = vpop.f32.mrb[55].mxu0 }
 0x1cb   : > { %v3153_v50 = vadd.f32 %v12657_v17, %v3152_v36  ;;  %v3154_v27 = vpop.f32.mrb[55].mxu1  ;;  %v3266_v52 = vsel %vm3202_vm12, %v3148_v32, %v3234_v6 }
 0x1cc   : > { %10112 = vmatprep.mubr.msk.f32.mxu1 %vm3639_vm1, %v3266_v52 }
 0x1cd   : > { %vm3203_vm13 = vcmp.gt.f32.partialorder %v3153_v50, 0.0  ;;  %v3235_v29 = vmul.f32 0.1, %v3153_v50  ;;  %v12771_v3 = vpop.f32.mrb[56].mxu0 }
 0x1ce   : > { %v3157_v43 = vpop.f32.mrb[56].mxu1  ;;  %v2477_v62 = vpop.f32.mrb[57].mxu0 }
 0x1cf   : > { %v3158_v37 = vadd.f32 %v12657_v17, %v3157_v43  ;;  %v3159_v31 = vpop.f32.mrb[57].mxu1  ;;  %v3267_v1 = vsel %vm3203_vm13, %v3153_v50, %v3235_v29  ;;  %v12782_v43 = vld [vmem:[%s15548_s4] ss:$0 sm:$0xff] }
 0x1d0   : > { %10113 = vmatmul.mubr.msk.f32.gmra.mrb[74].mxu1 %vm3639_vm1, %v3267_v1  ;;  %v2341_v38 = vadd.f32 %v12782_v43, %v12626_v49  ;;  %v2351_v49 = vadd.f32 %v12782_v43, %v12636_v11  ;;  %v2361_v11 = vadd.f32 %v12782_v43, %v12644_v46  ;;  %v2371_v46 = vadd.f32 %v12782_v43, %v12652_v12 }
 0x1d1   : > { %vm3204_vm14 = vcmp.gt.f32.partialorder %v3158_v37, 0.0  ;;  %v3236_v5 = vmul.f32 0.1, %v3158_v37  ;;  %v12775_v2 = vpop.f32.mrb[58].mxu0 }
 0x1d2   : > { %v3162_v36 = vpop.f32.mrb[58].mxu1  ;;  %v2482_v32 = vpop.f32.mrb[59].mxu0  ;;  %vm2495_vm4 = vcmp.gt.f32.partialorder %v2341_v38, 0.0  ;;  %vm2497_vm6 = vcmp.gt.f32.partialorder %v2351_v49, 0.0  ;;  %vm2499_vm8 = vcmp.gt.f32.partialorder %v2361_v11, 0.0  ;;  %vm2501_vm10 = vcmp.gt.f32.partialorder %v2371_v46, 0.0 }
 0x1d3   : > { %v3163_v6 = vadd.f32 %v12657_v17, %v3162_v36  ;;  %v3164_v27 = vpop.f32.mrb[59].mxu1  ;;  %v3268_v52 = vsel %vm3204_vm14, %v3158_v37, %v3236_v5  ;;  %v2336_v37 = vadd.f32 %v12782_v43, %v12620_v60 }
 0x1d4   : > { %10115 = vmatprep.mubr.msk.f32.mxu1 %vm3639_vm1, %v3268_v52 }
 0x1d5   : > { %vm3205_vm15 = vcmp.gt.f32.partialorder %v3163_v6, 0.0  ;;  %v3237_v50 = vmul.f32 0.1, %v3163_v6  ;;  %v12784_v29 = vpop.f32.mrb[60].mxu0  ;;  %vm2494_vm2 = vcmp.gt.f32.partialorder %v2336_v37, 0.0 }
 0x1d6   : > { %v3167_v62 = vpop.f32.mrb[60].mxu1  ;;  %v2487_v31 = vpop.f32.mrb[61].mxu0 }
 0x1d7   : > { %v3168_v1 = vadd.f32 %v12657_v17, %v3167_v62  ;;  %v3169_v32 = vpop.f32.mrb[61].mxu1  ;;  %v3269_v24 = vsel %vm3205_vm15, %v3163_v6, %v3237_v50  ;;  %v2346_v6 = vadd.f32 %v12782_v43, %v12632_v40 }
 0x1d8   : > { %10116 = vmatmul.mubr.msk.f32.gmra.mrb[76].mxu1 %vm3639_vm1, %v3269_v24  ;;  %v2526_v32 = vmul.f32 0.1, %v2336_v37 }
 0x1d9   : > { %vm3206_vm0 = vcmp.gt.f32.partialorder %v3168_v1, 0.0  ;;  %v3238_v5 = vmul.f32 0.1, %v3168_v1  ;;  %v12790_v36 = vpop.f32.mrb[62].mxu0  ;;  %vm2496_vm5 = vcmp.gt.f32.partialorder %v2346_v6, 0.0 }
 0x1da   : > { %v3172_v27 = vpop.f32.mrb[62].mxu1  ;;  %v2492_v52 = vpop.f32.mrb[63].mxu0  ;;  %v2558_v40 = vsel %vm2494_vm2, %v2336_v37, %v2526_v32  ;;  %v2531_v37 = vmul.f32 0.1, %v2361_v11 }
 0x1db   : > { %v3173_v31 = vadd.f32 %v12657_v17, %v3172_v27  ;;  %v3174_v54 = vpop.f32.mrb[63].mxu1  ;;  %v3270_v62 = vsel %vm3206_vm0, %v3168_v1, %v3238_v5  ;;  %v2527_v52 = vmul.f32 0.1, %v2341_v38  ;;  %v2356_v17 = vadd.f32 %v12782_v43, %v12640_v48 }
 0x1dc   : > { %10118 = vmatprep.mubr.msk.f32.mxu1 %vm3639_vm1, %v3270_v62  ;;  %v2528_v54 = vmul.f32 0.1, %v2346_v6  ;;  %v2529_v62 = vmul.f32 0.1, %v2351_v49  ;;  %v2563_v12 = vsel %vm2499_vm8, %v2361_v11, %v2531_v37 }
 0x1dd   : > { %vm3207_vm3 = vcmp.gt.f32.partialorder %v3173_v31, 0.0  ;;  %v3239_v24 = vmul.f32 0.1, %v3173_v31  ;;  %v12798_v60 = vpop.f32.mrb[64].mxu0  ;;  %v2559_v27 = vsel %vm2495_vm4, %v2341_v38, %v2527_v52  ;;  %vm2498_vm7 = vcmp.gt.f32.partialorder %v2356_v17, 0.0 }
 0x1de   : > { %v3381_v50 = vpop.f32.mrb[65].mxu0  ;;  %v2561_v32 = vsel %vm2497_vm6, %v2351_v49, %v2529_v62 }
 0x1df   : > { %v3271_v53 = vsel %vm3207_vm3, %v3173_v31, %v3239_v24  ;;  %v2530_v31 = vmul.f32 0.1, %v2356_v17  ;;  %v2366_v24 = vadd.f32 %v12782_v43, %v12648_v8  ;;  %v2376_v8 = vadd.f32 %v12782_v43, %v12661_v51 }
 0x1e0   : > { %10119 = vmatmul.mubr.msk.f32.gmra.mrb[78].mxu1 %vm3639_vm1, %v3271_v53  ;;  %v2560_v53 = vsel %vm2496_vm5, %v2346_v6, %v2528_v54  ;;  %v2533_v54 = vmul.f32 0.1, %v2371_v46 }
 0x1e1   : > { %10125 = vmatprep.mubr.msk.f32.mxu1 %vm3639_vm1, %v2558_v40  ;;  %v12806_v1 = vpop.f32.mrb[66].mxu0  ;;  %v2532_v50 = vmul.f32 0.1, %v2366_v24  ;;  %v2562_v6 = vsel %vm2498_vm7, %v2356_v17, %v2530_v31  ;;  %vm2500_vm9 = vcmp.gt.f32.partialorder %v2366_v24, 0.0  ;;  %v2381_v40 = vadd.f32 %v12782_v43, %v12669_v18 }
 0x1e2   : > { %v3386_v5 = vpop.f32.mrb[67].mxu0  ;;  %v2534_v49 = vmul.f32 0.1, %v2376_v8  ;;  %vm2502_vm11 = vcmp.gt.f32.partialorder %v2376_v8, 0.0  ;;  %v2391_v31 = vadd.f32 %v12782_v43, %v12679_v26  ;;  %v2565_v18 = vsel %vm2501_vm10, %v2371_v46, %v2533_v54 }
 0x1e3   : > { %v2386_v5 = vadd.f32 %v12782_v43, %v12674_v10  ;;  %v2564_v51 = vsel %vm2500_vm9, %v2366_v24, %v2532_v50  ;;  %v2535_v62 = vmul.f32 0.1, %v2381_v40  ;;  %vm2503_vm12 = vcmp.gt.f32.partialorder %v2381_v40, 0.0 }
 0x1e4   : > { %10126 = vmatmul.mubr.msk.f32.vlgmr.msra.gmra.mrb[80].mxu1 %vm3639_vm1, %v2559_v27  ;;  %v2566_v10 = vsel %vm2502_vm11, %v2376_v8, %v2534_v49  ;;  %v2537_v37 = vmul.f32 0.1, %v2391_v31  ;;  %vm2505_vm14 = vcmp.gt.f32.partialorder %v2391_v31, 0.0  ;;  %v2406_v50 = vadd.f32 %v12782_v43, %v12697_v14 }
 0x1e5   : > { %10380 = vmatpush3.bf16.msra.mxu1 %v12729_v25  ;;  %10128 = vmatprep.mubr.msk.f32.mxu1 %vm3639_vm1, %v2560_v53  ;;  %v12815_v48 = vpop.f32.mrb[68].mxu0  ;;  %v2536_v11 = vmul.f32 0.1, %v2386_v5  ;;  %v2396_v53 = vadd.f32 %v12782_v43, %v12685_v58  ;;  %vm2504_vm13 = vcmp.gt.f32.partialorder %v2386_v5, 0.0  ;;  %v2567_v26 = vsel %vm2503_vm12, %v2381_v40, %v2535_v62 }
 0x1e6   : > { %v3391_v38 = vpop.f32.mrb[69].mxu0  ;;  %v2411_v54 = vadd.f32 %v12782_v43, %v12703_v34  ;;  %v2540_v40 = vmul.f32 0.1, %v2406_v50  ;;  %vm2508_vm2 = vcmp.gt.f32.partialorder %v2406_v50, 0.0 }
 0x1e7   : > { %v2538_v46 = vmul.f32 0.1, %v2396_v53  ;;  %v2568_v58 = vsel %vm2504_vm13, %v2386_v5, %v2536_v11  ;;  %vm2506_vm15 = vcmp.gt.f32.partialorder %v2396_v53, 0.0 }
 0x1e8   : > { %10129 = vmatmul.mubr.msk.f32.gmra.mrb[82].mxu1 %vm3639_vm1, %v2561_v32  ;;  %v2401_v32 = vadd.f32 %v12782_v43, %v12691_v15  ;;  %v2569_v15 = vsel %vm2505_vm14, %v2391_v31, %v2537_v37  ;;  %vm2509_vm3 = vcmp.gt.f32.partialorder %v2411_v54, 0.0  ;;  %v2426_v31 = vadd.f32 %v12782_v43, %v12726_v20 }
 0x1e9   : > { %10131 = vmatprep.mubr.msk.f32.mxu1 %vm3639_vm1, %v2562_v6  ;;  %v12823_v25 = vpop.f32.mrb[70].mxu0  ;;  %v2570_v14 = vsel %vm2506_vm15, %v2396_v53, %v2538_v46  ;;  %v2436_v37 = vadd.f32 %v12782_v43, %v12739_v7 }
 0x1ea   : > { %v3396_v52 = vpop.f32.mrb[71].mxu0  ;;  %vm2507_vm0 = vcmp.gt.f32.partialorder %v2401_v32, 0.0  ;;  %vm2512_vm6 = vcmp.gt.f32.partialorder %v2426_v31, 0.0 }
 0x1eb   : > { %v2539_v52 = vmul.f32 0.1, %v2401_v32  ;;  %vm2514_vm8 = vcmp.gt.f32.partialorder %v2436_v37, 0.0 }
 0x1ec   : > { %10132 = vmatmul.mubr.msk.f32.gmra.mrb[84].mxu1 %vm3639_vm1, %v2563_v12  ;;  %v2416_v12 = vadd.f32 %v12782_v43, %v12709_v39  ;;  %v2572_v39 = vsel %vm2508_vm2, %v2406_v50, %v2540_v40  ;;  %v2441_v50 = vadd.f32 %v12782_v43, %v12743_v22  ;;  %v2451_v40 = vadd.f32 %v12782_v43, %v12751_v9 }
 0x1ed   : > { %10134 = vmatprep.mubr.msk.f32.mxu1 %vm3639_vm1, %v2564_v51  ;;  %v12831_v17 = vpop.f32.mrb[72].mxu0  ;;  %v2541_v51 = vmul.f32 0.1, %v2411_v54  ;;  %v2571_v34 = vsel %vm2507_vm0, %v2401_v32, %v2539_v52 }
 0x1ee   : > { %v3401_v27 = vpop.f32.mrb[73].mxu0  ;;  %v2542_v62 = vmul.f32 0.1, %v2416_v12  ;;  %vm2510_vm4 = vcmp.gt.f32.partialorder %v2416_v12, 0.0  ;;  %vm2515_vm9 = vcmp.gt.f32.partialorder %v2441_v50, 0.0  ;;  %vm2517_vm11 = vcmp.gt.f32.partialorder %v2451_v40, 0.0 }
 0x1ef   : > { %v2421_v27 = vadd.f32 %v12782_v43, %v12714_v30  ;;  %v2573_v30 = vsel %vm2509_vm3, %v2411_v54, %v2541_v51 }
 0x1f0   : > { %10135 = vmatmul.mubr.msk.f32.gmra.mrb[86].mxu1 %vm3639_vm1, %v2565_v18  ;;  %v2574_v20 = vsel %vm2510_vm4, %v2416_v12, %v2542_v62 }
 0x1f1   : > { %10137 = vmatprep.mubr.msk.f32.mxu1 %vm3639_vm1, %v2566_v10  ;;  %v12839_v24 = vpop.f32.mrb[74].mxu0  ;;  %v2543_v53 = vmul.f32 0.1, %v2421_v27  ;;  %v2431_v10 = vadd.f32 %v12782_v43, %v12734_v41  ;;  %vm2511_vm5 = vcmp.gt.f32.partialorder %v2421_v27, 0.0 }
 0x1f2   : > { %v3406_v38 = vpop.f32.mrb[75].mxu0 }
 0x1f3   : > { %v2544_v38 = vmul.f32 0.1, %v2426_v31  ;;  %v2545_v46 = vmul.f32 0.1, %v2431_v10  ;;  %v2575_v41 = vsel %vm2511_vm5, %v2421_v27, %v2543_v53  ;;  %vm2513_vm7 = vcmp.gt.f32.partialorder %v2431_v10, 0.0 }
 0x1f4   : > { %10138 = vmatmul.mubr.msk.f32.gmra.mrb[88].mxu1 %vm3639_vm1, %v2567_v26  ;;  %v2549_v27 = vmul.f32 0.1, %v2451_v40 }
 0x1f5   : > { %10140 = vmatprep.mubr.msk.f32.mxu1 %vm3639_vm1, %v2568_v58  ;;  %v12847_v8 = vpop.f32.mrb[76].mxu0  ;;  %v2546_v58 = vmul.f32 0.1, %v2436_v37  ;;  %v2576_v7 = vsel %vm2512_vm6, %v2426_v31, %v2544_v38  ;;  %v2577_v22 = vsel %vm2513_vm7, %v2431_v10, %v2545_v46  ;;  %v2466_v31 = vadd.f32 %v12782_v43, %v12763_v23 }
 0x1f6   : > { %v3411_v6 = vpop.f32.mrb[77].mxu0  ;;  %v2471_v10 = vadd.f32 %v12782_v43, %v12767_v59  ;;  %v2476_v38 = vadd.f32 %v12782_v43, %v12771_v3  ;;  %v2481_v46 = vadd.f32 %v12782_v43, %v12775_v2 }
 0x1f7   : > { %v2446_v6 = vadd.f32 %v12782_v43, %v12747_v21  ;;  %v2578_v21 = vsel %vm2514_vm8, %v2436_v37, %v2546_v58  ;;  %vm2520_vm14 = vcmp.gt.f32.partialorder %v2466_v31, 0.0  ;;  %v12913_v58 = vld [vmem:[%s15548_s4 + $0x2] ss:$0 sm:$0xff] }
 0x1f8   : > { %10141 = vmatmul.mubr.msk.f32.gmra.mrb[90].mxu1 %vm3639_vm1, %v2569_v15  ;;  %v2547_v15 = vmul.f32 0.1, %v2441_v50  ;;  %vm2521_vm15 = vcmp.gt.f32.partialorder %v2471_v10, 0.0  ;;  %vm2522_vm0 = vcmp.gt.f32.partialorder %v2476_v38, 0.0  ;;  %vm2523_vm2 = vcmp.gt.f32.partialorder %v2481_v46, 0.0 }
 0x1f9   : > { %10143 = vmatprep.mubr.msk.f32.mxu1 %vm3639_vm1, %v2570_v14  ;;  %v12855_v49 = vpop.f32.mrb[78].mxu0  ;;  %v2548_v12 = vmul.f32 0.1, %v2446_v6  ;;  %v2456_v14 = vadd.f32 %v12782_v43, %v12755_v19  ;;  %vm2516_vm10 = vcmp.gt.f32.partialorder %v2446_v6, 0.0 }
 0x1fa   : > { %v3416_v5 = vpop.f32.mrb[79].mxu0  ;;  %v2579_v9 = vsel %vm2515_vm9, %v2441_v50, %v2547_v15  ;;  %v2554_v50 = vmul.f32 0.1, %v2476_v38 }
 0x1fb   : > { %v2550_v62 = vmul.f32 0.1, %v2456_v14  ;;  %v2580_v19 = vsel %vm2516_vm10, %v2446_v6, %v2548_v12  ;;  %vm2518_vm12 = vcmp.gt.f32.partialorder %v2456_v14, 0.0 }
 0x1fc   : > { %10144 = vmatmul.mubr.msk.f32.gmra.mrb[92].mxu1 %vm3639_vm1, %v2571_v34  ;;  %v2461_v34 = vadd.f32 %v12782_v43, %v12759_v28  ;;  %v2581_v28 = vsel %vm2517_vm11, %v2451_v40, %v2549_v27  ;;  %v3380_v40 = vadd.f32 %v12913_v58, %v12798_v60  ;;  %v3390_v27 = vadd.f32 %v12913_v58, %v12815_v48 }
 0x1fd   : > { %10146 = vmatprep.mubr.msk.f32.mxu1 %vm3639_vm1, %v2572_v39  ;;  %v12863_v18 = vpop.f32.mrb[80].mxu0  ;;  %v2582_v23 = vsel %vm2518_vm12, %v2456_v14, %v2550_v62 }
 0x1fe   : > { %v3421_v11 = vpop.f32.mrb[81].mxu0  ;;  %v2551_v53 = vmul.f32 0.1, %v2461_v34  ;;  %vm2519_vm13 = vcmp.gt.f32.partialorder %v2461_v34, 0.0  ;;  %vm3538_vm5 = vcmp.gt.f32.partialorder %v3380_v40, 0.0  ;;  %vm3540_vm7 = vcmp.gt.f32.partialorder %v3390_v27, 0.0 }
 0x200   : > { %10147 = vmatmul.mubr.msk.f32.gmra.mrb[94].mxu1 %vm3639_vm1, %v2573_v30  ;;  %v2552_v30 = vmul.f32 0.1, %v2466_v31  ;;  %v2583_v59 = vsel %vm2519_vm13, %v2461_v34, %v2551_v53  ;;  %v3405_v53 = vadd.f32 %v12913_v58, %v12839_v24  ;;  %v3415_v24 = vadd.f32 %v12913_v58, %v12855_v49 }
 0x201   : > { %10149 = vmatprep.mubr.msk.f32.mxu1 %vm3639_vm1, %v2574_v20  ;;  %v12871_v32 = vpop.f32.mrb[82].mxu0 }
 0x202   : > { %v3426_v26 = vpop.f32.mrb[83].mxu0  ;;  %v2584_v3 = vsel %vm2520_vm14, %v2466_v31, %v2552_v30  ;;  %vm3543_vm10 = vcmp.gt.f32.partialorder %v3405_v53, 0.0  ;;  %v3425_v49 = vadd.f32 %v12913_v58, %v12871_v32  ;;  %vm3545_vm12 = vcmp.gt.f32.partialorder %v3415_v24, 0.0 }
 0x203   : > { %v2553_v26 = vmul.f32 0.1, %v2471_v10 }
 0x204   : > { %10150 = vmatmul.mubr.msk.f32.gmra.mrb[64].mxu1 %vm3639_vm1, %v2575_v41  ;;  %v2486_v41 = vadd.f32 %v12782_v43, %v12784_v29  ;;  %vm3547_vm14 = vcmp.gt.f32.partialorder %v3425_v49, 0.0 }
 0x205   : > { %10152 = vmatprep.mubr.msk.f32.mxu1 %vm3639_vm1, %v2576_v7  ;;  %v12879_v52 = vpop.f32.mrb[84].mxu0  ;;  %v2555_v7 = vmul.f32 0.1, %v2481_v46  ;;  %v2585_v15 = vsel %vm2521_vm15, %v2471_v10, %v2553_v26 }
 0x206   : > { %v3431_v54 = vpop.f32.mrb[85].mxu0  ;;  %v2556_v29 = vmul.f32 0.1, %v2486_v41  ;;  %vm2524_vm3 = vcmp.gt.f32.partialorder %v2486_v41, 0.0 }
 0x207   : > { %v2491_v54 = vadd.f32 %v12782_v43, %v12790_v36  ;;  %v2587_v43 = vsel %vm2523_vm2, %v2481_v46, %v2555_v7  ;;  %v3570_v36 = vmul.f32 0.1, %v3380_v40 }
 0x208   : > { %10153 = vmatmul.mubr.msk.f32.gmra.mrb[66].mxu1 %vm3639_vm1, %v2577_v22  ;;  %v2586_v22 = vsel %vm2522_vm0, %v2476_v38, %v2554_v50  ;;  %v2588_v60 = vsel %vm2524_vm3, %v2486_v41, %v2556_v29  ;;  %v3430_v29 = vadd.f32 %v12913_v58, %v12879_v52 }
 0x209   : > { %10155 = vmatprep.mubr.msk.f32.mxu1 %vm3639_vm1, %v2578_v21  ;;  %v12887_v5 = vpop.f32.mrb[86].mxu0  ;;  %v2557_v21 = vmul.f32 0.1, %v2491_v54  ;;  %vm2525_vm4 = vcmp.gt.f32.partialorder %v2491_v54, 0.0  ;;  %v3602_v48 = vsel %vm3538_vm5, %v3380_v40, %v3570_v36  ;;  %v3579_v40 = vmul.f32 0.1, %v3425_v49 }
 0x20a   : > { %v3436_v51 = vpop.f32.mrb[87].mxu0  ;;  %v3580_v32 = vmul.f32 0.1, %v3430_v29  ;;  %vm3548_vm15 = vcmp.gt.f32.partialorder %v3430_v29, 0.0 }
 0x20b   : > { %v3385_v51 = vadd.f32 %v12913_v58, %v12806_v1  ;;  %v3395_v1 = vadd.f32 %v12913_v58, %v12823_v25 }
 0x20c   : > { %10156 = vmatmul.mubr.msk.f32.gmra.mrb[68].mxu1 %vm3639_vm1, %v2579_v9  ;;  %v3400_v9 = vadd.f32 %v12913_v58, %v12831_v17 }
 0x20d   : > { %10158 = vmatprep.mubr.msk.f32.mxu1 %vm3639_vm1, %v2580_v19  ;;  %v12895_v39 = vpop.f32.mrb[88].mxu0  ;;  %v3571_v31 = vmul.f32 0.1, %v3385_v51  ;;  %v2589_v19 = vsel %vm2525_vm4, %v2491_v54, %v2557_v21  ;;  %vm3539_vm6 = vcmp.gt.f32.partialorder %v3385_v51, 0.0  ;;  %v3573_v38 = vmul.f32 0.1, %v3395_v1 }
 0x20e   : > { %v3441_v11 = vpop.f32.mrb[89].mxu0  ;;  %v3574_v17 = vmul.f32 0.1, %v3400_v9  ;;  %vm3542_vm8 = vcmp.gt.f32.partialorder %v3400_v9, 0.0  ;;  %vm3541_vm9 = vcmp.gt.f32.partialorder %v3395_v1, 0.0 }
 0x20f   : > { %v3572_v11 = vmul.f32 0.1, %v3390_v27  ;;  %v3603_v25 = vsel %vm3539_vm6, %v3385_v51, %v3571_v31  ;;  %v3605_v41 = vsel %vm3541_vm9, %v3395_v1, %v3573_v38 }
 0x210   : > { %10159 = vmatmul.mubr.msk.f32.gmra.mrb[70].mxu1 %vm3639_vm1, %v2581_v28  ;;  %v3410_v28 = vadd.f32 %v12913_v58, %v12847_v8  ;;  %v3420_v8 = vadd.f32 %v12913_v58, %v12863_v18 }
 0x211   : > { %10161 = vmatprep.mubr.msk.f32.mxu1 %vm3639_vm1, %v2582_v23  ;;  %v12903_v37 = vpop.f32.mrb[90].mxu0  ;;  %v3604_v23 = vsel %vm3540_vm7, %v3390_v27, %v3572_v11  ;;  %v3611_v27 = vsel %vm3547_vm14, %v3425_v49, %v3579_v40 }
 0x212   : > { %v3446_v20 = vpop.f32.mrb[91].mxu0  ;;  %v3576_v46 = vmul.f32 0.1, %v3410_v28  ;;  %vm3544_vm11 = vcmp.gt.f32.partialorder %v3410_v28, 0.0  ;;  %v3578_v54 = vmul.f32 0.1, %v3420_v8 }
 0x213   : > { %v3575_v20 = vmul.f32 0.1, %v3405_v53  ;;  %vm3546_vm13 = vcmp.gt.f32.partialorder %v3420_v8, 0.0 }
 0x214   : > { %10162 = vmatmul.mubr.msk.f32.gmra.mrb[72].mxu1 %vm3639_vm1, %v2583_v59  ;;  %v3606_v59 = vsel %vm3542_vm8, %v3400_v9, %v3574_v17  ;;  %v3610_v51 = vsel %vm3546_vm13, %v3420_v8, %v3578_v54 }
 0x215   : > { %10164 = vmatprep.mubr.msk.f32.mxu1 %vm3639_vm1, %v2584_v3  ;;  %v12916_v6 = vpop.f32.mrb[92].mxu0  ;;  %v3577_v3 = vmul.f32 0.1, %v3415_v24 }
 0x216   : > { %v3451_v2 = vpop.f32.mrb[93].mxu0  ;;  %v3450_v31 = vadd.f32 %v12913_v58, %v12916_v6 }
 0x217   : > { %v3607_v2 = vsel %vm3543_vm10, %v3405_v53, %v3575_v20 }
 0x218   : > { %10165 = vmatmul.mubr.msk.f32.gmra.mrb[74].mxu1 %vm3639_vm1, %v2585_v15  ;;  %v3608_v15 = vsel %vm3544_vm11, %v3410_v28, %v3576_v46  ;;  %vm3552_vm4 = vcmp.gt.f32.partialorder %v3450_v31, 0.0 }
 0x219   : > { %10167 = vmatprep.mubr.msk.f32.mxu1 %vm3639_vm1, %v2586_v22  ;;  %v12924_v12 = vpop.f32.mrb[94].mxu0  ;;  %v3609_v22 = vsel %vm3545_vm12, %v3415_v24, %v3577_v3 }
 0x21a   : > { %v3456_v14 = vpop.f32.mrb[95].mxu0  ;;  %v3455_v11 = vadd.f32 %v12913_v58, %v12924_v12 }
 0x21b   : > { %v3435_v14 = vadd.f32 %v12913_v58, %v12887_v5 }
 0x21c   : > { %10168 = vmatmul.mubr.msk.f32.gmra.mrb[76].mxu1 %vm3639_vm1, %v2587_v43  ;;  %v3440_v43 = vadd.f32 %v12913_v58, %v12895_v39  ;;  %v3585_v6 = vmul.f32 0.1, %v3455_v11  ;;  %vm3553_vm5 = vcmp.gt.f32.partialorder %v3455_v11, 0.0 }
 0x21d   : > { %10170 = vmatprep.mubr.msk.f32.mxu1 %vm3639_vm1, %v2588_v60  ;;  %v12932_v34 = vpop.f32.mrb[96].mxu0  ;;  %v3581_v52 = vmul.f32 0.1, %v3435_v14  ;;  %v3445_v60 = vadd.f32 %v12913_v58, %v12903_v37  ;;  %vm3549_vm0 = vcmp.gt.f32.partialorder %v3435_v14, 0.0  ;;  %v3584_v37 = vmul.f32 0.1, %v3450_v31 }
 0x21e   : > { %v3461_v62 = vpop.f32.mrb[97].mxu0  ;;  %v3582_v5 = vmul.f32 0.1, %v3440_v43  ;;  %vm3550_vm2 = vcmp.gt.f32.partialorder %v3440_v43, 0.0  ;;  %v3460_v17 = vadd.f32 %v12913_v58, %v12932_v34  ;;  %v3617_v46 = vsel %vm3553_vm5, %v3455_v11, %v3585_v6 }
 0x21f   : > { %v3612_v62 = vsel %vm3548_vm15, %v3430_v29, %v3580_v32  ;;  %v3583_v39 = vmul.f32 0.1, %v3445_v60  ;;  %vm3551_vm3 = vcmp.gt.f32.partialorder %v3445_v60, 0.0 }
 0x220   : > { %10171 = vmatmul.mubr.msk.f32.gmra.mrb[78].mxu1 %vm3639_vm1, %v2589_v19  ;;  %v3613_v19 = vsel %vm3549_vm0, %v3435_v14, %v3581_v52  ;;  %v3614_v53 = vsel %vm3550_vm2, %v3440_v43, %v3582_v5  ;;  %v3586_v12 = vmul.f32 0.1, %v3460_v17  ;;  %vm3554_vm6 = vcmp.gt.f32.partialorder %v3460_v17, 0.0 }
 0x221   : > { %10177 = vmatprep.mubr.msk.f32.mxu1 %vm3639_vm1, %v3602_v48  ;;  %v12942_v10 = vpop.f32.mrb[98].mxu0 }
 0x222   : > { %v3466_v30 = vpop.f32.mrb[99].mxu0 }
 0x223   : > { %v3615_v30 = vsel %vm3551_vm3, %v3445_v60, %v3583_v39 }
 0x224   : > { %10178 = vmatmul.mubr.msk.f32.vlgmr.msra.gmra.mrb[80].mxu1 %vm3639_vm1, %v3603_v25  ;;  %v3465_v25 = vadd.f32 %v12913_v58, %v12942_v10 }
 0x225   : > { %10180 = vmatprep.mubr.msk.f32.mxu1 %vm3639_vm1, %v3604_v23  ;;  %v12950_v26 = vpop.f32.mrb[100].mxu0  ;;  %v3616_v23 = vsel %vm3552_vm4, %v3450_v31, %v3584_v37 }
 0x226   : > { %v3471_v50 = vpop.f32.mrb[101].mxu0  ;;  %v3470_v20 = vadd.f32 %v12913_v58, %v12950_v26  ;;  %v3587_v34 = vmul.f32 0.1, %v3465_v25  ;;  %vm3555_vm7 = vcmp.gt.f32.partialorder %v3465_v25, 0.0 }
 0x227   : > { %v3618_v50 = vsel %vm3554_vm6, %v3460_v17, %v3586_v12 }
 0x228   : > { %10181 = vmatmul.mubr.msk.f32.gmra.mrb[82].mxu1 %vm3639_vm1, %v3605_v41  ;;  %v3588_v10 = vmul.f32 0.1, %v3470_v20  ;;  %vm3556_vm8 = vcmp.gt.f32.partialorder %v3470_v20, 0.0 }
 0x229   : > { %10183 = vmatprep.mubr.msk.f32.mxu1 %vm3639_vm1, %v3606_v59  ;;  %v3474_v7 = vpop.f32.mrb[102].mxu0 }
 0x22a   : > { %v3476_v18 = vpop.f32.mrb[103].mxu0  ;;  %v3475_v59 = vadd.f32 %v12913_v58, %v3474_v7  ;;  %v3620_v7 = vsel %vm3556_vm8, %v3470_v20, %v3588_v10 }
 0x22c   : > { %10184 = vmatmul.mubr.msk.f32.gmra.mrb[84].mxu1 %vm3639_vm1, %v3607_v2  ;;  %v3589_v26 = vmul.f32 0.1, %v3475_v59  ;;  %v3619_v2 = vsel %vm3555_vm7, %v3465_v25, %v3587_v34  ;;  %vm3557_vm9 = vcmp.gt.f32.partialorder %v3475_v59, 0.0 }
 0x22d   : > { %10186 = vmatprep.mubr.msk.f32.mxu1 %vm3639_vm1, %v3608_v15  ;;  %v3479_v21 = vpop.f32.mrb[104].mxu0 }
 0x22e   : > { %v3481_v36 = vpop.f32.mrb[105].mxu0  ;;  %v3480_v41 = vadd.f32 %v12913_v58, %v3479_v21 }
 0x230   : > { %10187 = vmatmul.mubr.msk.f32.gmra.mrb[86].mxu1 %vm3639_vm1, %v3609_v22  ;;  %v3590_v15 = vmul.f32 0.1, %v3480_v41  ;;  %vm3558_vm10 = vcmp.gt.f32.partialorder %v3480_v41, 0.0  ;;  %v3621_v22 = vsel %vm3557_vm9, %v3475_v59, %v3589_v26 }
 0x231   : > { %10189 = vmatprep.mubr.msk.f32.mxu1 %vm3639_vm1, %v3610_v51  ;;  %v3484_v9 = vpop.f32.mrb[106].mxu0 }
 0x232   : > { %v3486_v1 = vpop.f32.mrb[107].mxu0  ;;  %v3485_v49 = vadd.f32 %v12913_v58, %v3484_v9  ;;  %v3622_v51 = vsel %vm3558_vm10, %v3480_v41, %v3590_v15 }
 0x234   : > { %10190 = vmatmul.mubr.msk.f32.gmra.mrb[88].mxu1 %vm3639_vm1, %v3611_v27  ;;  %v3591_v40 = vmul.f32 0.1, %v3485_v49  ;;  %vm3559_vm11 = vcmp.gt.f32.partialorder %v3485_v49, 0.0 }
 0x235   : > { %10192 = vmatprep.mubr.msk.f32.mxu1 %vm3639_vm1, %v3612_v62  ;;  %v3489_v48 = vpop.f32.mrb[108].mxu0 }
 0x236   : > { %v3491_v28 = vpop.f32.mrb[109].mxu0  ;;  %v3490_v29 = vadd.f32 %v12913_v58, %v3489_v48  ;;  %v3623_v27 = vsel %vm3559_vm11, %v3485_v49, %v3591_v40 }
 0x238   : > { %10193 = vmatmul.mubr.msk.f32.gmra.mrb[90].mxu1 %vm3639_vm1, %v3613_v19  ;;  %v3592_v32 = vmul.f32 0.1, %v3490_v29  ;;  %vm3560_vm12 = vcmp.gt.f32.partialorder %v3490_v29, 0.0 }
 0x239   : > { %10195 = vmatprep.mubr.msk.f32.mxu1 %vm3639_vm1, %v3614_v53  ;;  %v3494_v38 = vpop.f32.mrb[110].mxu0 }
 0x23a   : > { %v3496_v24 = vpop.f32.mrb[111].mxu0  ;;  %v3495_v14 = vadd.f32 %v12913_v58, %v3494_v38  ;;  %v3624_v62 = vsel %vm3560_vm12, %v3490_v29, %v3592_v32 }
 0x23c   : > { %10196 = vmatmul.mubr.msk.f32.gmra.mrb[92].mxu1 %vm3639_vm1, %v3615_v30  ;;  %v3593_v52 = vmul.f32 0.1, %v3495_v14  ;;  %vm3561_vm13 = vcmp.gt.f32.partialorder %v3495_v14, 0.0 }
 0x23d   : > { %10198 = vmatprep.mubr.msk.f32.mxu1 %vm3639_vm1, %v3616_v23  ;;  %v3499_v8 = vpop.f32.mrb[112].mxu0 }
 0x23e   : > { %v3501_v3 = vpop.f32.mrb[113].mxu0  ;;  %v3500_v43 = vadd.f32 %v12913_v58, %v3499_v8  ;;  %v3625_v19 = vsel %vm3561_vm13, %v3495_v14, %v3593_v52 }
 0x240   : > { %10199 = vmatmul.mubr.msk.f32.gmra.mrb[94].mxu1 %vm3639_vm1, %v3617_v46  ;;  %v3594_v5 = vmul.f32 0.1, %v3500_v43  ;;  %vm3562_vm14 = vcmp.gt.f32.partialorder %v3500_v43, 0.0 }
 0x241   : > { %10201 = vmatprep.mubr.msk.f32.mxu1 %vm3639_vm1, %v3618_v50  ;;  %v3504_v54 = vpop.f32.mrb[114].mxu0 }
 0x242   : > { %v3506_v18 = vpop.f32.mrb[115].mxu0  ;;  %v3505_v60 = vadd.f32 %v12913_v58, %v3504_v54  ;;  %v3626_v53 = vsel %vm3562_vm14, %v3500_v43, %v3594_v5 }
 0x244   : > { %10202 = vmatmul.mubr.msk.f32.gmra.mrb[64].mxu1 %vm3639_vm1, %v3619_v2  ;;  %v3595_v39 = vmul.f32 0.1, %v3505_v60  ;;  %vm3563_vm15 = vcmp.gt.f32.partialorder %v3505_v60, 0.0 }
 0x245   : > { %10204 = vmatprep.mubr.msk.f32.mxu1 %vm3639_vm1, %v3620_v7  ;;  %v3509_v21 = vpop.f32.mrb[116].mxu0 }
 0x246   : > { %v3511_v36 = vpop.f32.mrb[117].mxu0  ;;  %v3510_v31 = vadd.f32 %v12913_v58, %v3509_v21  ;;  %v3627_v30 = vsel %vm3563_vm15, %v3505_v60, %v3595_v39 }
 0x248   : > { %10205 = vmatmul.mubr.msk.f32.gmra.mrb[66].mxu1 %vm3639_vm1, %v3621_v22  ;;  %v3596_v37 = vmul.f32 0.1, %v3510_v31  ;;  %vm3564_vm0 = vcmp.gt.f32.partialorder %v3510_v31, 0.0 }
 0x249   : > { %10207 = vmatprep.mubr.msk.f32.mxu1 %vm3639_vm1, %v3622_v51  ;;  %v3514_v9 = vpop.f32.mrb[118].mxu0 }
 0x24a   : > { %v3516_v1 = vpop.f32.mrb[119].mxu0  ;;  %v3515_v11 = vadd.f32 %v12913_v58, %v3514_v9  ;;  %v3628_v20 = vsel %vm3564_vm0, %v3510_v31, %v3596_v37 }
 0x24c   : > { %10208 = vmatmul.mubr.msk.f32.gmra.mrb[68].mxu1 %vm3639_vm1, %v3623_v27  ;;  %v3597_v6 = vmul.f32 0.1, %v3515_v11  ;;  %vm3565_vm2 = vcmp.gt.f32.partialorder %v3515_v11, 0.0 }
 0x24d   : > { %10210 = vmatprep.mubr.msk.f32.mxu1 %vm3639_vm1, %v3624_v62  ;;  %v3519_v48 = vpop.f32.mrb[120].mxu0  ;;  %v13019_v62 = vld [vmem:[%s15550_s6] ss:$0 sm:$0xff] }
 0x24e   : > { %v3520_v17 = vadd.f32 %v12913_v58, %v3519_v48  ;;  %v3521_v28 = vpop.f32.mrb[121].mxu0  ;;  %v3629_v46 = vsel %vm3565_vm2, %v3515_v11, %v3597_v6 }
 0x250   : > { %10211 = vmatmul.mubr.msk.f32.gmra.mrb[70].mxu1 %vm3639_vm1, %v3625_v19  ;;  %v3598_v38 = vmul.f32 0.1, %v3520_v17  ;;  %vm3566_vm3 = vcmp.gt.f32.partialorder %v3520_v17, 0.0 }
 0x251   : > { %10213 = vmatprep.mubr.msk.f32.mxu1 %vm3639_vm1, %v3626_v53  ;;  %v3524_v25 = vpop.f32.mrb[122].mxu0 }
 0x252   : > { %v3525_v12 = vadd.f32 %v12913_v58, %v3524_v25  ;;  %v3526_v23 = vpop.f32.mrb[123].mxu0  ;;  %v3630_v10 = vsel %vm3566_vm3, %v3520_v17, %v3598_v38 }
 0x254   : > { %10214 = vmatmul.mubr.msk.f32.gmra.mrb[72].mxu1 %vm3639_vm1, %v3627_v30  ;;  %v3599_v24 = vmul.f32 0.1, %v3525_v12  ;;  %vm3567_vm4 = vcmp.gt.f32.partialorder %v3525_v12, 0.0 }
 0x255   : > { %10216 = vmatprep.mubr.msk.f32.mxu1 %vm3639_vm1, %v3628_v20  ;;  %v3529_v34 = vpop.f32.mrb[124].mxu0 }
 0x256   : > { %v3530_v59 = vadd.f32 %v12913_v58, %v3529_v34  ;;  %v3531_v8 = vpop.f32.mrb[125].mxu0  ;;  %v3631_v3 = vsel %vm3567_vm4, %v3525_v12, %v3599_v24 }
 0x258   : > { %vm3568_vm5 = vcmp.gt.f32.partialorder %v3530_v59, 0.0  ;;  %v3600_v50 = vmul.f32 0.1, %v3530_v59  ;;  %10217 = vmatmul.mubr.msk.f32.gmra.mrb[74].mxu1 %vm3639_vm1, %v3629_v46 }
 0x259   : > { %v3534_v41 = vpop.f32.mrb[126].mxu0  ;;  %10219 = vmatprep.mubr.msk.f32.mxu1 %vm3639_vm1, %v3630_v10 }
 0x25a   : > { %v3535_v26 = vadd.f32 %v12913_v58, %v3534_v41  ;;  %v3536_v2 = vpop.f32.mrb[127].mxu0  ;;  %v3632_v49 = vsel %vm3568_vm5, %v3530_v59, %v3600_v50 }
 0x25c   : > { %vm3569_vm6 = vcmp.gt.f32.partialorder %v3535_v26, 0.0  ;;  %v3601_v54 = vmul.f32 0.1, %v3535_v26  ;;  %10220 = vmatmul.mubr.msk.f32.gmra.mrb[76].mxu1 %vm3639_vm1, %v3631_v3 }
 0x25d   : > { %v10075_v15 = vpop.f32.mrb[128].mxu0  ;;  %10222 = vmatprep.mubr.msk.f32.mxu1 %vm3639_vm1, %v3632_v49 }
 0x25e   : > { %v3802_v7 = vpop.f32.mrb[129].mxu0  ;;  %v3633_v29 = vsel %vm3569_vm6, %v3535_v26, %v3601_v54 }
 0x260   : > { %10223 = vmatmul.mubr.msk.f32.gmra.mrb[78].mxu1 %vm3639_vm1, %v3633_v29 }
 0x261   : > { %v10078_v18 = vpop.f32.mrb[130].mxu0 }
 0x262   : > { %v3812_v40 = vpop.f32.mrb[131].mxu0 }
 0x265   : > { %v10081_v22 = vpop.f32.mrb[132].mxu0 }
 0x266   : > { %v3822_v14 = vpop.f32.mrb[133].mxu0 }
 0x269   : > { %v10084_v21 = vpop.f32.mrb[134].mxu0 }
 0x26a   : > { %v3832_v32 = vpop.f32.mrb[135].mxu0 }
 0x26d   : > { %v10087_v58 = vpop.f32.mrb[136].mxu0 }
 0x26e   : > { %v3842_v51 = vpop.f32.mrb[137].mxu0 }
 0x271   : > { %v10090_v43 = vpop.f32.mrb[138].mxu0 }
 0x272   : > { %v3852_v36 = vpop.f32.mrb[139].mxu0 }
 0x275   : > { %v10093_v52 = vpop.f32.mrb[140].mxu0 }
 0x276   : > { %v3862_v27 = vpop.f32.mrb[141].mxu0 }
 0x279   : > { %v10096_v60 = vpop.f32.mrb[142].mxu0 }
 0x27a   : > { %v3872_v9 = vpop.f32.mrb[143].mxu0 }
 0x2f7   : > { %v10179_v5 = vpop.f32.mrb[80].mxu1 }
 0x2f8   : > { %v10383_v31 = vadd.f32 %v10179_v5, %v10075_v15  ;;  %v4447_v1 = vpop.f32.mrb[81].mxu1 }
 0x2f9   : > { %v10384_v39 = vadd.f32 %v4447_v1, %v3802_v7 }
 0x2fa   : > { %v13022_v19 = vadd.f32 %v10383_v31, %v13019_v62 }
 0x2fb   : > { %v10182_v11 = vpop.f32.mrb[82].mxu1  ;;  %v13029_v17 = vadd.f32 %v10384_v39, %v13019_v62 }
 0x2fc   : > { %v10385_v48 = vadd.f32 %v10182_v11, %v10078_v18  ;;  %4839 = vrot.lane.b32.xlu1 %v13022_v19, %s10995_s29  ;;  %4711 = vrot.lane.b32.xlu0 %v13022_v19, %s10996_s23  ;;  %v4457_v37 = vpop.f32.mrb[83].mxu1 }
 0x2fd   : > { %v10386_v53 = vadd.f32 %v4457_v37, %v3812_v40 }
 0x2fe   : > { %v13032_v28 = vadd.f32 %v10385_v48, %v13019_v62 }
 0x2ff   : > { %v10185_v6 = vpop.f32.mrb[84].mxu1  ;;  %v13043_v34 = vadd.f32 %v10386_v53, %v13019_v62 }
 0x300   : > { %v10387_v30 = vadd.f32 %v10185_v6, %v10081_v22  ;;  %4709 = vrot.lane.b32.xlu0 %v13029_v17, %s10996_s23  ;;  %4715 = vrot.lane.b32.xlu1 %v13032_v28, %s10996_s23  ;;  %v4467_v25 = vpop.f32.mrb[85].mxu1 }
 0x301   : > { %v10388_v38 = vadd.f32 %v4467_v25, %v3822_v14 }
 0x302   : > { %v13050_v50 = vadd.f32 %v10387_v30, %v13019_v62 }
 0x303   : > { %v10188_v12 = vpop.f32.mrb[86].mxu1  ;;  %v13053_v41 = vadd.f32 %v10388_v38, %v13019_v62 }
 0x304   : > { %v10389_v23 = vadd.f32 %v10188_v12, %v10084_v21  ;;  %4837 = vrot.lane.b32.xlu0 %v13029_v17, %s10995_s29  ;;  %4843 = vrot.lane.b32.xlu1 %v13032_v28, %s10995_s29  ;;  %v4477_v20 = vpop.f32.mrb[87].mxu1 }
 0x305   : > { %v10390_v24 = vadd.f32 %v4477_v20, %v3832_v32 }
 0x306   : > { %v13064_v18 = vadd.f32 %v10389_v23, %v13019_v62 }
 0x307   : > { %v10191_v46 = vpop.f32.mrb[88].mxu1  ;;  %v13067_v40 = vadd.f32 %v10390_v24, %v13019_v62 }
 0x308   : > { %v10391_v59 = vadd.f32 %v10191_v46, %v10087_v58  ;;  %4841 = vrot.lane.b32.xlu0 %v13043_v34, %s10995_s29  ;;  %4713 = vrot.lane.b32.xlu1 %v13043_v34, %s10996_s23  ;;  %v4487_v8 = vpop.f32.mrb[89].mxu1 }
 0x309   : > { %v10392_v10 = vadd.f32 %v4487_v8, %v3842_v51 }
 0x30b   : > { %v10194_v3 = vpop.f32.mrb[90].mxu1 }
 0x30c   : > { %v10393_v26 = vadd.f32 %v10194_v3, %v10090_v43  ;;  %4719 = vrot.lane.b32.xlu1 %v13050_v50, %s10996_s23  ;;  %4717 = vrot.lane.b32.xlu0 %v13053_v41, %s10996_s23  ;;  %v4497_v2 = vpop.f32.mrb[91].mxu1 }
 0x30d   : > { %v10394_v49 = vadd.f32 %v4497_v2, %v3852_v36 }
 0x30e   : > { %v13110_v37 = vadd.f32 %v10393_v26, %v13019_v62 }
 0x30f   : > { %v10197_v54 = vpop.f32.mrb[92].mxu1  ;;  %v13113_v53 = vadd.f32 %v10394_v49, %v13019_v62 }
 0x310   : > { %v10395_v15 = vadd.f32 %v10197_v54, %v10093_v52  ;;  %4847 = vrot.lane.b32.xlu1 %v13050_v50, %s10995_s29  ;;  %4845 = vrot.lane.b32.xlu0 %v13053_v41, %s10995_s29  ;;  %v4507_v7 = vpop.f32.mrb[93].mxu1  ;;  %v13084_v52 = vadd.f32 %v10391_v59, %v13019_v62 }
 0x311   : > { %v10396_v29 = vadd.f32 %v4507_v7, %v3862_v27  ;;  %v13087_v27 = vadd.f32 %v10392_v10, %v13019_v62 }
 0x312   : > { %v13136_v46 = vadd.f32 %v10395_v15, %v13019_v62 }
 0x313   : > { %v10200_v22 = vpop.f32.mrb[94].mxu1  ;;  %v13139_v59 = vadd.f32 %v10396_v29, %v13019_v62 }
 0x314   : > { %v10397_v14 = vadd.f32 %v10200_v22, %v10096_v60  ;;  %4723 = vrot.lane.b32.xlu1 %v13064_v18, %s10996_s23  ;;  %4721 = vrot.lane.b32.xlu0 %v13067_v40, %s10996_s23  ;;  %v4517_v21 = vpop.f32.mrb[95].mxu1 }
 0x315   : > { %v10398_v32 = vadd.f32 %v4517_v21, %v3872_v9 }
 0x316   : > { %v13162_v7 = vadd.f32 %v10397_v14, %v13019_v62 }
 0x317   : > { %v10203_v58 = vpop.f32.mrb[64].mxu1  ;;  %v13165_v29 = vadd.f32 %v10398_v32, %v13019_v62 }
 0x318   : > { %v13074_v51 = vadd.f32 %v10203_v58, %v13019_v62  ;;  %4851 = vrot.lane.b32.xlu1 %v13064_v18, %s10995_s29  ;;  %4849 = vrot.lane.b32.xlu0 %v13067_v40, %s10995_s29  ;;  %v4527_v43 = vpop.f32.mrb[65].mxu1 }
 0x319   : > { %v13081_v36 = vadd.f32 %v13019_v62, %v4527_v43 }
 0x31b   : > { %v10206_v60 = vpop.f32.mrb[66].mxu1 }
 0x31c   : > { %v13090_v9 = vadd.f32 %v10206_v60, %v13019_v62  ;;  %4727 = vrot.lane.b32.xlu1 %v13084_v52, %s10996_s23  ;;  %4725 = vrot.lane.b32.xlu0 %v13087_v27, %s10996_s23  ;;  %v4537_v5 = vpop.f32.mrb[67].mxu1 }
 0x31d   : > { %v13097_v31 = vadd.f32 %v13019_v62, %v4537_v5 }
 0x31f   : > { %v10209_v1 = vpop.f32.mrb[68].mxu1 }
 0x320   : > { %v13100_v39 = vadd.f32 %v10209_v1, %v13019_v62  ;;  %4855 = vrot.lane.b32.xlu1 %v13084_v52, %s10995_s29  ;;  %4853 = vrot.lane.b32.xlu0 %v13087_v27, %s10995_s29  ;;  %v4547_v11 = vpop.f32.mrb[69].mxu1 }
 0x321   : > { %v13107_v48 = vadd.f32 %v13019_v62, %v4547_v11 }
 0x323   : > { %v10212_v6 = vpop.f32.mrb[70].mxu1 }
 0x324   : > { %v13116_v30 = vadd.f32 %v10212_v6, %v13019_v62  ;;  %4731 = vrot.lane.b32.xlu1 %v13110_v37, %s10996_s23  ;;  %4729 = vrot.lane.b32.xlu0 %v13113_v53, %s10996_s23  ;;  %v4557_v25 = vpop.f32.mrb[71].mxu1 }
 0x325   : > { %v13123_v38 = vadd.f32 %v13019_v62, %v4557_v25 }
 0x327   : > { %v10215_v12 = vpop.f32.mrb[72].mxu1 }
 0x328   : > { %v13126_v23 = vadd.f32 %v10215_v12, %v13019_v62  ;;  %4859 = vrot.lane.b32.xlu1 %v13110_v37, %s10995_s29  ;;  %4857 = vrot.lane.b32.xlu0 %v13113_v53, %s10995_s29  ;;  %v4567_v20 = vpop.f32.mrb[73].mxu1 }
 0x329   : > { %v13133_v24 = vadd.f32 %v13019_v62, %v4567_v20 }
 0x32b   : > { %v10218_v8 = vpop.f32.mrb[74].mxu1 }
 0x32c   : > { %v13142_v10 = vadd.f32 %v10218_v8, %v13019_v62  ;;  %4735 = vrot.lane.b32.xlu1 %v13136_v46, %s10996_s23  ;;  %4733 = vrot.lane.b32.xlu0 %v13139_v59, %s10996_s23  ;;  %v4577_v3 = vpop.f32.mrb[75].mxu1 }
 0x32d   : > { %v13149_v26 = vadd.f32 %v13019_v62, %v4577_v3 }
 0x32f   : > { %v10221_v2 = vpop.f32.mrb[76].mxu1 }
 0x330   : > { %v13152_v49 = vadd.f32 %v10221_v2, %v13019_v62  ;;  %4863 = vrot.lane.b32.xlu1 %v13136_v46, %s10995_s29  ;;  %4861 = vrot.lane.b32.xlu0 %v13139_v59, %s10995_s29  ;;  %v4587_v54 = vpop.f32.mrb[77].mxu1 }
 0x331   : > { %v13159_v15 = vadd.f32 %v13019_v62, %v4587_v54 }
 0x333   : > { %v10224_v22 = vpop.f32.mrb[78].mxu1 }
 0x334   : > { %v13168_v21 = vadd.f32 %v10224_v22, %v13019_v62  ;;  %4739 = vrot.lane.b32.xlu1 %v13162_v7, %s10996_s23  ;;  %4737 = vrot.lane.b32.xlu0 %v13165_v29, %s10996_s23  ;;  %v4597_v58 = vpop.f32.mrb[79].mxu1 }
 0x335   : > { %v13175_v43 = vadd.f32 %v13019_v62, %v4597_v58 }
 0x338   : > { %4867 = vrot.lane.b32.xlu1 %v13162_v7, %s10995_s29  ;;  %4865 = vrot.lane.b32.xlu0 %v13165_v29, %s10995_s29 }
 0x33c   : > { %4743 = vrot.lane.b32.xlu1 %v13074_v51, %s10996_s23  ;;  %4741 = vrot.lane.b32.xlu0 %v13081_v36, %s10996_s23 }
 0x340   : > { %4871 = vrot.lane.b32.xlu1 %v13074_v51, %s10995_s29  ;;  %4869 = vrot.lane.b32.xlu0 %v13081_v36, %s10995_s29 }
 0x344   : > { %4747 = vrot.lane.b32.xlu1 %v13090_v9, %s10996_s23  ;;  %4745 = vrot.lane.b32.xlu0 %v13097_v31, %s10996_s23 }
 0x348   : > { %4875 = vrot.lane.b32.xlu1 %v13090_v9, %s10995_s29  ;;  %4873 = vrot.lane.b32.xlu0 %v13097_v31, %s10995_s29 }
 0x34c   : > { %4751 = vrot.lane.b32.xlu1 %v13100_v39, %s10996_s23  ;;  %4749 = vrot.lane.b32.xlu0 %v13107_v48, %s10996_s23 }
 0x350   : > { %4879 = vrot.lane.b32.xlu1 %v13100_v39, %s10995_s29  ;;  %4877 = vrot.lane.b32.xlu0 %v13107_v48, %s10995_s29 }
 0x354   : > { %4755 = vrot.lane.b32.xlu1 %v13116_v30, %s10996_s23  ;;  %4753 = vrot.lane.b32.xlu0 %v13123_v38, %s10996_s23 }
 0x358   : > { %4883 = vrot.lane.b32.xlu1 %v13116_v30, %s10995_s29  ;;  %4881 = vrot.lane.b32.xlu0 %v13123_v38, %s10995_s29 }
 0x35c   : > { %4759 = vrot.lane.b32.xlu1 %v13126_v23, %s10996_s23  ;;  %4757 = vrot.lane.b32.xlu0 %v13133_v24, %s10996_s23 }
 0x360   : > { %4887 = vrot.lane.b32.xlu1 %v13126_v23, %s10995_s29  ;;  %4885 = vrot.lane.b32.xlu0 %v13133_v24, %s10995_s29 }
 0x364   : > { %4763 = vrot.lane.b32.xlu1 %v13142_v10, %s10996_s23  ;;  %4761 = vrot.lane.b32.xlu0 %v13149_v26, %s10996_s23 }
 0x368   : > { %4891 = vrot.lane.b32.xlu1 %v13142_v10, %s10995_s29  ;;  %4889 = vrot.lane.b32.xlu0 %v13149_v26, %s10995_s29 }
 0x36c   : > { %4767 = vrot.lane.b32.xlu1 %v13152_v49, %s10996_s23  ;;  %4765 = vrot.lane.b32.xlu0 %v13159_v15, %s10996_s23 }
 0x36e   : > { %v4840_v62 = vpop.permute.xlu1 %4839  ;;  %v4712_v14 = vpop.permute.xlu0 %4711 }
 0x36f   : > { %v4806_v5 = vmax.f32 %v13022_v19, %v4712_v14 }
 0x370   : > { %4895 = vrot.lane.b32.xlu1 %v13152_v49, %s10995_s29  ;;  %4893 = vrot.lane.b32.xlu0 %v13159_v15, %s10995_s29 }
 0x371   : > { %v13247_v25 = vmax.f32 %v4806_v5, %v4840_v62 }
 0x372   : > { %v4710_v32 = vpop.permute.xlu0 %4709  ;;  %v4716_v60 = vpop.permute.xlu1 %4715 }
 0x373   : > { %v4805_v6 = vmax.f32 %v13029_v17, %v4710_v32  ;;  %v4808_v22 = vmax.f32 %v13032_v28, %v4716_v60 }
 0x374   : > { %4771 = vrot.lane.b32.xlu1 %v13168_v21, %s10996_s23  ;;  %4769 = vrot.lane.b32.xlu0 %v13175_v43, %s10996_s23 }
 0x376   : > { %v4838_v1 = vpop.permute.xlu0 %4837  ;;  %v4844_v11 = vpop.permute.xlu1 %4843 }
 0x377   : > { %v13249_v12 = vmax.f32 %v4805_v6, %v4838_v1  ;;  %v13261_v58 = vmax.f32 %v4808_v22, %v4844_v11 }
 0x378   : > { %4899 = vrot.lane.b32.xlu1 %v13168_v21, %s10995_s29  ;;  %4897 = vrot.lane.b32.xlu0 %v13175_v43, %s10995_s29 }
 0x37a   : > { %v4842_v20 = vpop.permute.xlu0 %4841  ;;  %v4714_v8 = vpop.permute.xlu1 %4713 }
 0x37b   : > { %v4807_v3 = vmax.f32 %v13043_v34, %v4714_v8 }
 0x37c   : > { %5095 = vrot.lane.b32.xlu1 %v13247_v25, %s10997_s18  ;;  %5093 = vrot.lane.b32.xlu0 %v13249_v12, %s10997_s18 }
 0x37d   : > { %v13263_v62 = vmax.f32 %v4807_v3, %v4842_v20 }
 0x37e   : > { %v4720_v2 = vpop.permute.xlu1 %4719  ;;  %v4718_v54 = vpop.permute.xlu0 %4717 }
 0x37f   : > { %v4810_v1 = vmax.f32 %v13050_v50, %v4720_v2  ;;  %v4809_v6 = vmax.f32 %v13053_v41, %v4718_v54 }
 0x380   : > { %5287 = vrot.lane.b32.xlu1 %v13247_v25, %s10998_s12  ;;  %5285 = vrot.lane.b32.xlu0 %v13249_v12, %s10998_s12 }
 0x382   : > { %v4848_v14 = vpop.permute.xlu1 %4847  ;;  %v4846_v32 = vpop.permute.xlu0 %4845 }
 0x383   : > { %v13275_v11 = vmax.f32 %v4810_v1, %v4848_v14  ;;  %v13277_v20 = vmax.f32 %v4809_v6, %v4846_v32 }
 0x384   : > { %5099 = vrot.lane.b32.xlu1 %v13261_v58, %s10997_s18  ;;  %5097 = vrot.lane.b32.xlu0 %v13263_v62, %s10997_s18 }
 0x386   : > { %v4724_v60 = vpop.permute.xlu1 %4723  ;;  %v4722_v5 = vpop.permute.xlu0 %4721 }
 0x387   : > { %v4812_v22 = vmax.f32 %v13064_v18, %v4724_v60  ;;  %v4811_v13 = vmax.f32 %v13067_v40, %v4722_v5 }
 0x388   : > { %5291 = vrot.lane.b32.xlu1 %v13261_v58, %s10998_s12  ;;  %5289 = vrot.lane.b32.xlu0 %v13263_v62, %s10998_s12 }
 0x38a   : > { %v4852_v8 = vpop.permute.xlu1 %4851  ;;  %v4850_v3 = vpop.permute.xlu0 %4849 }
 0x38b   : > { %v13289_v14 = vmax.f32 %v4812_v22, %v4852_v8  ;;  %v13291_v32 = vmax.f32 %v4811_v13, %v4850_v3 }
 0x38c   : > { %5103 = vrot.lane.b32.xlu1 %v13275_v11, %s10997_s18  ;;  %5101 = vrot.lane.b32.xlu0 %v13277_v20, %s10997_s18 }
 0x38e   : > { %v4728_v2 = vpop.permute.xlu1 %4727  ;;  %v4726_v54 = vpop.permute.xlu0 %4725 }
 0x38f   : > { %v4814_v45 = vmax.f32 %v13084_v52, %v4728_v2  ;;  %v4813_v44 = vmax.f32 %v13087_v27, %v4726_v54 }
 0x390   : > { %5295 = vrot.lane.b32.xlu1 %v13275_v11, %s10998_s12  ;;  %5293 = vrot.lane.b32.xlu0 %v13277_v20, %s10998_s12 }
 0x392   : > { %v4856_v1 = vpop.permute.xlu1 %4855  ;;  %v4854_v6 = vpop.permute.xlu0 %4853 }
 0x393   : > { %v13303_v13 = vmax.f32 %v4814_v45, %v4856_v1  ;;  %v13305_v8 = vmax.f32 %v4813_v44, %v4854_v6 }
 0x394   : > { %5107 = vrot.lane.b32.xlu1 %v13289_v14, %s10997_s18  ;;  %5105 = vrot.lane.b32.xlu0 %v13291_v32, %s10997_s18 }
 0x396   : > { %v4732_v60 = vpop.permute.xlu1 %4731  ;;  %v4730_v5 = vpop.permute.xlu0 %4729 }
 0x397   : > { %v4816_v47 = vmax.f32 %v13110_v37, %v4732_v60  ;;  %v4815_v0 = vmax.f32 %v13113_v53, %v4730_v5 }
 0x398   : > { %5299 = vrot.lane.b32.xlu1 %v13289_v14, %s10998_s12  ;;  %5297 = vrot.lane.b32.xlu0 %v13291_v32, %s10998_s12 }
 0x39a   : > { %v4860_v3 = vpop.permute.xlu1 %4859  ;;  %v4858_v22 = vpop.permute.xlu0 %4857 }
 0x39b   : > { %v13317_v44 = vmax.f32 %v4816_v47, %v4860_v3  ;;  %v13319_v45 = vmax.f32 %v4815_v0, %v4858_v22 }
 0x39c   : > { %5111 = vrot.lane.b32.xlu1 %v13303_v13, %s10997_s18  ;;  %5109 = vrot.lane.b32.xlu0 %v13305_v8, %s10997_s18 }
 0x39e   : > { %v4736_v2 = vpop.permute.xlu1 %4735  ;;  %v4734_v54 = vpop.permute.xlu0 %4733 }
 0x39f   : > { %v4818_v57 = vmax.f32 %v13136_v46, %v4736_v2  ;;  %v4817_v56 = vmax.f32 %v13139_v59, %v4734_v54 }
 0x3a0   : > { %5303 = vrot.lane.b32.xlu1 %v13303_v13, %s10998_s12  ;;  %5301 = vrot.lane.b32.xlu0 %v13305_v8, %s10998_s12 }
 0x3a2   : > { %v4864_v1 = vpop.permute.xlu1 %4863  ;;  %v4862_v6 = vpop.permute.xlu0 %4861 }
 0x3a3   : > { %v13331_v0 = vmax.f32 %v4818_v57, %v4864_v1  ;;  %v13333_v47 = vmax.f32 %v4817_v56, %v4862_v6 }
 0x3a4   : > { %5115 = vrot.lane.b32.xlu1 %v13317_v44, %s10997_s18  ;;  %5113 = vrot.lane.b32.xlu0 %v13319_v45, %s10997_s18 }
 0x3a6   : > { %v4740_v60 = vpop.permute.xlu1 %4739  ;;  %v4738_v5 = vpop.permute.xlu0 %4737 }
 0x3a7   : > { %v4820_v42 = vmax.f32 %v13162_v7, %v4740_v60  ;;  %v4819_v55 = vmax.f32 %v13165_v29, %v4738_v5 }
 0x3a8   : > { %5307 = vrot.lane.b32.xlu1 %v13317_v44, %s10998_s12  ;;  %5305 = vrot.lane.b32.xlu0 %v13319_v45, %s10998_s12 }
 0x3aa   : > { %v4868_v3 = vpop.permute.xlu1 %4867  ;;  %v4866_v22 = vpop.permute.xlu0 %4865 }
 0x3ab   : > { %v13345_v56 = vmax.f32 %v4820_v42, %v4868_v3  ;;  %v13347_v57 = vmax.f32 %v4819_v55, %v4866_v22 }
 0x3ac   : > { %5119 = vrot.lane.b32.xlu1 %v13331_v0, %s10997_s18  ;;  %5117 = vrot.lane.b32.xlu0 %v13333_v47, %s10997_s18 }
 0x3ad   : > { %15927 = vst [vmem:[#allocation90_spill] sm:$0xff] %v13347_v57 }
 0x3ae   : > { %v4744_v2 = vpop.permute.xlu1 %4743  ;;  %v4742_v54 = vpop.permute.xlu0 %4741 }
 0x3af   : > { %v4822_v16 = vmax.f32 %v13074_v51, %v4744_v2  ;;  %v4821_v35 = vmax.f32 %v13081_v36, %v4742_v54 }
 0x3b0   : > { %5311 = vrot.lane.b32.xlu1 %v13331_v0, %s10998_s12  ;;  %5309 = vrot.lane.b32.xlu0 %v13333_v47, %s10998_s12 }
 0x3b2   : > { %v4872_v1 = vpop.permute.xlu1 %4871  ;;  %v4870_v6 = vpop.permute.xlu0 %4869 }
 0x3b3   : > { %v13359_v55 = vmax.f32 %v4822_v16, %v4872_v1  ;;  %v13361_v42 = vmax.f32 %v4821_v35, %v4870_v6 }
 0x3b4   : > { %5123 = vrot.lane.b32.xlu1 %v13345_v56, %s10997_s18  ;;  %5121 = vrot.lane.b32.xlu0 %v13347_v57, %s10997_s18 }
 0x3b5   : > { %15928 = vst [vmem:[#allocation91_spill] sm:$0xff] %v13359_v55  ;;  %15929 = vst [vmem:[#allocation92_spill] sm:$0xff] %v13361_v42 }
 0x3b6   : > { %v4748_v60 = vpop.permute.xlu1 %4747  ;;  %v4746_v5 = vpop.permute.xlu0 %4745 }
 0x3b7   : > { %v4824_v63 = vmax.f32 %v13090_v9, %v4748_v60  ;;  %v4823_v33 = vmax.f32 %v13097_v31, %v4746_v5 }
 0x3b8   : > { %5315 = vrot.lane.b32.xlu1 %v13345_v56, %s10998_s12  ;;  %5313 = vrot.lane.b32.xlu0 %v13347_v57, %s10998_s12 }
 0x3ba   : > { %v4876_v3 = vpop.permute.xlu1 %4875  ;;  %v4874_v22 = vpop.permute.xlu0 %4873 }
 0x3bb   : > { %v13373_v35 = vmax.f32 %v4824_v63, %v4876_v3  ;;  %v13375_v16 = vmax.f32 %v4823_v33, %v4874_v22 }
 0x3bc   : > { %5127 = vrot.lane.b32.xlu1 %v13359_v55, %s10997_s18  ;;  %5125 = vrot.lane.b32.xlu0 %v13361_v42, %s10997_s18 }
 0x3bd   : > { %15930 = vst [vmem:[#allocation93_spill] sm:$0xff] %v13373_v35  ;;  %15931 = vst [vmem:[#allocation94_spill] sm:$0xff] %v13375_v16 }
 0x3be   : > { %v4752_v2 = vpop.permute.xlu1 %4751  ;;  %v4750_v54 = vpop.permute.xlu0 %4749 }
 0x3bf   : > { %v4826_v4 = vmax.f32 %v13100_v39, %v4752_v2  ;;  %v4825_v61 = vmax.f32 %v13107_v48, %v4750_v54 }
 0x3c0   : > { %5319 = vrot.lane.b32.xlu1 %v13359_v55, %s10998_s12  ;;  %5317 = vrot.lane.b32.xlu0 %v13361_v42, %s10998_s12 }
 0x3c2   : > { %v4880_v1 = vpop.permute.xlu1 %4879  ;;  %v4878_v6 = vpop.permute.xlu0 %4877 }
 0x3c3   : > { %v13387_v63 = vmax.f32 %v4826_v4, %v4880_v1  ;;  %v13389_v33 = vmax.f32 %v4825_v61, %v4878_v6 }
 0x3c4   : > { %5131 = vrot.lane.b32.xlu1 %v13373_v35, %s10997_s18  ;;  %5129 = vrot.lane.b32.xlu0 %v13375_v16, %s10997_s18 }
 0x3c5   : > { %15932 = vst [vmem:[#allocation95_spill] sm:$0xff] %v13387_v63  ;;  %15933 = vst [vmem:[#allocation96_spill] sm:$0xff] %v13389_v33 }
 0x3c6   : > { %v4756_v60 = vpop.permute.xlu1 %4755  ;;  %v4754_v5 = vpop.permute.xlu0 %4753 }
 0x3c7   : > { %v4828_v42 = vmax.f32 %v13116_v30, %v4756_v60 }
 0x3c8   : > { %5323 = vrot.lane.b32.xlu1 %v13373_v35, %s10998_s12  ;;  %5321 = vrot.lane.b32.xlu0 %v13375_v16, %s10998_s12  ;;  %v4827_v35 = vmax.f32 %v13123_v38, %v4754_v5 }
 0x3ca   : > { %v4884_v3 = vpop.permute.xlu1 %4883  ;;  %v4882_v22 = vpop.permute.xlu0 %4881 }
 0x3cb   : > { %v13401_v4 = vmax.f32 %v4828_v42, %v4884_v3  ;;  %v13403_v61 = vmax.f32 %v4827_v35, %v4882_v22 }
 0x3cc   : > { %5135 = vrot.lane.b32.xlu1 %v13387_v63, %s10997_s18  ;;  %5133 = vrot.lane.b32.xlu0 %v13389_v33, %s10997_s18 }
 0x3cd   : > { %15934 = vst [vmem:[#allocation97_spill] sm:$0xff] %v13401_v4  ;;  %15935 = vst [vmem:[#allocation98_spill] sm:$0xff] %v13403_v61 }
 0x3ce   : > { %v4760_v2 = vpop.permute.xlu1 %4759  ;;  %v4758_v54 = vpop.permute.xlu0 %4757 }
 0x3cf   : > { %v4830_v16 = vmax.f32 %v13126_v23, %v4760_v2 }
 0x3d0   : > { %5327 = vrot.lane.b32.xlu1 %v13387_v63, %s10998_s12  ;;  %5325 = vrot.lane.b32.xlu0 %v13389_v33, %s10998_s12  ;;  %v4829_v63 = vmax.f32 %v13133_v24, %v4758_v54 }
 0x3d2   : > { %v4888_v1 = vpop.permute.xlu1 %4887  ;;  %v4886_v6 = vpop.permute.xlu0 %4885 }
 0x3d3   : > { %v13415_v42 = vmax.f32 %v4830_v16, %v4888_v1  ;;  %v13417_v35 = vmax.f32 %v4829_v63, %v4886_v6 }
 0x3d4   : > { %5139 = vrot.lane.b32.xlu1 %v13401_v4, %s10997_s18  ;;  %5137 = vrot.lane.b32.xlu0 %v13403_v61, %s10997_s18 }
 0x3d5   : > { %15936 = vst [vmem:[#allocation99_spill] sm:$0xff] %v13415_v42  ;;  %15937 = vst [vmem:[#allocation100_spill] sm:$0xff] %v13417_v35 }
 0x3d6   : > { %v4764_v60 = vpop.permute.xlu1 %4763  ;;  %v4762_v5 = vpop.permute.xlu0 %4761 }
 0x3d7   : > { %v4832_v33 = vmax.f32 %v13142_v10, %v4764_v60 }
 0x3d8   : > { %5331 = vrot.lane.b32.xlu1 %v13401_v4, %s10998_s12  ;;  %5329 = vrot.lane.b32.xlu0 %v13403_v61, %s10998_s12  ;;  %v4831_v4 = vmax.f32 %v13149_v26, %v4762_v5 }
 0x3da   : > { %v4892_v3 = vpop.permute.xlu1 %4891  ;;  %v4890_v22 = vpop.permute.xlu0 %4889 }
 0x3db   : > { %v13429_v16 = vmax.f32 %v4832_v33, %v4892_v3  ;;  %v13431_v63 = vmax.f32 %v4831_v4, %v4890_v22 }
 0x3dc   : > { %5143 = vrot.lane.b32.xlu1 %v13415_v42, %s10997_s18  ;;  %5141 = vrot.lane.b32.xlu0 %v13417_v35, %s10997_s18 }
 0x3dd   : > { %15938 = vst [vmem:[#allocation101_spill] sm:$0xff] %v13429_v16  ;;  %15939 = vst [vmem:[#allocation102_spill] sm:$0xff] %v13431_v63 }
 0x3de   : > { %v4768_v2 = vpop.permute.xlu1 %4767  ;;  %v4766_v54 = vpop.permute.xlu0 %4765 }
 0x3df   : > { %v4834_v61 = vmax.f32 %v13152_v49, %v4768_v2 }
 0x3e0   : > { %5335 = vrot.lane.b32.xlu1 %v13415_v42, %s10998_s12  ;;  %5333 = vrot.lane.b32.xlu0 %v13417_v35, %s10998_s12  ;;  %v4833_v42 = vmax.f32 %v13159_v15, %v4766_v54 }
 0x3e2   : > { %v4896_v1 = vpop.permute.xlu1 %4895  ;;  %v4894_v6 = vpop.permute.xlu0 %4893 }
 0x3e3   : > { %v13443_v33 = vmax.f32 %v4834_v61, %v4896_v1  ;;  %v13445_v4 = vmax.f32 %v4833_v42, %v4894_v6 }
 0x3e4   : > { %5147 = vrot.lane.b32.xlu1 %v13429_v16, %s10997_s18  ;;  %5145 = vrot.lane.b32.xlu0 %v13431_v63, %s10997_s18 }
 0x3e6   : > { %v4772_v60 = vpop.permute.xlu1 %4771  ;;  %v4770_v5 = vpop.permute.xlu0 %4769 }
 0x3e7   : > { %v4835_v61 = vmax.f32 %v13175_v43, %v4770_v5 }
 0x3e8   : > { %5339 = vrot.lane.b32.xlu1 %v13429_v16, %s10998_s12  ;;  %5337 = vrot.lane.b32.xlu0 %v13431_v63, %s10998_s12  ;;  %v4836_v63 = vmax.f32 %v13168_v21, %v4772_v60 }
 0x3ea   : > { %v4900_v3 = vpop.permute.xlu1 %4899  ;;  %v4898_v22 = vpop.permute.xlu0 %4897 }
 0x3eb   : > { %v13459_v6 = vmax.f32 %v4836_v63, %v4900_v3  ;;  %v13461_v55 = vmax.f32 %v4835_v61, %v4898_v22 }
 0x3ec   : > { %5151 = vrot.lane.b32.xlu1 %v13443_v33, %s10997_s18  ;;  %5149 = vrot.lane.b32.xlu0 %v13445_v4, %s10997_s18 }
 0x3ee   : > { %v5096_v2 = vpop.permute.xlu1 %5095  ;;  %v5094_v54 = vpop.permute.xlu0 %5093 }
 0x3ef   : > { %v5190_v35 = vsub.f32 %v13022_v19, %v5096_v2  ;;  %v5189_v16 = vsub.f32 %v13029_v17, %v5094_v54 }
 0x3f0   : > { %5343 = vrot.lane.b32.xlu1 %v13443_v33, %s10998_s12  ;;  %5341 = vrot.lane.b32.xlu0 %v13445_v4, %s10998_s12 }
 0x3f1   : > { %v5223_v42 = vmul.f32 1.442695, %v5190_v35  ;;  %v5221_v1 = vmul.f32 1.442695, %v5189_v16 }
 0x3f2   : > { %v5288_v57 = vpop.permute.xlu1 %5287  ;;  %v5286_v2 = vpop.permute.xlu0 %5285 }
 0x3f3   : > { %10571 = vpow2.f32 %v5223_v42  ;;  %v5382_v54 = vsub.f32 %v13022_v19, %v5288_v57  ;;  %v5381_v60 = vsub.f32 %v13029_v17, %v5286_v2 }
 0x3f4   : > { %10573 = vpow2.f32 %v5221_v1  ;;  %5155 = vrot.lane.b32.xlu1 %v13459_v6, %s10997_s18  ;;  %5153 = vrot.lane.b32.xlu0 %v13461_v55, %s10997_s18 }
 0x3f5   : > { %v5415_v35 = vmul.f32 1.442695, %v5382_v54  ;;  %v5413_v16 = vmul.f32 1.442695, %v5381_v60 }
 0x3f6   : > { %v5100_v63 = vpop.permute.xlu1 %5099  ;;  %v5098_v5 = vpop.permute.xlu0 %5097 }
 0x3f7   : > { %10575 = vpow2.f32 %v5415_v35  ;;  %v5192_v3 = vsub.f32 %v13032_v28, %v5100_v63  ;;  %v5191_v22 = vsub.f32 %v13043_v34, %v5098_v5 }
 0x3f8   : > { %10577 = vpow2.f32 %v5413_v16  ;;  %5347 = vrot.lane.b32.xlu1 %v13459_v6, %s10998_s12  ;;  %5345 = vrot.lane.b32.xlu0 %v13461_v55, %s10998_s12 }
 0x3f9   : > { %v5227_v57 = vmul.f32 1.442695, %v5192_v3  ;;  %v5225_v61 = vmul.f32 1.442695, %v5191_v22 }
 0x3fa   : > { %v5292_v42 = vpop.permute.xlu1 %5291  ;;  %v5290_v1 = vpop.permute.xlu0 %5289 }
 0x3fb   : > { %10579 = vpow2.f32 %v5227_v57  ;;  %v5384_v2 = vsub.f32 %v13032_v28, %v5292_v42  ;;  %v5383_v54 = vsub.f32 %v13043_v34, %v5290_v1 }
 0x3fc   : > { %10581 = vpow2.f32 %v5225_v61 }
 0x3fd   : > { %v13477_v60 = vpop.eup %10571  ;;  %v5419_v35 = vmul.f32 1.442695, %v5384_v2  ;;  %v5417_v16 = vmul.f32 1.442695, %v5383_v54 }
 0x3fe   : > { %15940 = vst [vmem:[#allocation103_spill] sm:$0xff] %v13477_v60  ;;  %v13479_v63 = vpop.eup %10573  ;;  %5511 = vrot.lane.b32.xlu1 %v13477_v60, %s10996_s23  ;;  %v5104_v5 = vpop.permute.xlu1 %5103 }
 0x3ff   : > { %15941 = vst [vmem:[#allocation104_spill] sm:$0xff] %v13479_v63  ;;  %v5102_v3 = vpop.permute.xlu0 %5101  ;;  %10583 = vpow2.f32 %v5419_v35  ;;  %v5194_v22 = vsub.f32 %v13050_v50, %v5104_v5  ;;  %5509 = vrot.lane.b32.xlu0 %v13479_v63, %s10996_s23 }
 0x400   : > { %v5193_v57 = vsub.f32 %v13053_v41, %v5102_v3  ;;  %10585 = vpow2.f32 %v5417_v16 }
 0x401   : > { %v13487_v61 = vpop.eup %10575  ;;  %v5231_v42 = vmul.f32 1.442695, %v5194_v22 }
 0x402   : > { %15942 = vst [vmem:[#allocation105_spill] sm:$0xff] %v13487_v61  ;;  %v5229_v1 = vmul.f32 1.442695, %v5193_v57  ;;  %v13489_v2 = vpop.eup %10577  ;;  %5671 = vrot.lane.b32.xlu1 %v13487_v61, %s10995_s29  ;;  %v5296_v54 = vpop.permute.xlu1 %5295 }
 0x403   : > { %15943 = vst [vmem:[#allocation106_spill] sm:$0xff] %v13489_v2  ;;  %v5294_v60 = vpop.permute.xlu0 %5293  ;;  %10587 = vpow2.f32 %v5231_v42  ;;  %v5386_v35 = vsub.f32 %v13050_v50, %v5296_v54  ;;  %5669 = vrot.lane.b32.xlu0 %v13489_v2, %s10995_s29 }
 0x404   : > { %v5385_v5 = vsub.f32 %v13053_v41, %v5294_v60  ;;  %10589 = vpow2.f32 %v5229_v1 }
 0x405   : > { %v13497_v16 = vpop.eup %10579  ;;  %v5423_v3 = vmul.f32 1.442695, %v5386_v35 }
 0x406   : > { %15944 = vst [vmem:[#allocation107_spill] sm:$0xff] %v13497_v16  ;;  %v5421_v22 = vmul.f32 1.442695, %v5385_v5  ;;  %v13499_v57 = vpop.eup %10581  ;;  %5515 = vrot.lane.b32.xlu1 %v13497_v16, %s10996_s23  ;;  %v5108_v63 = vpop.permute.xlu1 %5107 }
 0x407   : > { %15945 = vst [vmem:[#allocation108_spill] sm:$0xff] %v13499_v57  ;;  %v5106_v61 = vpop.permute.xlu0 %5105  ;;  %10591 = vpow2.f32 %v5423_v3  ;;  %v5196_v42 = vsub.f32 %v13064_v18, %v5108_v63  ;;  %5513 = vrot.lane.b32.xlu0 %v13499_v57, %s10996_s23  ;;  %v10999_v3 = vmov 0  }
 0x408   : > { %v5195_v60 = vsub.f32 %v13067_v40, %v5106_v61  ;;  %10593 = vpow2.f32 %v5421_v22  ;;  %10514 = vset.pattern.permute.xlu0 %v10999_v3  ;;  %10513 = vset.pattern.permute.xlu1 %v10999_v3 }
 0x409   : > { %v13507_v1 = vpop.eup %10583  ;;  %v5235_v54 = vmul.f32 1.442695, %v5196_v42 }
 0x40a   : > { %15946 = vst [vmem:[#allocation109_spill] sm:$0xff] %v13507_v1  ;;  %v5233_v35 = vmul.f32 1.442695, %v5195_v60  ;;  %v13509_v5 = vpop.eup %10585  ;;  %5675 = vrot.lane.b32.xlu1 %v13507_v1, %s10995_s29  ;;  %v5300_v16 = vpop.permute.xlu1 %5299 }
 0x40b   : > { %15947 = vst [vmem:[#allocation110_spill] sm:$0xff] %v13509_v5  ;;  %v5298_v2 = vpop.permute.xlu0 %5297  ;;  %10595 = vpow2.f32 %v5235_v54  ;;  %v5388_v63 = vsub.f32 %v13064_v18, %v5300_v16  ;;  %5673 = vrot.lane.b32.xlu0 %v13509_v5, %s10995_s29 }
 0x40c   : > { %v5387_v61 = vsub.f32 %v13067_v40, %v5298_v2  ;;  %10597 = vpow2.f32 %v5233_v35 }
 0x40d   : > { %v13517_v22 = vpop.eup %10587  ;;  %v5427_v42 = vmul.f32 1.442695, %v5388_v63 }
 0x40e   : > { %15948 = vst [vmem:[#allocation111_spill] sm:$0xff] %v13517_v22  ;;  %v5425_v60 = vmul.f32 1.442695, %v5387_v61  ;;  %v13519_v57 = vpop.eup %10589  ;;  %5519 = vrot.lane.b32.xlu1 %v13517_v22, %s10996_s23  ;;  %v5112_v1 = vpop.permute.xlu1 %5111 }
 0x40f   : > { %15949 = vst [vmem:[#allocation112_spill] sm:$0xff] %v13519_v57  ;;  %v5110_v54 = vpop.permute.xlu0 %5109  ;;  %10599 = vpow2.f32 %v5427_v42  ;;  %v5198_v16 = vsub.f32 %v13084_v52, %v5112_v1  ;;  %5517 = vrot.lane.b32.xlu0 %v13519_v57, %s10996_s23 }
 0x410   : > { %v5197_v2 = vsub.f32 %v13087_v27, %v5110_v54  ;;  %10601 = vpow2.f32 %v5425_v60 }
 0x411   : > { %v13527_v35 = vpop.eup %10591  ;;  %v5239_v3 = vmul.f32 1.442695, %v5198_v16 }
 0x412   : > { %15950 = vst [vmem:[#allocation113_spill] sm:$0xff] %v13527_v35  ;;  %v5237_v63 = vmul.f32 1.442695, %v5197_v2  ;;  %v13529_v61 = vpop.eup %10593  ;;  %5679 = vrot.lane.b32.xlu1 %v13527_v35, %s10995_s29  ;;  %v5304_v22 = vpop.permute.xlu1 %5303 }
 0x413   : > { %15951 = vst [vmem:[#allocation114_spill] sm:$0xff] %v13529_v61  ;;  %v5302_v5 = vpop.permute.xlu0 %5301  ;;  %10603 = vpow2.f32 %v5239_v3  ;;  %v5390_v1 = vsub.f32 %v13084_v52, %v5304_v22  ;;  %5677 = vrot.lane.b32.xlu0 %v13529_v61, %s10995_s29 }
 0x414   : > { %v5389_v42 = vsub.f32 %v13087_v27, %v5302_v5  ;;  %10605 = vpow2.f32 %v5237_v63 }
 0x415   : > { %v13537_v60 = vpop.eup %10595  ;;  %v5431_v54 = vmul.f32 1.442695, %v5390_v1 }
 0x416   : > { %15952 = vst [vmem:[#allocation115_spill] sm:$0xff] %v13537_v60  ;;  %v5429_v16 = vmul.f32 1.442695, %v5389_v42  ;;  %v13539_v2 = vpop.eup %10597  ;;  %5523 = vrot.lane.b32.xlu1 %v13537_v60, %s10996_s23  ;;  %v5116_v57 = vpop.permute.xlu1 %5115 }
 0x417   : > { %15953 = vst [vmem:[#allocation116_spill] sm:$0xff] %v13539_v2  ;;  %v5114_v35 = vpop.permute.xlu0 %5113  ;;  %10607 = vpow2.f32 %v5431_v54  ;;  %v5200_v22 = vsub.f32 %v13110_v37, %v5116_v57  ;;  %5521 = vrot.lane.b32.xlu0 %v13539_v2, %s10996_s23 }
 0x418   : > { %v5199_v5 = vsub.f32 %v13113_v53, %v5114_v35  ;;  %10609 = vpow2.f32 %v5429_v16 }
 0x419   : > { %v13547_v3 = vpop.eup %10599  ;;  %v5243_v63 = vmul.f32 1.442695, %v5200_v22 }
 0x41a   : > { %15954 = vst [vmem:[#allocation117_spill] sm:$0xff] %v13547_v3  ;;  %v5241_v1 = vmul.f32 1.442695, %v5199_v5  ;;  %v13549_v42 = vpop.eup %10601  ;;  %5683 = vrot.lane.b32.xlu1 %v13547_v3, %s10995_s29  ;;  %v5308_v60 = vpop.permute.xlu1 %5307 }
 0x41b   : > { %15955 = vst [vmem:[#allocation118_spill] sm:$0xff] %v13549_v42  ;;  %v5306_v61 = vpop.permute.xlu0 %5305  ;;  %10611 = vpow2.f32 %v5243_v63  ;;  %v5392_v57 = vsub.f32 %v13110_v37, %v5308_v60  ;;  %5681 = vrot.lane.b32.xlu0 %v13549_v42, %s10995_s29 }
 0x41c   : > { %v5391_v35 = vsub.f32 %v13113_v53, %v5306_v61  ;;  %10613 = vpow2.f32 %v5241_v1 }
 0x41d   : > { %v13557_v54 = vpop.eup %10603  ;;  %v5435_v16 = vmul.f32 1.442695, %v5392_v57 }
 0x41e   : > { %15956 = vst [vmem:[#allocation119_spill] sm:$0xff] %v13557_v54  ;;  %v5433_v22 = vmul.f32 1.442695, %v5391_v35  ;;  %v13559_v5 = vpop.eup %10605  ;;  %5527 = vrot.lane.b32.xlu1 %v13557_v54, %s10996_s23  ;;  %v5120_v2 = vpop.permute.xlu1 %5119 }
 0x41f   : > { %15957 = vst [vmem:[#allocation120_spill] sm:$0xff] %v13559_v5  ;;  %v5118_v3 = vpop.permute.xlu0 %5117  ;;  %10615 = vpow2.f32 %v5435_v16  ;;  %v5202_v60 = vsub.f32 %v13136_v46, %v5120_v2  ;;  %5525 = vrot.lane.b32.xlu0 %v13559_v5, %s10996_s23 }
 0x420   : > { %v5201_v61 = vsub.f32 %v13139_v59, %v5118_v3  ;;  %10617 = vpow2.f32 %v5433_v22 }
 0x421   : > { %v13567_v63 = vpop.eup %10607  ;;  %v5247_v1 = vmul.f32 1.442695, %v5202_v60 }
 0x422   : > { %15958 = vst [vmem:[#allocation121_spill] sm:$0xff] %v13567_v63  ;;  %v5245_v57 = vmul.f32 1.442695, %v5201_v61  ;;  %v13569_v35 = vpop.eup %10609  ;;  %5687 = vrot.lane.b32.xlu1 %v13567_v63, %s10995_s29  ;;  %v5312_v54 = vpop.permute.xlu1 %5311 }
 0x423   : > { %15959 = vst [vmem:[#allocation122_spill] sm:$0xff] %v13569_v35  ;;  %v5310_v42 = vpop.permute.xlu0 %5309  ;;  %10619 = vpow2.f32 %v5247_v1  ;;  %v5394_v2 = vsub.f32 %v13136_v46, %v5312_v54  ;;  %5685 = vrot.lane.b32.xlu0 %v13569_v35, %s10995_s29 }
 0x424   : > { %v5393_v3 = vsub.f32 %v13139_v59, %v5310_v42  ;;  %10621 = vpow2.f32 %v5245_v57 }
 0x425   : > { %v13577_v16 = vpop.eup %10611  ;;  %v5439_v22 = vmul.f32 1.442695, %v5394_v2 }
 0x426   : > { %15960 = vst [vmem:[#allocation123_spill] sm:$0xff] %v13577_v16  ;;  %v5437_v60 = vmul.f32 1.442695, %v5393_v3  ;;  %v13579_v61 = vpop.eup %10613  ;;  %5531 = vrot.lane.b32.xlu1 %v13577_v16, %s10996_s23  ;;  %v5124_v5 = vpop.permute.xlu1 %5123 }
 0x427   : > { %15961 = vst [vmem:[#allocation124_spill] sm:$0xff] %v13579_v61  ;;  %v5122_v63 = vpop.permute.xlu0 %5121  ;;  %10623 = vpow2.f32 %v5439_v22  ;;  %v5204_v54 = vsub.f32 %v13162_v7, %v5124_v5  ;;  %5529 = vrot.lane.b32.xlu0 %v13579_v61, %s10996_s23 }
 0x428   : > { %v5203_v42 = vsub.f32 %v13165_v29, %v5122_v63  ;;  %10625 = vpow2.f32 %v5437_v60 }
 0x429   : > { %v13587_v1 = vpop.eup %10615  ;;  %v5251_v57 = vmul.f32 1.442695, %v5204_v54 }
 0x42a   : > { %15962 = vst [vmem:[#allocation125_spill] sm:$0xff] %v13587_v1  ;;  %v5249_v2 = vmul.f32 1.442695, %v5203_v42  ;;  %v13589_v3 = vpop.eup %10617  ;;  %5691 = vrot.lane.b32.xlu1 %v13587_v1, %s10995_s29  ;;  %v5316_v16 = vpop.permute.xlu1 %5315 }
 0x42b   : > { %15963 = vst [vmem:[#allocation126_spill] sm:$0xff] %v13589_v3  ;;  %v5314_v35 = vpop.permute.xlu0 %5313  ;;  %10627 = vpow2.f32 %v5251_v57  ;;  %v5396_v5 = vsub.f32 %v13162_v7, %v5316_v16  ;;  %5689 = vrot.lane.b32.xlu0 %v13589_v3, %s10995_s29 }
 0x42c   : > { %v5395_v63 = vsub.f32 %v13165_v29, %v5314_v35  ;;  %10629 = vpow2.f32 %v5249_v2 }
 0x42d   : > { %v13597_v22 = vpop.eup %10619  ;;  %v5443_v60 = vmul.f32 1.442695, %v5396_v5 }
 0x42e   : > { %15964 = vst [vmem:[#allocation127_spill] sm:$0xff] %v13597_v22  ;;  %v5441_v54 = vmul.f32 1.442695, %v5395_v63  ;;  %v13599_v42 = vpop.eup %10621  ;;  %5535 = vrot.lane.b32.xlu1 %v13597_v22, %s10996_s23  ;;  %v5128_v61 = vpop.permute.xlu1 %5127 }
 0x42f   : > { %15965 = vst [vmem:[#allocation128_spill] sm:$0xff] %v13599_v42  ;;  %v5126_v1 = vpop.permute.xlu0 %5125  ;;  %10631 = vpow2.f32 %v5443_v60  ;;  %v5206_v16 = vsub.f32 %v13074_v51, %v5128_v61  ;;  %5533 = vrot.lane.b32.xlu0 %v13599_v42, %s10996_s23 }
 0x430   : > { %v5205_v35 = vsub.f32 %v13081_v36, %v5126_v1  ;;  %10633 = vpow2.f32 %v5441_v54 }
 0x431   : > { %v13607_v57 = vpop.eup %10623  ;;  %v5255_v2 = vmul.f32 1.442695, %v5206_v16 }
 0x432   : > { %15966 = vst [vmem:[#allocation129_spill] sm:$0xff] %v13607_v57  ;;  %v5253_v5 = vmul.f32 1.442695, %v5205_v35  ;;  %v13609_v63 = vpop.eup %10625  ;;  %5695 = vrot.lane.b32.xlu1 %v13607_v57, %s10995_s29  ;;  %v5320_v22 = vpop.permute.xlu1 %5319 }
 0x433   : > { %15967 = vst [vmem:[#allocation130_spill] sm:$0xff] %v13609_v63  ;;  %v5318_v3 = vpop.permute.xlu0 %5317  ;;  %10635 = vpow2.f32 %v5255_v2  ;;  %v5398_v61 = vsub.f32 %v13074_v51, %v5320_v22  ;;  %5693 = vrot.lane.b32.xlu0 %v13609_v63, %s10995_s29 }
 0x434   : > { %v5397_v1 = vsub.f32 %v13081_v36, %v5318_v3  ;;  %10637 = vpow2.f32 %v5253_v5 }
 0x435   : > { %v13617_v60 = vpop.eup %10627  ;;  %v5447_v54 = vmul.f32 1.442695, %v5398_v61 }
 0x436   : > { %15968 = vst [vmem:[#allocation131_spill] sm:$0xff] %v13617_v60  ;;  %v5445_v16 = vmul.f32 1.442695, %v5397_v1  ;;  %v13619_v35 = vpop.eup %10629  ;;  %5539 = vrot.lane.b32.xlu1 %v13617_v60, %s10996_s23  ;;  %v5132_v42 = vpop.permute.xlu1 %5131 }
 0x437   : > { %15969 = vst [vmem:[#allocation132_spill] sm:$0xff] %v13619_v35  ;;  %v5130_v57 = vpop.permute.xlu0 %5129  ;;  %10639 = vpow2.f32 %v5447_v54  ;;  %v5208_v22 = vsub.f32 %v13090_v9, %v5132_v42  ;;  %5537 = vrot.lane.b32.xlu0 %v13619_v35, %s10996_s23 }
 0x438   : > { %v5207_v3 = vsub.f32 %v13097_v31, %v5130_v57  ;;  %10641 = vpow2.f32 %v5445_v16 }
 0x439   : > { %v13627_v2 = vpop.eup %10631  ;;  %v5259_v5 = vmul.f32 1.442695, %v5208_v22 }
 0x43a   : > { %15970 = vst [vmem:[#allocation133_spill] sm:$0xff] %v13627_v2  ;;  %v5257_v61 = vmul.f32 1.442695, %v5207_v3  ;;  %v13629_v1 = vpop.eup %10633  ;;  %5699 = vrot.lane.b32.xlu1 %v13627_v2, %s10995_s29  ;;  %v5324_v60 = vpop.permute.xlu1 %5323 }
 0x43b   : > { %15971 = vst [vmem:[#allocation134_spill] sm:$0xff] %v13629_v1  ;;  %v5322_v63 = vpop.permute.xlu0 %5321  ;;  %10643 = vpow2.f32 %v5259_v5  ;;  %v5400_v42 = vsub.f32 %v13090_v9, %v5324_v60  ;;  %5697 = vrot.lane.b32.xlu0 %v13629_v1, %s10995_s29 }
 0x43c   : > { %v5399_v57 = vsub.f32 %v13097_v31, %v5322_v63  ;;  %10645 = vpow2.f32 %v5257_v61 }
 0x43d   : > { %v13637_v54 = vpop.eup %10635  ;;  %v5451_v16 = vmul.f32 1.442695, %v5400_v42 }
 0x43e   : > { %15972 = vst [vmem:[#allocation135_spill] sm:$0xff] %v13637_v54  ;;  %v5449_v22 = vmul.f32 1.442695, %v5399_v57  ;;  %v13639_v3 = vpop.eup %10637  ;;  %5543 = vrot.lane.b32.xlu1 %v13637_v54, %s10996_s23  ;;  %v5136_v35 = vpop.permute.xlu1 %5135 }
 0x43f   : > { %15973 = vst [vmem:[#allocation136_spill] sm:$0xff] %v13639_v3  ;;  %v5134_v2 = vpop.permute.xlu0 %5133  ;;  %10647 = vpow2.f32 %v5451_v16  ;;  %v5210_v60 = vsub.f32 %v13100_v39, %v5136_v35  ;;  %5541 = vrot.lane.b32.xlu0 %v13639_v3, %s10996_s23 }
 0x440   : > { %v5209_v63 = vsub.f32 %v13107_v48, %v5134_v2  ;;  %10649 = vpow2.f32 %v5449_v22 }
 0x441   : > { %v13647_v5 = vpop.eup %10639  ;;  %v5263_v61 = vmul.f32 1.442695, %v5210_v60 }
 0x442   : > { %15974 = vst [vmem:[#allocation137_spill] sm:$0xff] %v13647_v5  ;;  %v5261_v42 = vmul.f32 1.442695, %v5209_v63  ;;  %v13649_v57 = vpop.eup %10641  ;;  %5703 = vrot.lane.b32.xlu1 %v13647_v5, %s10995_s29  ;;  %v5328_v54 = vpop.permute.xlu1 %5327 }
 0x443   : > { %15975 = vst [vmem:[#allocation138_spill] sm:$0xff] %v13649_v57  ;;  %v5326_v1 = vpop.permute.xlu0 %5325  ;;  %10651 = vpow2.f32 %v5263_v61  ;;  %v5402_v35 = vsub.f32 %v13100_v39, %v5328_v54  ;;  %5701 = vrot.lane.b32.xlu0 %v13649_v57, %s10995_s29 }
 0x444   : > { %v5401_v2 = vsub.f32 %v13107_v48, %v5326_v1  ;;  %10653 = vpow2.f32 %v5261_v42 }
 0x445   : > { %v13657_v16 = vpop.eup %10643  ;;  %v5455_v22 = vmul.f32 1.442695, %v5402_v35 }
 0x446   : > { %15976 = vst [vmem:[#allocation139_spill] sm:$0xff] %v13657_v16  ;;  %v5453_v60 = vmul.f32 1.442695, %v5401_v2  ;;  %v13659_v63 = vpop.eup %10645  ;;  %5547 = vrot.lane.b32.xlu1 %v13657_v16, %s10996_s23  ;;  %v5140_v3 = vpop.permute.xlu1 %5139 }
 0x447   : > { %15977 = vst [vmem:[#allocation140_spill] sm:$0xff] %v13659_v63  ;;  %v5138_v5 = vpop.permute.xlu0 %5137  ;;  %10655 = vpow2.f32 %v5455_v22  ;;  %v5212_v54 = vsub.f32 %v13116_v30, %v5140_v3  ;;  %5545 = vrot.lane.b32.xlu0 %v13659_v63, %s10996_s23 }
 0x448   : > { %v5211_v1 = vsub.f32 %v13123_v38, %v5138_v5  ;;  %10657 = vpow2.f32 %v5453_v60 }
 0x449   : > { %v13667_v61 = vpop.eup %10647  ;;  %v5267_v42 = vmul.f32 1.442695, %v5212_v54 }
 0x44a   : > { %15978 = vst [vmem:[#allocation141_spill] sm:$0xff] %v13667_v61  ;;  %v5265_v35 = vmul.f32 1.442695, %v5211_v1  ;;  %v13669_v2 = vpop.eup %10649  ;;  %5707 = vrot.lane.b32.xlu1 %v13667_v61, %s10995_s29  ;;  %v5332_v16 = vpop.permute.xlu1 %5331 }
 0x44b   : > { %15979 = vst [vmem:[#allocation142_spill] sm:$0xff] %v13669_v2  ;;  %v5330_v57 = vpop.permute.xlu0 %5329  ;;  %10659 = vpow2.f32 %v5267_v42  ;;  %v5404_v3 = vsub.f32 %v13116_v30, %v5332_v16  ;;  %5705 = vrot.lane.b32.xlu0 %v13669_v2, %s10995_s29 }
 0x44c   : > { %v5403_v5 = vsub.f32 %v13123_v38, %v5330_v57  ;;  %10661 = vpow2.f32 %v5265_v35 }
 0x44d   : > { %v13677_v22 = vpop.eup %10651  ;;  %v5459_v60 = vmul.f32 1.442695, %v5404_v3 }
 0x44e   : > { %15980 = vst [vmem:[#allocation143_spill] sm:$0xff] %v13677_v22  ;;  %v5457_v54 = vmul.f32 1.442695, %v5403_v5  ;;  %v13679_v1 = vpop.eup %10653  ;;  %5551 = vrot.lane.b32.xlu1 %v13677_v22, %s10996_s23  ;;  %v5144_v63 = vpop.permute.xlu1 %5143 }
 0x44f   : > { %15981 = vst [vmem:[#allocation144_spill] sm:$0xff] %v13679_v1  ;;  %v5142_v61 = vpop.permute.xlu0 %5141  ;;  %10663 = vpow2.f32 %v5459_v60  ;;  %v5214_v16 = vsub.f32 %v13126_v23, %v5144_v63  ;;  %5549 = vrot.lane.b32.xlu0 %v13679_v1, %s10996_s23 }
 0x450   : > { %v5213_v57 = vsub.f32 %v13133_v24, %v5142_v61  ;;  %10665 = vpow2.f32 %v5457_v54 }
 0x451   : > { %v13687_v42 = vpop.eup %10655  ;;  %v5271_v35 = vmul.f32 1.442695, %v5214_v16 }
 0x452   : > { %15982 = vst [vmem:[#allocation145_spill] sm:$0xff] %v13687_v42  ;;  %v5269_v3 = vmul.f32 1.442695, %v5213_v57  ;;  %v13689_v5 = vpop.eup %10657  ;;  %5711 = vrot.lane.b32.xlu1 %v13687_v42, %s10995_s29  ;;  %v5336_v22 = vpop.permute.xlu1 %5335 }
 0x453   : > { %15983 = vst [vmem:[#allocation146_spill] sm:$0xff] %v13689_v5  ;;  %v5334_v2 = vpop.permute.xlu0 %5333  ;;  %10667 = vpow2.f32 %v5271_v35  ;;  %v5406_v63 = vsub.f32 %v13126_v23, %v5336_v22  ;;  %5709 = vrot.lane.b32.xlu0 %v13689_v5, %s10995_s29 }
 0x454   : > { %v5405_v61 = vsub.f32 %v13133_v24, %v5334_v2  ;;  %10669 = vpow2.f32 %v5269_v3 }
 0x455   : > { %v13697_v60 = vpop.eup %10659  ;;  %v5463_v54 = vmul.f32 1.442695, %v5406_v63 }
 0x456   : > { %15984 = vst [vmem:[#allocation147_spill] sm:$0xff] %v13697_v60  ;;  %v5461_v16 = vmul.f32 1.442695, %v5405_v61  ;;  %v13699_v57 = vpop.eup %10661  ;;  %5555 = vrot.lane.b32.xlu1 %v13697_v60, %s10996_s23  ;;  %v5148_v1 = vpop.permute.xlu1 %5147 }
 0x457   : > { %15985 = vst [vmem:[#allocation148_spill] sm:$0xff] %v13699_v57  ;;  %v5146_v42 = vpop.permute.xlu0 %5145  ;;  %10671 = vpow2.f32 %v5463_v54  ;;  %v5216_v22 = vsub.f32 %v13142_v10, %v5148_v1  ;;  %5553 = vrot.lane.b32.xlu0 %v13699_v57, %s10996_s23  ;;  %v4966_v57 = vsub.f32 %v13022_v19, %v13247_v25  ;;  %v4965_v25 = vsub.f32 %v13029_v17, %v13249_v12 }
 0x458   : > { %v5215_v2 = vsub.f32 %v13149_v26, %v5146_v42  ;;  %10673 = vpow2.f32 %v5461_v16 }
 0x459   : > { %v13707_v35 = vpop.eup %10663  ;;  %v5275_v3 = vmul.f32 1.442695, %v5216_v22  ;;  %v4999_v19 = vmul.f32 1.442695, %v4966_v57  ;;  %v4997_v17 = vmul.f32 1.442695, %v4965_v25  ;;  %v4968_v25 = vsub.f32 %v13032_v28, %v13261_v58 }
 0x45a   : > { %15986 = vst [vmem:[#allocation149_spill] sm:$0xff] %v13707_v35  ;;  %v5273_v63 = vmul.f32 1.442695, %v5215_v2  ;;  %v13709_v61 = vpop.eup %10665  ;;  %5715 = vrot.lane.b32.xlu1 %v13707_v35, %s10995_s29  ;;  %v5340_v60 = vpop.permute.xlu1 %5339  ;;  %v4967_v58 = vsub.f32 %v13043_v34, %v13263_v62 }
 0x45b   : > { %15987 = vst [vmem:[#allocation150_spill] sm:$0xff] %v13709_v61  ;;  %v5338_v5 = vpop.permute.xlu0 %5337  ;;  %10675 = vpow2.f32 %v5275_v3  ;;  %v5408_v1 = vsub.f32 %v13142_v10, %v5340_v60  ;;  %5713 = vrot.lane.b32.xlu0 %v13709_v61, %s10995_s29  ;;  %v5003_v28 = vmul.f32 1.442695, %v4968_v25 }
 0x45c   : > { %v5407_v42 = vsub.f32 %v13149_v26, %v5338_v5  ;;  %10677 = vpow2.f32 %v5273_v63  ;;  %v5001_v25 = vmul.f32 1.442695, %v4967_v58 }
 0x45d   : > { %v13717_v54 = vpop.eup %10667  ;;  %v5467_v16 = vmul.f32 1.442695, %v5408_v1 }
 0x45e   : > { %15988 = vst [vmem:[#allocation151_spill] sm:$0xff] %v13717_v54  ;;  %v5465_v22 = vmul.f32 1.442695, %v5407_v42  ;;  %v13719_v2 = vpop.eup %10669  ;;  %5559 = vrot.lane.b32.xlu1 %v13717_v54, %s10996_s23  ;;  %v5152_v3 = vpop.permute.xlu1 %5151 }
 0x45f   : > { %15989 = vst [vmem:[#allocation152_spill] sm:$0xff] %v13719_v2  ;;  %v5150_v60 = vpop.permute.xlu0 %5149  ;;  %10679 = vpow2.f32 %v5467_v16  ;;  %v5218_v61 = vsub.f32 %v13152_v49, %v5152_v3  ;;  %5557 = vrot.lane.b32.xlu0 %v13719_v2, %s10996_s23 }
 0x460   : > { %v5217_v5 = vsub.f32 %v13159_v15, %v5150_v60  ;;  %10681 = vpow2.f32 %v5465_v22 }
 0x461   : > { %v13729_v63 = vpop.eup %10671  ;;  %v5279_v1 = vmul.f32 1.442695, %v5218_v61 }
 0x462   : > { %v5277_v42 = vmul.f32 1.442695, %v5217_v5  ;;  %v13731_v35 = vpop.eup %10673  ;;  %5719 = vrot.lane.b32.xlu1 %v13729_v63, %s10995_s29  ;;  %v5344_v16 = vpop.permute.xlu1 %5343 }
 0x463   : > { %15990 = vst [vmem:[#allocation153_spill] sm:$0xff] %v13731_v35  ;;  %v5342_v3 = vpop.permute.xlu0 %5341  ;;  %10683 = vpow2.f32 %v5279_v1  ;;  %v5410_v2 = vsub.f32 %v13152_v49, %v5344_v16  ;;  %5717 = vrot.lane.b32.xlu0 %v13731_v35, %s10995_s29 }
 0x464   : > { %v5409_v61 = vsub.f32 %v13159_v15, %v5342_v3  ;;  %10685 = vpow2.f32 %v5277_v42 }
 0x465   : > { %v13741_v22 = vpop.eup %10675  ;;  %v5471_v57 = vmul.f32 1.442695, %v5410_v2  ;;  %10687 = vpow2.f32 %v4999_v19 }
 0x466   : > { %15991 = vst [vmem:[#allocation154_spill] sm:$0xff] %v13741_v22  ;;  %v5469_v60 = vmul.f32 1.442695, %v5409_v61  ;;  %v13743_v5 = vpop.eup %10677  ;;  %5563 = vrot.lane.b32.xlu1 %v13741_v22, %s10996_s23  ;;  %v5156_v12 = vpop.permute.xlu1 %5155 }
 0x467   : > { %15992 = vst [vmem:[#allocation155_spill] sm:$0xff] %v13743_v5  ;;  %v5154_v1 = vpop.permute.xlu0 %5153  ;;  %10689 = vpow2.f32 %v5471_v57  ;;  %v5220_v16 = vsub.f32 %v13168_v21, %v5156_v12  ;;  %5561 = vrot.lane.b32.xlu0 %v13743_v5, %s10996_s23 }
 0x468   : > { %v5219_v42 = vsub.f32 %v13175_v43, %v5154_v1  ;;  %10691 = vpow2.f32 %v5469_v60 }
 0x469   : > { %v13751_v2 = vpop.eup %10679  ;;  %v5283_v3 = vmul.f32 1.442695, %v5220_v16  ;;  %10693 = vpow2.f32 %v4997_v17 }
 0x46a   : > { %v5281_v61 = vmul.f32 1.442695, %v5219_v42  ;;  %v13753_v19 = vpop.eup %10681  ;;  %5723 = vrot.lane.b32.xlu1 %v13751_v2, %s10995_s29  ;;  %v5348_v57 = vpop.permute.xlu1 %5347 }
 0x46b   : > { %15993 = vst [vmem:[#allocation156_spill] sm:$0xff] %v13753_v19  ;;  %v5346_v12 = vpop.permute.xlu0 %5345  ;;  %10695 = vpow2.f32 %v5283_v3  ;;  %v5412_v5 = vsub.f32 %v13168_v21, %v5348_v57  ;;  %5721 = vrot.lane.b32.xlu0 %v13753_v19, %s10995_s29 }
 0x46c   : > { %v5411_v60 = vsub.f32 %v13175_v43, %v5346_v12  ;;  %10697 = vpow2.f32 %v5281_v61 }
 0x46d   : > { %v13763_v1 = vpop.eup %10683  ;;  %v5475_v17 = vmul.f32 1.442695, %v5412_v5 }
 0x46e   : > { %15994 = vst [vmem:[#allocation157_spill] sm:$0xff] %v13763_v1  ;;  %v5473_v16 = vmul.f32 1.442695, %v5411_v60  ;;  %v13765_v42 = vpop.eup %10685  ;;  %5567 = vrot.lane.b32.xlu1 %v13763_v1, %s10996_s23 }
 0x46f   : > { %15995 = vst [vmem:[#allocation158_spill] sm:$0xff] %v13765_v42  ;;  %10699 = vpow2.f32 %v5475_v17  ;;  %5565 = vrot.lane.b32.xlu0 %v13765_v42, %s10996_s23  ;;  %v10688_v3 = vpop.eup %10687 }
 0x470   : > { %10701 = vpow2.f32 %v5473_v16  ;;  %v5512_v61 = vpop.permute.xlu1 %5511 }
 0x471   : > { %v13773_v57 = vpop.eup %10689  ;;  %v5510_v5 = vpop.permute.xlu0 %5509  ;;  %10703 = vpow2.f32 %v5003_v28  ;;  %v5606_v34 = vadd.f32 %v10688_v3, %v5512_v61  ;;  %v4970_v28 = vsub.f32 %v13050_v50, %v13275_v11 }
 0x472   : > { %v13775_v12 = vpop.eup %10691  ;;  %5727 = vrot.lane.b32.xlu1 %v13773_v57, %s10995_s29  ;;  %10705 = vpow2.f32 %v5001_v25  ;;  %v4969_v25 = vsub.f32 %v13053_v41, %v13277_v20  ;;  %v4972_v41 = vsub.f32 %v13064_v18, %v13289_v14 }
 0x473   : > { %15996 = vst [vmem:[#allocation159_spill] sm:$0xff] %v13775_v12  ;;  %5725 = vrot.lane.b32.xlu0 %v13775_v12, %s10995_s29  ;;  %v10694_v62 = vpop.eup %10693 }
 0x474   : > { %v5672_v60 = vpop.permute.xlu1 %5671  ;;  %v5605_v16 = vadd.f32 %v10694_v62, %v5510_v5 }
 0x475   : > { %v13781_v17 = vpop.eup %10695  ;;  %v5766_v42 = vadd.f32 %v5672_v60, %v5606_v34  ;;  %v5670_v1 = vpop.permute.xlu0 %5669  ;;  %v5007_v60 = vmul.f32 1.442695, %v4970_v28 }
 0x476   : > { %15997 = vst [vmem:[#allocation160_spill] sm:$0xff] %v13781_v17  ;;  %v13783_v19 = vpop.eup %10697  ;;  %5571 = vrot.lane.b32.xlu1 %v13781_v17, %s10996_s23  ;;  %v5765_v58 = vadd.f32 %v5670_v1, %v5605_v16  ;;  %v5005_v16 = vmul.f32 1.442695, %v4969_v25  ;;  %v5011_v25 = vmul.f32 1.442695, %v4972_v41 }
 0x477   : > { %15998 = vst [vmem:[#allocation161_spill] sm:$0xff] %v13783_v19  ;;  %10707 = vrcp.f32 %v5766_v42  ;;  %5569 = vrot.lane.b32.xlu0 %v13783_v19, %s10996_s23 }
 0x478   : > { %v5516_v61 = vpop.permute.xlu1 %5515  ;;  %10709 = vrcp.f32 %v5765_v58 }
 0x479   : > { %v13791_v12 = vpop.eup %10699  ;;  %v5514_v5 = vpop.permute.xlu0 %5513  ;;  %10711 = vpow2.f32 %v5007_v60 }
 0x47a   : > { %15999 = vst [vmem:[#allocation162_spill] sm:$0xff] %v13791_v12  ;;  %v13793_v34 = vpop.eup %10701  ;;  %5731 = vrot.lane.b32.xlu1 %v13791_v12, %s10995_s29  ;;  %10713 = vpow2.f32 %v5005_v16 }
 0x47b   : > { %16000 = vst [vmem:[#allocation163_spill] sm:$0xff] %v13793_v34  ;;  %5729 = vrot.lane.b32.xlu0 %v13793_v34, %s10995_s29  ;;  %v10704_v50 = vpop.eup %10703  ;;  %s10925_s29 = sshll.u32 %s11008_s8, 4  ;;  %s10926_s29 = int_to_ptr.vmem [resolvable:$false] %s10925_s29 }
 0x47c   : > { %v5676_v11 = vpop.permute.xlu1 %5675  ;;  %v5608_v1 = vadd.f32 %v10704_v50, %v5516_v61  ;;  %v10706_v17 = vpop.eup %10705  ;;  %s10927_s23 = scalar_lea.vmem %s10926_s29, 16384  ;;  %p10928_p0 = scmp.lt.s32.totalorder %s15496_s11, %s10926_s29 }
 0x47d   : > { %v5674_v42 = vpop.permute.xlu0 %5673  ;;  %v5607_v35 = vadd.f32 %v10706_v17, %v5514_v5  ;;  %p10929_p2 = scmp.lt.s32.totalorder %s10927_s23, %s10921_s17 }
 0x47e   : > { %v5768_v19 = vadd.f32 %v5676_v11, %v5608_v1  ;;  %v4971_v11 = vsub.f32 %v13067_v40, %v13291_v32 }
 0x47f   : > { %v5767_v20 = vadd.f32 %v5674_v42, %v5607_v35  ;;  %p10930_p4 = por %p10929_p2, %p10928_p0 }
 0x480   : > { %v5520_v22 = vpop.permute.xlu1 %5519  ;;  %10715 = vrcp.f32 %v5768_v19  ;;  %v5009_v35 = vmul.f32 1.442695, %v4971_v11 }
 0x481   : > { %v10708_v28 = vpop.eup %10707  ;;  %v5518_v54 = vpop.permute.xlu0 %5517  ;;  %10717 = vrcp.f32 %v5767_v20  ;;  %v4974_v20 = vsub.f32 %v13084_v52, %v13303_v13  ;;  %p10931_p5 = pnand %p10930_p4, %p10924_p10 }
 0x482   : > { %8775 = vrot.lane.b32.xlu1 %v10708_v28, %s10998_s12  ;;  %6599 = vrot.lane.b32.xlu0 %v10708_v28, %s10997_s18  ;;  %v10710_v61 = vpop.eup %10709  ;;  %v5830_v14 = vmul.f32 %v10708_v28, %v10688_v3  ;;  %10719 = vpow2.f32 %v5011_v25 }
 0x483   : > { %v10712_v5 = vpop.eup %10711  ;;  %v5829_v1 = vmul.f32 %v10710_v61, %v10694_v62  ;;  %10721 = vpow2.f32 %v5009_v35 }
 0x484   : > { %v5680_v58 = vpop.permute.xlu1 %5679  ;;  %v5610_v16 = vadd.f32 %v10712_v5, %v5520_v22  ;;  %v10714_v42 = vpop.eup %10713 }
 0x485   : > { %v5678_v60 = vpop.permute.xlu0 %5677  ;;  %v5609_v40 = vadd.f32 %v10714_v42, %v5518_v54 }
 0x486   : > { %8773 = vrot.lane.b32.xlu0 %v10710_v61, %s10998_s12  ;;  %6597 = vrot.lane.b32.xlu1 %v10710_v61, %s10997_s18  ;;  %v5770_v19 = vadd.f32 %v5680_v58, %v5610_v16  ;;  %v5015_v61 = vmul.f32 1.442695, %v4974_v20  ;;  %v4973_v58 = vsub.f32 %v13087_v27, %v13305_v8 }
 0x487   : > { %v5769_v22 = vadd.f32 %v5678_v60, %v5609_v40  ;;  %v4976_v40 = vsub.f32 %v13110_v37, %v13317_v44 }
 0x488   : > { %v5524_v18 = vpop.permute.xlu1 %5523  ;;  %10723 = vrcp.f32 %v5770_v19  ;;  %v5013_v60 = vmul.f32 1.442695, %v4973_v58 }
 0x489   : > { %v5522_v12 = vpop.permute.xlu0 %5521  ;;  %10725 = vrcp.f32 %v5769_v22  ;;  %v5019_v20 = vmul.f32 1.442695, %v4976_v40 }
 0x48a   : > { %5867 = vperm.xlu1 %10513, %v5830_v14   ;;  %5863 = vperm.xlu0 %10514, %v5829_v1   ;;  %v10716_v34 = vpop.eup %10715  ;;  %10727 = vpow2.f32 %v5015_v61 }
 0x48b   : > { %v10718_v62 = vpop.eup %10717  ;;  %v5832_v13 = vmul.f32 %v10716_v34, %v10704_v50  ;;  %10729 = vpow2.f32 %v5013_v60  ;;  %v4978_v60 = vsub.f32 %v13136_v46, %v13331_v0 }
 0x48c   : > { %v5684_v41 = vpop.permute.xlu1 %5683  ;;  %v10720_v54 = vpop.eup %10719  ;;  %v5831_v25 = vmul.f32 %v10718_v62, %v10706_v17 }
 0x48d   : > { %v5682_v32 = vpop.permute.xlu0 %5681  ;;  %v5612_v11 = vadd.f32 %v10720_v54, %v5524_v18  ;;  %v10722_v16 = vpop.eup %10721 }
 0x48e   : > { %8779 = vrot.lane.b32.xlu1 %v10716_v34, %s10998_s12  ;;  %6603 = vrot.lane.b32.xlu0 %v10716_v34, %s10997_s18  ;;  %v5611_v27 = vadd.f32 %v10722_v16, %v5522_v12 }
 0x48f   : > { %v5772_v1 = vadd.f32 %v5684_v41, %v5612_v11  ;;  %v4975_v41 = vsub.f32 %v13113_v53, %v13319_v45 }
 0x490   : > { %v5528_v3 = vpop.permute.xlu1 %5527  ;;  %v5771_v17 = vadd.f32 %v5682_v32, %v5611_v27 }
 0x491   : > { %v5526_v28 = vpop.permute.xlu0 %5525  ;;  %10731 = vrcp.f32 %v5772_v1  ;;  %v5017_v32 = vmul.f32 1.442695, %v4975_v41  ;;  %v5023_v1 = vmul.f32 1.442695, %v4978_v60 }
 0x492   : > { %8777 = vrot.lane.b32.xlu0 %v10718_v62, %s10998_s12  ;;  %6601 = vrot.lane.b32.xlu1 %v10718_v62, %s10997_s18  ;;  %v10724_v19 = vpop.eup %10723  ;;  %10733 = vrcp.f32 %v5771_v17 }
 0x493   : > { %v10726_v50 = vpop.eup %10725  ;;  %v5834_v44 = vmul.f32 %v10724_v19, %v10712_v5  ;;  %10735 = vpow2.f32 %v5019_v20 }
 0x494   : > { %v5688_v52 = vpop.permute.xlu1 %5687  ;;  %v10728_v12 = vpop.eup %10727  ;;  %v5833_v22 = vmul.f32 %v10726_v50, %v10714_v42  ;;  %10737 = vpow2.f32 %v5017_v32  ;;  %v16001_v32 = vld [vmem:[#allocation90_spill] sm:$0xff] }
 0x495   : > { %v5686_v14 = vpop.permute.xlu0 %5685  ;;  %v5614_v62 = vadd.f32 %v10728_v12, %v5528_v3 }
 0x496   : > { %5875 = vperm.xlu0 %10514, %v5832_v13   ;;  %5871 = vperm.xlu1 %10513, %v5831_v25   ;;  %v10730_v13 = vpop.eup %10729 }
 0x497   : > { %v5774_v58 = vadd.f32 %v5688_v52, %v5614_v62  ;;  %v5613_v25 = vadd.f32 %v10730_v13, %v5526_v28  ;;  %v4977_v28 = vsub.f32 %v13139_v59, %v13333_v47 }
 0x498   : > { %v5532_v35 = vpop.permute.xlu1 %5531 }
 0x499   : > { %v5530_v8 = vpop.permute.xlu0 %5529  ;;  %10739 = vrcp.f32 %v5774_v58  ;;  %v5773_v5 = vadd.f32 %v5686_v14, %v5613_v25  ;;  %v5021_v17 = vmul.f32 1.442695, %v4977_v28 }
 0x49a   : > { %6607 = vrot.lane.b32.xlu0 %v10724_v19, %s10997_s18  ;;  %8783 = vrot.lane.b32.xlu1 %v10724_v19, %s10998_s12 }
 0x49b   : > { %v10732_v45 = vpop.eup %10731  ;;  %10741 = vrcp.f32 %v5773_v5  ;;  %v16002_v5 = vld [vmem:[#allocation91_spill] sm:$0xff] }
 0x49c   : > { %v5692_v34 = vpop.permute.xlu1 %5691  ;;  %v10734_v3 = vpop.eup %10733  ;;  %v5836_v19 = vmul.f32 %v10732_v45, %v10720_v54  ;;  %10743 = vpow2.f32 %v5023_v1  ;;  %v4980_v54 = vsub.f32 %v13162_v7, %v13345_v56 }
 0x49d   : > { %v5690_v18 = vpop.permute.xlu0 %5689  ;;  %v13843_v46 = vpop.eup %10735  ;;  %v5835_v14 = vmul.f32 %v10734_v3, %v10722_v16  ;;  %10745 = vpow2.f32 %v5021_v17  ;;  %v16003_v17 = vld [vmem:[#allocation92_spill] sm:$0xff] }
 0x49e   : > { %8781 = vrot.lane.b32.xlu0 %v10726_v50, %s10998_s12  ;;  %6605 = vrot.lane.b32.xlu1 %v10726_v50, %s10997_s18  ;;  %v5616_v27 = vadd.f32 %v13843_v46, %v5532_v35  ;;  %v10738_v47 = vpop.eup %10737  ;;  %v5027_v62 = vmul.f32 1.442695, %v4980_v54 }
 0x49f   : > { %v5615_v41 = vadd.f32 %v10738_v47, %v5530_v8  ;;  %v4979_v8 = vsub.f32 %v13165_v29, %v16001_v32  ;;  %v4982_v29 = vsub.f32 %v13074_v51, %v16002_v5 }
 0x4a0   : > { %v13825_v37 = vpop.permute.xlu1 %5535  ;;  %v5776_v59 = vadd.f32 %v5692_v34, %v5616_v27 }
 0x4a1   : > { %v13827_v61 = vpop.permute.xlu0 %5533  ;;  %v5775_v16 = vadd.f32 %v5690_v18, %v5615_v41  ;;  %v5025_v60 = vmul.f32 1.442695, %v4979_v8 }
 0x4a2   : > { %5883 = vperm.xlu0 %10514, %v5834_v44   ;;  %5879 = vperm.xlu1 %10513, %v5833_v22   ;;  %10747 = vrcp.f32 %v5776_v59 }
 0x4a3   : > { %v10740_v20 = vpop.eup %10739  ;;  %10749 = vrcp.f32 %v5775_v16 }
 0x4a4   : > { %v5696_v53 = vpop.permute.xlu1 %5695  ;;  %v5838_v58 = vmul.f32 %v10740_v20, %v10728_v12  ;;  %10751 = vpow2.f32 %v5027_v62 }
 0x4a5   : > { %v13829_v11 = vpop.permute.xlu0 %5693  ;;  %v10742_v34 = vpop.eup %10741  ;;  %10753 = vpow2.f32 %v5025_v60 }
 0x4a6   : > { %6611 = vrot.lane.b32.xlu0 %v10732_v45, %s10997_s18  ;;  %8787 = vrot.lane.b32.xlu1 %v10732_v45, %s10998_s12  ;;  %v13866_v7 = vpop.eup %10743  ;;  %v5837_v18 = vmul.f32 %v10742_v34, %v10730_v13 }
 0x4a7   : > { %v5618_v45 = vadd.f32 %v13866_v7, %v13825_v37  ;;  %v10746_v1 = vpop.eup %10745  ;;  %v5031_v37 = vmul.f32 1.442695, %v4982_v29 }
 0x4a8   : > { %v13835_v42 = vpop.permute.xlu1 %5539  ;;  %v5617_v12 = vadd.f32 %v10746_v1, %v13827_v61  ;;  %v4981_v61 = vsub.f32 %v13081_v36, %v16003_v17 }
 0x4a9   : > { %v13837_v52 = vpop.permute.xlu0 %5537 }
 0x4aa   : > { %8785 = vrot.lane.b32.xlu0 %v10734_v3, %s10998_s12  ;;  %6609 = vrot.lane.b32.xlu1 %v10734_v3, %s10997_s18  ;;  %v5778_v3 = vadd.f32 %v5696_v53, %v5618_v45  ;;  %v5777_v51 = vadd.f32 %v13829_v11, %v5617_v12 }
 0x4ac   : > { %v13845_v0 = vpop.permute.xlu1 %5699  ;;  %10755 = vrcp.f32 %v5778_v3  ;;  %v16005_v3 = vld [vmem:[#allocation94_spill] sm:$0xff] }
 0x4ad   : > { %v13848_v40 = vpop.permute.xlu0 %5697  ;;  %10757 = vpow2.f32 %v5031_v37 }
 0x4ae   : > { %5891 = vperm.xlu0 %10514, %v5836_v19   ;;  %5887 = vperm.xlu1 %10513, %v5835_v14   ;;  %v10748_v19 = vpop.eup %10747  ;;  %10759 = vrcp.f32 %v5777_v51 }
 0x4af   : > { %v10750_v53 = vpop.eup %10749  ;;  %v5840_v41 = vmul.f32 %v10748_v19, %v13843_v46  ;;  %v16004_v46 = vld [vmem:[#allocation93_spill] sm:$0xff] }
 0x4b0   : > { %v13850_v50 = vpop.permute.xlu1 %5543  ;;  %v10752_v59 = vpop.eup %10751  ;;  %v5839_v11 = vmul.f32 %v10750_v53, %v10738_v47  ;;  %v4984_v47 = vsub.f32 %v13090_v9, %v16004_v46  ;;  %v4983_v9 = vsub.f32 %v13097_v31, %v16005_v3 }
 0x4b1   : > { %v13852_v44 = vpop.permute.xlu0 %5541  ;;  %v5620_v54 = vadd.f32 %v10752_v59, %v13835_v42  ;;  %v10754_v62 = vpop.eup %10753 }
 0x4b2   : > { %6615 = vrot.lane.b32.xlu0 %v10740_v20, %s10997_s18  ;;  %8791 = vrot.lane.b32.xlu1 %v10740_v20, %s10998_s12  ;;  %v5035_v29 = vmul.f32 1.442695, %v4984_v47 }
 0x4b3   : > { %v5780_v36 = vadd.f32 %v13845_v0, %v5620_v54 }
 0x4b4   : > { %v13858_v35 = vpop.permute.xlu1 %5703 }
 0x4b5   : > { %v13860_v22 = vpop.permute.xlu0 %5701 }
 0x4b6   : > { %8789 = vrot.lane.b32.xlu0 %v10742_v34, %s10998_s12  ;;  %6613 = vrot.lane.b32.xlu1 %v10742_v34, %s10997_s18  ;;  %v5029_v34 = vmul.f32 1.442695, %v4981_v61  ;;  %v10756_v8 = vpop.eup %10755  ;;  %v16006_v61 = vld [vmem:[#allocation95_spill] sm:$0xff] }
 0x4b7   : > { %v13909_v0 = vpop.eup %10757 }
 0x4b8   : > { %v13868_v56 = vpop.permute.xlu1 %5547  ;;  %10761 = vpow2.f32 %v5029_v34  ;;  %v10760_v60 = vpop.eup %10759  ;;  %v16007_v34 = vld [vmem:[#allocation96_spill] sm:$0xff] }
 0x4b9   : > { %v13872_v25 = vpop.permute.xlu0 %5545  ;;  %10763 = vrcp.f32 %v5780_v36  ;;  %v5841_v12 = vmul.f32 %v10760_v60, %v10746_v1  ;;  %v4985_v36 = vsub.f32 %v13107_v48, %v16007_v34 }
 0x4ba   : > { %5899 = vperm.xlu0 %10514, %v5838_v58   ;;  %5895 = vperm.xlu1 %10513, %v5837_v18   ;;  %v5619_v58 = vadd.f32 %v10754_v62, %v13837_v52  ;;  %v5622_v52 = vadd.f32 %v13909_v0, %v13850_v50  ;;  %v5033_v50 = vmul.f32 1.442695, %v4983_v9 }
 0x4bb   : > { %v5037_v47 = vmul.f32 1.442695, %v4985_v36  ;;  %v16011_v36 = vld [vmem:[#allocation100_spill] sm:$0xff] }
 0x4bc   : > { %v13876_v28 = vpop.permute.xlu1 %5707  ;;  %v5779_v42 = vadd.f32 %v13848_v40, %v5619_v58  ;;  %v5782_v40 = vadd.f32 %v13858_v35, %v5622_v52  ;;  %v4986_v35 = vsub.f32 %v13100_v39, %v16006_v61 }
 0x4bd   : > { %v13879_v13 = vpop.permute.xlu0 %5705 }
 0x4be   : > { %6619 = vrot.lane.b32.xlu0 %v10748_v19, %s10997_s18  ;;  %8795 = vrot.lane.b32.xlu1 %v10748_v19, %s10998_s12  ;;  %10765 = vrcp.f32 %v5779_v42  ;;  %v5842_v19 = vmul.f32 %v10756_v8, %v13866_v7  ;;  %v5039_v54 = vmul.f32 1.442695, %v4986_v35 }
 0x4bf   : > { %10767 = vpow2.f32 %v5035_v29 }
 0x4c0   : > { %v13884_v14 = vpop.permute.xlu1 %5551  ;;  %10769 = vrcp.f32 %v5782_v40 }
 0x4c1   : > { %v13886_v27 = vpop.permute.xlu0 %5549  ;;  %10771 = vpow2.f32 %v5033_v50 }
 0x4c2   : > { %8793 = vrot.lane.b32.xlu0 %v10750_v53, %s10998_s12  ;;  %6617 = vrot.lane.b32.xlu1 %v10750_v53, %s10997_s18  ;;  %v10762_v31 = vpop.eup %10761 }
 0x4c3   : > { %v10764_v53 = vpop.eup %10763  ;;  %v5621_v17 = vadd.f32 %v10762_v31, %v13852_v44 }
 0x4c4   : > { %v13892_v20 = vpop.permute.xlu1 %5711  ;;  %v5844_v44 = vmul.f32 %v10764_v53, %v10752_v59  ;;  %v16008_v59 = vld [vmem:[#allocation97_spill] sm:$0xff] }
 0x4c5   : > { %v13896_v16 = vpop.permute.xlu0 %5709  ;;  %v5781_v7 = vadd.f32 %v13860_v22, %v5621_v17  ;;  %v4988_v29 = vsub.f32 %v13116_v30, %v16008_v59 }
 0x4c6   : > { %5907 = vperm.xlu0 %10514, %v5840_v41   ;;  %5903 = vperm.xlu1 %10513, %v5839_v11  }
 0x4c7   : > { %10773 = vrcp.f32 %v5781_v7 }
 0x4c8   : > { %v13899_v32 = vpop.permute.xlu1 %5555  ;;  %v10766_v11 = vpop.eup %10765  ;;  %10775 = vpow2.f32 %v5039_v54 }
 0x4c9   : > { %v13902_v18 = vpop.permute.xlu0 %5553  ;;  %v10768_v39 = vpop.eup %10767  ;;  %10777 = vpow2.f32 %v5037_v47 }
 0x4ca   : > { %6623 = vrot.lane.b32.xlu0 %v10756_v8, %s10997_s18  ;;  %8799 = vrot.lane.b32.xlu1 %v10756_v8, %s10998_s12  ;;  %v10770_v8 = vpop.eup %10769  ;;  %v5624_v58 = vadd.f32 %v10768_v39, %v13868_v56 }
 0x4cb   : > { %v10772_v42 = vpop.eup %10771 }
 0x4cc   : > { %v13911_v45 = vpop.permute.xlu1 %5715  ;;  %v5784_v48 = vadd.f32 %v13876_v28, %v5624_v58  ;;  %v5623_v52 = vadd.f32 %v10772_v42, %v13872_v25  ;;  %v5043_v28 = vmul.f32 1.442695, %v4988_v29  ;;  %v5846_v25 = vmul.f32 %v10770_v8, %v13909_v0  ;;  %v16012_v29 = vld [vmem:[#allocation101_spill] sm:$0xff] }
 0x4cd   : > { %v13915_v5 = vpop.permute.xlu0 %5713 }
 0x4ce   : > { %8797 = vrot.lane.b32.xlu0 %v10760_v60, %s10998_s12  ;;  %6621 = vrot.lane.b32.xlu1 %v10760_v60, %s10997_s18  ;;  %v5843_v60 = vmul.f32 %v10766_v11, %v10754_v62  ;;  %10779 = vrcp.f32 %v5784_v48  ;;  %v5783_v56 = vadd.f32 %v13879_v13, %v5623_v52 }
 0x4d0   : > { %v13923_v37 = vpop.permute.xlu1 %5559  ;;  %10781 = vrcp.f32 %v5783_v56 }
 0x4d1   : > { %v13925_v51 = vpop.permute.xlu0 %5557  ;;  %v10774_v40 = vpop.eup %10773  ;;  %10783 = vpow2.f32 %v5043_v28  ;;  %v16013_v28 = vld [vmem:[#allocation102_spill] sm:$0xff] }
 0x4d2   : > { %5915 = vperm.xlu0 %10514, %v5842_v19   ;;  %5911 = vperm.xlu1 %10513, %v5841_v12   ;;  %v16009_v19 = vld [vmem:[#allocation98_spill] sm:$0xff]  ;;  %v10776_v30 = vpop.eup %10775  ;;  %v5845_v12 = vmul.f32 %v10774_v40, %v10762_v31 }
 0x4d3   : > { %v4987_v62 = vsub.f32 %v13123_v38, %v16009_v19  ;;  %v5626_v13 = vadd.f32 %v10776_v30, %v13884_v14  ;;  %v10778_v61 = vpop.eup %10777 }
 0x4d4   : > { %v13933_v1 = vpop.permute.xlu1 %5719  ;;  %v5625_v7 = vadd.f32 %v10778_v61, %v13886_v27  ;;  %v4989_v27 = vsub.f32 %v13133_v24, %v16011_v36 }
 0x4d5   : > { %v13935_v41 = vpop.permute.xlu0 %5717  ;;  %v5041_v17 = vmul.f32 1.442695, %v4987_v62  ;;  %v5786_v38 = vadd.f32 %v13892_v20, %v5626_v13 }
 0x4d6   : > { %6627 = vrot.lane.b32.xlu0 %v10764_v53, %s10997_s18  ;;  %8803 = vrot.lane.b32.xlu1 %v10764_v53, %s10998_s12  ;;  %v5785_v14 = vadd.f32 %v13896_v16, %v5625_v7  ;;  %v5045_v48 = vmul.f32 1.442695, %v4989_v27 }
 0x4d7   : > { %10785 = vpow2.f32 %v5041_v17 }
 0x4d8   : > { %v13942_v22 = vpop.permute.xlu1 %5563  ;;  %v10780_v35 = vpop.eup %10779  ;;  %10787 = vrcp.f32 %v5786_v38 }
 0x4d9   : > { %v13944_v46 = vpop.permute.xlu0 %5561  ;;  %10789 = vrcp.f32 %v5785_v14  ;;  %v4993_v14 = vsub.f32 %v13159_v15, %v13445_v4 }
 0x4da   : > { %8801 = vrot.lane.b32.xlu0 %v10766_v11, %s10998_s12  ;;  %6625 = vrot.lane.b32.xlu1 %v10766_v11, %s10997_s18  ;;  %v16010_v11 = vld [vmem:[#allocation99_spill] sm:$0xff]  ;;  %v10782_v20 = vpop.eup %10781 }
 0x4db   : > { %v4990_v0 = vsub.f32 %v13126_v23, %v16010_v11  ;;  %v10784_v23 = vpop.eup %10783  ;;  %v5053_v27 = vmul.f32 1.442695, %v4993_v14 }
 0x4dc   : > { %v13953_v3 = vpop.permute.xlu1 %5723  ;;  %v5628_v58 = vadd.f32 %v10784_v23, %v13899_v32 }
 0x4dd   : > { %v13955_v9 = vpop.permute.xlu0 %5721  ;;  %v5047_v34 = vmul.f32 1.442695, %v4990_v0 }
 0x4de   : > { %5923 = vperm.xlu0 %10514, %v5844_v44   ;;  %8807 = vrot.lane.b32.xlu1 %v10770_v8, %s10998_s12  ;;  %v5848_v44 = vmul.f32 %v10780_v35, %v10768_v39  ;;  %v5788_v24 = vadd.f32 %v13911_v45, %v5628_v58  ;;  %v4992_v39 = vsub.f32 %v13142_v10, %v16012_v29 }
 0x4df   : > { %10791 = vpow2.f32 %v5047_v34 }
 0x4e0   : > { %v13963_v50 = vpop.permute.xlu1 %5567  ;;  %10793 = vpow2.f32 %v5045_v48 }
 0x4e1   : > { %v13965_v53 = vpop.permute.xlu0 %5565  ;;  %10795 = vrcp.f32 %v5788_v24 }
 0x4e2   : > { %6631 = vrot.lane.b32.xlu0 %v10770_v8, %s10997_s18  ;;  %5919 = vperm.xlu1 %10513, %v5843_v60   ;;  %v5847_v8 = vmul.f32 %v10782_v20, %v10772_v42  ;;  %v10786_v60 = vpop.eup %10785 }
 0x4e3   : > { %v10788_v52 = vpop.eup %10787  ;;  %v5627_v59 = vadd.f32 %v10786_v60, %v13902_v18  ;;  %v4991_v18 = vsub.f32 %v13149_v26, %v16013_v28 }
 0x4e4   : > { %v13974_v31 = vpop.permute.xlu1 %5727  ;;  %v10790_v45 = vpop.eup %10789 }
 0x4e5   : > { %v13976_v54 = vpop.permute.xlu0 %5725  ;;  %v5787_v32 = vadd.f32 %v13915_v5, %v5627_v59  ;;  %v5850_v5 = vmul.f32 %v10788_v52, %v10776_v30  ;;  %v5049_v13 = vmul.f32 1.442695, %v4991_v18  ;;  %v4994_v30 = vsub.f32 %v13152_v49, %v13443_v33 }
 0x4e6   : > { %8805 = vrot.lane.b32.xlu0 %v10774_v40, %s10998_s12  ;;  %6629 = vrot.lane.b32.xlu1 %v10774_v40, %s10997_s18  ;;  %v5051_v40 = vmul.f32 1.442695, %v4992_v39 }
 0x4e7   : > { %10797 = vrcp.f32 %v5787_v32 }
 0x4e8   : > { %v13983_v16 = vpop.permute.xlu1 %5571  ;;  %10799 = vpow2.f32 %v5051_v40 }
 0x4e9   : > { %v13985_v47 = vpop.permute.xlu0 %5569  ;;  %v10792_v62 = vpop.eup %10791  ;;  %10801 = vpow2.f32 %v5049_v13 }
 0x4ea   : > { %5931 = vperm.xlu0 %10514, %v5846_v25   ;;  %5927 = vperm.xlu1 %10513, %v5845_v12   ;;  %v5849_v25 = vmul.f32 %v10790_v45, %v10778_v61  ;;  %v5630_v12 = vadd.f32 %v10792_v62, %v13923_v37  ;;  %v10794_v17 = vpop.eup %10793 }
 0x4eb   : > { %v10796_v38 = vpop.eup %10795 }
 0x4ec   : > { %v13994_v42 = vpop.permute.xlu1 %5731  ;;  %v5790_v26 = vadd.f32 %v13933_v1, %v5630_v12  ;;  %v5852_v33 = vmul.f32 %v10796_v38, %v10784_v23 }
 0x4ed   : > { %v13996_v56 = vpop.permute.xlu0 %5729 }
 0x4ee   : > { %6635 = vrot.lane.b32.xlu0 %v10780_v35, %s10997_s18  ;;  %8811 = vrot.lane.b32.xlu1 %v10780_v35, %s10998_s12  ;;  %v5629_v35 = vadd.f32 %v10794_v17, %v13925_v51  ;;  %10803 = vrcp.f32 %v5790_v26  ;;  %v5055_v51 = vmul.f32 1.442695, %v4994_v30 }
 0x4f0   : > { %v5789_v37 = vadd.f32 %v13935_v41, %v5629_v35 }
 0x4f1   : > { %v10798_v1 = vpop.eup %10797 }
 0x4f2   : > { %8809 = vrot.lane.b32.xlu0 %v10782_v20, %s10998_s12  ;;  %6633 = vrot.lane.b32.xlu1 %v10782_v20, %s10997_s18  ;;  %10805 = vrcp.f32 %v5789_v37  ;;  %v10800_v49 = vpop.eup %10799  ;;  %v5851_v36 = vmul.f32 %v10798_v1, %v10786_v60 }
 0x4f3   : > { %v5632_v20 = vadd.f32 %v10800_v49, %v13942_v22  ;;  %10807 = vpow2.f32 %v5055_v51  ;;  %v10802_v15 = vpop.eup %10801  ;;  %v4996_v22 = vsub.f32 %v13168_v21, %v13459_v6 }
 0x4f4   : > { %v14002_v10 = vpop.permute.xlu1 %8775  ;;  %v14004_v19 = vpop.permute.xlu0 %6599  ;;  %10809 = vpow2.f32 %v5053_v27 }
 0x4f6   : > { %5939 = vperm.xlu0 %10514, %v5848_v44   ;;  %5935 = vperm.xlu1 %10513, %v5847_v8   ;;  %v5792_v44 = vadd.f32 %v13953_v3, %v5632_v20  ;;  %v5631_v8 = vadd.f32 %v10802_v15, %v13944_v46  ;;  %v5059_v46 = vmul.f32 1.442695, %v4996_v22 }
 0x4f8   : > { %v14009_v7 = vpop.permute.xlu1 %6597  ;;  %v14011_v11 = vpop.permute.xlu0 %8773  ;;  %10811 = vrcp.f32 %v5792_v44  ;;  %v5791_v48 = vadd.f32 %v13955_v9, %v5631_v8 }
 0x4f9   : > { %v10804_v4 = vpop.eup %10803 }
 0x4fa   : > { %6639 = vrot.lane.b32.xlu0 %v10788_v52, %s10997_s18  ;;  %8815 = vrot.lane.b32.xlu1 %v10788_v52, %s10998_s12  ;;  %v4995_v52 = vsub.f32 %v13175_v43, %v13461_v55  ;;  %10813 = vrcp.f32 %v5791_v48  ;;  %v5854_v6 = vmul.f32 %v10804_v4, %v10792_v62 }
 0x4fb   : > { %10815 = vpow2.f32 %v5059_v46  ;;  %v16019_v46 = vld [vmem:[#allocation106_spill] sm:$0xff] }
 0x4fc   : > { %v10806_v3 = vpop.eup %10805  ;;  %v5057_v32 = vmul.f32 1.442695, %v4995_v52  ;;  %v8869_v52 = vmul.f32 %v16019_v46, %v14011_v11  ;;  %v16035_v46 = vld [vmem:[#allocation129_spill] sm:$0xff] }
 0x4fd   : > { %v10808_v21 = vpop.eup %10807  ;;  %v5853_v39 = vmul.f32 %v10806_v3, %v10794_v17 }
 0x4fe   : > { %8813 = vrot.lane.b32.xlu0 %v10790_v45, %s10998_s12  ;;  %6637 = vrot.lane.b32.xlu1 %v10790_v45, %s10997_s18  ;;  %v5634_v9 = vadd.f32 %v10808_v21, %v13963_v50  ;;  %v10810_v43 = vpop.eup %10809  ;;  %10817 = vpow2.f32 %v5057_v32  ;;  %v15782_v32 = vmov 2  }
 0x4ff   : > { %v5633_v40 = vadd.f32 %v10810_v43, %v13965_v53 }
 0x500   : > { %v5794_v45 = vadd.f32 %v13974_v31, %v5634_v9  ;;  %v16020_v9 = vld [vmem:[#allocation105_spill] sm:$0xff] }
 0x501   : > { %v5793_v50 = vadd.f32 %v13976_v54, %v5633_v40  ;;  %v16024_v40 = vld [vmem:[#allocation104_spill] sm:$0xff] }
 0x502   : > { %5947 = vperm.xlu0 %10514, %v5850_v5   ;;  %5943 = vperm.xlu1 %10513, %v5849_v25   ;;  %v10812_v55 = vpop.eup %10811  ;;  %10819 = vrcp.f32 %v5794_v45  ;;  %v16021_v45 = vld [vmem:[#allocation109_spill] sm:$0xff] }
 0x503   : > { %10821 = vrcp.f32 %v5793_v50  ;;  %v5856_v25 = vmul.f32 %v10812_v55, %v10800_v49  ;;  %v6693_v50 = vmul.f32 %v16024_v40, %v14009_v7  ;;  %v16038_v40 = vld [vmem:[#allocation114_spill] sm:$0xff] }
 0x504   : > { %v10814_v62 = vpop.eup %10813 }
 0x505   : > { %v10816_v53 = vpop.eup %10815  ;;  %v5855_v54 = vmul.f32 %v10814_v62, %v10802_v15 }
 0x506   : > { %6643 = vrot.lane.b32.xlu0 %v10796_v38, %s10997_s18  ;;  %8819 = vrot.lane.b32.xlu1 %v10796_v38, %s10998_s12  ;;  %v5636_v12 = vadd.f32 %v10816_v53, %v13983_v16 }
 0x508   : > { %v5796_v17 = vadd.f32 %v13994_v42, %v5636_v12  ;;  %v10818_v38 = vpop.eup %10817 }
 0x509   : > { %v14018_v61 = vpop.permute.xlu1 %5867  ;;  %v14020_v0 = vpop.permute.xlu0 %5863  ;;  %v5635_v30 = vadd.f32 %v10818_v38, %v13985_v47 }
 0x50a   : > { %16014 = vst [vmem:[#allocation90_spill] sm:$0xff] %v14018_v61  ;;  %8817 = vrot.lane.b32.xlu0 %v10798_v1, %s10998_s12  ;;  %6641 = vrot.lane.b32.xlu1 %v10798_v1, %s10997_s18  ;;  %10823 = vrcp.f32 %v5796_v17  ;;  %v16027_v17 = vld [vmem:[#allocation117_spill] sm:$0xff] }
 0x50b   : > { %v5795_v16 = vadd.f32 %v13996_v56, %v5635_v30  ;;  %v16028_v30 = vld [vmem:[#allocation108_spill] sm:$0xff] }
 0x50c   : > { %v10820_v35 = vpop.eup %10819 }
 0x50d   : > { %v14027_v34 = vpop.permute.xlu1 %8779  ;;  %v14029_v41 = vpop.permute.xlu0 %6603  ;;  %10825 = vrcp.f32 %v5795_v16  ;;  %v5858_v47 = vmul.f32 %v10820_v35, %v10808_v21 }
 0x50e   : > { %5955 = vperm.xlu0 %10514, %v5852_v33   ;;  %5951 = vperm.xlu1 %10513, %v5851_v36   ;;  %v10822_v51 = vpop.eup %10821 }
 0x50f   : > { %v5857_v20 = vmul.f32 %v10822_v51, %v10810_v43  ;;  %v8872_v43 = vmul.f32 %v16021_v45, %v14027_v34  ;;  %v16026_v34 = vld [vmem:[#allocation107_spill] sm:$0xff] }
 0x511   : > { %v14033_v58 = vpop.permute.xlu1 %6601  ;;  %v14035_v23 = vpop.permute.xlu0 %8777 }
 0x512   : > { %6647 = vrot.lane.b32.xlu0 %v10804_v4, %s10997_s18  ;;  %8823 = vrot.lane.b32.xlu1 %v10804_v4, %s10998_s12  ;;  %v6695_v16 = vmul.f32 %v16028_v30, %v14033_v58  ;;  %v16034_v58 = vld [vmem:[#allocation111_spill] sm:$0xff] }
 0x514   : > { %v10824_v56 = vpop.eup %10823 }
 0x515   : > { %v14042_v24 = vpop.permute.xlu1 %5871  ;;  %v14044_v60 = vpop.permute.xlu0 %5875  ;;  %v5860_v8 = vmul.f32 %v10824_v56, %v10816_v53 }
 0x516   : > { %8821 = vrot.lane.b32.xlu0 %v10806_v3, %s10998_s12  ;;  %6645 = vrot.lane.b32.xlu1 %v10806_v3, %s10997_s18 }
 0x517   : > { %v10826_v44 = vpop.eup %10825 }
 0x518   : > { %v5859_v3 = vmul.f32 %v10826_v44, %v10818_v38 }
 0x519   : > { %v14051_v59 = vpop.permute.xlu1 %8783  ;;  %v14053_v29 = vpop.permute.xlu0 %6607 }
 0x51a   : > { %5963 = vperm.xlu0 %10514, %v5854_v6   ;;  %5959 = vperm.xlu1 %10513, %v5853_v39   ;;  %v8870_v39 = vmul.f32 %v16020_v9, %v14002_v10  ;;  %v16025_v10 = vld [vmem:[#allocation113_spill] sm:$0xff] }
 0x51b   : > { %v8874_v53 = vmul.f32 %v16025_v10, %v14051_v59  ;;  %v16029_v59 = vld [vmem:[#allocation121_spill] sm:$0xff] }
 0x51d   : > { %v14057_v28 = vpop.permute.xlu1 %6605  ;;  %v14059_v18 = vpop.permute.xlu0 %8781 }
 0x51e   : > { %6651 = vrot.lane.b32.xlu0 %v10812_v55, %s10997_s18  ;;  %8827 = vrot.lane.b32.xlu1 %v10812_v55, %s10998_s12 }
 0x521   : > { %v14064_v5 = vpop.permute.xlu1 %5879  ;;  %v14066_v31 = vpop.permute.xlu0 %5883 }
 0x522   : > { %16015 = vst [vmem:[#allocation91_spill] sm:$0xff] %v14064_v5  ;;  %8825 = vrot.lane.b32.xlu0 %v10814_v62, %s10998_s12  ;;  %6649 = vrot.lane.b32.xlu1 %v10814_v62, %s10997_s18  ;;  %v15780_v62 = vmov 1   ;;  %v10829_v5 = vld [vmem:[%s11161_s15 + $0x30] sm:$0xff] }
 0x525   : > { %v14071_v13 = vpop.permute.xlu1 %8787  ;;  %v14073_v26 = vpop.permute.xlu0 %6611 }
 0x526   : > { %5971 = vperm.xlu0 %10514, %v5856_v25   ;;  %5967 = vperm.xlu1 %10513, %v5855_v54   ;;  %v6696_v54 = vmul.f32 %v16026_v34, %v14029_v41  ;;  %v8876_v38 = vmul.f32 %v16027_v17, %v14071_v13  ;;  %v16032_v41 = vld [vmem:[#allocation110_spill] sm:$0xff]  ;;  %v16041_v34 = vld [vmem:[#allocation115_spill] sm:$0xff] }
 0x527   : > { %v8871_v13 = vmul.f32 %v16032_v41, %v14035_v23  ;;  %v16036_v23 = vld [vmem:[#allocation133_spill] sm:$0xff] }
 0x529   : > { %v14077_v37 = vpop.permute.xlu1 %6609  ;;  %v14079_v1 = vpop.permute.xlu0 %8785 }
 0x52a   : > { %6655 = vrot.lane.b32.xlu0 %v10820_v35, %s10997_s18  ;;  %8831 = vrot.lane.b32.xlu1 %v10820_v35, %s10998_s12 }
 0x52d   : > { %v14084_v14 = vpop.permute.xlu1 %5887  ;;  %v14086_v42 = vpop.permute.xlu0 %5891 }
 0x52e   : > { %16016 = vst [vmem:[#allocation92_spill] sm:$0xff] %v14084_v14  ;;  %8829 = vrot.lane.b32.xlu0 %v10822_v51, %s10998_s12  ;;  %6653 = vrot.lane.b32.xlu1 %v10822_v51, %s10997_s18 }
 0x531   : > { %v8792_v49 = vpop.permute.xlu1 %8791  ;;  %v14090_v33 = vpop.permute.xlu0 %6615 }
 0x532   : > { %5979 = vperm.xlu0 %10514, %v5858_v47   ;;  %5975 = vperm.xlu1 %10513, %v5857_v20   ;;  %v8878_v51 = vmul.f32 %v16029_v59, %v8792_v49  ;;  %v6698_v49 = vmul.f32 %v16034_v58, %v14053_v29  ;;  %v16039_v29 = vld [vmem:[#allocation137_spill] sm:$0xff]  ;;  %v16047_v58 = vld [vmem:[#allocation122_spill] sm:$0xff] }
 0x535   : > { %v14092_v36 = vpop.permute.xlu1 %6613  ;;  %v14094_v27 = vpop.permute.xlu0 %8789 }
 0x536   : > { %6659 = vrot.lane.b32.xlu0 %v10824_v56, %s10997_s18  ;;  %8835 = vrot.lane.b32.xlu1 %v10824_v56, %s10998_s12  ;;  %v16033_v56 = vld [vmem:[#allocation125_spill] sm:$0xff] }
 0x539   : > { %v14098_v15 = vpop.permute.xlu1 %5895  ;;  %v14100_v4 = vpop.permute.xlu0 %5899 }
 0x53a   : > { %16017 = vst [vmem:[#allocation93_spill] sm:$0xff] %v14098_v15  ;;  %16018 = vst [vmem:[#allocation94_spill] sm:$0xff] %v14100_v4  ;;  %8833 = vrot.lane.b32.xlu0 %v10826_v44, %s10998_s12  ;;  %6657 = vrot.lane.b32.xlu1 %v10826_v44, %s10997_s18 }
 0x53d   : > { %v8796_v22 = vpop.permute.xlu1 %8795  ;;  %v14104_v48 = vpop.permute.xlu0 %6619 }
 0x53e   : > { %5987 = vperm.xlu0 %10514, %v5860_v8   ;;  %5983 = vperm.xlu1 %10513, %v5859_v3   ;;  %v8880_v44 = vmul.f32 %v16033_v56, %v8796_v22  ;;  %v16046_v56 = vld [vmem:[#allocation141_spill] sm:$0xff] }
 0x541   : > { %v14108_v21 = vpop.permute.xlu1 %6617  ;;  %v14110_v6 = vpop.permute.xlu0 %8793 }
 0x542   : > { %10517 = vset.pattern.permute.xlu0 %v15782_v32  ;;  %10515 = vset.pattern.permute.xlu1 %v15782_v32 }
 0x543   : > { %8903 = vperm.xlu0 %10517, %v8869_v52   ;;  %8908 = vperm.xlu1 %10515, %v8870_v39  }
 0x545   : > { %v14118_v55 = vpop.permute.xlu1 %5903  ;;  %v14120_v11 = vpop.permute.xlu0 %5907 }
 0x546   : > { %16022 = vst [vmem:[#allocation95_spill] sm:$0xff] %v14118_v55  ;;  %16023 = vst [vmem:[#allocation96_spill] sm:$0xff] %v14120_v11  ;;  %v16130_v11 = vld [vmem:[#allocation20_spill] sm:$0xff] }
 0x547   : > { %8918 = vperm.xlu0 %10517, %v8872_v43   ;;  %10516 = vset.pattern.permute.xlu1 %v15780_v62 }
 0x548   : > { %6727 = vperm.xlu1 %10516, %v6693_v50   ;;  %v8873_v50 = vmul.f32 %v16038_v40, %v14059_v18  ;;  %v11003_v40 = vmov 1985246804  }
 0x549   : > { %v8800_v25 = vpop.permute.xlu1 %8799  ;;  %v14127_v12 = vpop.permute.xlu0 %6623 }
 0x54a   : > { %v8882_v52 = vmul.f32 %v16035_v46, %v8800_v25 }
 0x54b   : > { %8928 = vperm.xlu0 %10517, %v8874_v53  }
 0x54c   : > { %6739 = vperm.xlu1 %10516, %v6696_v54   ;;  %v6700_v54 = vmul.f32 %v16041_v34, %v14073_v26  ;;  %v16045_v26 = vld [vmem:[#allocation119_spill] sm:$0xff] }
 0x54d   : > { %v14133_v7 = vpop.permute.xlu1 %6621  ;;  %v14135_v35 = vpop.permute.xlu0 %8797 }
 0x54f   : > { %8938 = vperm.xlu0 %10517, %v8876_v38   ;;  %v16042_v38 = vld [vmem:[#allocation118_spill] sm:$0xff] }
 0x550   : > { %6735 = vperm.xlu1 %10516, %v6695_v16   ;;  %v8875_v30 = vmul.f32 %v16042_v38, %v14079_v1 }
 0x551   : > { %v14140_v47 = vpop.permute.xlu1 %5911  ;;  %v14142_v20 = vpop.permute.xlu0 %5915 }
 0x552   : > { %16030 = vst [vmem:[#allocation97_spill] sm:$0xff] %v14140_v47  ;;  %16031 = vst [vmem:[#allocation98_spill] sm:$0xff] %v14142_v20  ;;  %v16128_v47 = vld [vmem:[#allocation18_spill] sm:$0xff] }
 0x553   : > { %8948 = vperm.xlu0 %10517, %v8878_v51   ;;  %v6702_v51 = vmul.f32 %v16045_v26, %v14090_v33 }
 0x554   : > { %10518 = vset.pattern.permute.xlu1 %v15782_v32 }
 0x555   : > { %v8804_v8 = vpop.permute.xlu1 %8803  ;;  %v14148_v3 = vpop.permute.xlu0 %6627  ;;  %8913 = vperm.xlu1 %10518, %v8871_v13  }
 0x556   : > { %v8884_v22 = vmul.f32 %v16036_v23, %v8804_v8 }
 0x557   : > { %8958 = vperm.xlu0 %10517, %v8880_v44  }
 0x559   : > { %v14153_v9 = vpop.permute.xlu1 %6625  ;;  %v14155_v39 = vpop.permute.xlu0 %8801  ;;  %10519 = vset.pattern.permute.xlu1 %v15780_v62 }
 0x55a   : > { %6747 = vperm.xlu1 %10519, %v6698_v49   ;;  %v8877_v49 = vmul.f32 %v16047_v58, %v14094_v27  ;;  %v16051_v27 = vld [vmem:[#allocation145_spill] sm:$0xff]  ;;  %v16054_v58 = vld [vmem:[#allocation127_spill] sm:$0xff] }
 0x55b   : > { %8968 = vperm.xlu0 %10517, %v8882_v52   ;;  %v16050_v52 = vld [vmem:[#allocation123_spill] sm:$0xff] }
 0x55c   : > { %v6704_v23 = vmul.f32 %v16050_v52, %v14104_v48 }
 0x55d   : > { %v8808_v45 = vpop.permute.xlu1 %8807  ;;  %v14159_v43 = vpop.permute.xlu0 %5923 }
 0x55e   : > { %16037 = vst [vmem:[#allocation99_spill] sm:$0xff] %v14159_v43  ;;  %10520 = vset.pattern.permute.xlu1 %v15782_v32  ;;  %v8886_v10 = vmul.f32 %v16039_v29, %v8808_v45  ;;  %v16123_v43 = vld [vmem:[#allocation16_spill] sm:$0xff] }
 0x55f   : > { %8978 = vperm.xlu0 %10517, %v8884_v22   ;;  %8923 = vperm.xlu1 %10520, %v8873_v50   ;;  %v11002_v22 = vmov 839922192   ;;  %v5997_v50 = vunpack.c.l.s4 %v11003_v40 }
 0x560   : > { %v5990_v45 = vunpack.c.l.s4 %v11002_v22 }
 0x561   : > { %v14165_v53 = vpop.permute.xlu1 %5919  ;;  %v14167_v25 = vpop.permute.xlu0 %6631  ;;  %v5998_v38 = vunpack.c.0.s8 %v5997_v50  ;;  %v16055_v50 = vld [vmem:[#allocation50_spill] sm:$0xff] }
 0x562   : > { %16040 = vst [vmem:[#allocation100_spill] sm:$0xff] %v14165_v53 }
 0x563   : > { %8988 = vperm.xlu0 %10517, %v8886_v10   ;;  %10521 = vset.pattern.permute.xlu1 %v15780_v62 }
 0x564   : > { %6755 = vperm.xlu1 %10521, %v6700_v54   ;;  %v5991_v54 = vunpack.c.0.s8 %v5990_v45 }
 0x565   : > { %v14172_v17 = vpop.permute.xlu1 %6629  ;;  %v14174_v18 = vpop.permute.xlu0 %8805 }
 0x568   : > { %10522 = vset.pattern.permute.xlu1 %v15782_v32 }
 0x569   : > { %v14179_v16 = vpop.permute.xlu1 %5927  ;;  %v14181_v59 = vpop.permute.xlu0 %5931  ;;  %8933 = vperm.xlu1 %10522, %v8875_v30   ;;  %v16052_v30 = vld [vmem:[#allocation126_spill] sm:$0xff] }
 0x56a   : > { %16043 = vst [vmem:[#allocation101_spill] sm:$0xff] %v14179_v16  ;;  %16044 = vst [vmem:[#allocation102_spill] sm:$0xff] %v14181_v59  ;;  %v8879_v26 = vmul.f32 %v16052_v30, %v14110_v6 }
 0x56d   : > { %v8812_v41 = vpop.permute.xlu1 %8811  ;;  %v14185_v13 = vpop.permute.xlu0 %6635  ;;  %10523 = vset.pattern.permute.xlu1 %v15780_v62 }
 0x56e   : > { %v8888_v44 = vmul.f32 %v16046_v56, %v8812_v41  ;;  %6763 = vperm.xlu1 %10523, %v6702_v51   ;;  %v16053_v41 = vld [vmem:[#allocation8_spill] sm:$0xff] }
 0x56f   : > { %v14214_v56 = vsub.s32 %v5991_v54, %v16053_v41 }
 0x570   : > { %8998 = vperm.xlu0 %10517, %v8888_v44   ;;  %v14217_v44 = vsub.s32 %v5998_v38, %v16053_v41  ;;  %v16061_v38 = vld [vmem:[#allocation57_spill] sm:$0xff] }
 0x571   : > { %v14189_v1 = vpop.permute.xlu1 %6633  ;;  %v14191_v8 = vpop.permute.xlu0 %8809 }
 0x572   : > { %10524 = vset.pattern.permute.xlu1 %v15782_v32 }
 0x573   : > { %8943 = vperm.xlu1 %10524, %v8877_v49   ;;  %v6706_v49 = vmul.f32 %v16054_v58, %v14127_v12  ;;  %v16059_v12 = vld [vmem:[#allocation56_spill] sm:$0xff] }
 0x575   : > { %v14196_v33 = vpop.permute.xlu1 %5935  ;;  %v14198_v46 = vpop.permute.xlu0 %5939 }
 0x576   : > { %16048 = vst [vmem:[#allocation106_spill] sm:$0xff] %v14196_v33  ;;  %16049 = vst [vmem:[#allocation105_spill] sm:$0xff] %v14198_v46 }
 0x577   : > { %10525 = vset.pattern.permute.xlu1 %v15780_v62 }
 0x578   : > { %6771 = vperm.xlu1 %10525, %v6704_v23  }
 0x579   : > { %v8816_v29 = vpop.permute.xlu1 %8815  ;;  %v14203_v10 = vpop.permute.xlu0 %6639 }
 0x57a   : > { %v8890_v34 = vmul.f32 %v16051_v27, %v8816_v29  ;;  %v16057_v27 = vld [vmem:[#allocation51_spill] sm:$0xff] }
 0x57c   : > { %9008 = vperm.xlu0 %10517, %v8890_v34   ;;  %10526 = vset.pattern.permute.xlu1 %v15782_v32 }
 0x57d   : > { %v14209_v48 = vpop.permute.xlu1 %6637  ;;  %v14211_v51 = vpop.permute.xlu0 %8813  ;;  %8953 = vperm.xlu1 %10526, %v8879_v26  }
 0x581   : > { %v5944_v52 = vpop.permute.xlu1 %5943  ;;  %v5948_v23 = vpop.permute.xlu0 %5947  ;;  %10527 = vset.pattern.permute.xlu1 %v15780_v62 }
 0x582   : > { %v6275_v6 = vrot.slane %v5944_v52, %v14214_v56  ;;  %v6282_v22 = vrot.slane %v5944_v52, %v14217_v44  ;;  %v6289_v45 = vrot.slane %v5948_v23, %v14214_v56  ;;  %v6296_v40 = vrot.slane %v5948_v23, %v14217_v44  ;;  %6779 = vperm.xlu1 %10527, %v6706_v49   ;;  %v16063_v52 = vld [vmem:[#allocation130_spill] sm:$0xff]  ;;  %v16064_v23 = vld [vmem:[#allocation149_spill] sm:$0xff] }
 0x583   : > { %v8881_v62 = vmul.f32 %v16063_v52, %v14135_v35 }
 0x584   : > { %v14227_v29 = vmul.f32 %v6275_v6, %v16055_v50  ;;  %v14230_v34 = vmul.f32 %v6282_v22, %v16057_v27  ;;  %v14233_v54 = vmul.f32 %v6289_v45, %v16059_v12  ;;  %v14236_v30 = vmul.f32 %v6296_v40, %v16061_v38  ;;  %v16065_v45 = vld [vmem:[#allocation131_spill] sm:$0xff] }
 0x585   : > { %v8820_v26 = vpop.permute.xlu1 %8819  ;;  %v14238_v58 = vpop.permute.xlu0 %6643  ;;  %v6708_v40 = vmul.f32 %v16065_v45, %v14148_v3 }
 0x586   : > { %16056 = vst [vmem:[#allocation109_spill] sm:$0xff] %v14227_v29  ;;  %16058 = vst [vmem:[#allocation104_spill] sm:$0xff] %v14230_v34  ;;  %v8892_v49 = vmul.f32 %v16064_v23, %v8820_v26  ;;  %10528 = vset.pattern.permute.xlu1 %v15782_v32  ;;  %v16066_v34 = vmov 1   ;;  %v16067_v23 = vld [vmem:[#allocation134_spill] sm:$0xff] }
 0x587   : > { %16060 = vst [vmem:[#allocation113_spill] sm:$0xff] %v14233_v54  ;;  %16062 = vst [vmem:[#allocation107_spill] sm:$0xff] %v14236_v30  ;;  %8963 = vperm.xlu1 %10528, %v8881_v62  }
 0x588   : > { %9018 = vperm.xlu0 %10517, %v8892_v49   ;;  %v8883_v49 = vmul.f32 %v16067_v23, %v14155_v39 }
 0x589   : > { %v14244_v6 = vpop.permute.xlu1 %6641  ;;  %v14246_v22 = vpop.permute.xlu0 %8817 }
 0x58b   : > { %10529 = vset.pattern.permute.xlu1 %v16066_v34 }
 0x58c   : > { %6787 = vperm.xlu1 %10529, %v6708_v40  }
 0x58d   : > { %v5956_v29 = vpop.permute.xlu0 %5955  ;;  %v5952_v30 = vpop.permute.xlu1 %5951 }
 0x58e   : > { %v6317_v35 = vrot.slane %v5956_v29, %v14214_v56  ;;  %v6324_v26 = vrot.slane %v5956_v29, %v14217_v44  ;;  %v6303_v52 = vrot.slane %v5952_v30, %v14214_v56  ;;  %v6310_v62 = vrot.slane %v5952_v30, %v14217_v44 }
 0x58f   : > { %v16072_v29 = vmov 2  }
 0x590   : > { %v14258_v32 = vmul.f32 %v6317_v35, %v16059_v12  ;;  %v14261_v3 = vmul.f32 %v6324_v26, %v16061_v38  ;;  %v14264_v45 = vmul.f32 %v6303_v52, %v16055_v50  ;;  %v14267_v40 = vmul.f32 %v6310_v62, %v16057_v27  ;;  %10530 = vset.pattern.permute.xlu1 %v16072_v29  ;;  %v16073_v35 = vld [vmem:[#allocation135_spill] sm:$0xff]  ;;  %v16074_v62 = vld [vmem:[#allocation138_spill] sm:$0xff] }
 0x591   : > { %v14270_v54 = vpop.permute.xlu0 %6647  ;;  %v8824_v30 = vpop.permute.xlu1 %8823  ;;  %8973 = vperm.xlu1 %10530, %v8883_v49   ;;  %v6710_v23 = vmul.f32 %v16073_v35, %v14167_v25  ;;  %v16079_v38 = vld [vmem:[#allocation70_spill] sm:$0xff] }
 0x592   : > { %16068 = vst [vmem:[#allocation117_spill] sm:$0xff] %v14258_v32  ;;  %16069 = vst [vmem:[#allocation108_spill] sm:$0xff] %v14261_v3  ;;  %v8894_v39 = vmul.f32 %v13729_v63, %v8824_v30  ;;  %v16077_v32 = vld [vmem:[#allocation77_spill] sm:$0xff] }
 0x593   : > { %16070 = vst [vmem:[#allocation121_spill] sm:$0xff] %v14264_v45  ;;  %16071 = vst [vmem:[#allocation110_spill] sm:$0xff] %v14267_v40  ;;  %v8885_v40 = vmul.f32 %v16074_v62, %v14174_v18  ;;  %v16081_v62 = vld [vmem:[#allocation71_spill] sm:$0xff] }
 0x594   : > { %9028 = vperm.xlu0 %10517, %v8894_v39   ;;  %v16075_v39 = vld [vmem:[#allocation76_spill] sm:$0xff] }
 0x595   : > { %v14275_v26 = vpop.permute.xlu0 %8821  ;;  %v14277_v3 = vpop.permute.xlu1 %6645  ;;  %10531 = vset.pattern.permute.xlu1 %v16066_v34 }
 0x596   : > { %6795 = vperm.xlu1 %10531, %v6710_v23  }
 0x599   : > { %v5964_v52 = vpop.permute.xlu0 %5963  ;;  %v5960_v45 = vpop.permute.xlu1 %5959 }
 0x59a   : > { %v6345_v49 = vrot.slane %v5964_v52, %v14214_v56  ;;  %v6352_v63 = vrot.slane %v5964_v52, %v14217_v44  ;;  %v6331_v30 = vrot.slane %v5960_v45, %v14214_v56  ;;  %v6338_v25 = vrot.slane %v5960_v45, %v14217_v44  ;;  %10532 = vset.pattern.permute.xlu1 %v16072_v29  ;;  %v16083_v45 = vld [vmem:[#allocation139_spill] sm:$0xff] }
 0x59b   : > { %8983 = vperm.xlu1 %10532, %v8885_v40   ;;  %v6712_v50 = vmul.f32 %v16083_v45, %v14185_v13 }
 0x59c   : > { %v14288_v35 = vmul.f32 %v6345_v49, %v16075_v39  ;;  %v14291_v23 = vmul.f32 %v6352_v63, %v16077_v32  ;;  %v14294_v18 = vmul.f32 %v6331_v30, %v16079_v38  ;;  %v14297_v12 = vmul.f32 %v6338_v25, %v16081_v62  ;;  %v16084_v63 = vld [vmem:[#allocation142_spill] sm:$0xff] }
 0x59d   : > { %v14299_v52 = vpop.permute.xlu0 %6651  ;;  %v8828_v27 = vpop.permute.xlu1 %8827  ;;  %v8887_v30 = vmul.f32 %v16084_v63, %v14191_v8  ;;  %v16087_v8 = vld [vmem:[#allocation143_spill] sm:$0xff] }
 0x59e   : > { %16076 = vst [vmem:[#allocation125_spill] sm:$0xff] %v14288_v35  ;;  %16078 = vst [vmem:[#allocation111_spill] sm:$0xff] %v14291_v23  ;;  %v8896_v46 = vmul.f32 %v13751_v2, %v8828_v27  ;;  %v6714_v63 = vmul.f32 %v16087_v8, %v14203_v10  ;;  %v11007_v35 = vmov 1987475062  }
 0x59f   : > { %16080 = vst [vmem:[#allocation129_spill] sm:$0xff] %v14294_v18  ;;  %16082 = vst [vmem:[#allocation133_spill] sm:$0xff] %v14297_v12  ;;  %10533 = vset.pattern.permute.xlu1 %v16066_v34 }
 0x5a0   : > { %9038 = vperm.xlu0 %10517, %v8896_v46   ;;  %6803 = vperm.xlu1 %10533, %v6712_v50  }
 0x5a1   : > { %v14305_v49 = vpop.permute.xlu0 %8825  ;;  %v14307_v40 = vpop.permute.xlu1 %6649 }
 0x5a4   : > { %10534 = vset.pattern.permute.xlu1 %v16072_v29 }
 0x5a5   : > { %v5972_v25 = vpop.permute.xlu0 %5971  ;;  %v5968_v12 = vpop.permute.xlu1 %5967  ;;  %8993 = vperm.xlu1 %10534, %v8887_v30  }
 0x5a6   : > { %v6373_v13 = vrot.slane %v5972_v25, %v14214_v56  ;;  %v6380_v2 = vrot.slane %v5972_v25, %v14217_v44  ;;  %v6359_v27 = vrot.slane %v5968_v12, %v14214_v56  ;;  %v6366_v46 = vrot.slane %v5968_v12, %v14217_v44 }
 0x5a8   : > { %v14317_v50 = vmul.f32 %v6373_v13, %v16075_v39  ;;  %v14320_v45 = vmul.f32 %v6380_v2, %v16077_v32  ;;  %v14325_v18 = vmul.f32 %v6359_v27, %v16079_v38  ;;  %v14328_v30 = vmul.f32 %v6366_v46, %v16081_v62  ;;  %v16090_v2 = vld [vmem:[#allocation146_spill] sm:$0xff]  ;;  %v16091_v27 = vld [vmem:[#allocation103_spill] sm:$0xff] }
 0x5a9   : > { %v14330_v25 = vpop.permute.xlu0 %6655  ;;  %v8832_v23 = vpop.permute.xlu1 %8831  ;;  %10535 = vset.pattern.permute.xlu1 %v16066_v34  ;;  %v8889_v10 = vmul.f32 %v16090_v2, %v14211_v51  ;;  %v6694_v46 = vmul.f32 %v16091_v27, %v14004_v19 }
 0x5aa   : > { %16085 = vst [vmem:[#allocation114_spill] sm:$0xff] %v14317_v50  ;;  %16086 = vst [vmem:[#allocation137_spill] sm:$0xff] %v14320_v45  ;;  %v8898_v12 = vmul.f32 %v13773_v57, %v8832_v23  ;;  %6811 = vperm.xlu1 %10535, %v6714_v63   ;;  %v16092_v63 = vld [vmem:[#allocation147_spill] sm:$0xff]  ;;  %v16093_v45 = vld [vmem:[#allocation112_spill] sm:$0xff] }
 0x5ab   : > { %16088 = vst [vmem:[#allocation115_spill] sm:$0xff] %v14325_v18  ;;  %16089 = vst [vmem:[#allocation118_spill] sm:$0xff] %v14328_v30  ;;  %v6716_v51 = vmul.f32 %v16092_v63, %v14238_v58  ;;  %v6697_v19 = vmul.f32 %v16093_v45, %v14057_v28  ;;  %v16098_v28 = vld [vmem:[#allocation116_spill] sm:$0xff] }
 0x5ac   : > { %9048 = vperm.xlu0 %10517, %v8898_v12   ;;  %v6699_v45 = vmul.f32 %v16098_v28, %v14077_v37  ;;  %v11005_v28 = vmov 842150450  }
 0x5ad   : > { %v14334_v13 = vpop.permute.xlu0 %8829  ;;  %v14338_v8 = vpop.permute.xlu1 %6653 }
 0x5ae   : > { %10536 = vset.pattern.permute.xlu1 %v16072_v29 }
 0x5af   : > { %9003 = vperm.xlu1 %10536, %v8889_v10  }
 0x5b0   : > { %10545 = vset.pattern.permute.xlu0 %v16066_v34 }
 0x5b1   : > { %v5980_v30 = vpop.permute.xlu0 %5979  ;;  %v5976_v18 = vpop.permute.xlu1 %5975  ;;  %6731 = vperm.xlu0 %10545, %v6694_v46  }
 0x5b2   : > { %v6401_v57 = vrot.slane %v5980_v30, %v14214_v56  ;;  %v6408_v23 = vrot.slane %v5980_v30, %v14217_v44  ;;  %v6387_v12 = vrot.slane %v5976_v18, %v14214_v56  ;;  %v6394_v2 = vrot.slane %v5976_v18, %v14217_v44 }
 0x5b3   : > { %10537 = vset.pattern.permute.xlu1 %v16066_v34 }
 0x5b4   : > { %v14353_v10 = vmul.f32 %v6401_v57, %v16075_v39  ;;  %v14356_v27 = vmul.f32 %v6408_v23, %v16077_v32  ;;  %v14360_v30 = vmul.f32 %v6387_v12, %v16079_v38  ;;  %v14363_v58 = vmul.f32 %v6394_v2, %v16081_v62  ;;  %6819 = vperm.xlu1 %10537, %v6716_v51   ;;  %v16099_v57 = vld [vmem:[#allocation150_spill] sm:$0xff]  ;;  %v16100_v51 = vld [vmem:[#allocation120_spill] sm:$0xff] }
 0x5b5   : > { %v14365_v46 = vpop.permute.xlu0 %6659  ;;  %v14367_v18 = vpop.permute.xlu1 %8835  ;;  %6743 = vperm.xlu0 %10545, %v6697_v19   ;;  %v8891_v23 = vmul.f32 %v16099_v57, %v14246_v22  ;;  %v6701_v2 = vmul.f32 %v16100_v51, %v14092_v36  ;;  %v6875_v36 = vunpack.c.l.s4 %v11007_v35 }
 0x5b6   : > { %16094 = vst [vmem:[#allocation119_spill] sm:$0xff] %v14353_v10  ;;  %16095 = vst [vmem:[#allocation141_spill] sm:$0xff] %v14356_v27  ;;  %v11004_v27 = vmov 269488144   ;;  %v6861_v10 = vunpack.c.l.s4 %v11005_v28 }
 0x5b7   : > { %16096 = vst [vmem:[#allocation122_spill] sm:$0xff] %v14360_v30  ;;  %16097 = vst [vmem:[#allocation123_spill] sm:$0xff] %v14363_v58  ;;  %v16101_v58 = vld [vmem:[#allocation151_spill] sm:$0xff]  ;;  %v6854_v37 = vunpack.c.l.s4 %v11004_v27  ;;  %v16102_v27 = vld [vmem:[#allocation124_spill] sm:$0xff] }
 0x5b8   : > { %10538 = vset.pattern.permute.xlu1 %v16072_v29  ;;  %v6718_v19 = vmul.f32 %v16101_v58, %v14270_v54  ;;  %v6703_v58 = vmul.f32 %v16102_v27, %v14108_v21  ;;  %v6862_v33 = vunpack.c.0.s8 %v6861_v10  ;;  %v6876_v21 = vunpack.c.0.s8 %v6875_v36  ;;  %v16112_v27 = vld [vmem:[#allocation12_spill] sm:$0xff] }
 0x5b9   : > { %v14374_v63 = vpop.permute.xlu0 %8833  ;;  %v14376_v12 = vpop.permute.xlu1 %6657  ;;  %6751 = vperm.xlu0 %10545, %v6699_v45   ;;  %9013 = vperm.xlu1 %10538, %v8891_v23   ;;  %v11006_v23 = vmov 1414812756   ;;  %v6855_v35 = vunpack.c.0.s8 %v6854_v37 }
 0x5ba   : > { %v6868_v50 = vunpack.c.l.s4 %v11006_v23  ;;  %v14420_v37 = vsub.s32 %v6862_v33, %v16053_v41 }
 0x5bb   : > { %v14417_v10 = vsub.s32 %v6855_v35, %v16053_v41 }
 0x5bc   : > { %v6869_v59 = vunpack.c.0.s8 %v6868_v50  ;;  %v6044_v50 = vrot.slane %v14044_v60, %v14217_v44 }
 0x5bd   : > { %v5988_v30 = vpop.permute.xlu0 %5987  ;;  %v5984_v22 = vpop.permute.xlu1 %5983  ;;  %6759 = vperm.xlu0 %10545, %v6701_v2   ;;  %10539 = vset.pattern.permute.xlu1 %v16066_v34 }
 0x5be   : > { %v6429_v57 = vrot.slane %v5988_v30, %v14214_v56  ;;  %v6436_v45 = vrot.slane %v5988_v30, %v14217_v44  ;;  %v6415_v51 = vrot.slane %v5984_v22, %v14214_v56  ;;  %v6422_v54 = vrot.slane %v5984_v22, %v14217_v44  ;;  %6827 = vperm.xlu1 %10539, %v6718_v19   ;;  %v16107_v22 = vld [vmem:[#allocation153_spill] sm:$0xff] }
 0x5bf   : > { %v8893_v19 = vmul.f32 %v16107_v22, %v14275_v26  ;;  %v6037_v26 = vrot.slane %v14044_v60, %v14214_v56 }
 0x5c0   : > { %v14390_v2 = vmul.f32 %v6429_v57, %v16075_v39  ;;  %v14393_v28 = vmul.f32 %v6436_v45, %v16077_v32  ;;  %v14396_v30 = vmul.f32 %v6415_v51, %v16079_v38  ;;  %v14399_v23 = vmul.f32 %v6422_v54, %v16081_v62  ;;  %v16109_v38 = vld [vmem:[#allocation128_spill] sm:$0xff]  ;;  %v16111_v51 = vld [vmem:[#allocation154_spill] sm:$0xff] }
 0x5c1   : > { %6767 = vperm.xlu0 %10545, %v6703_v58   ;;  %v5995_v39 = vrot.slane %v14020_v0, %v14214_v56  ;;  %v6002_v32 = vrot.slane %v14020_v0, %v14217_v44  ;;  %v6705_v62 = vmul.f32 %v16109_v38, %v14133_v7  ;;  %v14423_v45 = vsub.s32 %v6869_v59, %v16053_v41  ;;  %v16110_v7 = vld [vmem:[#allocation10_spill] sm:$0xff]  ;;  %v16113_v59 = vld [vmem:[#allocation132_spill] sm:$0xff] }
 0x5c2   : > { %16103 = vst [vmem:[#allocation145_spill] sm:$0xff] %v14390_v2  ;;  %16104 = vst [vmem:[#allocation126_spill] sm:$0xff] %v14393_v28  ;;  %v14405_v57 = vpop.permute.xlu1 %8908  ;;  %10540 = vset.pattern.permute.xlu1 %v16072_v29  ;;  %v14426_v0 = vsub.s32 %v6876_v21, %v16053_v41  ;;  %v6720_v54 = vmul.f32 %v16111_v51, %v14299_v52  ;;  %v6707_v35 = vmul.f32 %v16113_v59, %v14153_v9  ;;  %v8904_v41 = vpop.permute.xlu0 %8903  ;;  %v16115_v52 = vld [vmem:[#allocation22_spill] sm:$0xff]  ;;  %v16117_v9 = vld [vmem:[#allocation140_spill] sm:$0xff] }
 0x5c3   : > { %16105 = vst [vmem:[#allocation8_spill] sm:$0xff] %v14396_v30  ;;  %16106 = vst [vmem:[#allocation127_spill] sm:$0xff] %v14399_v23  ;;  %9023 = vperm.xlu1 %10540, %v8893_v19   ;;  %v6501_v36 = vmul.f32 %v5995_v39, %v16110_v7  ;;  %v6502_v60 = vmul.f32 %v6002_v32, %v16112_v27  ;;  %v16114_v19 = vld [vmem:[#allocation21_spill] sm:$0xff]  ;;  %v14443_v39 = vmul.f32 %v6044_v50, %v16115_v52 }
 0x5c4   : > { %16108 = vst [vmem:[#allocation130_spill] sm:$0xff] %v14405_v57  ;;  %v14440_v21 = vmul.f32 %v6037_v26, %v16114_v19  ;;  %v6711_v59 = vmul.f32 %v16117_v9, %v14189_v1  ;;  %v10827_v26 = vld [vmem:[%s11161_s15] sm:$0xff]  ;;  %v10828_v50 = vld [vmem:[%s11161_s15 + $0x8] sm:$0xff]  ;;  %v16119_v57 = vld [vmem:[#allocation14_spill] sm:$0xff] }
 0x5c5   : > { %6775 = vperm.xlu0 %10545, %v6705_v62   ;;  %v16116_v62 = vld [vmem:[#allocation136_spill] sm:$0xff]  ;;  %v9061_v28 = vmul.f32 %v10827_v26, %v8904_v41  ;;  %v9062_v23 = vmul.f32 %v10828_v50, %v8904_v41  ;;  %v16118_v2 = vld [vmem:[#allocation13_spill] sm:$0xff]  ;;  %v16122_v1 = vld [vmem:[#allocation15_spill] sm:$0xff] }
 0x5c6   : > { %v6709_v51 = vmul.f32 %v16116_v62, %v14172_v17  ;;  %v16121_v17 = vld [vmem:[#allocation156_spill] sm:$0xff] }
 0x5c7   : > { %v6728_v22 = vpop.permute.xlu1 %6727  ;;  %10541 = vset.pattern.permute.xlu1 %v16066_v34  ;;  %v8895_v62 = vmul.f32 %v16121_v17, %v14305_v49  ;;  %v16125_v41 = vld [vmem:[#allocation160_spill] sm:$0xff]  ;;  %v9190_v17 = vcombine.high %v9061_v28, %v9062_v23 }
 0x5c8   : > { %v6859_v32 = vrot.slane %v6728_v22, %v14417_v10  ;;  %v6866_v38 = vrot.slane %v6728_v22, %v14420_v37  ;;  %6835 = vperm.xlu1 %10541, %v6720_v54   ;;  %v6873_v33 = vrot.slane %v6728_v22, %v14423_v45  ;;  %v6880_v58 = vrot.slane %v6728_v22, %v14426_v0  ;;  %v16120_v54 = vld [vmem:[#allocation144_spill] sm:$0xff] }
 0x5c9   : > { %6783 = vperm.xlu0 %10545, %v6707_v35   ;;  %v6713_v53 = vmul.f32 %v16120_v54, %v14209_v48  ;;  %v16124_v35 = vld [vmem:[#allocation157_spill] sm:$0xff]  ;;  %v14467_v50 = vmul.f32 %v16125_v41, %v14365_v46  ;;  %v8919_v48 = vpop.permute.xlu0 %8918 }
 0x5ca   : > { %v7877_v30 = vmul.f32 %v6859_v32, %v16118_v2  ;;  %v7878_v16 = vmul.f32 %v6866_v38, %v16119_v57  ;;  %v7879_v9 = vmul.f32 %v6873_v33, %v16122_v1  ;;  %v7880_v20 = vmul.f32 %v6880_v58, %v16123_v43  ;;  %v16126_v46 = vld [vmem:[#allocation9_spill] sm:$0xff] }
 0x5cb   : > { %v6740_v22 = vpop.permute.xlu1 %6739  ;;  %v6722_v26 = vmul.f32 %v16124_v35, %v14330_v25  ;;  %v9189_v25 = vcombine.low %v9061_v28, %v9062_v23  ;;  %v9067_v4 = vmul.f32 %v10829_v5, %v8919_v48 }
 0x5cc   : > { %v8133_v32 = vcombine.low %v7877_v30, %v7878_v16  ;;  %v6943_v38 = vrot.slane %v6740_v22, %v14417_v10  ;;  %10542 = vset.pattern.permute.xlu1 %v16072_v29  ;;  %v8141_v49 = vcombine.low %v7879_v9, %v7880_v20  ;;  %v6950_v33 = vrot.slane %v6740_v22, %v14420_v37  ;;  %v16127_v16 = vld [vmem:[#allocation17_spill] sm:$0xff]  ;;  %v16129_v20 = vld [vmem:[#allocation19_spill] sm:$0xff] }
 0x5cd   : > { %v6957_v58 = vrot.slane %v6740_v22, %v14423_v45  ;;  %v6964_v54 = vrot.slane %v6740_v22, %v14426_v0  ;;  %6791 = vperm.xlu0 %10545, %v6709_v51   ;;  %9033 = vperm.xlu1 %10542, %v8895_v62   ;;  %v10830_v22 = vld [vmem:[%s11161_s15 + $0x38] sm:$0xff] }
 0x5ce   : > { %v8140_v35 = vrot.slane %v8133_v32, %v16126_v46  ;;  %v7889_v30 = vmul.f32 %v6943_v38, %v16127_v16  ;;  %v8148_v41 = vrot.slane %v8141_v49, %v16126_v46  ;;  %v7890_v55 = vmul.f32 %v6950_v33, %v16128_v47 }
 0x5cf   : > { %v7891_v9 = vmul.f32 %v6957_v58, %v16129_v20  ;;  %v7892_v15 = vmul.f32 %v6964_v54, %v16130_v11  ;;  %v6736_v14 = vpop.permute.xlu1 %6735  ;;  %v9068_v51 = vmul.f32 %v10830_v22, %v8919_v48 }
 0x5d0   : > { %v8709_v61 = vadd.f32 %v8140_v35, %v6501_v36  ;;  %v6915_v28 = vrot.slane %v6736_v14, %v14417_v10  ;;  %v8710_v23 = vadd.f32 %v8148_v41, %v6502_v60  ;;  %v8181_v32 = vcombine.low %v7889_v30, %v7890_v55  ;;  %v16131_v35 = vld [vmem:[#allocation148_spill] sm:$0xff] }
 0x5d1   : > { %v8189_v38 = vcombine.low %v7891_v9, %v7892_v15  ;;  %v6922_v62 = vrot.slane %v6736_v14, %v14420_v37  ;;  %6799 = vperm.xlu0 %10545, %v6711_v59   ;;  %v6929_v33 = vrot.slane %v6736_v14, %v14423_v45  ;;  %v6936_v58 = vrot.slane %v6736_v14, %v14426_v0 }
 0x5d2   : > { %v9317_v49 = vadd.f32 %v9189_v25, %v8709_v61  ;;  %v7885_v54 = vmul.f32 %v6915_v28, %v16118_v2  ;;  %10543 = vset.pattern.permute.xlu1 %v16066_v34  ;;  %v9318_v5 = vadd.f32 %v9190_v17, %v8710_v23  ;;  %v8188_v36 = vrot.slane %v8181_v32, %v16126_v46 }
 0x5d3   : > { %v8196_v48 = vrot.slane %v8189_v38, %v16126_v46  ;;  %v7886_v15 = vmul.f32 %v6922_v62, %v16119_v57  ;;  %6843 = vperm.xlu1 %10543, %v6722_v26   ;;  %v9195_v55 = vcombine.low %v9067_v4, %v9068_v51  ;;  %v9196_v60 = vcombine.high %v9067_v4, %v9068_v51 }
 0x5d4   : > { %v7887_v61 = vmul.f32 %v6929_v33, %v16122_v1  ;;  %v7888_v14 = vmul.f32 %v6936_v58, %v16123_v43  ;;  %v8914_v59 = vpop.permute.xlu1 %8913  ;;  %v9445_v2 = vcombine.low %v9317_v49, %v9318_v5  ;;  %v9446_v34 = vcombine.high %v9317_v49, %v9318_v5  ;;  %v10831_v1 = vld [vmem:[%s11161_s15 + $0x20] sm:$0xff]  ;;  %v16136_v58 = vld [vmem:[#allocation159_spill] sm:$0xff] }
 0x5d5   : > { %v8715_v25 = vadd.f32 %v8188_v36, %v14440_v21  ;;  %v8716_v17 = vadd.f32 %v8196_v48, %v14443_v39  ;;  %6807 = vperm.xlu0 %10545, %v6713_v53   ;;  %v6715_v57 = vmul.f32 %v16131_v35, %v14244_v6  ;;  %v8165_v26 = vcombine.low %v7885_v54, %v7886_v15  ;;  %v10832_v21 = vld [vmem:[%s11161_s15 + $0x28] sm:$0xff]  ;;  %v16135_v49 = vld [vmem:[#allocation152_spill] sm:$0xff] }
 0x5d6   : > { %v8173_v30 = vcombine.low %v7887_v61, %v7888_v14  ;;  %9573 = vst [vmem:[%s14499_s19] sm:$0xff] %v9445_v2  ;;  %9574 = vst [vmem:[%s14499_s19 + $0x8] sm:$0xff] %v9446_v34  ;;  %v9065_v41 = vmul.f32 %v10831_v1, %v8914_v59  ;;  %v9066_v9 = vmul.f32 %v10832_v21, %v8914_v59  ;;  %v16137_v59 = vld [vmem:[#allocation27_spill] sm:$0xff]  ;;  %v16138_v34 = vld [vmem:[#allocation28_spill] sm:$0xff] }
 0x5d7   : > { %v9323_v4 = vadd.f32 %v9195_v55, %v8715_v25  ;;  %v9324_v43 = vadd.f32 %v9196_v60, %v8716_v17  ;;  %6851 = vperm.xlu1 %10543, %v14467_v50   ;;  %v16133_v53 = vrot.slane %v14042_v24, %v14214_v56  ;;  %v16134_v39 = vrot.slane %v14042_v24, %v14217_v44  ;;  %v8929_v60 = vpop.permute.xlu0 %8928  ;;  %v16139_v17 = vld [vmem:[#allocation29_spill] sm:$0xff] }
 0x5d8   : > { %v8172_v51 = vrot.slane %v8165_v26, %v16126_v46  ;;  %v8180_v28 = vrot.slane %v8173_v30, %v16126_v46  ;;  %v9193_v38 = vcombine.low %v9065_v41, %v9066_v9  ;;  %v9194_v62 = vcombine.high %v9065_v41, %v9066_v9  ;;  %v16141_v30 = vld [vmem:[#allocation155_spill] sm:$0xff]  ;;  %v10833_v9 = vld [vmem:[%s11161_s15 + $0x50] sm:$0xff] }
 0x5d9   : > { %v6505_v6 = vmul.f32 %v16133_v53, %v16110_v7  ;;  %v6506_v22 = vmul.f32 %v16134_v39, %v16112_v27  ;;  %v9451_v23 = vcombine.low %v9323_v4, %v9324_v43  ;;  %v9452_v32 = vcombine.high %v9323_v4, %v9324_v43  ;;  %v6748_v50 = vpop.permute.xlu1 %6747  ;;  %6815 = vperm.xlu0 %10545, %v6715_v57   ;;  %v16140_v57 = vld [vmem:[#allocation30_spill] sm:$0xff] }
 0x5da   : > { %v6717_v33 = vmul.f32 %v16135_v49, %v14277_v3  ;;  %v8897_v54 = vmul.f32 %v16136_v58, %v14334_v13  ;;  %v6999_v24 = vrot.slane %v6748_v50, %v14417_v10  ;;  %v7006_v48 = vrot.slane %v6748_v50, %v14420_v37 }
 0x5db   : > { %v8713_v5 = vadd.f32 %v8172_v51, %v6505_v6  ;;  %v8714_v36 = vadd.f32 %v8180_v28, %v6506_v22  ;;  %9579 = vst [vmem:[%s14499_s19 + $0x30] sm:$0xff] %v9451_v23  ;;  %9580 = vst [vmem:[%s14499_s19 + $0x38] sm:$0xff] %v9452_v32  ;;  %v7013_v15 = vrot.slane %v6748_v50, %v14423_v45  ;;  %10544 = vset.pattern.permute.xlu1 %v16072_v29  ;;  %v10834_v6 = vld [vmem:[%s11161_s15 + $0x58] sm:$0xff]  ;;  %v16143_v32 = vld [vmem:[#allocation158_spill] sm:$0xff] }
 0x5dc   : > { %v7020_v55 = vrot.slane %v6748_v50, %v14426_v0  ;;  %v6065_v3 = vrot.slane %v14066_v31, %v14214_v56  ;;  %v6072_v13 = vrot.slane %v14066_v31, %v14217_v44  ;;  %9043 = vperm.xlu1 %10544, %v8897_v54   ;;  %v7897_v2 = vmul.f32 %v6999_v24, %v16137_v59  ;;  %v16142_v31 = vld [vmem:[#allocation163_spill] sm:$0xff]  ;;  %v8939_v24 = vpop.permute.xlu0 %8938 }
 0x5dd   : > { %v9321_v61 = vadd.f32 %v9193_v38, %v8713_v5  ;;  %v9322_v14 = vadd.f32 %v9194_v62, %v8714_v36  ;;  %v7898_v25 = vmul.f32 %v7006_v48, %v16138_v34  ;;  %v7899_v35 = vmul.f32 %v7013_v15, %v16139_v17  ;;  %6823 = vperm.xlu0 %10545, %v6717_v33  }
 0x5de   : > { %v7900_v26 = vmul.f32 %v7020_v55, %v16140_v57  ;;  %v6719_v4 = vmul.f32 %v16141_v30, %v14307_v40  ;;  %v8899_v43 = vmul.f32 %v16142_v31, %v14374_v63  ;;  %v14539_v21 = vpop.permute.xlu1 %8923  ;;  %v9071_v53 = vmul.f32 %v10833_v9, %v8929_v60  ;;  %v10835_v30 = vld [vmem:[%s11161_s15 + $0x70] sm:$0xff]  ;;  %v10836_v31 = vld [vmem:[%s11161_s15 + $0x78] sm:$0xff] }
 0x5df   : > { %v9449_v1 = vcombine.low %v9321_v61, %v9322_v14  ;;  %v9450_v41 = vcombine.high %v9321_v61, %v9322_v14  ;;  %v9072_v39 = vmul.f32 %v10834_v6, %v8929_v60  ;;  %v8213_v22 = vcombine.low %v7897_v2, %v7898_v25 }
 0x5e0   : > { %v8221_v51 = vcombine.low %v7899_v35, %v7900_v26  ;;  %9053 = vperm.xlu1 %10544, %v8899_v43   ;;  %v6511_v28 = vmul.f32 %v6065_v3, %v16114_v19  ;;  %v6512_v40 = vmul.f32 %v6072_v13, %v16115_v52  ;;  %v6721_v38 = vmul.f32 %v16143_v32, %v14338_v8  ;;  %v16144_v13 = vld [vmem:[#allocation161_spill] sm:$0xff]  ;;  %v16146_v32 = vld [vmem:[#allocation90_spill] sm:$0xff] }
 0x5e1   : > { %9577 = vst [vmem:[%s14499_s19 + $0x20] sm:$0xff] %v9449_v1  ;;  %9578 = vst [vmem:[%s14499_s19 + $0x28] sm:$0xff] %v9450_v41  ;;  %v8220_v23 = vrot.slane %v8213_v22, %v16126_v46  ;;  %6831 = vperm.xlu0 %10545, %v6719_v4   ;;  %v9199_v62 = vcombine.low %v9071_v53, %v9072_v39  ;;  %v9200_v50 = vcombine.high %v9071_v53, %v9072_v39 }
 0x5e2   : > { %v8228_v63 = vrot.slane %v8221_v51, %v16126_v46  ;;  %v6093_v54 = vrot.slane %v14086_v42, %v14214_v56  ;;  %v6100_v3 = vrot.slane %v14086_v42, %v14217_v44  ;;  %v6723_v60 = vmul.f32 %v16144_v13, %v14376_v12 }
 0x5e3   : > { %v8719_v49 = vadd.f32 %v8220_v23, %v6511_v28  ;;  %v6756_v58 = vpop.permute.xlu1 %6755  ;;  %v9075_v4 = vmul.f32 %v10835_v30, %v8939_v24  ;;  %v9076_v43 = vmul.f32 %v10836_v31, %v8939_v24  ;;  %v16150_v24 = vld [vmem:[#allocation40_spill] sm:$0xff]  ;;  %v16152_v30 = vld [vmem:[#allocation37_spill] sm:$0xff] }
 0x5e4   : > { %v8720_v33 = vadd.f32 %v8228_v63, %v6512_v40  ;;  %v7055_v5 = vrot.slane %v6756_v58, %v14417_v10  ;;  %v7062_v36 = vrot.slane %v6756_v58, %v14420_v37  ;;  %v7069_v55 = vrot.slane %v6756_v58, %v14423_v45 }
 0x5e5   : > { %v9327_v48 = vadd.f32 %v9199_v62, %v8719_v49  ;;  %v7076_v8 = vrot.slane %v6756_v58, %v14426_v0  ;;  %6839 = vperm.xlu0 %10545, %v6721_v38   ;;  %v6515_v12 = vmul.f32 %v6093_v54, %v16114_v19  ;;  %v9203_v53 = vcombine.low %v9075_v4, %v9076_v43  ;;  %v8949_v62 = vpop.permute.xlu0 %8948  ;;  %v16147_v49 = vld [vmem:[#allocation94_spill] sm:$0xff] }
 0x5e6   : > { %v9328_v15 = vadd.f32 %v9200_v50, %v8720_v33  ;;  %v7905_v61 = vmul.f32 %v7055_v5, %v16137_v59  ;;  %v7906_v14 = vmul.f32 %v7062_v36, %v16138_v34  ;;  %v7907_v35 = vmul.f32 %v7069_v55, %v16139_v17  ;;  %v16148_v58 = vld [vmem:[#allocation38_spill] sm:$0xff]  ;;  %v16149_v5 = vld [vmem:[#allocation39_spill] sm:$0xff] }
 0x5e7   : > { %v7908_v26 = vmul.f32 %v7076_v8, %v16140_v57  ;;  %v6516_v34 = vmul.f32 %v6100_v3, %v16115_v52  ;;  %v16145_v57 = vld [vmem:[#allocation162_spill] sm:$0xff]  ;;  %v9204_v39 = vcombine.high %v9075_v4, %v9076_v43  ;;  %v6016_v38 = vrot.slane %v16146_v32, %v14217_v44  ;;  %v16151_v3 = vld [vmem:[#allocation41_spill] sm:$0xff] }
 0x5e8   : > { %v9455_v2 = vcombine.low %v9327_v48, %v9328_v15  ;;  %v9456_v25 = vcombine.high %v9327_v48, %v9328_v15  ;;  %v8245_v1 = vcombine.low %v7905_v61, %v7906_v14  ;;  %v14567_v41 = vpop.permute.xlu1 %8933  ;;  %v8900_v9 = vmul.f32 %v16145_v57, %v14367_v18  ;;  %v10838_v14 = vld [vmem:[%s11161_s15 + $0x98] sm:$0xff] }
 0x5e9   : > { %v8253_v42 = vcombine.low %v7907_v35, %v7908_v26  ;;  %6847 = vperm.xlu0 %10545, %v6723_v60   ;;  %v6009_v18 = vrot.slane %v16146_v32, %v14214_v56  ;;  %v6121_v33 = vrot.slane %v16147_v49, %v14214_v56  ;;  %v6128_v15 = vrot.slane %v16147_v49, %v14217_v44  ;;  %v10837_v60 = vld [vmem:[%s11161_s15 + $0x90] sm:$0xff]  ;;  %v16156_v32 = vld [vmem:[#allocation93_spill] sm:$0xff]  ;;  %v16157_v49 = vld [vmem:[#allocation96_spill] sm:$0xff] }
 0x5ea   : > { %9583 = vst [vmem:[%s14499_s19 + $0x50] sm:$0xff] %v9455_v2  ;;  %9584 = vst [vmem:[%s14499_s19 + $0x58] sm:$0xff] %v9456_v25  ;;  %v8252_v59 = vrot.slane %v8245_v1, %v16126_v46  ;;  %v9079_v61 = vmul.f32 %v10837_v60, %v8949_v62  ;;  %v9080_v2 = vmul.f32 %v10838_v14, %v8949_v62  ;;  %v8959_v62 = vpop.permute.xlu0 %8958 }
 0x5eb   : > { %v8260_v17 = vrot.slane %v8253_v42, %v16126_v46  ;;  %v6519_v4 = vmul.f32 %v6121_v33, %v16152_v30  ;;  %v14603_v43 = vmul.f32 %v6009_v18, %v16114_v19  ;;  %v14606_v1 = vmul.f32 %v6016_v38, %v16115_v52  ;;  %v16153_v42 = vld [vmem:[#allocation11_spill] sm:$0xff] }
 0x5ec   : > { %v8723_v6 = vadd.f32 %v8252_v59, %v6515_v12  ;;  %v6520_v12 = vmul.f32 %v6128_v15, %v16153_v42  ;;  %v9208_v52 = vcombine.high %v9079_v61, %v9080_v2  ;;  %v6107_v18 = vrot.slane %v16156_v32, %v14214_v56 }
 0x5ed   : > { %v8724_v22 = vadd.f32 %v8260_v17, %v6516_v34  ;;  %v6764_v51 = vpop.permute.xlu1 %6763  ;;  %10546 = vset.pattern.permute.xlu0 %v16072_v29  ;;  %v16154_v34 = vld [vmem:[#allocation91_spill] sm:$0xff]  ;;  %v6114_v38 = vrot.slane %v16156_v32, %v14217_v44  ;;  %v6149_v33 = vrot.slane %v16157_v49, %v14214_v56  ;;  %v6156_v15 = vrot.slane %v16157_v49, %v14217_v44 }
 0x5ee   : > { %v9331_v28 = vadd.f32 %v9203_v53, %v8723_v6  ;;  %v7111_v40 = vrot.slane %v6764_v51, %v14417_v10  ;;  %v7118_v23 = vrot.slane %v6764_v51, %v14420_v37  ;;  %v7125_v63 = vrot.slane %v6764_v51, %v14423_v45  ;;  %9058 = vperm.xlu0 %10546, %v8900_v9   ;;  %v16155_v6 = vld [vmem:[#allocation92_spill] sm:$0xff]  ;;  %v16163_v49 = vld [vmem:[#allocation99_spill] sm:$0xff] }
 0x5ef   : > { %v9332_v50 = vadd.f32 %v9204_v39, %v8724_v22  ;;  %v7132_v29 = vrot.slane %v6764_v51, %v14426_v0  ;;  %v6051_v17 = vrot.slane %v16154_v34, %v14214_v56  ;;  %v6058_v57 = vrot.slane %v16154_v34, %v14217_v44 }
 0x5f0   : > { %v7913_v54 = vmul.f32 %v7111_v40, %v16148_v58  ;;  %v7914_v36 = vmul.f32 %v7118_v23, %v16149_v5  ;;  %v7915_v48 = vmul.f32 %v7125_v63, %v16150_v24  ;;  %v9207_v9 = vcombine.low %v9079_v61, %v9080_v2  ;;  %v10839_v61 = vld [vmem:[%s11161_s15 + $0xb0] sm:$0xff]  ;;  %v10840_v2 = vld [vmem:[%s11161_s15 + $0xb8] sm:$0xff] }
 0x5f1   : > { %v9459_v55 = vcombine.low %v9331_v28, %v9332_v50  ;;  %v9460_v8 = vcombine.high %v9331_v28, %v9332_v50  ;;  %v7916_v13 = vmul.f32 %v7132_v29, %v16151_v3  ;;  %v6079_v39 = vrot.slane %v16155_v6, %v14214_v56 }
 0x5f2   : > { %v8277_v25 = vcombine.low %v7913_v54, %v7914_v36  ;;  %v14596_v35 = vpop.permute.xlu1 %8943  ;;  %v6086_v19 = vrot.slane %v16155_v6, %v14217_v44  ;;  %v14635_v60 = vmul.f32 %v6051_v17, %v16110_v7  ;;  %v9083_v14 = vmul.f32 %v10839_v61, %v8959_v62 }
 0x5f3   : > { %9587 = vst [vmem:[%s14499_s19 + $0x70] sm:$0xff] %v9459_v55  ;;  %9588 = vst [vmem:[%s14499_s19 + $0x78] sm:$0xff] %v9460_v8  ;;  %v8285_v26 = vcombine.low %v7915_v48, %v7916_v13  ;;  %v6523_v17 = vmul.f32 %v6149_v33, %v16152_v30  ;;  %v6205_v33 = vrot.slane %v16163_v49, %v14214_v56 }
 0x5f4   : > { %v8284_v31 = vrot.slane %v8277_v25, %v16126_v46 }
 0x5f5   : > { %v8292_v59 = vrot.slane %v8285_v26, %v16126_v46  ;;  %v14645_v26 = vmul.f32 %v6079_v39, %v16110_v7  ;;  %v16161_v39 = vld [vmem:[#allocation97_spill] sm:$0xff] }
 0x5f6   : > { %v8727_v53 = vadd.f32 %v8284_v31, %v6519_v4  ;;  %v14648_v4 = vmul.f32 %v6086_v19, %v16112_v27  ;;  %v16158_v31 = vld [vmem:[#allocation31_spill] sm:$0xff]  ;;  %v6163_v19 = vrot.slane %v16161_v39, %v14214_v56 }
 0x5f7   : > { %v8728_v22 = vadd.f32 %v8292_v59, %v6520_v12  ;;  %v6772_v51 = vpop.permute.xlu1 %6771  ;;  %v14653_v12 = vmul.f32 %v6107_v18, %v16158_v31  ;;  %v16159_v59 = vld [vmem:[#allocation32_spill] sm:$0xff] }
 0x5f8   : > { %v9335_v28 = vadd.f32 %v9207_v9, %v8727_v53  ;;  %v7167_v40 = vrot.slane %v6772_v51, %v14417_v10  ;;  %v7174_v23 = vrot.slane %v6772_v51, %v14420_v37  ;;  %v7181_v63 = vrot.slane %v6772_v51, %v14423_v45  ;;  %v16160_v9 = vld [vmem:[#allocation95_spill] sm:$0xff] }
 0x5f9   : > { %v9336_v50 = vadd.f32 %v9208_v52, %v8728_v22  ;;  %v7188_v29 = vrot.slane %v6772_v51, %v14426_v0  ;;  %v14656_v34 = vmul.f32 %v6114_v38, %v16159_v59  ;;  %v6135_v7 = vrot.slane %v16160_v9, %v14214_v56 }
 0x5fa   : > { %v7921_v54 = vmul.f32 %v7167_v40, %v16148_v58  ;;  %v7922_v36 = vmul.f32 %v7174_v23, %v16149_v5  ;;  %v7923_v48 = vmul.f32 %v7181_v63, %v16150_v24  ;;  %v9084_v58 = vmul.f32 %v10840_v2, %v8959_v62 }
 0x5fb   : > { %v9463_v55 = vcombine.low %v9335_v28, %v9336_v50  ;;  %v9464_v8 = vcombine.high %v9335_v28, %v9336_v50  ;;  %v7924_v13 = vmul.f32 %v7188_v29, %v16151_v3  ;;  %v14642_v24 = vmul.f32 %v6058_v57, %v16112_v27  ;;  %v16162_v28 = vld [vmem:[#allocation98_spill] sm:$0xff] }
 0x5fc   : > { %v8309_v25 = vcombine.low %v7921_v54, %v7922_v36  ;;  %v14639_v5 = vpop.permute.xlu1 %8953  ;;  %v6142_v27 = vrot.slane %v16160_v9, %v14217_v44  ;;  %v6524_v53 = vmul.f32 %v6156_v15, %v16153_v42  ;;  %v6170_v52 = vrot.slane %v16161_v39, %v14217_v44  ;;  %v8969_v36 = vpop.permute.xlu0 %8968  ;;  %v16168_v9 = vld [vmem:[#allocation49_spill] sm:$0xff]  ;;  %v10841_v39 = vld [vmem:[%s11161_s15 + $0xd0] sm:$0xff] }
 0x5fd   : > { %9591 = vst [vmem:[%s14499_s19 + $0x90] sm:$0xff] %v9463_v55  ;;  %9592 = vst [vmem:[%s14499_s19 + $0x98] sm:$0xff] %v9464_v8  ;;  %v8317_v3 = vcombine.low %v7923_v48, %v7924_v13  ;;  %v9211_v22 = vcombine.low %v9083_v14, %v9084_v58  ;;  %v6177_v40 = vrot.slane %v16162_v28, %v14214_v56  ;;  %v16164_v55 = vld [vmem:[#allocation100_spill] sm:$0xff]  ;;  %v16165_v13 = vld [vmem:[#allocation46_spill] sm:$0xff] }
 0x5fe   : > { %v8316_v57 = vrot.slane %v8309_v25, %v16126_v46  ;;  %v6184_v23 = vrot.slane %v16162_v28, %v14217_v44  ;;  %v9212_v63 = vcombine.high %v9083_v14, %v9084_v58  ;;  %v6212_v54 = vrot.slane %v16163_v49, %v14217_v44  ;;  %v16166_v14 = vld [vmem:[#allocation47_spill] sm:$0xff]  ;;  %v16167_v58 = vld [vmem:[#allocation48_spill] sm:$0xff] }
 0x5ff   : > { %v8324_v6 = vrot.slane %v8317_v3, %v16126_v46  ;;  %v6191_v8 = vrot.slane %v16164_v55, %v14214_v56  ;;  %v6198_v3 = vrot.slane %v16164_v55, %v14217_v44  ;;  %v6531_v49 = vmul.f32 %v6205_v33, %v16152_v30 }
 0x600   : > { %v8731_v51 = vadd.f32 %v8316_v57, %v6523_v17 }
 0x601   : > { %v8732_v32 = vadd.f32 %v8324_v6, %v6524_v53  ;;  %v6780_v18 = vpop.permute.xlu1 %6779  ;;  %v14691_v6 = vmul.f32 %v6135_v7, %v16158_v31 }
 0x602   : > { %v9339_v38 = vadd.f32 %v9211_v22, %v8731_v51  ;;  %v7223_v62 = vrot.slane %v6780_v18, %v14417_v10  ;;  %v7230_v50 = vrot.slane %v6780_v18, %v14420_v37  ;;  %v7237_v29 = vrot.slane %v6780_v18, %v14423_v45  ;;  %v10842_v51 = vld [vmem:[%s11161_s15 + $0xd8] sm:$0xff] }
 0x603   : > { %v9340_v48 = vadd.f32 %v9212_v63, %v8732_v32  ;;  %v7244_v15 = vrot.slane %v6780_v18, %v14426_v0  ;;  %v9087_v22 = vmul.f32 %v10841_v39, %v8969_v36  ;;  %v9088_v28 = vmul.f32 %v10842_v51, %v8969_v36 }
 0x604   : > { %v7929_v61 = vmul.f32 %v7223_v62, %v16165_v13  ;;  %v7930_v2 = vmul.f32 %v7230_v50, %v16166_v14  ;;  %v7931_v25 = vmul.f32 %v7237_v29, %v16167_v58  ;;  %v14698_v18 = vmul.f32 %v6142_v27, %v16159_v59 }
 0x605   : > { %v9467_v17 = vcombine.low %v9339_v38, %v9340_v48  ;;  %v9468_v57 = vcombine.high %v9339_v38, %v9340_v48  ;;  %v7932_v53 = vmul.f32 %v7244_v15, %v16168_v9  ;;  %v14701_v62 = vmul.f32 %v6163_v19, %v16158_v31  ;;  %v8979_v48 = vpop.permute.xlu0 %8978 }
 0x606   : > { %v8341_v63 = vcombine.low %v7929_v61, %v7930_v2  ;;  %v14695_v32 = vpop.permute.xlu1 %8963  ;;  %16169 = vst [vmem:[#allocation149_spill] sm:$0xff] %v14698_v18  ;;  %v14704_v38 = vmul.f32 %v6170_v52, %v16159_v59  ;;  %v6527_v50 = vmul.f32 %v6177_v40, %v16152_v30  ;;  %v6528_v29 = vmul.f32 %v6184_v23, %v16153_v42  ;;  %v16174_v40 = vld [vmem:[#allocation101_spill] sm:$0xff]  ;;  %v10865_v18 = vld [vmem:[%s11161_s15 + $0xe0] sm:$0xff] }
 0x607   : > { %16170 = vst [vmem:[#allocation131_spill] sm:$0xff] %v14701_v62  ;;  %9595 = vst [vmem:[%s14499_s19 + $0xb0] sm:$0xff] %v9467_v17  ;;  %v8349_v7 = vcombine.low %v7931_v25, %v7932_v53  ;;  %v14713_v27 = vmul.f32 %v6212_v54, %v16153_v42  ;;  %v14716_v19 = vmul.f32 %v6191_v8, %v16158_v31  ;;  %v16175_v42 = vld [vmem:[#allocation102_spill] sm:$0xff] }
 0x608   : > { %16171 = vst [vmem:[#allocation134_spill] sm:$0xff] %v14704_v38  ;;  %9596 = vst [vmem:[%s14499_s19 + $0xb8] sm:$0xff] %v9468_v57  ;;  %v8348_v36 = vrot.slane %v8341_v63, %v16126_v46  ;;  %v14719_v52 = vmul.f32 %v6198_v3, %v16159_v59  ;;  %v6219_v55 = vrot.slane %v16174_v40, %v14214_v56  ;;  %v16176_v57 = vld [vmem:[#allocation106_spill] sm:$0xff] }
 0x609   : > { %16172 = vst [vmem:[#allocation135_spill] sm:$0xff] %v14716_v19  ;;  %v8356_v15 = vrot.slane %v8349_v7, %v16126_v46  ;;  %v6226_v30 = vrot.slane %v16174_v40, %v14217_v44  ;;  %v9215_v23 = vcombine.low %v9087_v22, %v9088_v28  ;;  %v6233_v54 = vrot.slane %v16175_v42, %v14214_v56  ;;  %v8989_v40 = vpop.permute.xlu0 %8988 }
 0x60a   : > { %16173 = vst [vmem:[#allocation138_spill] sm:$0xff] %v14719_v52  ;;  %v8735_v33 = vadd.f32 %v8348_v36, %v6527_v50  ;;  %v6240_v31 = vrot.slane %v16175_v42, %v14217_v44  ;;  %v9216_v8 = vcombine.high %v9087_v22, %v9088_v28  ;;  %v6247_v53 = vrot.slane %v16176_v57, %v14214_v56  ;;  %v16177_v28 = vld [vmem:[#allocation105_spill] sm:$0xff]  ;;  %v16178_v36 = vld [vmem:[#allocation50_spill] sm:$0xff]  ;;  %v10864_v52 = vld [vmem:[%s11161_s15 + $0x178] sm:$0xff] }
 0x60b   : > { %v8736_v59 = vadd.f32 %v8356_v15, %v6528_v29  ;;  %v6788_v61 = vpop.permute.xlu1 %6787  ;;  %v6254_v39 = vrot.slane %v16176_v57, %v14217_v44  ;;  %v6261_v63 = vrot.slane %v16177_v28, %v14214_v56  ;;  %v14744_v15 = vmul.f32 %v6219_v55, %v16178_v36  ;;  %v10843_v56 = vld [vmem:[%s11161_s15 + $0xf0] sm:$0xff]  ;;  %v16182_v55 = vld [vmem:[#allocation56_spill] sm:$0xff] }
 0x60c   : > { %v9343_v2 = vadd.f32 %v9215_v23, %v8735_v33  ;;  %v7279_v25 = vrot.slane %v6788_v61, %v14417_v10  ;;  %v7286_v3 = vrot.slane %v6788_v61, %v14420_v37  ;;  %v7293_v17 = vrot.slane %v6788_v61, %v14423_v45 }
 0x60d   : > { %v9344_v51 = vadd.f32 %v9216_v8, %v8736_v59  ;;  %v7300_v22 = vrot.slane %v6788_v61, %v14426_v0  ;;  %16179 = vst [vmem:[#allocation76_spill] sm:$0xff] %v14744_v15  ;;  %v16180_v8 = vld [vmem:[#allocation51_spill] sm:$0xff]  ;;  %v14765_v57 = vmul.f32 %v6247_v53, %v16178_v36  ;;  %v10847_v53 = vld [vmem:[%s11161_s15 + $0x40] sm:$0xff] }
 0x60e   : > { %v7937_v7 = vmul.f32 %v7279_v25, %v16165_v13  ;;  %v7938_v50 = vmul.f32 %v7286_v3, %v16166_v14  ;;  %v7939_v29 = vmul.f32 %v7293_v17, %v16167_v58  ;;  %v14748_v59 = vmul.f32 %v6226_v30, %v16180_v8  ;;  %v10844_v61 = vld [vmem:[%s11161_s15 + $0xf8] sm:$0xff]  ;;  %v16183_v17 = vld [vmem:[#allocation57_spill] sm:$0xff] }
 0x60f   : > { %v9471_v23 = vcombine.low %v9343_v2, %v9344_v51  ;;  %v9472_v33 = vcombine.high %v9343_v2, %v9344_v51  ;;  %v7940_v42 = vmul.f32 %v7300_v22, %v16168_v9  ;;  %v9091_v13 = vmul.f32 %v10843_v56, %v8979_v48  ;;  %16184 = vst [vmem:[#allocation70_spill] sm:$0xff] %v14765_v57  ;;  %v10845_v51 = vld [vmem:[%s11161_s15 + $0x10] sm:$0xff] }
 0x610   : > { %16181 = vst [vmem:[#allocation77_spill] sm:$0xff] %v14748_v59  ;;  %v9092_v14 = vmul.f32 %v10844_v61, %v8979_v48  ;;  %v8373_v58 = vcombine.low %v7937_v7, %v7938_v50  ;;  %v14752_v25 = vpop.permute.xlu1 %8973  ;;  %v14755_v3 = vmul.f32 %v6233_v54, %v16182_v55  ;;  %v14758_v2 = vmul.f32 %v6240_v31, %v16183_v17  ;;  %v16186_v22 = vld [vmem:[#allocation130_spill] sm:$0xff]  ;;  %v8999_v50 = vpop.permute.xlu0 %8998  ;;  %v10850_v61 = vld [vmem:[%s11161_s15 + $0x118] sm:$0xff] }
 0x611   : > { %v6268_v9 = vrot.slane %v16177_v28, %v14217_v44  ;;  %9599 = vst [vmem:[%s14499_s19 + $0xd0] sm:$0xff] %v9471_v23  ;;  %9600 = vst [vmem:[%s14499_s19 + $0xd8] sm:$0xff] %v9472_v33  ;;  %v8381_v30 = vcombine.low %v7939_v29, %v7940_v42  ;;  %v14768_v48 = vmul.f32 %v6254_v39, %v16180_v8  ;;  %v10846_v28 = vld [vmem:[%s11161_s15 + $0x18] sm:$0xff]  ;;  %v10848_v29 = vld [vmem:[%s11161_s15 + $0x48] sm:$0xff] }
 0x612   : > { %v14771_v54 = vmul.f32 %v6261_v63, %v16182_v55  ;;  %v8380_v31 = vrot.slane %v8373_v58, %v16126_v46  ;;  %v14776_v44 = vmul.f32 %v10845_v51, %v16186_v22  ;;  %v14780_v7 = vmul.f32 %v10846_v28, %v16186_v22  ;;  %v10849_v8 = vld [vmem:[%s11161_s15 + $0x110] sm:$0xff]  ;;  %v10851_v55 = vld [vmem:[%s11161_s15 + $0x60] sm:$0xff]  ;;  %v10852_v22 = vld [vmem:[%s11161_s15 + $0x68] sm:$0xff] }
 0x613   : > { %16185 = vst [vmem:[#allocation71_spill] sm:$0xff] %v14768_v48  ;;  %v14784_v39 = vmul.f32 %v10847_v53, %v14539_v21  ;;  %v8388_v63 = vrot.slane %v8381_v30, %v16126_v46  ;;  %v14789_v36 = vmul.f32 %v10848_v29, %v14539_v21  ;;  %v9219_v23 = vcombine.low %v9091_v13, %v9092_v14 }
 0x614   : > { %v9220_v33 = vcombine.high %v9091_v13, %v9092_v14  ;;  %v8739_v42 = vadd.f32 %v8380_v31, %v6531_v49  ;;  %v14792_v56 = vmul.f32 %v10849_v8, %v8989_v40  ;;  %v14795_v58 = vmul.f32 %v10850_v61, %v8989_v40  ;;  %v10853_v49 = vld [vmem:[%s11161_s15 + $0x130] sm:$0xff]  ;;  %v10855_v61 = vld [vmem:[%s11161_s15 + $0x80] sm:$0xff] }
 0x615   : > { %v14799_v51 = vmul.f32 %v10851_v55, %v14567_v41  ;;  %v8740_v30 = vadd.f32 %v8388_v63, %v14713_v27  ;;  %v6796_v21 = vpop.permute.xlu1 %6795  ;;  %v14804_v13 = vmul.f32 %v10852_v22, %v14567_v41  ;;  %v14807_v14 = vmul.f32 %v10853_v49, %v8999_v50  ;;  %v10854_v27 = vld [vmem:[%s11161_s15 + $0x138] sm:$0xff]  ;;  %v10856_v55 = vld [vmem:[%s11161_s15 + $0x88] sm:$0xff] }
 0x616   : > { %v9347_v31 = vadd.f32 %v9219_v23, %v8739_v42  ;;  %v7335_v40 = vrot.slane %v6796_v21, %v14417_v10  ;;  %v7342_v53 = vrot.slane %v6796_v21, %v14420_v37  ;;  %v7349_v29 = vrot.slane %v6796_v21, %v14423_v45  ;;  %v16187_v42 = vld [vmem:[#allocation58_spill] sm:$0xff]  ;;  %v16188_v49 = vld [vmem:[#allocation59_spill] sm:$0xff] }
 0x617   : > { %v9348_v28 = vadd.f32 %v9220_v33, %v8740_v30  ;;  %v7356_v8 = vrot.slane %v6796_v21, %v14426_v0  ;;  %v14814_v63 = vmul.f32 %v10854_v27, %v8999_v50  ;;  %v14818_v41 = vmul.f32 %v10855_v61, %v14596_v35  ;;  %v16189_v21 = vld [vmem:[#allocation60_spill] sm:$0xff]  ;;  %v10860_v27 = vld [vmem:[%s11161_s15 + $0xa8] sm:$0xff] }
 0x618   : > { %v14822_v23 = vmul.f32 %v10856_v55, %v14596_v35  ;;  %v7945_v33 = vmul.f32 %v7335_v40, %v16187_v42  ;;  %v7946_v48 = vmul.f32 %v7342_v53, %v16188_v49  ;;  %v7947_v57 = vmul.f32 %v7349_v29, %v16189_v21  ;;  %v9009_v35 = vpop.permute.xlu0 %9008  ;;  %v16190_v55 = vld [vmem:[#allocation61_spill] sm:$0xff] }
 0x619   : > { %v9475_v30 = vcombine.low %v9347_v31, %v9348_v28  ;;  %v9476_v22 = vcombine.high %v9347_v31, %v9348_v28  ;;  %v14828_v50 = vmul.f32 %v6268_v9, %v16183_v17  ;;  %v7948_v59 = vmul.f32 %v7356_v8, %v16190_v55  ;;  %v10859_v8 = vld [vmem:[%s11161_s15 + $0xa0] sm:$0xff] }
 0x61a   : > { %v14835_v40 = vpop.permute.xlu1 %8983  ;;  %v9223_v9 = vcombine.low %v14792_v56, %v14795_v58  ;;  %v8405_v28 = vcombine.low %v7945_v33, %v7946_v48  ;;  %v9224_v53 = vcombine.high %v14792_v56, %v14795_v58  ;;  %v10857_v58 = vld [vmem:[%s11161_s15 + $0x150] sm:$0xff]  ;;  %v14871_v48 = vmul.f32 %v10860_v27, %v14639_v5 }
 0x61b   : > { %9603 = vst [vmem:[%s14499_s19 + $0xf0] sm:$0xff] %v9475_v30  ;;  %9604 = vst [vmem:[%s14499_s19 + $0xf8] sm:$0xff] %v9476_v22  ;;  %v8413_v31 = vcombine.low %v7947_v57, %v7948_v59  ;;  %v14859_v33 = vmul.f32 %v10857_v58, %v9009_v35  ;;  %v10858_v22 = vld [vmem:[%s11161_s15 + $0x158] sm:$0xff]  ;;  %v14866_v59 = vmul.f32 %v10859_v8, %v14639_v5  ;;  %v10862_v30 = vld [vmem:[%s11161_s15 + $0xc8] sm:$0xff] }
 0x61c   : > { %v8412_v56 = vrot.slane %v8405_v28, %v16126_v46  ;;  %v14862_v29 = vmul.f32 %v10858_v22, %v9009_v35  ;;  %v9019_v57 = vpop.permute.xlu0 %9018  ;;  %v10861_v28 = vld [vmem:[%s11161_s15 + $0xc0] sm:$0xff]  ;;  %v14879_v35 = vmul.f32 %v10862_v30, %v14695_v32  ;;  %v10863_v27 = vld [vmem:[%s11161_s15 + $0x170] sm:$0xff] }
 0x61d   : > { %v8420_v61 = vrot.slane %v8413_v31, %v16126_v46  ;;  %v14875_v58 = vmul.f32 %v10861_v28, %v14695_v32  ;;  %v14887_v28 = vmul.f32 %v10863_v27, %v9019_v57  ;;  %v14890_v19 = vmul.f32 %v10864_v52, %v9019_v57  ;;  %v10866_v52 = vld [vmem:[%s11161_s15 + $0xe8] sm:$0xff] }
 0x61e   : > { %16191 = vst [vmem:[#allocation139_spill] sm:$0xff] %v14879_v35  ;;  %v8743_v22 = vadd.f32 %v8412_v56, %v14755_v3  ;;  %v14900_v27 = vmul.f32 %v10865_v18, %v14752_v25 }
 0x61f   : > { %v6804_v8 = vpop.permute.xlu1 %6803  ;;  %v8744_v17 = vadd.f32 %v8420_v61, %v14758_v2 }
 0x620   : > { %v7391_v31 = vrot.slane %v6804_v8, %v14417_v10  ;;  %v7398_v15 = vrot.slane %v6804_v8, %v14420_v37  ;;  %v7405_v5 = vrot.slane %v6804_v8, %v14423_v45  ;;  %v9351_v32 = vadd.f32 %v9223_v9, %v8743_v22  ;;  %v9029_v30 = vpop.permute.xlu0 %9028  ;;  %16192 = vst [vmem:[#allocation142_spill] sm:$0xff] %v14900_v27 }
 0x621   : > { %v7412_v3 = vrot.slane %v6804_v8, %v14426_v0  ;;  %v9352_v56 = vadd.f32 %v9224_v53, %v8744_v17  ;;  %v14904_v9 = vmul.f32 %v10866_v52, %v14752_v25  ;;  %v10872_v25 = vld [vmem:[%s11161_s15 + $0x1b8] sm:$0xff] }
 0x622   : > { %v7953_v2 = vmul.f32 %v7391_v31, %v16187_v42  ;;  %v7954_v61 = vmul.f32 %v7398_v15, %v16188_v49  ;;  %v7955_v38 = vmul.f32 %v7405_v5, %v16189_v21  ;;  %v16200_v31 = vld [vmem:[#allocation67_spill] sm:$0xff]  ;;  %v16201_v15 = vld [vmem:[#allocation68_spill] sm:$0xff] }
 0x623   : > { %16193 = vst [vmem:[#allocation143_spill] sm:$0xff] %v14904_v9  ;;  %v7956_v17 = vmul.f32 %v7412_v3, %v16190_v55  ;;  %v9479_v42 = vcombine.low %v9351_v32, %v9352_v56  ;;  %v9480_v49 = vcombine.high %v9351_v32, %v9352_v56  ;;  %v10870_v3 = vld [vmem:[%s11161_s15 + $0x108] sm:$0xff]  ;;  %v10871_v56 = vld [vmem:[%s11161_s15 + $0x1b0] sm:$0xff] }
 0x624   : > { %v8437_v21 = vcombine.low %v7953_v2, %v7954_v61  ;;  %v8994_v53 = vpop.permute.xlu1 %8993  ;;  %v9039_v32 = vpop.permute.xlu0 %9038  ;;  %v10867_v61 = vld [vmem:[%s11161_s15 + $0x190] sm:$0xff]  ;;  %v14944_v55 = vmul.f32 %v10870_v3, %v14835_v40 }
 0x625   : > { %v8445_v22 = vcombine.low %v7955_v38, %v7956_v17  ;;  %9607 = vst [vmem:[%s14499_s19 + $0x110] sm:$0xff] %v9479_v42  ;;  %9608 = vst [vmem:[%s14499_s19 + $0x118] sm:$0xff] %v9480_v49  ;;  %v14932_v52 = vmul.f32 %v10867_v61, %v9029_v30  ;;  %v10868_v17 = vld [vmem:[%s11161_s15 + $0x198] sm:$0xff]  ;;  %v10869_v49 = vld [vmem:[%s11161_s15 + $0x100] sm:$0xff]  ;;  %v14948_v61 = vmul.f32 %v10871_v56, %v9039_v32 }
 0x626   : > { %v8444_v5 = vrot.slane %v8437_v21, %v16126_v46  ;;  %v14935_v42 = vmul.f32 %v10868_v17, %v9029_v30  ;;  %v14939_v21 = vmul.f32 %v10869_v49, %v14835_v40  ;;  %16194 = vst [vmem:[#allocation146_spill] sm:$0xff] %v14944_v55  ;;  %v14951_v30 = vmul.f32 %v10872_v25, %v9039_v32  ;;  %v10873_v56 = vld [vmem:[%s11161_s15 + $0x120] sm:$0xff]  ;;  %v10874_v32 = vld [vmem:[%s11161_s15 + $0x128] sm:$0xff] }
 0x627   : > { %v8452_v2 = vrot.slane %v8445_v22, %v16126_v46  ;;  %v16195_v49 = vcombine.low %v14807_v14, %v14814_v63  ;;  %v14963_v25 = vmul.f32 %v10873_v56, %v8994_v53  ;;  %v16202_v56 = vld [vmem:[#allocation69_spill] sm:$0xff] }
 0x628   : > { %v8747_v8 = vadd.f32 %v8444_v5, %v14771_v54 }
 0x629   : > { %v8748_v22 = vadd.f32 %v8452_v2, %v14828_v50  ;;  %v6812_v17 = vpop.permute.xlu1 %6811  ;;  %v16196_v50 = vcombine.high %v14807_v14, %v14814_v63  ;;  %16197 = vst [vmem:[#allocation103_spill] sm:$0xff] %v14963_v25  ;;  %v14966_v2 = vmul.f32 %v10874_v32, %v8994_v53  ;;  %v10875_v14 = vld [vmem:[%s11161_s15 + $0x1d0] sm:$0xff]  ;;  %v10876_v53 = vld [vmem:[%s11161_s15 + $0x1d8] sm:$0xff] }
 0x62a   : > { %v9355_v57 = vadd.f32 %v16195_v49, %v8747_v8  ;;  %v7447_v54 = vrot.slane %v6812_v17, %v14417_v10  ;;  %v7454_v5 = vrot.slane %v6812_v17, %v14420_v37  ;;  %v7461_v40 = vrot.slane %v6812_v17, %v14423_v45  ;;  %v16199_v49 = vld [vmem:[#allocation66_spill] sm:$0xff] }
 0x62b   : > { %v9356_v3 = vadd.f32 %v16196_v50, %v8748_v22  ;;  %16198 = vst [vmem:[#allocation147_spill] sm:$0xff] %v14966_v2  ;;  %v7468_v62 = vrot.slane %v6812_v17, %v14426_v0  ;;  %v9049_v8 = vpop.permute.xlu0 %9048 }
 0x62c   : > { %v7961_v38 = vmul.f32 %v7447_v54, %v16199_v49  ;;  %v7962_v18 = vmul.f32 %v7454_v5, %v16200_v31  ;;  %v7963_v9 = vmul.f32 %v7461_v40, %v16201_v15  ;;  %v14973_v63 = vmul.f32 %v10875_v14, %v9049_v8 }
 0x62d   : > { %v9483_v22 = vcombine.low %v9355_v57, %v9356_v3  ;;  %v9484_v50 = vcombine.high %v9355_v57, %v9356_v3  ;;  %v7964_v27 = vmul.f32 %v7468_v62, %v16202_v56  ;;  %v14977_v32 = vmul.f32 %v10876_v53, %v9049_v8  ;;  %v10877_v8 = vld [vmem:[%s11161_s15 + $0x140] sm:$0xff] }
 0x62e   : > { %v8469_v40 = vcombine.low %v7961_v38, %v7962_v18  ;;  %v9004_v35 = vpop.permute.xlu1 %9003  ;;  %v10878_v18 = vld [vmem:[%s11161_s15 + $0x148] sm:$0xff] }
 0x62f   : > { %9611 = vst [vmem:[%s14499_s19 + $0x130] sm:$0xff] %v9483_v22  ;;  %9612 = vst [vmem:[%s14499_s19 + $0x138] sm:$0xff] %v9484_v50  ;;  %v8477_v3 = vcombine.low %v7963_v9, %v7964_v27  ;;  %v16203_v9 = vld [vmem:[#allocation113_spill] sm:$0xff]  ;;  %v15006_v62 = vmul.f32 %v10877_v8, %v9004_v35  ;;  %v15009_v54 = vmul.f32 %v10878_v18, %v9004_v35  ;;  %v16204_v22 = vld [vmem:[#allocation107_spill] sm:$0xff] }
 0x630   : > { %v8476_v38 = vrot.slane %v8469_v40, %v16126_v46  ;;  %v6732_v50 = vpop.permute.xlu0 %6731 }
 0x631   : > { %v8484_v53 = vrot.slane %v8477_v3, %v16126_v46  ;;  %v6887_v14 = vrot.slane %v6732_v50, %v14417_v10  ;;  %v6894_v5 = vrot.slane %v6732_v50, %v14420_v37  ;;  %v6901_v27 = vrot.slane %v6732_v50, %v14423_v45 }
 0x632   : > { %v8751_v57 = vadd.f32 %v8476_v38, %v16203_v9  ;;  %v6908_v40 = vrot.slane %v6732_v50, %v14426_v0  ;;  %v16205_v38 = vcombine.low %v14859_v33, %v14862_v29 }
 0x633   : > { %v8752_v17 = vadd.f32 %v8484_v53, %v16204_v22  ;;  %v7881_v3 = vmul.f32 %v6887_v14, %v16127_v16  ;;  %v7882_v2 = vmul.f32 %v6894_v5, %v16128_v47  ;;  %v7883_v25 = vmul.f32 %v6901_v27, %v16129_v20  ;;  %v6820_v55 = vpop.permute.xlu1 %6819 }
 0x634   : > { %v9359_v9 = vadd.f32 %v16205_v38, %v8751_v57  ;;  %v7884_v8 = vmul.f32 %v6908_v40, %v16130_v11  ;;  %v7503_v35 = vrot.slane %v6820_v55, %v14417_v10  ;;  %v7510_v18 = vrot.slane %v6820_v55, %v14420_v37  ;;  %v6744_v50 = vpop.permute.xlu0 %6743 }
 0x635   : > { %v16206_v22 = vcombine.high %v14859_v33, %v14862_v29  ;;  %v8149_v14 = vcombine.low %v7881_v3, %v7882_v2  ;;  %v7517_v47 = vrot.slane %v6820_v55, %v14423_v45  ;;  %v7524_v20 = vrot.slane %v6820_v55, %v14426_v0 }
 0x636   : > { %v8157_v5 = vcombine.low %v7883_v25, %v7884_v8  ;;  %v7969_v57 = vmul.f32 %v7503_v35, %v16199_v49  ;;  %v7970_v11 = vmul.f32 %v7510_v18, %v16200_v31  ;;  %v6971_v53 = vrot.slane %v6744_v50, %v14417_v10 }
 0x637   : > { %v9360_v16 = vadd.f32 %v16206_v22, %v8752_v17  ;;  %v8156_v38 = vrot.slane %v8149_v14, %v16126_v46  ;;  %v7971_v29 = vmul.f32 %v7517_v47, %v16201_v15  ;;  %v7972_v2 = vmul.f32 %v7524_v20, %v16202_v56  ;;  %v16208_v56 = vld [vmem:[#allocation24_spill] sm:$0xff]  ;;  %v16210_v47 = vld [vmem:[#allocation25_spill] sm:$0xff] }
 0x638   : > { %v8164_v33 = vrot.slane %v8157_v5, %v16126_v46  ;;  %v8501_v17 = vcombine.low %v7969_v57, %v7970_v11  ;;  %v6978_v55 = vrot.slane %v6744_v50, %v14420_v37  ;;  %v6752_v25 = vpop.permute.xlu0 %6751  ;;  %v6985_v49 = vrot.slane %v6744_v50, %v14423_v45  ;;  %v16211_v5 = vld [vmem:[#allocation26_spill] sm:$0xff] }
 0x639   : > { %v9487_v27 = vcombine.low %v9359_v9, %v9360_v16  ;;  %v9488_v40 = vcombine.high %v9359_v9, %v9360_v16  ;;  %v8711_v31 = vadd.f32 %v8156_v38, %v14603_v43  ;;  %v6992_v3 = vrot.slane %v6744_v50, %v14426_v0  ;;  %v16207_v9 = vld [vmem:[#allocation23_spill] sm:$0xff]  ;;  %v9014_v38 = vpop.permute.xlu1 %9013 }
 0x63a   : > { %v7893_v8 = vmul.f32 %v6971_v53, %v16207_v9  ;;  %v8712_v15 = vadd.f32 %v8164_v33, %v14606_v1  ;;  %v8508_v35 = vrot.slane %v8501_v17, %v16126_v46  ;;  %v8509_v18 = vcombine.low %v7971_v29, %v7972_v2  ;;  %v16213_v53 = vld [vmem:[#allocation117_spill] sm:$0xff] }
 0x63b   : > { %9615 = vst [vmem:[%s14499_s19 + $0x150] sm:$0xff] %v9487_v27  ;;  %9616 = vst [vmem:[%s14499_s19 + $0x158] sm:$0xff] %v9488_v40  ;;  %v7894_v22 = vmul.f32 %v6978_v55, %v16208_v56  ;;  %v9248_v16 = vcombine.high %v14973_v63, %v14977_v32  ;;  %v16209_v14 = vcombine.low %v14776_v44, %v14780_v7  ;;  %v16214_v55 = vld [vmem:[#allocation108_spill] sm:$0xff] }
 0x63c   : > { %v7895_v20 = vmul.f32 %v6985_v49, %v16210_v47  ;;  %v7896_v50 = vmul.f32 %v6992_v3, %v16211_v5  ;;  %v16212_v57 = vcombine.high %v14776_v44, %v14780_v7  ;;  %v8516_v11 = vrot.slane %v8509_v18, %v16126_v46  ;;  %v10879_v18 = vld [vmem:[%s11161_s15 + $0x160] sm:$0xff] }
 0x63d   : > { %v9319_v43 = vadd.f32 %v16209_v14, %v8711_v31  ;;  %v8755_v27 = vadd.f32 %v8508_v35, %v16213_v53  ;;  %v8197_v40 = vcombine.low %v7893_v8, %v7894_v22  ;;  %v9229_v29 = vcombine.low %v15006_v62, %v15009_v54  ;;  %v6760_v8 = vpop.permute.xlu0 %6759  ;;  %v10880_v14 = vld [vmem:[%s11161_s15 + $0x168] sm:$0xff] }
 0x63e   : > { %v9320_v1 = vadd.f32 %v16212_v57, %v8712_v15  ;;  %v8205_v33 = vcombine.low %v7895_v20, %v7896_v50  ;;  %v7027_v2 = vrot.slane %v6752_v25, %v14417_v10  ;;  %v7034_v17 = vrot.slane %v6752_v25, %v14420_v37 }
 0x63f   : > { %v8756_v31 = vadd.f32 %v8516_v11, %v16214_v55  ;;  %v16215_v49 = vcombine.low %v14887_v28, %v14890_v19  ;;  %v8204_v15 = vrot.slane %v8197_v40, %v16126_v46  ;;  %v15067_v22 = vmul.f32 %v10879_v18, %v9014_v38  ;;  %v16219_v55 = vld [vmem:[#allocation33_spill] sm:$0xff]  ;;  %v16221_v18 = vld [vmem:[#allocation35_spill] sm:$0xff] }
 0x640   : > { %v9447_v44 = vcombine.low %v9319_v43, %v9320_v1  ;;  %v9448_v7 = vcombine.high %v9319_v43, %v9320_v1  ;;  %v8212_v35 = vrot.slane %v8205_v33, %v16126_v46  ;;  %v15070_v20 = vmul.f32 %v10880_v14, %v9014_v38 }
 0x641   : > { %v9363_v3 = vadd.f32 %v16215_v49, %v8755_v27  ;;  %v16216_v43 = vcombine.high %v14887_v28, %v14890_v19  ;;  %v7041_v57 = vrot.slane %v6752_v25, %v14423_v45  ;;  %v7048_v1 = vrot.slane %v6752_v25, %v14426_v0 }
 0x642   : > { %9575 = vst [vmem:[%s14499_s19 + $0x10] sm:$0xff] %v9447_v44  ;;  %9576 = vst [vmem:[%s14499_s19 + $0x18] sm:$0xff] %v9448_v7  ;;  %v7901_v11 = vmul.f32 %v7027_v2, %v16207_v9  ;;  %v8717_v53 = vadd.f32 %v8204_v15, %v14635_v60  ;;  %v8718_v27 = vadd.f32 %v8212_v35, %v14642_v24 }
 0x643   : > { %v9364_v50 = vadd.f32 %v16216_v43, %v8756_v31  ;;  %v7902_v40 = vmul.f32 %v7034_v17, %v16208_v56  ;;  %v7083_v38 = vrot.slane %v6760_v8, %v14417_v10  ;;  %v7903_v19 = vmul.f32 %v7041_v57, %v16210_v47  ;;  %v6828_v56 = vpop.permute.xlu1 %6827  ;;  %v16222_v43 = vld [vmem:[#allocation36_spill] sm:$0xff] }
 0x644   : > { %v7904_v28 = vmul.f32 %v7048_v1, %v16211_v5  ;;  %v16217_v25 = vcombine.low %v14784_v39, %v14789_v36  ;;  %v16218_v9 = vcombine.high %v14784_v39, %v14789_v36  ;;  %v7090_v24 = vrot.slane %v6760_v8, %v14420_v37  ;;  %v16220_v36 = vld [vmem:[#allocation34_spill] sm:$0xff] }
 0x645   : > { %v9491_v33 = vcombine.low %v9363_v3, %v9364_v50  ;;  %v9492_v44 = vcombine.high %v9363_v3, %v9364_v50  ;;  %v8229_v2 = vcombine.low %v7901_v11, %v7902_v40  ;;  %v7097_v47 = vrot.slane %v6760_v8, %v14423_v45 }
 0x646   : > { %v9325_v7 = vadd.f32 %v16217_v25, %v8717_v53  ;;  %v9326_v60 = vadd.f32 %v16218_v9, %v8718_v27  ;;  %v8237_v17 = vcombine.low %v7903_v19, %v7904_v28  ;;  %v7104_v5 = vrot.slane %v6760_v8, %v14426_v0  ;;  %v6768_v27 = vpop.permute.xlu0 %6767 }
 0x647   : > { %9619 = vst [vmem:[%s14499_s19 + $0x170] sm:$0xff] %v9491_v33  ;;  %9620 = vst [vmem:[%s14499_s19 + $0x178] sm:$0xff] %v9492_v44  ;;  %v7909_v31 = vmul.f32 %v7083_v38, %v16219_v55  ;;  %v8236_v39 = vrot.slane %v8229_v2, %v16126_v46  ;;  %v7910_v15 = vmul.f32 %v7090_v24, %v16220_v36  ;;  %v16223_v44 = vld [vmem:[#allocation78_spill] sm:$0xff] }
 0x648   : > { %v9453_v49 = vcombine.low %v9325_v7, %v9326_v60  ;;  %v9454_v3 = vcombine.high %v9325_v7, %v9326_v60  ;;  %v8244_v35 = vrot.slane %v8237_v17, %v16126_v46  ;;  %v7911_v14 = vmul.f32 %v7097_v47, %v16221_v18  ;;  %v16226_v60 = vld [vmem:[#allocation80_spill] sm:$0xff]  ;;  %v16228_v47 = vld [vmem:[#allocation81_spill] sm:$0xff] }
 0x649   : > { %v7912_v50 = vmul.f32 %v7104_v5, %v16222_v43  ;;  %v7559_v57 = vrot.slane %v6828_v56, %v14417_v10  ;;  %v8721_v8 = vadd.f32 %v8236_v39, %v14645_v26  ;;  %v8261_v1 = vcombine.low %v7909_v31, %v7910_v15  ;;  %v16225_v26 = vld [vmem:[#allocation79_spill] sm:$0xff]  ;;  %v9024_v31 = vpop.permute.xlu1 %9023 }
 0x64a   : > { %9581 = vst [vmem:[%s14499_s19 + $0x40] sm:$0xff] %v9453_v49  ;;  %9582 = vst [vmem:[%s14499_s19 + $0x48] sm:$0xff] %v9454_v3  ;;  %v7566_v11 = vrot.slane %v6828_v56, %v14420_v37  ;;  %v7573_v53 = vrot.slane %v6828_v56, %v14423_v45  ;;  %v8722_v40 = vadd.f32 %v8244_v35, %v14648_v4 }
 0x64b   : > { %v8269_v38 = vcombine.low %v7911_v14, %v7912_v50  ;;  %v7580_v33 = vrot.slane %v6828_v56, %v14426_v0  ;;  %v7977_v19 = vmul.f32 %v7559_v57, %v16223_v44  ;;  %v16224_v28 = vcombine.low %v14799_v51, %v14804_v13 }
 0x64c   : > { %v8268_v7 = vrot.slane %v8261_v1, %v16126_v46  ;;  %v7978_v9 = vmul.f32 %v7566_v11, %v16225_v26  ;;  %v7979_v2 = vmul.f32 %v7573_v53, %v16226_v60  ;;  %v16227_v24 = vcombine.high %v14799_v51, %v14804_v13  ;;  %v6776_v11 = vpop.permute.xlu0 %6775 }
 0x64d   : > { %v9329_v25 = vadd.f32 %v16224_v28, %v8721_v8  ;;  %v8276_v4 = vrot.slane %v8269_v38, %v16126_v46  ;;  %v7980_v56 = vmul.f32 %v7580_v33, %v16228_v47  ;;  %v7139_v5 = vrot.slane %v6768_v27, %v14417_v10 }
 0x64e   : > { %v9330_v17 = vadd.f32 %v16227_v24, %v8722_v40  ;;  %v8725_v49 = vadd.f32 %v8268_v7, %v14653_v12  ;;  %v8533_v3 = vcombine.low %v7977_v19, %v7978_v9  ;;  %v7146_v39 = vrot.slane %v6768_v27, %v14420_v37  ;;  %v16231_v19 = vld [vmem:[#allocation125_spill] sm:$0xff]  ;;  %v16232_v7 = vld [vmem:[#allocation111_spill] sm:$0xff] }
 0x64f   : > { %v7153_v15 = vrot.slane %v6768_v27, %v14423_v45  ;;  %v8726_v51 = vadd.f32 %v8276_v4, %v14656_v34  ;;  %v8541_v13 = vcombine.low %v7979_v2, %v7980_v56  ;;  %v16229_v50 = vcombine.low %v14818_v41, %v14822_v23  ;;  %v10881_v4 = vld [vmem:[%s11161_s15 + $0x180] sm:$0xff] }
 0x650   : > { %v9457_v35 = vcombine.low %v9329_v25, %v9330_v17  ;;  %v9458_v14 = vcombine.high %v9329_v25, %v9330_v17  ;;  %v8540_v8 = vrot.slane %v8533_v3, %v16126_v46  ;;  %v7160_v1 = vrot.slane %v6768_v27, %v14426_v0 }
 0x651   : > { %v9333_v57 = vadd.f32 %v16229_v50, %v8725_v49  ;;  %v7917_v12 = vmul.f32 %v7139_v5, %v16219_v55  ;;  %v16230_v53 = vcombine.high %v14818_v41, %v14822_v23  ;;  %v8548_v34 = vrot.slane %v8541_v13, %v16126_v46  ;;  %v10882_v5 = vld [vmem:[%s11161_s15 + $0x188] sm:$0xff]  ;;  %v6784_v50 = vpop.permute.xlu0 %6783 }
 0x652   : > { %9585 = vst [vmem:[%s14499_s19 + $0x60] sm:$0xff] %v9457_v35  ;;  %9586 = vst [vmem:[%s14499_s19 + $0x68] sm:$0xff] %v9458_v14  ;;  %v7918_v38 = vmul.f32 %v7146_v39, %v16220_v36  ;;  %v7919_v33 = vmul.f32 %v7153_v15, %v16221_v18  ;;  %v9230_v27 = vcombine.high %v15006_v62, %v15009_v54  ;;  %v6836_v36 = vpop.permute.xlu1 %6835 }
 0x653   : > { %v9334_v40 = vadd.f32 %v16230_v53, %v8726_v51  ;;  %v9233_v55 = vcombine.low %v15067_v22, %v15070_v20  ;;  %v8759_v28 = vadd.f32 %v8540_v8, %v16231_v19  ;;  %v7920_v41 = vmul.f32 %v7160_v1, %v16222_v43  ;;  %v16235_v8 = vld [vmem:[#allocation42_spill] sm:$0xff]  ;;  %v16239_v19 = vld [vmem:[#allocation45_spill] sm:$0xff] }
 0x654   : > { %v8760_v9 = vadd.f32 %v8548_v34, %v16232_v7  ;;  %v8293_v2 = vcombine.low %v7917_v12, %v7918_v38  ;;  %v16233_v18 = vcombine.low %v14932_v52, %v14935_v42  ;;  %v15153_v56 = vmul.f32 %v10881_v4, %v9024_v31  ;;  %v16236_v12 = vld [vmem:[#allocation149_spill] sm:$0xff]  ;;  %v16238_v38 = vld [vmem:[#allocation44_spill] sm:$0xff] }
 0x655   : > { %v9461_v23 = vcombine.low %v9333_v57, %v9334_v40  ;;  %v9462_v25 = vcombine.high %v9333_v57, %v9334_v40  ;;  %v8301_v17 = vcombine.low %v7919_v33, %v7920_v41  ;;  %v15156_v49 = vmul.f32 %v10882_v5, %v9024_v31  ;;  %v16237_v40 = vld [vmem:[#allocation43_spill] sm:$0xff] }
 0x656   : > { %v9367_v24 = vadd.f32 %v16233_v18, %v8759_v28  ;;  %v16234_v43 = vcombine.high %v14932_v52, %v14935_v42  ;;  %v8300_v39 = vrot.slane %v8293_v2, %v16126_v46  ;;  %v7195_v15 = vrot.slane %v6776_v11, %v14417_v10 }
 0x657   : > { %9589 = vst [vmem:[%s14499_s19 + $0x80] sm:$0xff] %v9461_v23  ;;  %9590 = vst [vmem:[%s14499_s19 + $0x88] sm:$0xff] %v9462_v25  ;;  %v7202_v35 = vrot.slane %v6776_v11, %v14420_v37  ;;  %v8308_v14 = vrot.slane %v8301_v17, %v16126_v46  ;;  %v7209_v51 = vrot.slane %v6776_v11, %v14423_v45 }
 0x658   : > { %v9368_v3 = vadd.f32 %v16234_v43, %v8760_v9  ;;  %v7216_v31 = vrot.slane %v6776_v11, %v14426_v0  ;;  %v7615_v13 = vrot.slane %v6836_v36, %v14417_v10  ;;  %v8729_v42 = vadd.f32 %v8300_v39, %v14691_v6 }
 0x659   : > { %v7925_v1 = vmul.f32 %v7195_v15, %v16235_v8  ;;  %v8730_v53 = vadd.f32 %v8308_v14, %v16236_v12  ;;  %v7926_v34 = vmul.f32 %v7202_v35, %v16237_v40  ;;  %v7927_v33 = vmul.f32 %v7209_v51, %v16238_v38 }
 0x65a   : > { %v9495_v57 = vcombine.low %v9367_v24, %v9368_v3  ;;  %v9496_v52 = vcombine.high %v9367_v24, %v9368_v3  ;;  %v7928_v28 = vmul.f32 %v7216_v31, %v16239_v19  ;;  %v16240_v11 = vcombine.low %v14866_v59, %v14871_v48 }
 0x65b   : > { %v7622_v23 = vrot.slane %v6836_v36, %v14420_v37  ;;  %v7629_v6 = vrot.slane %v6836_v36, %v14423_v45  ;;  %v7636_v25 = vrot.slane %v6836_v36, %v14426_v0  ;;  %v16241_v7 = vcombine.high %v14866_v59, %v14871_v48  ;;  %v6792_v59 = vpop.permute.xlu0 %6791 }
 0x65c   : > { %9623 = vst [vmem:[%s14499_s19 + $0x190] sm:$0xff] %v9495_v57  ;;  %9624 = vst [vmem:[%s14499_s19 + $0x198] sm:$0xff] %v9496_v52  ;;  %v9337_v41 = vadd.f32 %v16240_v11, %v8729_v42  ;;  %v8325_v2 = vcombine.low %v7925_v1, %v7926_v34  ;;  %v8333_v18 = vcombine.low %v7927_v33, %v7928_v28  ;;  %v9034_v11 = vpop.permute.xlu1 %9033 }
 0x65d   : > { %v9338_v9 = vadd.f32 %v16241_v7, %v8730_v53  ;;  %v7985_v24 = vmul.f32 %v7615_v13, %v16223_v44  ;;  %v7986_v17 = vmul.f32 %v7622_v23, %v16225_v26  ;;  %v7987_v4 = vmul.f32 %v7629_v6, %v16226_v60  ;;  %v16242_v26 = vld [vmem:[#allocation131_spill] sm:$0xff]  ;;  %v16248_v23 = vld [vmem:[#allocation137_spill] sm:$0xff] }
 0x65e   : > { %v7988_v5 = vmul.f32 %v7636_v25, %v16228_v47  ;;  %v7251_v43 = vrot.slane %v6784_v50, %v14417_v10  ;;  %v8332_v39 = vrot.slane %v8325_v2, %v16126_v46  ;;  %v8340_v48 = vrot.slane %v8333_v18, %v16126_v46  ;;  %v16243_v47 = vld [vmem:[#allocation134_spill] sm:$0xff]  ;;  %v16244_v53 = vld [vmem:[#allocation139_spill] sm:$0xff] }
 0x65f   : > { %v9465_v3 = vcombine.low %v9337_v41, %v9338_v9  ;;  %v9466_v36 = vcombine.high %v9337_v41, %v9338_v9  ;;  %v8565_v15 = vcombine.low %v7985_v24, %v7986_v17  ;;  %v7258_v14 = vrot.slane %v6784_v50, %v14420_v37  ;;  %v6800_v18 = vpop.permute.xlu0 %6799 }
 0x660   : > { %v8573_v35 = vcombine.low %v7987_v4, %v7988_v5  ;;  %v7265_v44 = vrot.slane %v6784_v50, %v14423_v45  ;;  %v8733_v60 = vadd.f32 %v8332_v39, %v16242_v26  ;;  %v8734_v51 = vadd.f32 %v8340_v48, %v16243_v47  ;;  %v10884_v39 = vld [vmem:[%s11161_s15 + $0x1a8] sm:$0xff] }
 0x661   : > { %9593 = vst [vmem:[%s14499_s19 + $0xa0] sm:$0xff] %v9465_v3  ;;  %9594 = vst [vmem:[%s14499_s19 + $0xa8] sm:$0xff] %v9466_v36  ;;  %v7272_v31 = vrot.slane %v6784_v50, %v14426_v0  ;;  %v7933_v13 = vmul.f32 %v7251_v43, %v16235_v8  ;;  %v8572_v57 = vrot.slane %v8565_v15, %v16126_v46  ;;  %v10883_v43 = vld [vmem:[%s11161_s15 + $0x1a0] sm:$0xff] }
 0x662   : > { %v8580_v52 = vrot.slane %v8573_v35, %v16126_v46  ;;  %v7934_v42 = vmul.f32 %v7258_v14, %v16237_v40  ;;  %v7935_v1 = vmul.f32 %v7265_v44, %v16238_v38  ;;  %v9234_v12 = vcombine.high %v15067_v22, %v15070_v20  ;;  %v16247_v38 = vld [vmem:[#allocation114_spill] sm:$0xff]  ;;  %v16251_v14 = vld [vmem:[#allocation135_spill] sm:$0xff] }
 0x663   : > { %v16245_v34 = vcombine.low %v14875_v58, %v16244_v53  ;;  %v16246_v50 = vcombine.high %v14875_v58, %v16244_v53  ;;  %v7936_v28 = vmul.f32 %v7272_v31, %v16239_v19  ;;  %v9237_v40 = vcombine.low %v15153_v56, %v15156_v49  ;;  %v16256_v53 = vld [vmem:[#allocation142_spill] sm:$0xff] }
 0x664   : > { %v8763_v41 = vadd.f32 %v8572_v57, %v16247_v38  ;;  %v8764_v6 = vadd.f32 %v8580_v52, %v16248_v23  ;;  %v8357_v25 = vcombine.low %v7933_v13, %v7934_v42  ;;  %v7307_v58 = vrot.slane %v6792_v59, %v14417_v10  ;;  %v16254_v13 = vld [vmem:[#allocation53_spill] sm:$0xff]  ;;  %v16255_v52 = vld [vmem:[#allocation54_spill] sm:$0xff] }
 0x665   : > { %v9341_v33 = vadd.f32 %v16245_v34, %v8733_v60  ;;  %v9342_v8 = vadd.f32 %v16246_v50, %v8734_v51  ;;  %v8365_v2 = vcombine.low %v7935_v1, %v7936_v28  ;;  %v16249_v19 = vcombine.low %v14948_v61, %v14951_v30  ;;  %v16252_v60 = vld [vmem:[#allocation138_spill] sm:$0xff]  ;;  %v16253_v51 = vld [vmem:[#allocation52_spill] sm:$0xff]  ;;  %v6844_v1 = vpop.permute.xlu1 %6843  ;;  %v16257_v34 = vld [vmem:[#allocation143_spill] sm:$0xff] }
 0x666   : > { %v16250_v17 = vcombine.high %v14948_v61, %v14951_v30  ;;  %v8364_v5 = vrot.slane %v8357_v25, %v16126_v46  ;;  %v15228_v3 = vmul.f32 %v10883_v43, %v9034_v11  ;;  %v15234_v48 = vmul.f32 %v10884_v39, %v9034_v11 }
 0x667   : > { %v9469_v7 = vcombine.low %v9341_v33, %v9342_v8  ;;  %v9470_v9 = vcombine.high %v9341_v33, %v9342_v8  ;;  %v9371_v24 = vadd.f32 %v16249_v19, %v8763_v41  ;;  %v8372_v36 = vrot.slane %v8365_v2, %v16126_v46  ;;  %v16259_v8 = vld [vmem:[#allocation55_spill] sm:$0xff] }
 0x668   : > { %v9372_v4 = vadd.f32 %v16250_v17, %v8764_v6  ;;  %v7314_v15 = vrot.slane %v6792_v59, %v14420_v37  ;;  %v7321_v35 = vrot.slane %v6792_v59, %v14423_v45  ;;  %v8737_v44 = vadd.f32 %v8364_v5, %v16251_v14  ;;  %v16262_v14 = vld [vmem:[#allocation86_spill] sm:$0xff] }
 0x669   : > { %9597 = vst [vmem:[%s14499_s19 + $0xc0] sm:$0xff] %v9469_v7  ;;  %9598 = vst [vmem:[%s14499_s19 + $0xc8] sm:$0xff] %v9470_v9  ;;  %v7328_v26 = vrot.slane %v6792_v59, %v14426_v0  ;;  %v8738_v47 = vadd.f32 %v8372_v36, %v16252_v60  ;;  %v7941_v31 = vmul.f32 %v7307_v58, %v16253_v51  ;;  %v6808_v7 = vpop.permute.xlu0 %6807 }
 0x66a   : > { %v9499_v61 = vcombine.low %v9371_v24, %v9372_v4  ;;  %v9500_v30 = vcombine.high %v9371_v24, %v9372_v4  ;;  %v7942_v57 = vmul.f32 %v7314_v15, %v16254_v13  ;;  %v7943_v42 = vmul.f32 %v7321_v35, %v16255_v52  ;;  %v16261_v15 = vld [vmem:[#allocation76_spill] sm:$0xff] }
 0x66b   : > { %v16258_v33 = vcombine.low %v16256_v53, %v16257_v34  ;;  %v7944_v28 = vmul.f32 %v7328_v26, %v16259_v8  ;;  %v7363_v11 = vrot.slane %v6800_v18, %v14417_v10  ;;  %v7370_v59 = vrot.slane %v6800_v18, %v14420_v37  ;;  %v16263_v26 = vld [vmem:[#allocation77_spill] sm:$0xff] }
 0x66c   : > { %9627 = vst [vmem:[%s14499_s19 + $0x1b0] sm:$0xff] %v9499_v61  ;;  %9628 = vst [vmem:[%s14499_s19 + $0x1b8] sm:$0xff] %v9500_v30  ;;  %v16260_v38 = vcombine.high %v16256_v53, %v16257_v34  ;;  %v8389_v23 = vcombine.low %v7941_v31, %v7942_v57  ;;  %v7377_v6 = vrot.slane %v6800_v18, %v14423_v45  ;;  %v16264_v31 = vld [vmem:[#allocation87_spill] sm:$0xff]  ;;  %v16265_v57 = vld [vmem:[#allocation146_spill] sm:$0xff] }
 0x66d   : > { %v9345_v50 = vadd.f32 %v16258_v33, %v8737_v44  ;;  %v7384_v25 = vrot.slane %v6800_v18, %v14426_v0  ;;  %v8397_v9 = vcombine.low %v7943_v42, %v7944_v28  ;;  %v7949_v2 = vmul.f32 %v7363_v11, %v16253_v51  ;;  %v16267_v53 = vld [vmem:[#allocation88_spill] sm:$0xff]  ;;  %v16268_v33 = vld [vmem:[#allocation89_spill] sm:$0xff] }
 0x66e   : > { %v9346_v41 = vadd.f32 %v16260_v38, %v8738_v47  ;;  %v7950_v58 = vmul.f32 %v7370_v59, %v16254_v13  ;;  %v7671_v19 = vrot.slane %v6844_v1, %v14417_v10  ;;  %v8396_v4 = vrot.slane %v8389_v23, %v16126_v46  ;;  %v16270_v38 = vld [vmem:[#allocation70_spill] sm:$0xff] }
 0x66f   : > { %v7951_v5 = vmul.f32 %v7377_v6, %v16255_v52  ;;  %v8404_v43 = vrot.slane %v8397_v9, %v16126_v46  ;;  %v7952_v36 = vmul.f32 %v7384_v25, %v16259_v8  ;;  %v7678_v18 = vrot.slane %v6844_v1, %v14420_v37 }
 0x670   : > { %v9473_v24 = vcombine.low %v9345_v50, %v9346_v41  ;;  %v9474_v17 = vcombine.high %v9345_v50, %v9346_v41  ;;  %v8421_v39 = vcombine.low %v7949_v2, %v7950_v58  ;;  %v8741_v35 = vadd.f32 %v8396_v4, %v16261_v15  ;;  %v6852_v58 = vpop.permute.xlu1 %6851  ;;  %v16272_v4 = vld [vmem:[#allocation103_spill] sm:$0xff]  ;;  %v16275_v15 = vld [vmem:[#allocation62_spill] sm:$0xff] }
 0x671   : > { %v7685_v61 = vrot.slane %v6844_v1, %v14423_v45  ;;  %v7692_v30 = vrot.slane %v6844_v1, %v14426_v0  ;;  %v7993_v44 = vmul.f32 %v7671_v19, %v16262_v14  ;;  %v8742_v60 = vadd.f32 %v8404_v43, %v16263_v26  ;;  %v15280_v1 = vpop.permute.xlu0 %6815  ;;  %v16278_v26 = vld [vmem:[#allocation64_spill] sm:$0xff] }
 0x672   : > { %9601 = vst [vmem:[%s14499_s19 + $0xe0] sm:$0xff] %v9473_v24  ;;  %9602 = vst [vmem:[%s14499_s19 + $0xe8] sm:$0xff] %v9474_v17  ;;  %v8428_v47 = vrot.slane %v8421_v39, %v16126_v46  ;;  %v8429_v51 = vcombine.low %v7951_v5, %v7952_v36  ;;  %v7994_v13 = vmul.f32 %v7678_v18, %v16264_v31  ;;  %v16271_v17 = vld [vmem:[#allocation71_spill] sm:$0xff] }
 0x673   : > { %v16266_v52 = vcombine.low %v14939_v21, %v16265_v57  ;;  %v7995_v34 = vmul.f32 %v7685_v61, %v16267_v53  ;;  %v7996_v50 = vmul.f32 %v7692_v30, %v16268_v33  ;;  %v7419_v8 = vrot.slane %v6808_v7, %v14417_v10  ;;  %v16273_v5 = vld [vmem:[#allocation147_spill] sm:$0xff] }
 0x674   : > { %v16269_v28 = vcombine.high %v14939_v21, %v16265_v57  ;;  %v8436_v59 = vrot.slane %v8429_v51, %v16126_v46  ;;  %v8745_v41 = vadd.f32 %v8428_v47, %v16270_v38  ;;  %v8597_v23 = vcombine.low %v7993_v44, %v7994_v13  ;;  %v16276_v61 = vld [vmem:[#allocation63_spill] sm:$0xff]  ;;  %v16279_v47 = vld [vmem:[#allocation65_spill] sm:$0xff] }
 0x675   : > { %v9349_v42 = vadd.f32 %v16266_v52, %v8741_v35  ;;  %v8605_v6 = vcombine.low %v7995_v34, %v7996_v50  ;;  %v7426_v25 = vrot.slane %v6808_v7, %v14420_v37  ;;  %v7433_v9 = vrot.slane %v6808_v7, %v14423_v45  ;;  %v16280_v57 = vld [vmem:[#allocation119_spill] sm:$0xff] }
 0x676   : > { %v9350_v11 = vadd.f32 %v16269_v28, %v8742_v60  ;;  %v7440_v2 = vrot.slane %v6808_v7, %v14426_v0  ;;  %v8746_v21 = vadd.f32 %v8436_v59, %v16271_v17  ;;  %v16274_v43 = vcombine.low %v16272_v4, %v16273_v5  ;;  %v15309_v28 = vpop.permute.xlu0 %6823 }
 0x677   : > { %v8604_v39 = vrot.slane %v8597_v23, %v16126_v46  ;;  %v8612_v18 = vrot.slane %v8605_v6, %v16126_v46  ;;  %v7957_v35 = vmul.f32 %v7419_v8, %v16275_v15  ;;  %v7958_v30 = vmul.f32 %v7426_v25, %v16276_v61 }
 0x678   : > { %v9477_v19 = vcombine.low %v9349_v42, %v9350_v11  ;;  %v9478_v24 = vcombine.high %v9349_v42, %v9350_v11  ;;  %v9353_v36 = vadd.f32 %v16274_v43, %v8745_v41  ;;  %v16277_v7 = vcombine.high %v16272_v4, %v16273_v5  ;;  %v16281_v42 = vld [vmem:[#allocation141_spill] sm:$0xff]  ;;  %v9044_v5 = vpop.permute.xlu1 %9043  ;;  %v16284_v43 = vld [vmem:[#allocation104_spill] sm:$0xff] }
 0x679   : > { %v7959_v60 = vmul.f32 %v7433_v9, %v16278_v26  ;;  %v7960_v51 = vmul.f32 %v7440_v2, %v16279_v47  ;;  %v7727_v13 = vrot.slane %v6852_v58, %v14417_v10  ;;  %v8767_v52 = vadd.f32 %v8604_v39, %v16280_v57 }
 0x67a   : > { %9605 = vst [vmem:[%s14499_s19 + $0x100] sm:$0xff] %v9477_v19  ;;  %9606 = vst [vmem:[%s14499_s19 + $0x108] sm:$0xff] %v9478_v24  ;;  %v9354_v44 = vadd.f32 %v16277_v7, %v8746_v21  ;;  %v8768_v34 = vadd.f32 %v8612_v18, %v16281_v42  ;;  %v8453_v50 = vcombine.low %v7957_v35, %v7958_v30  ;;  %v6832_v7 = vpop.permute.xlu0 %6831 }
 0x67b   : > { %v7734_v8 = vrot.slane %v6852_v58, %v14420_v37  ;;  %v8461_v38 = vcombine.low %v7959_v60, %v7960_v51  ;;  %v7741_v41 = vrot.slane %v6852_v58, %v14423_v45  ;;  %v16282_v23 = vcombine.low %v14973_v63, %v14977_v32 }
 0x67c   : > { %v9481_v11 = vcombine.low %v9353_v36, %v9354_v44  ;;  %v9482_v59 = vcombine.high %v9353_v36, %v9354_v44  ;;  %v9376_v25 = vadd.f32 %v9248_v16, %v8768_v34  ;;  %v8460_v9 = vrot.slane %v8453_v50, %v16126_v46  ;;  %v16283_v16 = vld [vmem:[#allocation109_spill] sm:$0xff] }
 0x67d   : > { %v9375_v6 = vadd.f32 %v16282_v23, %v8767_v52  ;;  %v7748_v2 = vrot.slane %v6852_v58, %v14426_v0  ;;  %v9238_v19 = vcombine.high %v15153_v56, %v15156_v49  ;;  %v9241_v24 = vcombine.low %v15228_v3, %v15234_v48  ;;  %v10886_v52 = vld [vmem:[%s11161_s15 + $0x1c8] sm:$0xff]  ;;  %v15384_v23 = vpop.permute.xlu1 %9053 }
 0x67e   : > { %9609 = vst [vmem:[%s14499_s19 + $0x120] sm:$0xff] %v9481_v11  ;;  %9610 = vst [vmem:[%s14499_s19 + $0x128] sm:$0xff] %v9482_v59  ;;  %v8468_v17 = vrot.slane %v8461_v38, %v16126_v46  ;;  %v15328_v21 = vmul.f32 %v7727_v13, %v16262_v14  ;;  %v8749_v4 = vadd.f32 %v8460_v9, %v16283_v16  ;;  %v16285_v11 = vld [vmem:[#allocation72_spill] sm:$0xff]  ;;  %v16286_v38 = vld [vmem:[#allocation73_spill] sm:$0xff] }
 0x67f   : > { %v9503_v63 = vcombine.low %v9375_v6, %v9376_v25  ;;  %v9504_v32 = vcombine.high %v9375_v6, %v9376_v25  ;;  %v15332_v58 = vmul.f32 %v7734_v8, %v16264_v31  ;;  %v15336_v39 = vmul.f32 %v7741_v41, %v16267_v53 }
 0x680   : > { %v8750_v36 = vadd.f32 %v8468_v17, %v16284_v43  ;;  %v7475_v18 = vrot.slane %v15280_v1, %v14417_v10  ;;  %v7482_v14 = vrot.slane %v15280_v1, %v14420_v37  ;;  %v9357_v31 = vadd.f32 %v9229_v29, %v8749_v4  ;;  %v10885_v29 = vld [vmem:[%s11161_s15 + $0x1c0] sm:$0xff] }
 0x681   : > { %9631 = vst [vmem:[%s14499_s19 + $0x1d0] sm:$0xff] %v9503_v63  ;;  %9632 = vst [vmem:[%s14499_s19 + $0x1d8] sm:$0xff] %v9504_v32  ;;  %v15348_v35 = vmul.f32 %v7748_v2, %v16268_v33  ;;  %v7489_v53 = vrot.slane %v15280_v1, %v14423_v45  ;;  %v7496_v30 = vrot.slane %v15280_v1, %v14426_v0  ;;  %v16287_v2 = vld [vmem:[#allocation74_spill] sm:$0xff]  ;;  %v6840_v63 = vpop.permute.xlu0 %6839  ;;  %v16288_v32 = vld [vmem:[#allocation121_spill] sm:$0xff] }
 0x682   : > { %v9358_v44 = vadd.f32 %v9230_v27, %v8750_v36  ;;  %v7965_v60 = vmul.f32 %v7475_v18, %v16275_v15  ;;  %v7966_v51 = vmul.f32 %v7482_v14, %v16276_v61  ;;  %v15360_v33 = vmul.f32 %v10885_v29, %v9044_v5  ;;  %v16290_v36 = vld [vmem:[#allocation110_spill] sm:$0xff] }
 0x683   : > { %v7967_v13 = vmul.f32 %v7489_v53, %v16278_v26  ;;  %v7968_v57 = vmul.f32 %v7496_v30, %v16279_v47  ;;  %v15365_v1 = vmul.f32 %v10886_v52, %v9044_v5  ;;  %v7531_v54 = vrot.slane %v15309_v28, %v14417_v10 }
 0x684   : > { %v9485_v62 = vcombine.low %v9357_v31, %v9358_v44  ;;  %v9486_v27 = vcombine.high %v9357_v31, %v9358_v44  ;;  %v8485_v15 = vcombine.low %v7965_v60, %v7966_v51  ;;  %v7538_v61 = vrot.slane %v15309_v28, %v14420_v37  ;;  %v10887_v31 = vld [vmem:[%s11161_s15 + $0x1e0] sm:$0xff] }
 0x685   : > { %v9242_v42 = vcombine.high %v15228_v3, %v15234_v48  ;;  %v8629_v26 = vcombine.low %v15328_v21, %v15332_v58  ;;  %v8493_v34 = vcombine.low %v7967_v13, %v7968_v57  ;;  %v7545_v47 = vrot.slane %v15309_v28, %v14423_v45  ;;  %v16300_v48 = vld [vmem:[#allocation123_spill] sm:$0xff] }
 0x686   : > { %9613 = vst [vmem:[%s14499_s19 + $0x140] sm:$0xff] %v9485_v62  ;;  %9614 = vst [vmem:[%s14499_s19 + $0x148] sm:$0xff] %v9486_v27  ;;  %v8492_v50 = vrot.slane %v8485_v15, %v16126_v46  ;;  %v7552_v8 = vrot.slane %v15309_v28, %v14426_v0  ;;  %v7973_v59 = vmul.f32 %v7531_v54, %v16285_v11  ;;  %v16289_v28 = vld [vmem:[#allocation75_spill] sm:$0xff] }
 0x687   : > { %v7974_v41 = vmul.f32 %v7538_v61, %v16286_v38  ;;  %v8637_v6 = vcombine.low %v15336_v39, %v15348_v35  ;;  %v8500_v25 = vrot.slane %v8493_v34, %v16126_v46  ;;  %v9245_v9 = vcombine.low %v15360_v33, %v15365_v1  ;;  %v16301_v39 = vld [vmem:[#allocation8_spill] sm:$0xff] }
 0x688   : > { %v7975_v17 = vmul.f32 %v7545_v47, %v16287_v2  ;;  %v8753_v16 = vadd.f32 %v8492_v50, %v16288_v32  ;;  %v7976_v4 = vmul.f32 %v7552_v8, %v16289_v28  ;;  %v7587_v43 = vrot.slane %v6832_v7, %v14417_v10 }
 0x689   : > { %v8517_v5 = vcombine.low %v7973_v59, %v7974_v41  ;;  %v8754_v18 = vadd.f32 %v8500_v25, %v16290_v36  ;;  %v9246_v14 = vcombine.high %v15360_v33, %v15365_v1  ;;  %v15400_v53 = vmul.f32 %v10887_v31, %v15384_v23  ;;  %v16296_v36 = vld [vmem:[#allocation115_spill] sm:$0xff]  ;;  %v16297_v31 = vld [vmem:[#allocation85_spill] sm:$0xff] }
 0x68a   : > { %v7594_v30 = vrot.slane %v6832_v7, %v14420_v37  ;;  %v9361_v44 = vadd.f32 %v9233_v55, %v8753_v16  ;;  %v8525_v51 = vcombine.low %v7975_v17, %v7976_v4  ;;  %v7601_v29 = vrot.slane %v6832_v7, %v14423_v45  ;;  %v16291_v55 = vld [vmem:[#allocation129_spill] sm:$0xff]  ;;  %v16294_v16 = vld [vmem:[#allocation83_spill] sm:$0xff] }
 0x68b   : > { %v8524_v60 = vrot.slane %v8517_v5, %v16126_v46  ;;  %v9362_v13 = vadd.f32 %v9234_v12, %v8754_v18  ;;  %v7608_v57 = vrot.slane %v6832_v7, %v14426_v0  ;;  %v7981_v52 = vmul.f32 %v7587_v43, %v16285_v11  ;;  %v6848_v12 = vpop.permute.xlu0 %6847  ;;  %v16292_v7 = vld [vmem:[#allocation133_spill] sm:$0xff]  ;;  %v16303_v33 = vld [vmem:[#allocation127_spill] sm:$0xff] }
 0x68c   : > { %v7982_v54 = vmul.f32 %v7594_v30, %v16286_v38  ;;  %v8532_v62 = vrot.slane %v8525_v51, %v16126_v46  ;;  %v7983_v15 = vmul.f32 %v7601_v29, %v16287_v2  ;;  %v7643_v61 = vrot.slane %v6840_v63, %v14417_v10  ;;  %v16293_v2 = vld [vmem:[#allocation82_spill] sm:$0xff] }
 0x68d   : > { %v8757_v27 = vadd.f32 %v8524_v60, %v16291_v55  ;;  %v9489_v34 = vcombine.low %v9361_v44, %v9362_v13  ;;  %v9490_v47 = vcombine.high %v9361_v44, %v9362_v13  ;;  %v7984_v22 = vmul.f32 %v7608_v57, %v16289_v28  ;;  %v16298_v60 = vld [vmem:[#allocation118_spill] sm:$0xff] }
 0x68e   : > { %v8549_v20 = vcombine.low %v7981_v52, %v7982_v54  ;;  %v8758_v50 = vadd.f32 %v8532_v62, %v16292_v7  ;;  %v7650_v11 = vrot.slane %v6840_v63, %v14420_v37  ;;  %v7657_v59 = vrot.slane %v6840_v63, %v14423_v45  ;;  %v10888_v62 = vld [vmem:[%s11161_s15 + $0x1e8] sm:$0xff] }
 0x68f   : > { %v9365_v8 = vadd.f32 %v9237_v40, %v8757_v27  ;;  %9617 = vst [vmem:[%s14499_s19 + $0x160] sm:$0xff] %v9489_v34  ;;  %9618 = vst [vmem:[%s14499_s19 + $0x168] sm:$0xff] %v9490_v47  ;;  %v8557_v41 = vcombine.low %v7983_v15, %v7984_v22  ;;  %v7664_v25 = vrot.slane %v6840_v63, %v14426_v0  ;;  %v16295_v40 = vld [vmem:[#allocation84_spill] sm:$0xff]  ;;  %v9059_v57 = vpop.permute.xlu0 %9058  ;;  %v16299_v15 = vld [vmem:[#allocation122_spill] sm:$0xff] }
 0x690   : > { %v8556_v38 = vrot.slane %v8549_v20, %v16126_v46  ;;  %v7989_v17 = vmul.f32 %v7643_v61, %v16293_v2  ;;  %v9366_v32 = vadd.f32 %v9238_v19, %v8758_v50  ;;  %v7990_v28 = vmul.f32 %v7650_v11, %v16294_v16 }
 0x691   : > { %v7991_v4 = vmul.f32 %v7657_v59, %v16295_v40  ;;  %v7699_v5 = vrot.slane %v6848_v12, %v14417_v10  ;;  %v8564_v43 = vrot.slane %v8557_v41, %v16126_v46  ;;  %v7992_v63 = vmul.f32 %v7664_v25, %v16297_v31 }
 0x692   : > { %v8761_v18 = vadd.f32 %v8556_v38, %v16296_v36  ;;  %v7706_v30 = vrot.slane %v6848_v12, %v14420_v37  ;;  %v9493_v44 = vcombine.low %v9365_v8, %v9366_v32  ;;  %v9494_v56 = vcombine.high %v9365_v8, %v9366_v32 }
 0x693   : > { %v8581_v49 = vcombine.low %v7989_v17, %v7990_v28  ;;  %v7713_v19 = vrot.slane %v6848_v12, %v14423_v45  ;;  %v8762_v51 = vadd.f32 %v8564_v43, %v16298_v60  ;;  %v8589_v29 = vcombine.low %v7991_v4, %v7992_v63  ;;  %v16304_v17 = vld [vmem:[#allocation126_spill] sm:$0xff] }
 0x694   : > { %v9369_v10 = vadd.f32 %v9241_v24, %v8761_v18  ;;  %v7720_v13 = vrot.slane %v6848_v12, %v14426_v0  ;;  %9621 = vst [vmem:[%s14499_s19 + $0x180] sm:$0xff] %v9493_v44  ;;  %9622 = vst [vmem:[%s14499_s19 + $0x188] sm:$0xff] %v9494_v56  ;;  %v7997_v52 = vmul.f32 %v7699_v5, %v16293_v2 }
 0x695   : > { %v8588_v37 = vrot.slane %v8581_v49, %v16126_v46  ;;  %v7998_v54 = vmul.f32 %v7706_v30, %v16294_v16  ;;  %v7999_v45 = vmul.f32 %v7713_v19, %v16295_v40  ;;  %v9122_v55 = vmul.f32 %v10888_v62, %v15384_v23  ;;  %v10889_v23 = vld [vmem:[%s11161_s15 + $0x1f0] sm:$0xff] }
 0x696   : > { %v9370_v0 = vadd.f32 %v9242_v42, %v8762_v51  ;;  %v8596_v24 = vrot.slane %v8589_v29, %v16126_v46  ;;  %v8000_v27 = vmul.f32 %v7720_v13, %v16297_v31  ;;  %v8636_v47 = vrot.slane %v8629_v26, %v16126_v46  ;;  %v10890_v26 = vld [vmem:[%s11161_s15 + $0x1f8] sm:$0xff]  ;;  %s9966_s15 = sshll.u32 %s11072_s28, 13  ;;  %s9638_s28 = scalar_lea.sflag [#allocation4], %s11155_s16 }
 0x697   : > { %v8765_v61 = vadd.f32 %v8588_v37, %v16299_v15  ;;  %v8613_v34 = vcombine.low %v7997_v52, %v7998_v54  ;;  %v9123_v22 = vmul.f32 %v10889_v23, %v9059_v57  ;;  %v8644_v8 = vrot.slane %v8637_v6, %v16126_v46  ;;  %v16302_v6 = vld [vmem:[#allocation145_spill] sm:$0xff]  ;;  %s15494_s21 = scalar_lea.hbm %s15551_s7, %s9966_s15 }
 0x698   : > { %v9497_v20 = vcombine.low %v9369_v10, %v9370_v0  ;;  %v9498_v3 = vcombine.high %v9369_v10, %v9370_v0  ;;  %v8766_v42 = vadd.f32 %v8596_v24, %v16300_v48  ;;  %v8621_v12 = vcombine.low %v7999_v45, %v8000_v27 }
 0x699   : > { %v9373_v7 = vadd.f32 %v9245_v9, %v8765_v61  ;;  %v8620_v50 = vrot.slane %v8613_v34, %v16126_v46  ;;  %v9124_v9 = vmul.f32 %v10890_v26, %v9059_v57  ;;  %v9249_v11 = vcombine.low %v15400_v53, %v9122_v55 }
 0x69a   : > { %9625 = vst [vmem:[%s14499_s19 + $0x1a0] sm:$0xff] %v9497_v20  ;;  %9626 = vst [vmem:[%s14499_s19 + $0x1a8] sm:$0xff] %v9498_v3  ;;  %v9374_v21 = vadd.f32 %v9246_v14, %v8766_v42  ;;  %v8628_v58 = vrot.slane %v8621_v12, %v16126_v46  ;;  %v9250_v59 = vcombine.high %v15400_v53, %v9122_v55 }
 0x69b   : > { %v8769_v35 = vadd.f32 %v8620_v50, %v16301_v39  ;;  %v8771_v38 = vadd.f32 %v8636_v47, %v16302_v6  ;;  %v9251_v14 = vcombine.low %v9123_v22, %v9124_v9  ;;  %v8772_v46 = vadd.f32 %v8644_v8, %v16304_v17 }
 0x69c   : > { %v9501_v41 = vcombine.low %v9373_v7, %v9374_v21  ;;  %v9502_v25 = vcombine.high %v9373_v7, %v9374_v21  ;;  %v8770_v1 = vadd.f32 %v8628_v58, %v16303_v33  ;;  %v9252_v32 = vcombine.high %v9123_v22, %v9124_v9 }
 0x69d   : > { %v9377_v2 = vadd.f32 %v9249_v11, %v8769_v35  ;;  %v9379_v16 = vadd.f32 %v9251_v14, %v8771_v38 }
 0x69e   : > { %9629 = vst [vmem:[%s14499_s19 + $0x1c0] sm:$0xff] %v9501_v41  ;;  %9630 = vst [vmem:[%s14499_s19 + $0x1c8] sm:$0xff] %v9502_v25  ;;  %v9378_v53 = vadd.f32 %v9250_v59, %v8770_v1  ;;  %v9380_v28 = vadd.f32 %v9252_v32, %v8772_v46 }
 0x6a0   : > { %v9505_v40 = vcombine.low %v9377_v2, %v9378_v53  ;;  %v9506_v4 = vcombine.high %v9377_v2, %v9378_v53  ;;  %v9507_v5 = vcombine.low %v9379_v16, %v9380_v28  ;;  %v9508_v43 = vcombine.high %v9379_v16, %v9380_v28 }
 0x6a2   : > { %9633 = vst [vmem:[%s14499_s19 + $0x1e0] sm:$0xff] %v9505_v40  ;;  %9634 = vst [vmem:[%s14499_s19 + $0x1e8] sm:$0xff] %v9506_v4 }
 0x6a3   : > { %9635 = vst [vmem:[%s14499_s19 + $0x1f0] sm:$0xff] %v9507_v5  ;;  %9636 = vst [vmem:[%s14499_s19 + $0x1f8] sm:$0xff] %v9508_v43 }
 0x6a4   : > { %10934 = shalt.err (!%p10931_p5)
}
 0x6a5   : > { %s10935_s18 = scalar_lea.hbm %s15494_s21, 8192  ;;  %s10939_s19 = scalar_lea.hbm %s15551_s7, 16384 }
 0x6a6   : > { %p10936_p7 = scmp.ne.s32.totalorder %s15494_s21, %s10935_s18  ;;  %p10940_p3 = scmp.lt.u32.totalorder %s15494_s21, %s15551_s7 }
 0x6a7   : > { %p10941_p6 = scmp.lt.u32.totalorder %s10939_s19, %s10935_s18  ;;  %p10943_p12 = scmp.lt.u32.totalorder %s10935_s18, %s15494_s21 }
 0x6a8   : > { %p10937_p9 = pnand %p10936_p7, %p16305_p13 }
 0x6a9   : > { %p10942_p11 = por %p10941_p6, %p10940_p3 }
 0x6aa   : > { %p10938_p1 = pneg %p10937_p9 }
 0x6ab   : > { %p10944_p8 = por %p10943_p12, %p10942_p11 }
 0x6ad   : > { %p10945_p10 = pnand %p10944_p8, %p10938_p1 }
 0x6af   : > { %10948 = shalt.err (!%p10945_p10)
}
 0x6b0   : > { %s11009_s20 = smov 256   ;;  %s11010_s17 = smov 16  }
 0x6b1   : > { %10449 = dma.vmem_to_hbm [thread:$0]  (%p16305_p13), %s15496_s11, 8192, %s15494_s21, %s9638_s28, %s11009_s20, %s11009_s20, %s11010_s17  }
 0x6b2 PF: > { %s9667_s8 = sand.u32 1, %s10975_s24   ;;  %p16306_p0 = scmp.ne.s32.totalorder %s15819_s14, 0 }
 0x6b3   : > { %p16307_p2 = scmp.ge.s32.totalorder %s10987_s27, 2  ;;  %s9668_s29 = scalar_lea.sflag [#allocation4], %s9667_s8 }
 0x6b5   : > { %p10456_p4 = pnand %p16307_p2, %p16306_p0 }
 0x6b7   : > { %10970 = dma.done.wait (!%p10456_p4), %s9668_s29, 8192  }
 0x6b8   : > { %10972 = vsyncadd (!%p10456_p4), %s9668_s29, 4294959104  ;;  %p20_p5 = scmp.ge.s32.totalorder %s11076_s30, 4   ;;  %s16308_s24 = smov %s10979_s25 }
 0x6b9   : > { %s16309_s25 = smov %s10983_s26  ;;  %s16310_s26 = smov %s11088_s10 }
 0x6ba   : > { %s16311_s27 = smov %s11076_s30  ;;  %22 = sbr.rel (!%p20_p5) target bundleno = 5 (0x5), region = 105 }
 0x6c1   :  { %9673 = vsyncpa [#allocation3], 1 }
 0x6c2   :  { %9675 = vsyncpa [#allocation3 + $0x1], 1 }
 0x6c3   :  { %9676 = vsyncpa [#allocation4], 1 }
 0x6c4   :  { %9678 = vsyncpa [#allocation4 + $0x1], 1 }

</bundles_post_ra>
